<compile_context>
chip_gen: v7x
topology: tpu7x:2x2x1
jax: 0.10.0
libtpu: 0.0.40
codegen_flags: <defaults>
</compile_context>

<pallas_src>
import jax
import jax.numpy as jnp
from jax.experimental import pallas as pl
from jax.experimental.pallas import tpu as pltpu

_VMEM = pl.BlockSpec(memory_space=pltpu.MemorySpace.VMEM)


# ----------------------------- kernel helpers ------------------------------ #

def _maxpool2_into_pad(src_ref, dst_pad_ref):
    """2x2 max-pool (stride 2) of src_ref (n, 2ho, 2wo, c), written into the
    interior of a zero-initialised padded scratch (n, ho+2, wo+2, c) so the
    following conv can read 'same'-padded 3x3 windows with no jnp.pad."""
    n, h2, w2, c = src_ref.shape
    ho, wo = h2 // 2, w2 // 2
    # Pool along W (sublane axis) with strided ref loads.
    even = src_ref[:, :, pl.ds(0, wo, stride=2), :]
    odd = src_ref[:, :, pl.ds(1, wo, stride=2), :]
    y = jnp.maximum(even, odd)                       # (n, 2*ho, wo, c)
    # Pool along H (major axis): layout-free split + reduce.
    y = y.reshape(n, ho, 2, wo, c)
    dst_pad_ref[:, 1:1 + ho, 1:1 + wo, :] = jnp.max(y, axis=2)


def _conv3x3_relu(pad_ref, w_ref, b_ref, h, w):
    """3x3 conv (stride 1, 'same' padding via the padded scratch) + bias + ReLU.

    pad_ref: (n, h+2, w+2, cin) f32; w_ref: (9*cin, cout) bf16 in im2col layout
    (row = (dh*3+dw)*cin + ci); b_ref: (1, cout) f32.
    Returns the activation as an (n*h*w, cout) f32 value (rows ordered
    (batch, hi, wi)) — a single bf16 MXU matmul per conv.
    """
    n = pad_ref.shape[0]
    cin = pad_ref.shape[3]
    taps = [pad_ref[:, dh:dh + h, dw:dw + w, :]
            for dh in range(3) for dw in range(3)]
    patches = jnp.concatenate(taps, axis=-1)                 # (n, h, w, 9*cin)
    patches = patches.reshape(n * h * w, 9 * cin).astype(jnp.bfloat16)
    acc = jnp.dot(patches, w_ref[...], preferred_element_type=jnp.float32)
    return jnp.maximum(acc + b_ref[...], 0.0)


# ----------------------------- fused kernel -------------------------------- #

def _fused_policy_kernel(
        # inputs
        x_ref, extras_ref,
        wc1_ref, bc1_ref, wc2_ref, bc2_ref, wc3_ref, bc3_ref,
        wc4_ref, bc4_ref, wc5_ref, bc5_ref,
        w1f_ref, w1e_ref, b1_ref, w2_ref, b2_ref, wcrit_ref, bcrit_ref, emb_ref,
        # outputs
        actor_ref, value_ref,
        # scratch
        pad0, buf1, pad1, buf2, pad2, buf3, pad3, pad4, buf5):
    n, h0, w0, _ = x_ref.shape
    h1s, w1s = h0 // 2, w0 // 2
    h2s, w2s = h1s // 2, w1s // 2
    h3s, w3s = h2s // 2, w2s // 2
    h4s, w4s = h3s // 2, w3s // 2
    out_size = h4s * w4s

    # Zero the padded scratch buffers (provides the 1-pixel zero border for all
    # 'same' convs; replaces 5 jnp.pad ops + their HBM round trips).  These
    # buffers are tiny (<40 KiB each), so a full clear is a handful of vst.
    for p in (pad0, pad1, pad2, pad3, pad4):
        p[...] = jnp.zeros(p.shape, p.dtype)

    # ---- main: [MaxPool2d(2) -> Conv3x3 -> ReLU] x 4 ---------------------- #
    _maxpool2_into_pad(x_ref, pad0)
    buf1[...] = _conv3x3_relu(pad0, wc1_ref, bc1_ref, h1s, w1s).reshape(
        n, h1s, w1s, 32)

    _maxpool2_into_pad(buf1, pad1)
    buf2[...] = _conv3x3_relu(pad1, wc2_ref, bc2_ref, h2s, w2s).reshape(
        n, h2s, w2s, 64)

    _maxpool2_into_pad(buf2, pad2)
    buf3[...] = _conv3x3_relu(pad2, wc3_ref, bc3_ref, h3s, w3s).reshape(
        n, h3s, w3s, 128)

    _maxpool2_into_pad(buf3, pad3)
    pad4[:, 1:1 + h4s, 1:1 + w4s, :] = _conv3x3_relu(
        pad3, wc4_ref, bc4_ref, h4s, w4s).reshape(n, h4s, w4s, 64)

    # ---- Conv3x3(64->32) + ReLU; output kept as (n*out_size, 32) ----------- #
    buf5[...] = _conv3x3_relu(pad4, wc5_ref, bc5_ref, h4s, w4s)

    # ---- head -------------------------------------------------------------- #
    # Orientation embedding: Embedding(72, 8)(extras) as a one-hot matmul
    # (in-kernel gather; no XLA take / concat).
    ids = extras_ref[...]                                       # (n, 1) int32
    iota = jax.lax.broadcasted_iota(jnp.int32, (n, emb_ref.shape[0]), 1)
    onehot = (iota == ids).astype(jnp.float32)                  # (n, 72)
    emb_sel = jnp.dot(onehot, emb_ref[...],
                      preferred_element_type=jnp.float32)       # (n, 8)

    # linear1 without materializing the flattened feature vector:
    #   flat[i, k*32 + c] == buf5[i*out_size + k, c]  (NHWC flatten order;
    #   w1f rows are stored in that order at init).  Each k is one bf16 MXU
    #   matmul against a zero-cost static slice of w1f.
    h1_acc = jnp.dot(emb_sel.astype(jnp.bfloat16), w1e_ref[...],
                     preferred_element_type=jnp.float32)        # (n, 512)
    for k in range(out_size):
        yk = buf5[pl.ds(k, n, stride=out_size), :].astype(jnp.bfloat16)  # (n, 32)
        h1_acc = h1_acc + jnp.dot(yk, w1f_ref[k * 32:(k + 1) * 32, :],
                                  preferred_element_type=jnp.float32)
    h1 = jnp.maximum(h1_acc + b1_ref[...], 0.0)                 # (n, 512)

    h2 = jnp.dot(h1.astype(jnp.bfloat16), w2_ref[...],
                 preferred_element_type=jnp.float32) + b2_ref[...]
    h2 = jnp.maximum(h2, 0.0)                                   # (n, 256)

    actor_ref[...] = h2.astype(actor_ref.dtype)
    # critic_linear(256 -> 1): lane reduction on the VPU/XLU instead of a
    # 1-column MXU matmul.
    value_ref[...] = (jnp.sum(h2 * wcrit_ref[...], axis=-1, keepdims=True)
                      + bcrit_ref[...]).astype(value_ref.dtype)


# ----------------------------- wrapper -------------------------------------- #

def _policy_fused(x_nhwc, extras, p):
    n, h0, w0, c0 = x_nhwc.shape
    assert c0 == 8 and h0 % 16 == 0 and w0 % 16 == 0
    h1s, w1s = h0 // 2, w0 // 2
    h2s, w2s = h1s // 2, w1s // 2
    h3s, w3s = h2s // 2, w2s // 2
    h4s, w4s = h3s // 2, w3s // 2
    out_size = h4s * w4s
    f32 = jnp.float32
    scratch = [
        pltpu.VMEM((n, h1s + 2, w1s + 2, 8), f32),     # pad0  (pool1 out, padded)
        pltpu.VMEM((n, h1s, w1s, 32), f32),            # buf1  (conv1 out)
        pltpu.VMEM((n, h2s + 2, w2s + 2, 32), f32),    # pad1
        pltpu.VMEM((n, h2s, w2s, 64), f32),            # buf2
        pltpu.VMEM((n, h3s + 2, w3s + 2, 64), f32),    # pad2
        pltpu.VMEM((n, h3s, w3s, 128), f32),           # buf3
        pltpu.VMEM((n, h4s + 2, w4s + 2, 128), f32),   # pad3
        pltpu.VMEM((n, h4s + 2, w4s + 2, 64), f32),    # pad4  (conv4 out, padded)
        pltpu.VMEM((n * out_size, 32), f32),           # buf5  (conv5 out, 2-D)
    ]
    # TODO(synk): when batching many envs, add a grid over N with
    # dimension_semantics=("parallel",) (2 TensorCores on v7x) and explicit
    # vmem_limit_bytes; at N=2 a single gridless invocation is optimal.
    actor, value = pl.pallas_call(
        _fused_policy_kernel,
        out_shape=(jax.ShapeDtypeStruct((n, 256), f32),
                   jax.ShapeDtypeStruct((n, 1), f32)),
        in_specs=[_VMEM] * 20,
        out_specs=(_VMEM, _VMEM),
        scratch_shapes=scratch,
    )(x_nhwc, extras,
      p["wc1"], p["bc1"], p["wc2"], p["bc2"], p["wc3"], p["bc3"],
      p["wc4"], p["bc4"], p["wc5"], p["bc5"],
      p["w1f"], p["w1e"], p["b1"], p["w2"], p["b2"],
      p["wcrit"], p["bcrit"], p["emb"])
    return actor, value


# ----------------------------- parameters ----------------------------------- #

def init_params(key, input_shape, hidden_size=512):
    """Synthetic parameters matching Global_Policy.__init__ shapes, stored in the
    kernel-friendly layouts described at the top of this file."""
    c_in, h, w = input_shape
    assert c_in == 8
    out_size = (h // 16) * (w // 16)
    conv_dims = [(8, 32), (32, 64), (64, 128), (128, 64), (64, 32)]
    keys = iter(jax.random.split(key, 20))
    p = {}
    for i, (ci, co) in enumerate(conv_dims, start=1):
        std = 1.0 / jnp.sqrt(ci * 9.0)
        w_hwio = jax.random.normal(next(keys), (3, 3, ci, co), jnp.float32) * std
        # im2col row order = (dh*3 + dw)*cin + ci, matching the tap-concat
        # order inside the kernel.  (Real PyTorch weight (cout,cin,3,3) ->
        # transpose(2,3,1,0).reshape(9*cin, cout).)
        p[f"wc{i}"] = w_hwio.reshape(9 * ci, co).astype(jnp.bfloat16)
        p[f"bc{i}"] = jax.random.normal(next(keys), (1, co), jnp.float32) * 0.01
    in1 = out_size * 32 + 8
    w1 = jax.random.normal(next(keys), (in1, hidden_size),
                           jnp.float32) / jnp.sqrt(float(in1))
    # Rows 0 .. out_size*32-1 are in NHWC-flatten order (spatial-major,
    # channel-minor); the last 8 rows are the orientation-embedding block.
    p["w1f"] = w1[:out_size * 32].astype(jnp.bfloat16)
    p["w1e"] = w1[out_size * 32:].astype(jnp.bfloat16)
    p["b1"] = jnp.zeros((1, hidden_size), jnp.float32)
    p["w2"] = (jax.random.normal(next(keys), (hidden_size, 256), jnp.float32)
               / jnp.sqrt(float(hidden_size))).astype(jnp.bfloat16)
    p["b2"] = jnp.zeros((1, 256), jnp.float32)
    p["wcrit"] = jax.random.normal(next(keys), (1, 256), jnp.float32) / 16.0
    p["bcrit"] = jnp.zeros((1, 1), jnp.float32)
    p["emb"] = jax.random.normal(next(keys), (72, 8), jnp.float32)   # Embedding(72, 8)
    return p


# ----------------------------- forward --------------------------------------- #

@jax.jit
def rl_policy_forward(params, inputs_nchw, rnn_hxs, masks, extras):
    """Returns (value (N,), actor_features (N,256), rnn_hxs) like Global_Policy.forward."""
    del masks  # non-recurrent Global_Policy: masks unused, rnn_hxs passed through
    x = jnp.transpose(inputs_nchw, (0, 2, 3, 1))        # NCHW -> NHWC (boundary glue)
    actor, value = _policy_fused(x, extras, params)
    return value[:, 0], actor, rnn_hxs


# ----------------------------- main ------------------------------------------ #

if __name__ == "__main__":
    N, C, H, W = 2, 8, 32, 32                     # H, W must be multiples of 16
    key = jax.random.PRNGKey(0)
    k_in, k_ex = jax.random.split(key)
    inputs = jax.random.normal(k_in, (N, C, H, W), jnp.float32)   # NCHW (PyTorch)
    extras = jax.random.randint(k_ex, (N, 1), 0, 72, jnp.int32)   # orientation ids
    rnn_hxs = jnp.zeros((N, 512), jnp.float32)                    # unused (non-recurrent)
    masks = jnp.ones((N, 1), jnp.float32)

    params = init_params(jax.random.PRNGKey(42), (C, H, W), hidden_size=512)

    value, actor, out_hxs = rl_policy_forward(params, inputs, rnn_hxs, masks, extras)
    jax.block_until_ready((value, actor, out_hxs))

    assert value.shape == (N,)
    assert actor.shape == (N, 256)
    assert out_hxs.shape == rnn_hxs.shape
    print("KERNEL_OK")
</pallas_src>

<mosaic_0001>
module attributes {stable_mosaic.version = 11 : i64} {
  func.func @_fused_policy_kernel(%arg0: memref<2x32x32x8xf32, #tpu.memory_space<vmem>>, %arg1: memref<2x1xi32, #tpu.memory_space<vmem>>, %arg2: memref<72x32xbf16, #tpu.memory_space<vmem>>, %arg3: memref<1x32xf32, #tpu.memory_space<vmem>>, %arg4: memref<288x64xbf16, #tpu.memory_space<vmem>>, %arg5: memref<1x64xf32, #tpu.memory_space<vmem>>, %arg6: memref<576x128xbf16, #tpu.memory_space<vmem>>, %arg7: memref<1x128xf32, #tpu.memory_space<vmem>>, %arg8: memref<1152x64xbf16, #tpu.memory_space<vmem>>, %arg9: memref<1x64xf32, #tpu.memory_space<vmem>>, %arg10: memref<576x32xbf16, #tpu.memory_space<vmem>>, %arg11: memref<1x32xf32, #tpu.memory_space<vmem>>, %arg12: memref<128x512xbf16, #tpu.memory_space<vmem>>, %arg13: memref<8x512xbf16, #tpu.memory_space<vmem>>, %arg14: memref<1x512xf32, #tpu.memory_space<vmem>>, %arg15: memref<512x256xbf16, #tpu.memory_space<vmem>>, %arg16: memref<1x256xf32, #tpu.memory_space<vmem>>, %arg17: memref<1x256xf32, #tpu.memory_space<vmem>>, %arg18: memref<1x1xf32, #tpu.memory_space<vmem>>, %arg19: memref<72x8xf32, #tpu.memory_space<vmem>>, %arg20: memref<2x256xf32, #tpu.memory_space<vmem>>, %arg21: memref<2x1xf32, #tpu.memory_space<vmem>>, %arg22: memref<2x18x18x8xf32, #tpu.memory_space<vmem>>, %arg23: memref<2x16x16x32xf32, #tpu.memory_space<vmem>>, %arg24: memref<2x10x10x32xf32, #tpu.memory_space<vmem>>, %arg25: memref<2x8x8x64xf32, #tpu.memory_space<vmem>>, %arg26: memref<2x6x6x64xf32, #tpu.memory_space<vmem>>, %arg27: memref<2x4x4x128xf32, #tpu.memory_space<vmem>>, %arg28: memref<2x4x4x128xf32, #tpu.memory_space<vmem>>, %arg29: memref<2x4x4x64xf32, #tpu.memory_space<vmem>>, %arg30: memref<8x32xf32, #tpu.memory_space<vmem>>) attributes {dimension_semantics = [], scalar_prefetch = 0 : i64, scratch_operands = 9 : i64, tpu.core_type = #tpu.core_type<tc>} {
    %cst = arith.constant 0.000000e+00 : f32
    %0 = vector.broadcast %cst : f32 to vector<2x18x18x8xf32>
    %c0 = arith.constant 0 : index
    %c0_0 = arith.constant 0 : index
    %c0_1 = arith.constant 0 : index
    %c0_2 = arith.constant 0 : index
    %1 = vector.load %arg22[%c0, %c0_0, %c0_1, %c0_2] : memref<2x18x18x8xf32, #tpu.memory_space<vmem>>, vector<2x18x18x8xf32>
    tpu.vector_store %arg22[%c0, %c0_0, %c0_1, %c0_2], %0 {strides = array<i32>} : memref<2x18x18x8xf32, #tpu.memory_space<vmem>>, vector<2x18x18x8xf32>,
    %cst_3 = arith.constant 0.000000e+00 : f32
    %2 = vector.broadcast %cst_3 : f32 to vector<2x10x10x32xf32>
    %c0_4 = arith.constant 0 : index
    %c0_5 = arith.constant 0 : index
    %c0_6 = arith.constant 0 : index
    %c0_7 = arith.constant 0 : index
    %3 = vector.load %arg24[%c0_4, %c0_5, %c0_6, %c0_7] : memref<2x10x10x32xf32, #tpu.memory_space<vmem>>, vector<2x10x10x32xf32>
    tpu.vector_store %arg24[%c0_4, %c0_5, %c0_6, %c0_7], %2 {strides = array<i32>} : memref<2x10x10x32xf32, #tpu.memory_space<vmem>>, vector<2x10x10x32xf32>,
    %cst_8 = arith.constant 0.000000e+00 : f32
    %4 = vector.broadcast %cst_8 : f32 to vector<2x6x6x64xf32>
    %c0_9 = arith.constant 0 : index
    %c0_10 = arith.constant 0 : index
    %c0_11 = arith.constant 0 : index
    %c0_12 = arith.constant 0 : index
    %5 = vector.load %arg26[%c0_9, %c0_10, %c0_11, %c0_12] : memref<2x6x6x64xf32, #tpu.memory_space<vmem>>, vector<2x6x6x64xf32>
    tpu.vector_store %arg26[%c0_9, %c0_10, %c0_11, %c0_12], %4 {strides = array<i32>} : memref<2x6x6x64xf32, #tpu.memory_space<vmem>>, vector<2x6x6x64xf32>,
    %cst_13 = arith.constant 0.000000e+00 : f32
    %6 = vector.broadcast %cst_13 : f32 to vector<2x4x4x128xf32>
    %c0_14 = arith.constant 0 : index
    %c0_15 = arith.constant 0 : index
    %c0_16 = arith.constant 0 : index
    %c0_17 = arith.constant 0 : index
    %7 = vector.load %arg28[%c0_14, %c0_15, %c0_16, %c0_17] : memref<2x4x4x128xf32, #tpu.memory_space<vmem>>, vector<2x4x4x128xf32>
    tpu.vector_store %arg28[%c0_14, %c0_15, %c0_16, %c0_17], %6 {strides = array<i32>} : memref<2x4x4x128xf32, #tpu.memory_space<vmem>>, vector<2x4x4x128xf32>,
    %cst_18 = arith.constant 0.000000e+00 : f32
    %8 = vector.broadcast %cst_18 : f32 to vector<2x4x4x64xf32>
    %c0_19 = arith.constant 0 : index
    %c0_20 = arith.constant 0 : index
    %c0_21 = arith.constant 0 : index
    %c0_22 = arith.constant 0 : index
    %9 = vector.load %arg29[%c0_19, %c0_20, %c0_21, %c0_22] : memref<2x4x4x64xf32, #tpu.memory_space<vmem>>, vector<2x4x4x64xf32>
    tpu.vector_store %arg29[%c0_19, %c0_20, %c0_21, %c0_22], %8 {strides = array<i32>} : memref<2x4x4x64xf32, #tpu.memory_space<vmem>>, vector<2x4x4x64xf32>,
    %c0_23 = arith.constant 0 : index
    %c0_24 = arith.constant 0 : index
    %c0_25 = arith.constant 0 : index
    %c0_26 = arith.constant 0 : index
    %10 = tpu.strided_load %arg0[%c0_23, %c0_24, %c0_25, %c0_26] {strides = array<i32: 1, 1, 2, 1>} : memref<2x32x32x8xf32, #tpu.memory_space<vmem>>, vector<2x32x16x8xf32>
    %c0_27 = arith.constant 0 : index
    %c0_28 = arith.constant 0 : index
    %c1 = arith.constant 1 : index
    %c0_29 = arith.constant 0 : index
    %11 = tpu.strided_load %arg0[%c0_27, %c0_28, %c1, %c0_29] {strides = array<i32: 1, 1, 2, 1>} : memref<2x32x32x8xf32, #tpu.memory_space<vmem>>, vector<2x32x16x8xf32>
    %12 = arith.maximumf %10, %11 : vector<2x32x16x8xf32>
    %13 = vector.shape_cast %12 : vector<2x32x16x8xf32> to vector<2x16x2x16x8xf32>
    %cst_30 = arith.constant dense<0xFF800000> : vector<2x16x16x8xf32>
    %14 = vector.multi_reduction <maximumf>, %13, %cst_30 [2] : vector<2x16x2x16x8xf32> to vector<2x16x16x8xf32>
    %c0_31 = arith.constant 0 : index
    %c1_32 = arith.constant 1 : index
    %c1_33 = arith.constant 1 : index
    %c0_34 = arith.constant 0 : index
    %15 = vector.load %arg22[%c0_31, %c1_32, %c1_33, %c0_34] : memref<2x18x18x8xf32, #tpu.memory_space<vmem>>, vector<2x16x16x8xf32>
    tpu.vector_store %arg22[%c0_31, %c1_32, %c1_33, %c0_34], %14 {strides = array<i32>} : memref<2x18x18x8xf32, #tpu.memory_space<vmem>>, vector<2x16x16x8xf32>,
    %c0_35 = arith.constant 0 : index
    %c0_36 = arith.constant 0 : index
    %c0_37 = arith.constant 0 : index
    %c0_38 = arith.constant 0 : index
    %16 = vector.load %arg22[%c0_35, %c0_36, %c0_37, %c0_38] : memref<2x18x18x8xf32, #tpu.memory_space<vmem>>, vector<2x16x16x8xf32>
    %c0_39 = arith.constant 0 : index
    %c0_40 = arith.constant 0 : index
    %c1_41 = arith.constant 1 : index
    %c0_42 = arith.constant 0 : index
    %17 = vector.load %arg22[%c0_39, %c0_40, %c1_41, %c0_42] : memref<2x18x18x8xf32, #tpu.memory_space<vmem>>, vector<2x16x16x8xf32>
    %c0_43 = arith.constant 0 : index
    %c0_44 = arith.constant 0 : index
    %c2 = arith.constant 2 : index
    %c0_45 = arith.constant 0 : index
    %18 = vector.load %arg22[%c0_43, %c0_44, %c2, %c0_45] : memref<2x18x18x8xf32, #tpu.memory_space<vmem>>, vector<2x16x16x8xf32>
    %c0_46 = arith.constant 0 : index
    %c1_47 = arith.constant 1 : index
    %c0_48 = arith.constant 0 : index
    %c0_49 = arith.constant 0 : index
    %19 = vector.load %arg22[%c0_46, %c1_47, %c0_48, %c0_49] : memref<2x18x18x8xf32, #tpu.memory_space<vmem>>, vector<2x16x16x8xf32>
    %c0_50 = arith.constant 0 : index
    %c1_51 = arith.constant 1 : index
    %c1_52 = arith.constant 1 : index
    %c0_53 = arith.constant 0 : index
    %20 = vector.load %arg22[%c0_50, %c1_51, %c1_52, %c0_53] : memref<2x18x18x8xf32, #tpu.memory_space<vmem>>, vector<2x16x16x8xf32>
    %c0_54 = arith.constant 0 : index
    %c1_55 = arith.constant 1 : index
    %c2_56 = arith.constant 2 : index
    %c0_57 = arith.constant 0 : index
    %21 = vector.load %arg22[%c0_54, %c1_55, %c2_56, %c0_57] : memref<2x18x18x8xf32, #tpu.memory_space<vmem>>, vector<2x16x16x8xf32>
    %c0_58 = arith.constant 0 : index
    %c2_59 = arith.constant 2 : index
    %c0_60 = arith.constant 0 : index
    %c0_61 = arith.constant 0 : index
    %22 = vector.load %arg22[%c0_58, %c2_59, %c0_60, %c0_61] : memref<2x18x18x8xf32, #tpu.memory_space<vmem>>, vector<2x16x16x8xf32>
    %c0_62 = arith.constant 0 : index
    %c2_63 = arith.constant 2 : index
    %c1_64 = arith.constant 1 : index
    %c0_65 = arith.constant 0 : index
    %23 = vector.load %arg22[%c0_62, %c2_63, %c1_64, %c0_65] : memref<2x18x18x8xf32, #tpu.memory_space<vmem>>, vector<2x16x16x8xf32>
    %c0_66 = arith.constant 0 : index
    %c2_67 = arith.constant 2 : index
    %c2_68 = arith.constant 2 : index
    %c0_69 = arith.constant 0 : index
    %24 = vector.load %arg22[%c0_66, %c2_67, %c2_68, %c0_69] : memref<2x18x18x8xf32, #tpu.memory_space<vmem>>, vector<2x16x16x8xf32>
    %25 = tpu.concatenate %16, %17, %18, %19, %20, %21, %22, %23, %24 in 3 : vector<2x16x16x8xf32>, vector<2x16x16x8xf32>, vector<2x16x16x8xf32>, vector<2x16x16x8xf32>, vector<2x16x16x8xf32>, vector<2x16x16x8xf32>, vector<2x16x16x8xf32>, vector<2x16x16x8xf32>, vector<2x16x16x8xf32> -> vector<2x16x16x72xf32>
    %26 = vector.shape_cast %25 : vector<2x16x16x72xf32> to vector<512x72xf32>
    %27 = arith.truncf %26 : vector<512x72xf32> to vector<512x72xbf16>
    %c0_70 = arith.constant 0 : index
    %c0_71 = arith.constant 0 : index
    %28 = vector.load %arg2[%c0_70, %c0_71] : memref<72x32xbf16, #tpu.memory_space<vmem>>, vector<72x32xbf16>
    %cst_72 = arith.constant dense<0.000000e+00> : vector<512x32xf32>
    %29 = tpu.matmul %27, %28, %cst_72 {dimension_numbers = #tpu.dot_dimension_numbers<[1], [0], [0], [1], [0, 0, 1, 1], [], []>} : vector<512x72xbf16>, vector<72x32xbf16>, vector<512x32xf32> -> vector<512x32xf32>
    %c0_73 = arith.constant 0 : index
    %c0_74 = arith.constant 0 : index
    %30 = vector.load %arg3[%c0_73, %c0_74] : memref<1x32xf32, #tpu.memory_space<vmem>>, vector<1x32xf32>
    %31 = vector.broadcast %30 : vector<1x32xf32> to vector<512x32xf32>
    %32 = arith.addf %29, %31 : vector<512x32xf32>
    %cst_75 = arith.constant 0.000000e+00 : f32
    %33 = vector.broadcast %cst_75 : f32 to vector<512x32xf32>
    %34 = arith.maximumf %32, %33 : vector<512x32xf32>
    %35 = vector.shape_cast %34 : vector<512x32xf32> to vector<2x16x16x32xf32>
    %c0_76 = arith.constant 0 : index
    %c0_77 = arith.constant 0 : index
    %c0_78 = arith.constant 0 : index
    %c0_79 = arith.constant 0 : index
    %36 = vector.load %arg23[%c0_76, %c0_77, %c0_78, %c0_79] : memref<2x16x16x32xf32, #tpu.memory_space<vmem>>, vector<2x16x16x32xf32>
    tpu.vector_store %arg23[%c0_76, %c0_77, %c0_78, %c0_79], %35 {strides = array<i32>} : memref<2x16x16x32xf32, #tpu.memory_space<vmem>>, vector<2x16x16x32xf32>,
    %c0_80 = arith.constant 0 : index
    %c0_81 = arith.constant 0 : index
    %c0_82 = arith.constant 0 : index
    %c0_83 = arith.constant 0 : index
    %37 = tpu.strided_load %arg23[%c0_80, %c0_81, %c0_82, %c0_83] {strides = array<i32: 1, 1, 2, 1>} : memref<2x16x16x32xf32, #tpu.memory_space<vmem>>, vector<2x16x8x32xf32>
    %c0_84 = arith.constant 0 : index
    %c0_85 = arith.constant 0 : index
    %c1_86 = arith.constant 1 : index
    %c0_87 = arith.constant 0 : index
    %38 = tpu.strided_load %arg23[%c0_84, %c0_85, %c1_86, %c0_87] {strides = array<i32: 1, 1, 2, 1>} : memref<2x16x16x32xf32, #tpu.memory_space<vmem>>, vector<2x16x8x32xf32>
    %39 = arith.maximumf %37, %38 : vector<2x16x8x32xf32>
    %40 = vector.shape_cast %39 : vector<2x16x8x32xf32> to vector<2x8x2x8x32xf32>
    %cst_88 = arith.constant dense<0xFF800000> : vector<2x8x8x32xf32>
    %41 = vector.multi_reduction <maximumf>, %40, %cst_88 [2] : vector<2x8x2x8x32xf32> to vector<2x8x8x32xf32>
    %c0_89 = arith.constant 0 : index
    %c1_90 = arith.constant 1 : index
    %c1_91 = arith.constant 1 : index
    %c0_92 = arith.constant 0 : index
    %42 = vector.load %arg24[%c0_89, %c1_90, %c1_91, %c0_92] : memref<2x10x10x32xf32, #tpu.memory_space<vmem>>, vector<2x8x8x32xf32>
    tpu.vector_store %arg24[%c0_89, %c1_90, %c1_91, %c0_92], %41 {strides = array<i32>} : memref<2x10x10x32xf32, #tpu.memory_space<vmem>>, vector<2x8x8x32xf32>,
    %c0_93 = arith.constant 0 : index
    %c0_94 = arith.constant 0 : index
    %c0_95 = arith.constant 0 : index
    %c0_96 = arith.constant 0 : index
    %43 = vector.load %arg24[%c0_93, %c0_94, %c0_95, %c0_96] : memref<2x10x10x32xf32, #tpu.memory_space<vmem>>, vector<2x8x8x32xf32>
    %c0_97 = arith.constant 0 : index
    %c0_98 = arith.constant 0 : index
    %c1_99 = arith.constant 1 : index
    %c0_100 = arith.constant 0 : index
    %44 = vector.load %arg24[%c0_97, %c0_98, %c1_99, %c0_100] : memref<2x10x10x32xf32, #tpu.memory_space<vmem>>, vector<2x8x8x32xf32>
    %c0_101 = arith.constant 0 : index
    %c0_102 = arith.constant 0 : index
    %c2_103 = arith.constant 2 : index
    %c0_104 = arith.constant 0 : index
    %45 = vector.load %arg24[%c0_101, %c0_102, %c2_103, %c0_104] : memref<2x10x10x32xf32, #tpu.memory_space<vmem>>, vector<2x8x8x32xf32>
    %c0_105 = arith.constant 0 : index
    %c1_106 = arith.constant 1 : index
    %c0_107 = arith.constant 0 : index
    %c0_108 = arith.constant 0 : index
    %46 = vector.load %arg24[%c0_105, %c1_106, %c0_107, %c0_108] : memref<2x10x10x32xf32, #tpu.memory_space<vmem>>, vector<2x8x8x32xf32>
    %c0_109 = arith.constant 0 : index
    %c1_110 = arith.constant 1 : index
    %c1_111 = arith.constant 1 : index
    %c0_112 = arith.constant 0 : index
    %47 = vector.load %arg24[%c0_109, %c1_110, %c1_111, %c0_112] : memref<2x10x10x32xf32, #tpu.memory_space<vmem>>, vector<2x8x8x32xf32>
    %c0_113 = arith.constant 0 : index
    %c1_114 = arith.constant 1 : index
    %c2_115 = arith.constant 2 : index
    %c0_116 = arith.constant 0 : index
    %48 = vector.load %arg24[%c0_113, %c1_114, %c2_115, %c0_116] : memref<2x10x10x32xf32, #tpu.memory_space<vmem>>, vector<2x8x8x32xf32>
    %c0_117 = arith.constant 0 : index
    %c2_118 = arith.constant 2 : index
    %c0_119 = arith.constant 0 : index
    %c0_120 = arith.constant 0 : index
    %49 = vector.load %arg24[%c0_117, %c2_118, %c0_119, %c0_120] : memref<2x10x10x32xf32, #tpu.memory_space<vmem>>, vector<2x8x8x32xf32>
    %c0_121 = arith.constant 0 : index
    %c2_122 = arith.constant 2 : index
    %c1_123 = arith.constant 1 : index
    %c0_124 = arith.constant 0 : index
    %50 = vector.load %arg24[%c0_121, %c2_122, %c1_123, %c0_124] : memref<2x10x10x32xf32, #tpu.memory_space<vmem>>, vector<2x8x8x32xf32>
    %c0_125 = arith.constant 0 : index
    %c2_126 = arith.constant 2 : index
    %c2_127 = arith.constant 2 : index
    %c0_128 = arith.constant 0 : index
    %51 = vector.load %arg24[%c0_125, %c2_126, %c2_127, %c0_128] : memref<2x10x10x32xf32, #tpu.memory_space<vmem>>, vector<2x8x8x32xf32>
    %52 = tpu.concatenate %43, %44, %45, %46, %47, %48, %49, %50, %51 in 3 : vector<2x8x8x32xf32>, vector<2x8x8x32xf32>, vector<2x8x8x32xf32>, vector<2x8x8x32xf32>, vector<2x8x8x32xf32>, vector<2x8x8x32xf32>, vector<2x8x8x32xf32>, vector<2x8x8x32xf32>, vector<2x8x8x32xf32> -> vector<2x8x8x288xf32>
    %53 = vector.shape_cast %52 : vector<2x8x8x288xf32> to vector<128x288xf32>
    %54 = arith.truncf %53 : vector<128x288xf32> to vector<128x288xbf16>
    %c0_129 = arith.constant 0 : index
    %c0_130 = arith.constant 0 : index
    %55 = vector.load %arg4[%c0_129, %c0_130] : memref<288x64xbf16, #tpu.memory_space<vmem>>, vector<288x64xbf16>
    %cst_131 = arith.constant dense<0.000000e+00> : vector<128x64xf32>
    %56 = tpu.matmul %54, %55, %cst_131 {dimension_numbers = #tpu.dot_dimension_numbers<[1], [0], [0], [1], [0, 0, 1, 1], [], []>} : vector<128x288xbf16>, vector<288x64xbf16>, vector<128x64xf32> -> vector<128x64xf32>
    %c0_132 = arith.constant 0 : index
    %c0_133 = arith.constant 0 : index
    %57 = vector.load %arg5[%c0_132, %c0_133] : memref<1x64xf32, #tpu.memory_space<vmem>>, vector<1x64xf32>
    %58 = vector.broadcast %57 : vector<1x64xf32> to vector<128x64xf32>
    %59 = arith.addf %56, %58 : vector<128x64xf32>
    %cst_134 = arith.constant 0.000000e+00 : f32
    %60 = vector.broadcast %cst_134 : f32 to vector<128x64xf32>
    %61 = arith.maximumf %59, %60 : vector<128x64xf32>
    %62 = vector.shape_cast %61 : vector<128x64xf32> to vector<2x8x8x64xf32>
    %c0_135 = arith.constant 0 : index
    %c0_136 = arith.constant 0 : index
    %c0_137 = arith.constant 0 : index
    %c0_138 = arith.constant 0 : index
    %63 = vector.load %arg25[%c0_135, %c0_136, %c0_137, %c0_138] : memref<2x8x8x64xf32, #tpu.memory_space<vmem>>, vector<2x8x8x64xf32>
    tpu.vector_store %arg25[%c0_135, %c0_136, %c0_137, %c0_138], %62 {strides = array<i32>} : memref<2x8x8x64xf32, #tpu.memory_space<vmem>>, vector<2x8x8x64xf32>,
    %c0_139 = arith.constant 0 : index
    %c0_140 = arith.constant 0 : index
    %c0_141 = arith.constant 0 : index
    %c0_142 = arith.constant 0 : index
    %64 = tpu.strided_load %arg25[%c0_139, %c0_140, %c0_141, %c0_142] {strides = array<i32: 1, 1, 2, 1>} : memref<2x8x8x64xf32, #tpu.memory_space<vmem>>, vector<2x8x4x64xf32>
    %c0_143 = arith.constant 0 : index
    %c0_144 = arith.constant 0 : index
    %c1_145 = arith.constant 1 : index
    %c0_146 = arith.constant 0 : index
    %65 = tpu.strided_load %arg25[%c0_143, %c0_144, %c1_145, %c0_146] {strides = array<i32: 1, 1, 2, 1>} : memref<2x8x8x64xf32, #tpu.memory_space<vmem>>, vector<2x8x4x64xf32>
    %66 = arith.maximumf %64, %65 : vector<2x8x4x64xf32>
    %67 = vector.shape_cast %66 : vector<2x8x4x64xf32> to vector<2x4x2x4x64xf32>
    %cst_147 = arith.constant dense<0xFF800000> : vector<2x4x4x64xf32>
    %68 = vector.multi_reduction <maximumf>, %67, %cst_147 [2] : vector<2x4x2x4x64xf32> to vector<2x4x4x64xf32>
    %c0_148 = arith.constant 0 : index
    %c1_149 = arith.constant 1 : index
    %c1_150 = arith.constant 1 : index
    %c0_151 = arith.constant 0 : index
    %69 = vector.load %arg26[%c0_148, %c1_149, %c1_150, %c0_151] : memref<2x6x6x64xf32, #tpu.memory_space<vmem>>, vector<2x4x4x64xf32>
    tpu.vector_store %arg26[%c0_148, %c1_149, %c1_150, %c0_151], %68 {strides = array<i32>} : memref<2x6x6x64xf32, #tpu.memory_space<vmem>>, vector<2x4x4x64xf32>,
    %c0_152 = arith.constant 0 : index
    %c0_153 = arith.constant 0 : index
    %c0_154 = arith.constant 0 : index
    %c0_155 = arith.constant 0 : index
    %70 = vector.load %arg26[%c0_152, %c0_153, %c0_154, %c0_155] : memref<2x6x6x64xf32, #tpu.memory_space<vmem>>, vector<2x4x4x64xf32>
    %c0_156 = arith.constant 0 : index
    %c0_157 = arith.constant 0 : index
    %c1_158 = arith.constant 1 : index
    %c0_159 = arith.constant 0 : index
    %71 = vector.load %arg26[%c0_156, %c0_157, %c1_158, %c0_159] : memref<2x6x6x64xf32, #tpu.memory_space<vmem>>, vector<2x4x4x64xf32>
    %c0_160 = arith.constant 0 : index
    %c0_161 = arith.constant 0 : index
    %c2_162 = arith.constant 2 : index
    %c0_163 = arith.constant 0 : index
    %72 = vector.load %arg26[%c0_160, %c0_161, %c2_162, %c0_163] : memref<2x6x6x64xf32, #tpu.memory_space<vmem>>, vector<2x4x4x64xf32>
    %c0_164 = arith.constant 0 : index
    %c1_165 = arith.constant 1 : index
    %c0_166 = arith.constant 0 : index
    %c0_167 = arith.constant 0 : index
    %73 = vector.load %arg26[%c0_164, %c1_165, %c0_166, %c0_167] : memref<2x6x6x64xf32, #tpu.memory_space<vmem>>, vector<2x4x4x64xf32>
    %c0_168 = arith.constant 0 : index
    %c1_169 = arith.constant 1 : index
    %c1_170 = arith.constant 1 : index
    %c0_171 = arith.constant 0 : index
    %74 = vector.load %arg26[%c0_168, %c1_169, %c1_170, %c0_171] : memref<2x6x6x64xf32, #tpu.memory_space<vmem>>, vector<2x4x4x64xf32>
    %c0_172 = arith.constant 0 : index
    %c1_173 = arith.constant 1 : index
    %c2_174 = arith.constant 2 : index
    %c0_175 = arith.constant 0 : index
    %75 = vector.load %arg26[%c0_172, %c1_173, %c2_174, %c0_175] : memref<2x6x6x64xf32, #tpu.memory_space<vmem>>, vector<2x4x4x64xf32>
    %c0_176 = arith.constant 0 : index
    %c2_177 = arith.constant 2 : index
    %c0_178 = arith.constant 0 : index
    %c0_179 = arith.constant 0 : index
    %76 = vector.load %arg26[%c0_176, %c2_177, %c0_178, %c0_179] : memref<2x6x6x64xf32, #tpu.memory_space<vmem>>, vector<2x4x4x64xf32>
    %c0_180 = arith.constant 0 : index
    %c2_181 = arith.constant 2 : index
    %c1_182 = arith.constant 1 : index
    %c0_183 = arith.constant 0 : index
    %77 = vector.load %arg26[%c0_180, %c2_181, %c1_182, %c0_183] : memref<2x6x6x64xf32, #tpu.memory_space<vmem>>, vector<2x4x4x64xf32>
    %c0_184 = arith.constant 0 : index
    %c2_185 = arith.constant 2 : index
    %c2_186 = arith.constant 2 : index
    %c0_187 = arith.constant 0 : index
    %78 = vector.load %arg26[%c0_184, %c2_185, %c2_186, %c0_187] : memref<2x6x6x64xf32, #tpu.memory_space<vmem>>, vector<2x4x4x64xf32>
    %79 = tpu.concatenate %70, %71, %72, %73, %74, %75, %76, %77, %78 in 3 : vector<2x4x4x64xf32>, vector<2x4x4x64xf32>, vector<2x4x4x64xf32>, vector<2x4x4x64xf32>, vector<2x4x4x64xf32>, vector<2x4x4x64xf32>, vector<2x4x4x64xf32>, vector<2x4x4x64xf32>, vector<2x4x4x64xf32> -> vector<2x4x4x576xf32>
    %80 = vector.shape_cast %79 : vector<2x4x4x576xf32> to vector<32x576xf32>
    %81 = arith.truncf %80 : vector<32x576xf32> to vector<32x576xbf16>
    %c0_188 = arith.constant 0 : index
    %c0_189 = arith.constant 0 : index
    %82 = vector.load %arg6[%c0_188, %c0_189] : memref<576x128xbf16, #tpu.memory_space<vmem>>, vector<576x128xbf16>
    %cst_190 = arith.constant dense<0.000000e+00> : vector<32x128xf32>
    %83 = tpu.matmul %81, %82, %cst_190 {dimension_numbers = #tpu.dot_dimension_numbers<[1], [0], [0], [1], [0, 0, 1, 1], [], []>} : vector<32x576xbf16>, vector<576x128xbf16>, vector<32x128xf32> -> vector<32x128xf32>
    %c0_191 = arith.constant 0 : index
    %c0_192 = arith.constant 0 : index
    %84 = vector.load %arg7[%c0_191, %c0_192] : memref<1x128xf32, #tpu.memory_space<vmem>>, vector<1x128xf32>
    %85 = vector.broadcast %84 : vector<1x128xf32> to vector<32x128xf32>
    %86 = arith.addf %83, %85 : vector<32x128xf32>
    %cst_193 = arith.constant 0.000000e+00 : f32
    %87 = vector.broadcast %cst_193 : f32 to vector<32x128xf32>
    %88 = arith.maximumf %86, %87 : vector<32x128xf32>
    %89 = vector.shape_cast %88 : vector<32x128xf32> to vector<2x4x4x128xf32>
    %c0_194 = arith.constant 0 : index
    %c0_195 = arith.constant 0 : index
    %c0_196 = arith.constant 0 : index
    %c0_197 = arith.constant 0 : index
    %90 = vector.load %arg27[%c0_194, %c0_195, %c0_196, %c0_197] : memref<2x4x4x128xf32, #tpu.memory_space<vmem>>, vector<2x4x4x128xf32>
    tpu.vector_store %arg27[%c0_194, %c0_195, %c0_196, %c0_197], %89 {strides = array<i32>} : memref<2x4x4x128xf32, #tpu.memory_space<vmem>>, vector<2x4x4x128xf32>,
    %c0_198 = arith.constant 0 : index
    %c0_199 = arith.constant 0 : index
    %c0_200 = arith.constant 0 : index
    %c0_201 = arith.constant 0 : index
    %91 = tpu.strided_load %arg27[%c0_198, %c0_199, %c0_200, %c0_201] {strides = array<i32: 1, 1, 2, 1>} : memref<2x4x4x128xf32, #tpu.memory_space<vmem>>, vector<2x4x2x128xf32>
    %c0_202 = arith.constant 0 : index
    %c0_203 = arith.constant 0 : index
    %c1_204 = arith.constant 1 : index
    %c0_205 = arith.constant 0 : index
    %92 = tpu.strided_load %arg27[%c0_202, %c0_203, %c1_204, %c0_205] {strides = array<i32: 1, 1, 2, 1>} : memref<2x4x4x128xf32, #tpu.memory_space<vmem>>, vector<2x4x2x128xf32>
    %93 = arith.maximumf %91, %92 : vector<2x4x2x128xf32>
    %94 = vector.shape_cast %93 : vector<2x4x2x128xf32> to vector<2x2x2x2x128xf32>
    %cst_206 = arith.constant dense<0xFF800000> : vector<2x2x2x128xf32>
    %95 = vector.multi_reduction <maximumf>, %94, %cst_206 [2] : vector<2x2x2x2x128xf32> to vector<2x2x2x128xf32>
    %c0_207 = arith.constant 0 : index
    %c1_208 = arith.constant 1 : index
    %c1_209 = arith.constant 1 : index
    %c0_210 = arith.constant 0 : index
    %96 = vector.load %arg28[%c0_207, %c1_208, %c1_209, %c0_210] : memref<2x4x4x128xf32, #tpu.memory_space<vmem>>, vector<2x2x2x128xf32>
    tpu.vector_store %arg28[%c0_207, %c1_208, %c1_209, %c0_210], %95 {strides = array<i32>} : memref<2x4x4x128xf32, #tpu.memory_space<vmem>>, vector<2x2x2x128xf32>,
    %c0_211 = arith.constant 0 : index
    %c0_212 = arith.constant 0 : index
    %c0_213 = arith.constant 0 : index
    %c0_214 = arith.constant 0 : index
    %97 = vector.load %arg28[%c0_211, %c0_212, %c0_213, %c0_214] : memref<2x4x4x128xf32, #tpu.memory_space<vmem>>, vector<2x2x2x128xf32>
    %c0_215 = arith.constant 0 : index
    %c0_216 = arith.constant 0 : index
    %c1_217 = arith.constant 1 : index
    %c0_218 = arith.constant 0 : index
    %98 = vector.load %arg28[%c0_215, %c0_216, %c1_217, %c0_218] : memref<2x4x4x128xf32, #tpu.memory_space<vmem>>, vector<2x2x2x128xf32>
    %c0_219 = arith.constant 0 : index
    %c0_220 = arith.constant 0 : index
    %c2_221 = arith.constant 2 : index
    %c0_222 = arith.constant 0 : index
    %99 = vector.load %arg28[%c0_219, %c0_220, %c2_221, %c0_222] : memref<2x4x4x128xf32, #tpu.memory_space<vmem>>, vector<2x2x2x128xf32>
    %c0_223 = arith.constant 0 : index
    %c1_224 = arith.constant 1 : index
    %c0_225 = arith.constant 0 : index
    %c0_226 = arith.constant 0 : index
    %100 = vector.load %arg28[%c0_223, %c1_224, %c0_225, %c0_226] : memref<2x4x4x128xf32, #tpu.memory_space<vmem>>, vector<2x2x2x128xf32>
    %c0_227 = arith.constant 0 : index
    %c1_228 = arith.constant 1 : index
    %c1_229 = arith.constant 1 : index
    %c0_230 = arith.constant 0 : index
    %101 = vector.load %arg28[%c0_227, %c1_228, %c1_229, %c0_230] : memref<2x4x4x128xf32, #tpu.memory_space<vmem>>, vector<2x2x2x128xf32>
    %c0_231 = arith.constant 0 : index
    %c1_232 = arith.constant 1 : index
    %c2_233 = arith.constant 2 : index
    %c0_234 = arith.constant 0 : index
    %102 = vector.load %arg28[%c0_231, %c1_232, %c2_233, %c0_234] : memref<2x4x4x128xf32, #tpu.memory_space<vmem>>, vector<2x2x2x128xf32>
    %c0_235 = arith.constant 0 : index
    %c2_236 = arith.constant 2 : index
    %c0_237 = arith.constant 0 : index
    %c0_238 = arith.constant 0 : index
    %103 = vector.load %arg28[%c0_235, %c2_236, %c0_237, %c0_238] : memref<2x4x4x128xf32, #tpu.memory_space<vmem>>, vector<2x2x2x128xf32>
    %c0_239 = arith.constant 0 : index
    %c2_240 = arith.constant 2 : index
    %c1_241 = arith.constant 1 : index
    %c0_242 = arith.constant 0 : index
    %104 = vector.load %arg28[%c0_239, %c2_240, %c1_241, %c0_242] : memref<2x4x4x128xf32, #tpu.memory_space<vmem>>, vector<2x2x2x128xf32>
    %c0_243 = arith.constant 0 : index
    %c2_244 = arith.constant 2 : index
    %c2_245 = arith.constant 2 : index
    %c0_246 = arith.constant 0 : index
    %105 = vector.load %arg28[%c0_243, %c2_244, %c2_245, %c0_246] : memref<2x4x4x128xf32, #tpu.memory_space<vmem>>, vector<2x2x2x128xf32>
    %106 = tpu.concatenate %97, %98, %99, %100, %101, %102, %103, %104, %105 in 3 : vector<2x2x2x128xf32>, vector<2x2x2x128xf32>, vector<2x2x2x128xf32>, vector<2x2x2x128xf32>, vector<2x2x2x128xf32>, vector<2x2x2x128xf32>, vector<2x2x2x128xf32>, vector<2x2x2x128xf32>, vector<2x2x2x128xf32> -> vector<2x2x2x1152xf32>
    %107 = vector.shape_cast %106 : vector<2x2x2x1152xf32> to vector<8x1152xf32>
    %108 = arith.truncf %107 : vector<8x1152xf32> to vector<8x1152xbf16>
    %c0_247 = arith.constant 0 : index
    %c0_248 = arith.constant 0 : index
    %109 = vector.load %arg8[%c0_247, %c0_248] : memref<1152x64xbf16, #tpu.memory_space<vmem>>, vector<1152x64xbf16>
    %cst_249 = arith.constant dense<0.000000e+00> : vector<8x64xf32>
    %110 = tpu.matmul %108, %109, %cst_249 {dimension_numbers = #tpu.dot_dimension_numbers<[1], [0], [0], [1], [0, 0, 1, 1], [], []>} : vector<8x1152xbf16>, vector<1152x64xbf16>, vector<8x64xf32> -> vector<8x64xf32>
    %c0_250 = arith.constant 0 : index
    %c0_251 = arith.constant 0 : index
    %111 = vector.load %arg9[%c0_250, %c0_251] : memref<1x64xf32, #tpu.memory_space<vmem>>, vector<1x64xf32>
    %112 = vector.broadcast %111 : vector<1x64xf32> to vector<8x64xf32>
    %113 = arith.addf %110, %112 : vector<8x64xf32>
    %cst_252 = arith.constant 0.000000e+00 : f32
    %114 = vector.broadcast %cst_252 : f32 to vector<8x64xf32>
    %115 = arith.maximumf %113, %114 : vector<8x64xf32>
    %116 = vector.shape_cast %115 : vector<8x64xf32> to vector<2x2x2x64xf32>
    %c0_253 = arith.constant 0 : index
    %c1_254 = arith.constant 1 : index
    %c1_255 = arith.constant 1 : index
    %c0_256 = arith.constant 0 : index
    %117 = vector.load %arg29[%c0_253, %c1_254, %c1_255, %c0_256] : memref<2x4x4x64xf32, #tpu.memory_space<vmem>>, vector<2x2x2x64xf32>
    tpu.vector_store %arg29[%c0_253, %c1_254, %c1_255, %c0_256], %116 {strides = array<i32>} : memref<2x4x4x64xf32, #tpu.memory_space<vmem>>, vector<2x2x2x64xf32>,
    %c0_257 = arith.constant 0 : index
    %c0_258 = arith.constant 0 : index
    %c0_259 = arith.constant 0 : index
    %c0_260 = arith.constant 0 : index
    %118 = vector.load %arg29[%c0_257, %c0_258, %c0_259, %c0_260] : memref<2x4x4x64xf32, #tpu.memory_space<vmem>>, vector<2x2x2x64xf32>
    %c0_261 = arith.constant 0 : index
    %c0_262 = arith.constant 0 : index
    %c1_263 = arith.constant 1 : index
    %c0_264 = arith.constant 0 : index
    %119 = vector.load %arg29[%c0_261, %c0_262, %c1_263, %c0_264] : memref<2x4x4x64xf32, #tpu.memory_space<vmem>>, vector<2x2x2x64xf32>
    %c0_265 = arith.constant 0 : index
    %c0_266 = arith.constant 0 : index
    %c2_267 = arith.constant 2 : index
    %c0_268 = arith.constant 0 : index
    %120 = vector.load %arg29[%c0_265, %c0_266, %c2_267, %c0_268] : memref<2x4x4x64xf32, #tpu.memory_space<vmem>>, vector<2x2x2x64xf32>
    %c0_269 = arith.constant 0 : index
    %c1_270 = arith.constant 1 : index
    %c0_271 = arith.constant 0 : index
    %c0_272 = arith.constant 0 : index
    %121 = vector.load %arg29[%c0_269, %c1_270, %c0_271, %c0_272] : memref<2x4x4x64xf32, #tpu.memory_space<vmem>>, vector<2x2x2x64xf32>
    %c0_273 = arith.constant 0 : index
    %c1_274 = arith.constant 1 : index
    %c1_275 = arith.constant 1 : index
    %c0_276 = arith.constant 0 : index
    %122 = vector.load %arg29[%c0_273, %c1_274, %c1_275, %c0_276] : memref<2x4x4x64xf32, #tpu.memory_space<vmem>>, vector<2x2x2x64xf32>
    %c0_277 = arith.constant 0 : index
    %c1_278 = arith.constant 1 : index
    %c2_279 = arith.constant 2 : index
    %c0_280 = arith.constant 0 : index
    %123 = vector.load %arg29[%c0_277, %c1_278, %c2_279, %c0_280] : memref<2x4x4x64xf32, #tpu.memory_space<vmem>>, vector<2x2x2x64xf32>
    %c0_281 = arith.constant 0 : index
    %c2_282 = arith.constant 2 : index
    %c0_283 = arith.constant 0 : index
    %c0_284 = arith.constant 0 : index
    %124 = vector.load %arg29[%c0_281, %c2_282, %c0_283, %c0_284] : memref<2x4x4x64xf32, #tpu.memory_space<vmem>>, vector<2x2x2x64xf32>
    %c0_285 = arith.constant 0 : index
    %c2_286 = arith.constant 2 : index
    %c1_287 = arith.constant 1 : index
    %c0_288 = arith.constant 0 : index
    %125 = vector.load %arg29[%c0_285, %c2_286, %c1_287, %c0_288] : memref<2x4x4x64xf32, #tpu.memory_space<vmem>>, vector<2x2x2x64xf32>
    %c0_289 = arith.constant 0 : index
    %c2_290 = arith.constant 2 : index
    %c2_291 = arith.constant 2 : index
    %c0_292 = arith.constant 0 : index
    %126 = vector.load %arg29[%c0_289, %c2_290, %c2_291, %c0_292] : memref<2x4x4x64xf32, #tpu.memory_space<vmem>>, vector<2x2x2x64xf32>
    %127 = tpu.concatenate %118, %119, %120, %121, %122, %123, %124, %125, %126 in 3 : vector<2x2x2x64xf32>, vector<2x2x2x64xf32>, vector<2x2x2x64xf32>, vector<2x2x2x64xf32>, vector<2x2x2x64xf32>, vector<2x2x2x64xf32>, vector<2x2x2x64xf32>, vector<2x2x2x64xf32>, vector<2x2x2x64xf32> -> vector<2x2x2x576xf32>
    %128 = vector.shape_cast %127 : vector<2x2x2x576xf32> to vector<8x576xf32>
    %129 = arith.truncf %128 : vector<8x576xf32> to vector<8x576xbf16>
    %c0_293 = arith.constant 0 : index
    %c0_294 = arith.constant 0 : index
    %130 = vector.load %arg10[%c0_293, %c0_294] : memref<576x32xbf16, #tpu.memory_space<vmem>>, vector<576x32xbf16>
    %cst_295 = arith.constant dense<0.000000e+00> : vector<8x32xf32>
    %131 = tpu.matmul %129, %130, %cst_295 {dimension_numbers = #tpu.dot_dimension_numbers<[1], [0], [0], [1], [0, 0, 1, 1], [], []>} : vector<8x576xbf16>, vector<576x32xbf16>, vector<8x32xf32> -> vector<8x32xf32>
    %c0_296 = arith.constant 0 : index
    %c0_297 = arith.constant 0 : index
    %132 = vector.load %arg11[%c0_296, %c0_297] : memref<1x32xf32, #tpu.memory_space<vmem>>, vector<1x32xf32>
    %133 = vector.broadcast %132 : vector<1x32xf32> to vector<8x32xf32>
    %134 = arith.addf %131, %133 : vector<8x32xf32>
    %cst_298 = arith.constant 0.000000e+00 : f32
    %135 = vector.broadcast %cst_298 : f32 to vector<8x32xf32>
    %136 = arith.maximumf %134, %135 : vector<8x32xf32>
    %c0_299 = arith.constant 0 : index
    %c0_300 = arith.constant 0 : index
    %137 = vector.load %arg30[%c0_299, %c0_300] : memref<8x32xf32, #tpu.memory_space<vmem>>, vector<8x32xf32>
    tpu.vector_store %arg30[%c0_299, %c0_300], %136 {strides = array<i32>} : memref<8x32xf32, #tpu.memory_space<vmem>>, vector<8x32xf32>,
    %c0_301 = arith.constant 0 : index
    %c0_302 = arith.constant 0 : index
    %138 = vector.load %arg1[%c0_301, %c0_302] : memref<2x1xi32, #tpu.memory_space<vmem>>, vector<2x1xi32>
    %139 = tpu.iota {dimensions = array<i32: 1>} : vector<2x72xi32>
    %140 = vector.broadcast %138 : vector<2x1xi32> to vector<2x72xi32>
    %141 = arith.cmpi eq, %139, %140 : vector<2x72xi32>
    %142 = arith.extui %141 : vector<2x72xi1> to vector<2x72xi32>
    %143 = arith.sitofp %142 : vector<2x72xi32> to vector<2x72xf32>
    %c0_303 = arith.constant 0 : index
    %c0_304 = arith.constant 0 : index
    %144 = vector.load %arg19[%c0_303, %c0_304] : memref<72x8xf32, #tpu.memory_space<vmem>>, vector<72x8xf32>
    %cst_305 = arith.constant dense<0.000000e+00> : vector<2x8xf32>
    %145 = tpu.matmul %143, %144, %cst_305 {dimension_numbers = #tpu.dot_dimension_numbers<[1], [0], [0], [1], [0, 0, 1, 1], [], []>} : vector<2x72xf32>, vector<72x8xf32>, vector<2x8xf32> -> vector<2x8xf32>
    %146 = arith.truncf %145 : vector<2x8xf32> to vector<2x8xbf16>
    %c0_306 = arith.constant 0 : index
    %c0_307 = arith.constant 0 : index
    %147 = vector.load %arg13[%c0_306, %c0_307] : memref<8x512xbf16, #tpu.memory_space<vmem>>, vector<8x512xbf16>
    %cst_308 = arith.constant dense<0.000000e+00> : vector<2x512xf32>
    %148 = tpu.matmul %146, %147, %cst_308 {dimension_numbers = #tpu.dot_dimension_numbers<[1], [0], [0], [1], [0, 0, 1, 1], [], []>} : vector<2x8xbf16>, vector<8x512xbf16>, vector<2x512xf32> -> vector<2x512xf32>
    %c0_309 = arith.constant 0 : index
    %c0_310 = arith.constant 0 : index
    %149 = tpu.strided_load %arg30[%c0_309, %c0_310] {strides = array<i32: 4, 1>} : memref<8x32xf32, #tpu.memory_space<vmem>>, vector<2x32xf32>
    %150 = arith.truncf %149 : vector<2x32xf32> to vector<2x32xbf16>
    %c0_311 = arith.constant 0 : index
    %c0_312 = arith.constant 0 : index
    %151 = vector.load %arg12[%c0_311, %c0_312] : memref<128x512xbf16, #tpu.memory_space<vmem>>, vector<32x512xbf16>
    %cst_313 = arith.constant dense<0.000000e+00> : vector<2x512xf32>
    %152 = tpu.matmul %150, %151, %cst_313 {dimension_numbers = #tpu.dot_dimension_numbers<[1], [0], [0], [1], [0, 0, 1, 1], [], []>} : vector<2x32xbf16>, vector<32x512xbf16>, vector<2x512xf32> -> vector<2x512xf32>
    %153 = arith.addf %148, %152 : vector<2x512xf32>
    %c1_314 = arith.constant 1 : index
    %c0_315 = arith.constant 0 : index
    %154 = tpu.strided_load %arg30[%c1_314, %c0_315] {strides = array<i32: 4, 1>} : memref<8x32xf32, #tpu.memory_space<vmem>>, vector<2x32xf32>
    %155 = arith.truncf %154 : vector<2x32xf32> to vector<2x32xbf16>
    %c32 = arith.constant 32 : index
    %c0_316 = arith.constant 0 : index
    %156 = vector.load %arg12[%c32, %c0_316] : memref<128x512xbf16, #tpu.memory_space<vmem>>, vector<32x512xbf16>
    %cst_317 = arith.constant dense<0.000000e+00> : vector<2x512xf32>
    %157 = tpu.matmul %155, %156, %cst_317 {dimension_numbers = #tpu.dot_dimension_numbers<[1], [0], [0], [1], [0, 0, 1, 1], [], []>} : vector<2x32xbf16>, vector<32x512xbf16>, vector<2x512xf32> -> vector<2x512xf32>
    %158 = arith.addf %153, %157 : vector<2x512xf32>
    %c2_318 = arith.constant 2 : index
    %c0_319 = arith.constant 0 : index
    %159 = tpu.strided_load %arg30[%c2_318, %c0_319] {strides = array<i32: 4, 1>} : memref<8x32xf32, #tpu.memory_space<vmem>>, vector<2x32xf32>
    %160 = arith.truncf %159 : vector<2x32xf32> to vector<2x32xbf16>
    %c64 = arith.constant 64 : index
    %c0_320 = arith.constant 0 : index
    %161 = vector.load %arg12[%c64, %c0_320] : memref<128x512xbf16, #tpu.memory_space<vmem>>, vector<32x512xbf16>
    %cst_321 = arith.constant dense<0.000000e+00> : vector<2x512xf32>
    %162 = tpu.matmul %160, %161, %cst_321 {dimension_numbers = #tpu.dot_dimension_numbers<[1], [0], [0], [1], [0, 0, 1, 1], [], []>} : vector<2x32xbf16>, vector<32x512xbf16>, vector<2x512xf32> -> vector<2x512xf32>
    %163 = arith.addf %158, %162 : vector<2x512xf32>
    %c3 = arith.constant 3 : index
    %c0_322 = arith.constant 0 : index
    %164 = tpu.strided_load %arg30[%c3, %c0_322] {strides = array<i32: 4, 1>} : memref<8x32xf32, #tpu.memory_space<vmem>>, vector<2x32xf32>
    %165 = arith.truncf %164 : vector<2x32xf32> to vector<2x32xbf16>
    %c96 = arith.constant 96 : index
    %c0_323 = arith.constant 0 : index
    %166 = vector.load %arg12[%c96, %c0_323] : memref<128x512xbf16, #tpu.memory_space<vmem>>, vector<32x512xbf16>
    %cst_324 = arith.constant dense<0.000000e+00> : vector<2x512xf32>
    %167 = tpu.matmul %165, %166, %cst_324 {dimension_numbers = #tpu.dot_dimension_numbers<[1], [0], [0], [1], [0, 0, 1, 1], [], []>} : vector<2x32xbf16>, vector<32x512xbf16>, vector<2x512xf32> -> vector<2x512xf32>
    %168 = arith.addf %163, %167 : vector<2x512xf32>
    %c0_325 = arith.constant 0 : index
    %c0_326 = arith.constant 0 : index
    %169 = vector.load %arg14[%c0_325, %c0_326] : memref<1x512xf32, #tpu.memory_space<vmem>>, vector<1x512xf32>
    %170 = vector.broadcast %169 : vector<1x512xf32> to vector<2x512xf32>
    %171 = arith.addf %168, %170 : vector<2x512xf32>
    %cst_327 = arith.constant 0.000000e+00 : f32
    %172 = vector.broadcast %cst_327 : f32 to vector<2x512xf32>
    %173 = arith.maximumf %171, %172 : vector<2x512xf32>
    %174 = arith.truncf %173 : vector<2x512xf32> to vector<2x512xbf16>
    %c0_328 = arith.constant 0 : index
    %c0_329 = arith.constant 0 : index
    %175 = vector.load %arg15[%c0_328, %c0_329] : memref<512x256xbf16, #tpu.memory_space<vmem>>, vector<512x256xbf16>
    %cst_330 = arith.constant dense<0.000000e+00> : vector<2x256xf32>
    %176 = tpu.matmul %174, %175, %cst_330 {dimension_numbers = #tpu.dot_dimension_numbers<[1], [0], [0], [1], [0, 0, 1, 1], [], []>} : vector<2x512xbf16>, vector<512x256xbf16>, vector<2x256xf32> -> vector<2x256xf32>
    %c0_331 = arith.constant 0 : index
    %c0_332 = arith.constant 0 : index
    %177 = vector.load %arg16[%c0_331, %c0_332] : memref<1x256xf32, #tpu.memory_space<vmem>>, vector<1x256xf32>
    %178 = vector.broadcast %177 : vector<1x256xf32> to vector<2x256xf32>
    %179 = arith.addf %176, %178 : vector<2x256xf32>
    %cst_333 = arith.constant 0.000000e+00 : f32
    %180 = vector.broadcast %cst_333 : f32 to vector<2x256xf32>
    %181 = arith.maximumf %179, %180 : vector<2x256xf32>
    %c0_334 = arith.constant 0 : index
    %c0_335 = arith.constant 0 : index
    %182 = vector.load %arg20[%c0_334, %c0_335] : memref<2x256xf32, #tpu.memory_space<vmem>>, vector<2x256xf32>
    tpu.vector_store %arg20[%c0_334, %c0_335], %181 {strides = array<i32>} : memref<2x256xf32, #tpu.memory_space<vmem>>, vector<2x256xf32>,
    %c0_336 = arith.constant 0 : index
    %c0_337 = arith.constant 0 : index
    %183 = vector.load %arg17[%c0_336, %c0_337] : memref<1x256xf32, #tpu.memory_space<vmem>>, vector<1x256xf32>
    %184 = vector.broadcast %183 : vector<1x256xf32> to vector<2x256xf32>
    %185 = arith.mulf %181, %184 : vector<2x256xf32>
    %cst_338 = arith.constant dense<0.000000e+00> : vector<2xf32>
    %186 = vector.multi_reduction <add>, %185, %cst_338 [1] : vector<2x256xf32> to vector<2xf32>
    %187 = vector.shape_cast %186 : vector<2xf32> to vector<2x1xf32>
    %c0_339 = arith.constant 0 : index
    %c0_340 = arith.constant 0 : index
    %188 = vector.load %arg18[%c0_339, %c0_340] : memref<1x1xf32, #tpu.memory_space<vmem>>, vector<1x1xf32>
    %189 = vector.broadcast %188 : vector<1x1xf32> to vector<2x1xf32>
    %190 = arith.addf %187, %189 : vector<2x1xf32>
    %c0_341 = arith.constant 0 : index
    %c0_342 = arith.constant 0 : index
    %191 = vector.load %arg21[%c0_341, %c0_342] : memref<2x1xf32, #tpu.memory_space<vmem>>, vector<2x1xf32>
    tpu.vector_store %arg21[%c0_341, %c0_342], %190 {strides = array<i32>} : memref<2x1xf32, #tpu.memory_space<vmem>>, vector<2x1xf32>,
    return
  }
}

</mosaic_0001>

<bundles_post_ra>
// kernel: rl_policy_forward.1
= control target key start
LH: loop header
LB: loop body
LE: loop exit
PB: predicated region body
PF: predicated region fallthrough
CT: control target
= control target key end

     0   :  { %s18351_s0 = inlined_call_operand.vmem [shape: f32[2,32,32,8], index: 0, kind: input, shape index: {}]   ;;  %s18352_s1 = inlined_call_operand.vmem [shape: s32[2,1], index: 1, kind: input, shape index: {}]   ;;  %s18353_s2 = inlined_call_operand.vmem [shape: bf16[72,32], index: 2, kind: input, shape index: {}]   ;;  %s18354_s3 = inlined_call_operand.vmem [shape: f32[1,32], index: 3, kind: input, shape index: {}]   ;;  %s18355_s4 = inlined_call_operand.vmem [shape: bf16[288,64], index: 4, kind: input, shape index: {}]   ;;  %s18356_s5 = inlined_call_operand.vmem [shape: f32[1,64], index: 5, kind: input, shape index: {}]   ;;  %s18357_s6 = inlined_call_operand.vmem [shape: bf16[576,128], index: 6, kind: input, shape index: {}]   ;;  %s18358_s7 = inlined_call_operand.vmem [shape: f32[1,128], index: 7, kind: input, shape index: {}]   ;;  %s18359_s8 = inlined_call_operand.vmem [shape: bf16[1152,64], index: 8, kind: input, shape index: {}]   ;;  %s18360_s9 = inlined_call_operand.vmem [shape: f32[1,64], index: 9, kind: input, shape index: {}]   ;;  %s18361_s10 = inlined_call_operand.vmem [shape: bf16[576,32], index: 10, kind: input, shape index: {}]   ;;  %s18362_s11 = inlined_call_operand.vmem [shape: f32[1,32], index: 11, kind: input, shape index: {}]   ;;  %s18363_s12 = inlined_call_operand.vmem [shape: bf16[128,512], index: 12, kind: input, shape index: {}]   ;;  %s18364_s13 = inlined_call_operand.vmem [shape: bf16[8,512], index: 13, kind: input, shape index: {}]   ;;  %s18365_s14 = inlined_call_operand.vmem [shape: f32[1,512], index: 14, kind: input, shape index: {}]   ;;  %s18366_s15 = inlined_call_operand.vmem [shape: bf16[512,256], index: 15, kind: input, shape index: {}]   ;;  %s18367_s16 = inlined_call_operand.vmem [shape: f32[1,256], index: 16, kind: input, shape index: {}]   ;;  %s18368_s17 = inlined_call_operand.vmem [shape: f32[1,256], index: 17, kind: input, shape index: {}]   ;;  %s18369_s18 = inlined_call_operand.<no memory space> [shape: f32[1,1], index: 18, kind: input, shape index: {}]   ;;  %s18370_s19 = inlined_call_operand.vmem [shape: f32[72,8], index: 19, kind: input, shape index: {}]   ;;  %s18371_s20 = inlined_call_operand.hbm [shape: f32[2,256], index: 20, kind: output, shape index: {0}]   ;;  %s18372_s21 = inlined_call_operand.vmem [shape: f32[2,1], index: 21, kind: output, shape index: {1}]  }
   0x1   :  { %18394 = sst [smem:[#allocation15_spill]] %s18351_s0  ;;  %v27_v0 = vstv %s18369_s18 }
   0x2   :  { %18395 = sst [smem:[#allocation16_spill]] %s18352_s1  ;;  %28 = vst [vmem:[#allocation11] sm:$0x1] %v27_v0 }
   0x3   :  { %18396 = sst [smem:[#allocation17_spill]] %s18353_s2 }
   0x4   :  { %18397 = sst [smem:[#allocation18_spill]] %s18354_s3 }
   0x5   :  { %18398 = sst [smem:[#allocation19_spill]] %s18355_s4 }
   0x6   :  { %18399 = sst [smem:[#allocation20_spill]] %s18356_s5 }
   0x7   :  { %18400 = sst [smem:[#allocation21_spill]] %s18367_s16 }
   0x8   :  { %18401 = sst [smem:[#allocation22_spill]] %s18368_s17 }
   0x9   :  { %18402 = sst [smem:[#allocation23_spill]] %s18371_s20 }
   0xa   :  { %18403 = sst [smem:[#allocation24_spill]] %s18372_s21 }
   0xb   :  { %vm71_vm0 = vcmask 64512   ;;  %vm74_vm1 = vcmask 58368   ;;  %v13353_v1 = vmov 0.0   ;;  %s18404_s27 = sld [smem:[#allocation15_spill]]  ;;  %s18383_s25 = smov 16   ;;  %vm181_vm2 = vcmask 261120  }
   0xc   :  { %72 = vst.msk [vmem:[#allocation2] sm:$0xff] %vm71_vm0, %v13353_v1  ;;  %73 = vst.msk [vmem:[#allocation2 + $0x8] sm:$0xff] %vm71_vm0, %v13353_v1  ;;  %s18387_s29 = smov 8   ;;  %s18381_s2 = smov 24   ;;  %vm4464_vm3 = vcmask 1043456   ;;  %vm3838_vm4 = vcmask 130048  }
   0xd   :  { %75 = vst.msk [vmem:[#allocation2 + $0x10] sm:$0x3] %vm74_vm1, %v13353_v1  ;;  %78 = vst.msk [vmem:[#allocation2 + $0x28] sm:$0x3] %vm74_vm1, %v13353_v1  ;;  %s18391_s3 = smov 32   ;;  %s18405_s26 = sld [smem:[#allocation17_spill]] }
   0xe   :  { %76 = vst.msk [vmem:[#allocation2 + $0x18] sm:$0xff] %vm71_vm0, %v13353_v1  ;;  %77 = vst.msk [vmem:[#allocation2 + $0x20] sm:$0xff] %vm71_vm0, %v13353_v1  ;;  %s18389_s28 = smov 40   ;;  %s18377_s0 = smov 48   ;;  %vm3903_vm5 = vcmask 195584   ;;  %vm4032_vm6 = vcmask 326656  }
   0xf   :  { %79 = vst.msk [vmem:[#allocation2 + $0x30] sm:$0xff] %vm71_vm0, %v13353_v1  ;;  %80 = vst.msk [vmem:[#allocation2 + $0x38] sm:$0xff] %vm71_vm0, %v13353_v1  ;;  %s18385_s5 = smov 64   ;;  %s18409_s1 = smov 16   ;;  %vm4097_vm7 = vcmask 392192   ;;  %vm4162_vm8 = vcmask 457728  }
  0x10   :  { %81 = vst.msk [vmem:[#allocation2 + $0x40] sm:$0x3] %vm74_vm1, %v13353_v1  ;;  %84 = vst.msk [vmem:[#allocation2 + $0x58] sm:$0x3] %vm74_vm1, %v13353_v1  ;;  %s18410_s30 = smov 24   ;;  %s18411_s21 = smov 32  }
  0x11   :  { %82 = vst.msk [vmem:[#allocation2 + $0x48] sm:$0xff] %vm71_vm0, %v13353_v1  ;;  %83 = vst.msk [vmem:[#allocation2 + $0x50] sm:$0xff] %vm71_vm0, %v13353_v1  ;;  %v253_v2 = vld [vmem:[%s18404_s27] ss:$2 sm:$0xff]  ;;  %v10341_v3 = vld [vmem:[%s18404_s27 + $0x10] ss:$2 sm:$0xff] }
  0x12   :  { %85 = vst.msk [vmem:[#allocation2 + $0x60] sm:$0xff] %vm71_vm0, %v13353_v1  ;;  %86 = vst.msk [vmem:[#allocation2 + $0x68] sm:$0xff] %vm71_vm0, %v13353_v1  ;;  %v10342_v4 = vld [vmem:[%s18404_s27 + $0x20] ss:$2 sm:$0xff]  ;;  %v10343_v5 = vld [vmem:[%s18404_s27 + $0x30] ss:$2 sm:$0xff] }
  0x13   :  { %87 = vst.msk [vmem:[#allocation2 + $0x70] sm:$0x3] %vm74_vm1, %v13353_v1  ;;  %90 = vst.msk [vmem:[#allocation2 + $0x88] sm:$0x3] %vm74_vm1, %v13353_v1  ;;  %v10468_v6 = vld [vmem:[%s18404_s27 + $0x1] ss:$2 sm:$0xff] }
  0x14   :  { %88 = vst.msk [vmem:[#allocation2 + $0x78] sm:$0xff] %vm71_vm0, %v13353_v1  ;;  %89 = vst.msk [vmem:[#allocation2 + $0x80] sm:$0xff] %vm71_vm0, %v13353_v1  ;;  %v10469_v7 = vld [vmem:[%s18404_s27 + $0x11] ss:$2 sm:$0xff]  ;;  %v10470_v8 = vld [vmem:[%s18404_s27 + $0x21] ss:$2 sm:$0xff]  ;;  %v764_v10 = vmax.f32 %v253_v2, %v10468_v6 }
  0x15   :  { %91 = vst.msk [vmem:[#allocation2 + $0x90] sm:$0xff] %vm71_vm0, %v13353_v1  ;;  %92 = vst.msk [vmem:[#allocation2 + $0x98] sm:$0xff] %vm71_vm0, %v13353_v1  ;;  %v10471_v9 = vld [vmem:[%s18404_s27 + $0x31] ss:$2 sm:$0xff]  ;;  %v765_v11 = vmax.f32 %v10341_v3, %v10469_v7  ;;  %v10344_v12 = vld [vmem:[%s18404_s27 + $0x40] ss:$2 sm:$0xff]  ;;  %v766_v13 = vmax.f32 %v10342_v4, %v10470_v8 }
  0x16   :  { %93 = vst.msk [vmem:[#allocation2 + $0xa0] sm:$0x3] %vm74_vm1, %v13353_v1  ;;  %96 = vst.msk [vmem:[#allocation2 + $0xb8] sm:$0x3] %vm74_vm1, %v13353_v1  ;;  %v767_v14 = vmax.f32 %v10343_v5, %v10471_v9  ;;  %v10345_v15 = vld [vmem:[%s18404_s27 + $0x50] ss:$2 sm:$0xff] }
  0x17   :  { %94 = vst.msk [vmem:[#allocation2 + $0xa8] sm:$0xff] %vm71_vm0, %v13353_v1  ;;  %95 = vst.msk [vmem:[#allocation2 + $0xb0] sm:$0xff] %vm71_vm0, %v13353_v1  ;;  %v10346_v16 = vld [vmem:[%s18404_s27 + $0x60] ss:$2 sm:$0xff]  ;;  %v10347_v17 = vld [vmem:[%s18404_s27 + $0x70] ss:$2 sm:$0xff] }
  0x18   :  { %97 = vst.msk [vmem:[#allocation2 + $0xc0] sm:$0xff] %vm71_vm0, %v13353_v1  ;;  %98 = vst.msk [vmem:[#allocation2 + $0xc8] sm:$0xff] %vm71_vm0, %v13353_v1  ;;  %v892_v18 = vsel %vm71_vm0, %v764_v10, -inf  ;;  %v895_v19 = vsel %vm71_vm0, %v765_v11, -inf  ;;  %v10472_v20 = vld [vmem:[%s18404_s27 + $0x41] ss:$2 sm:$0xff] }
  0x19   :  { %99 = vst.msk [vmem:[#allocation2 + $0xd0] sm:$0x3] %vm74_vm1, %v13353_v1  ;;  %102 = vst.msk [vmem:[#allocation2 + $0xe8] sm:$0x3] %vm74_vm1, %v13353_v1  ;;  %v10473_v21 = vld [vmem:[%s18404_s27 + $0x51] ss:$2 sm:$0xff]  ;;  %v768_v26 = vmax.f32 %v10344_v12, %v10472_v20 }
  0x1a   :  { %100 = vst.msk [vmem:[#allocation2 + $0xd8] sm:$0xff] %vm71_vm0, %v13353_v1  ;;  %101 = vst.msk [vmem:[#allocation2 + $0xe0] sm:$0xff] %vm71_vm0, %v13353_v1  ;;  %v893_v22 = vsel %vm71_vm0, %v766_v13, -inf  ;;  %v896_v23 = vsel %vm71_vm0, %v767_v14, -inf  ;;  %v10474_v24 = vld [vmem:[%s18404_s27 + $0x61] ss:$2 sm:$0xff]  ;;  %v769_v27 = vmax.f32 %v10345_v15, %v10473_v21 }
  0x1b   :  { %103 = vst.msk [vmem:[#allocation2 + $0xf0] sm:$0xff] %vm71_vm0, %v13353_v1  ;;  %104 = vst.msk [vmem:[#allocation2 + $0xf8] sm:$0xff] %vm71_vm0, %v13353_v1  ;;  %v10475_v25 = vld [vmem:[%s18404_s27 + $0x71] ss:$2 sm:$0xff]  ;;  %v894_v28 = vmax.f32 %v892_v18, %v893_v22  ;;  %v897_v29 = vmax.f32 %v895_v19, %v896_v23  ;;  %v770_v30 = vmax.f32 %v10346_v16, %v10474_v24  ;;  %v10348_v32 = vld [vmem:[%s18404_s27 + $0x80] ss:$2 sm:$0xff] }
  0x1c   :  { %105 = vst.msk [vmem:[#allocation2 + $0x100] sm:$0x3] %vm74_vm1, %v13353_v1  ;;  %108 = vst.msk [vmem:[#allocation2 + $0x118] sm:$0x3] %vm74_vm1, %v13353_v1  ;;  %v771_v31 = vmax.f32 %v10347_v17, %v10475_v25  ;;  %v10349_v33 = vld [vmem:[%s18404_s27 + $0x90] ss:$2 sm:$0xff] }
  0x1d   :  { %106 = vst.msk [vmem:[#allocation2 + $0x108] sm:$0xff] %vm71_vm0, %v13353_v1  ;;  %107 = vst.msk [vmem:[#allocation2 + $0x110] sm:$0xff] %vm71_vm0, %v13353_v1  ;;  %v1277_v34 = vld [vmem:[#allocation2 + $0x2] sm:$0xff]  ;;  %v1278_v35 = vld [vmem:[#allocation2 + $0xa] sm:$0xff]  ;;  %v898_v37 = vsel %vm71_vm0, %v768_v26, -inf  ;;  %v901_v38 = vsel %vm71_vm0, %v769_v27, -inf }
  0x1e   :  { %109 = vst.msk [vmem:[#allocation2 + $0x120] sm:$0xff] %vm71_vm0, %v13353_v1  ;;  %110 = vst.msk [vmem:[#allocation2 + $0x128] sm:$0xff] %vm71_vm0, %v13353_v1  ;;  %v1213_v36 = vld [vmem:[#allocation2 + $0x1] sm:$0xff]  ;;  %v11490_v39 = vpack.i.bf16 %v1278_v35, %v1277_v34  ;;  %v1214_v40 = vld [vmem:[#allocation2 + $0x9] sm:$0xff]  ;;  %v899_v41 = vsel %vm71_vm0, %v770_v30, -inf  ;;  %v902_v42 = vsel %vm71_vm0, %v771_v31, -inf }
  0x1f   :  { %111 = vst.msk [vmem:[#allocation2 + $0x130] sm:$0x3] %vm74_vm1, %v13353_v1  ;;  %114 = vst.msk [vmem:[#allocation2 + $0x148] sm:$0x3] %vm74_vm1, %v13353_v1  ;;  %v10350_v43 = vld [vmem:[%s18404_s27 + $0xa0] ss:$2 sm:$0xff]  ;;  %v11485_v44 = vpack.i.bf16 %v1214_v40, %v1213_v36  ;;  %v900_v45 = vmax.f32 %v898_v37, %v899_v41  ;;  %v903_v46 = vmax.f32 %v901_v38, %v902_v42 }
  0x20   :  { %112 = vst.msk [vmem:[#allocation2 + $0x138] sm:$0xff] %vm71_vm0, %v13353_v1  ;;  %113 = vst.msk [vmem:[#allocation2 + $0x140] sm:$0xff] %vm71_vm0, %v13353_v1  ;;  %v10351_v47 = vld [vmem:[%s18404_s27 + $0xb0] ss:$2 sm:$0xff]  ;;  %v10476_v48 = vld [vmem:[%s18404_s27 + $0x81] ss:$2 sm:$0xff]  ;;  %11491 = vrot.lane.b32.xlu1 %v11490_v39, %s18383_s25 }
  0x21   :  { %115 = vst.msk [vmem:[#allocation2 + $0x150] sm:$0xff] %vm71_vm0, %v13353_v1  ;;  %116 = vst.msk [vmem:[#allocation2 + $0x158] sm:$0xff] %vm71_vm0, %v13353_v1  ;;  %v10477_v49 = vld [vmem:[%s18404_s27 + $0x91] ss:$2 sm:$0xff]  ;;  %v10478_v50 = vld [vmem:[%s18404_s27 + $0xa1] ss:$2 sm:$0xff]  ;;  %v772_v52 = vmax.f32 %v10348_v32, %v10476_v48  ;;  %11486 = vrot.lane.b32.xlu0 %v11485_v44, %s18387_s29 }
  0x22   :  { %117 = vst.msk [vmem:[#allocation2 + $0x160] sm:$0x3] %vm74_vm1, %v13353_v1  ;;  %120 = vst.msk [vmem:[#allocation2 + $0x178] sm:$0x3] %vm74_vm1, %v13353_v1  ;;  %v10479_v51 = vld [vmem:[%s18404_s27 + $0xb1] ss:$2 sm:$0xff]  ;;  %v773_v53 = vmax.f32 %v10349_v33, %v10477_v49  ;;  %v774_v54 = vmax.f32 %v10350_v43, %v10478_v50 }
  0x23   :  { %118 = vst.msk [vmem:[#allocation2 + $0x168] sm:$0xff] %vm71_vm0, %v13353_v1  ;;  %119 = vst.msk [vmem:[#allocation2 + $0x170] sm:$0xff] %vm71_vm0, %v13353_v1  ;;  %v775_v55 = vmax.f32 %v10351_v47, %v10479_v51  ;;  %v10352_v56 = vld [vmem:[%s18404_s27 + $0xc0] ss:$2 sm:$0xff]  ;;  %v10353_v57 = vld [vmem:[%s18404_s27 + $0xd0] ss:$2 sm:$0xff] }
  0x24   :  { %121 = vst.msk [vmem:[#allocation2 + $0x180] sm:$0xff] %vm71_vm0, %v13353_v1  ;;  %122 = vst.msk [vmem:[#allocation2 + $0x188] sm:$0xff] %vm71_vm0, %v13353_v1  ;;  %v10354_v58 = vld [vmem:[%s18404_s27 + $0xe0] ss:$2 sm:$0xff]  ;;  %v904_v59 = vsel %vm71_vm0, %v772_v52, -inf  ;;  %v907_v60 = vsel %vm71_vm0, %v773_v53, -inf }
  0x25   :  { %123 = vst.msk [vmem:[#allocation2 + $0x190] sm:$0x3] %vm74_vm1, %v13353_v1  ;;  %126 = vst.msk [vmem:[#allocation2 + $0x1a8] sm:$0x3] %vm74_vm1, %v13353_v1  ;;  %v10355_v61 = vld [vmem:[%s18404_s27 + $0xf0] ss:$2 sm:$0xff] }
  0x26   :  { %124 = vst.msk [vmem:[#allocation2 + $0x198] sm:$0xff] %vm71_vm0, %v13353_v1  ;;  %125 = vst.msk [vmem:[#allocation2 + $0x1a0] sm:$0xff] %vm71_vm0, %v13353_v1  ;;  %v10480_v62 = vld [vmem:[%s18404_s27 + $0xc1] ss:$2 sm:$0xff]  ;;  %v905_v63 = vsel %vm71_vm0, %v774_v54, -inf  ;;  %v908_v0 = vsel %vm71_vm0, %v775_v55, -inf }
  0x27   :  { %127 = vst.msk [vmem:[#allocation2 + $0x1b0] sm:$0xff] %vm71_vm0, %v13353_v1  ;;  %128 = vst.msk [vmem:[#allocation2 + $0x1b8] sm:$0xff] %vm71_vm0, %v13353_v1  ;;  %v10481_v2 = vld [vmem:[%s18404_s27 + $0xd1] ss:$2 sm:$0xff]  ;;  %v10482_v3 = vld [vmem:[%s18404_s27 + $0xe1] ss:$2 sm:$0xff]  ;;  %v776_v4 = vmax.f32 %v10352_v56, %v10480_v62  ;;  %v906_v5 = vmax.f32 %v904_v59, %v905_v63  ;;  %v909_v6 = vmax.f32 %v907_v60, %v908_v0 }
  0x28   :  { %129 = vst.msk [vmem:[#allocation2 + $0x1c0] sm:$0x3] %vm74_vm1, %v13353_v1  ;;  %132 = vst.msk [vmem:[#allocation2 + $0x1d8] sm:$0x3] %vm74_vm1, %v13353_v1  ;;  %v10483_v7 = vld [vmem:[%s18404_s27 + $0xf1] ss:$2 sm:$0xff]  ;;  %v777_v8 = vmax.f32 %v10353_v57, %v10481_v2  ;;  %v778_v9 = vmax.f32 %v10354_v58, %v10482_v3 }
  0x29   :  { %130 = vst.msk [vmem:[#allocation2 + $0x1c8] sm:$0xff] %vm71_vm0, %v13353_v1  ;;  %131 = vst.msk [vmem:[#allocation2 + $0x1d0] sm:$0xff] %vm71_vm0, %v13353_v1  ;;  %v779_v13 = vmax.f32 %v10355_v61, %v10483_v7  ;;  %v910_v14 = vsel %vm71_vm0, %v776_v4, -inf  ;;  %v10356_v24 = vld [vmem:[%s18404_s27 + $0x100] ss:$2 sm:$0xff]  ;;  %s18413_s23 = smov 8  }
  0x2a   :  { %133 = vst.msk [vmem:[#allocation2 + $0x1e0] sm:$0xff] %vm71_vm0, %v13353_v1  ;;  %134 = vst.msk [vmem:[#allocation2 + $0x1e8] sm:$0xff] %vm71_vm0, %v13353_v1  ;;  %v911_v19 = vsel %vm71_vm0, %v778_v9, -inf  ;;  %v913_v20 = vsel %vm71_vm0, %v777_v8, -inf  ;;  %v10357_v25 = vld [vmem:[%s18404_s27 + $0x110] ss:$2 sm:$0xff] }
  0x2b   :  { %135 = vst.msk [vmem:[#allocation2 + $0x1f0] sm:$0x3] %vm74_vm1, %v13353_v1  ;;  %138 = vst.msk [vmem:[#allocation2 + $0x208] sm:$0x3] %vm74_vm1, %v13353_v1  ;;  %v912_v22 = vmax.f32 %v910_v14, %v911_v19  ;;  %v914_v23 = vsel %vm71_vm0, %v779_v13, -inf  ;;  %v13006_v14 = vld [vmem:[%s18405_s26] sm:$0xff]  }
  0x2c   :  { %136 = vst.msk [vmem:[#allocation2 + $0x1f8] sm:$0xff] %vm71_vm0, %v13353_v1  ;;  %137 = vst.msk [vmem:[#allocation2 + $0x200] sm:$0xff] %vm71_vm0, %v13353_v1  ;;  %v10359_v34 = vld [vmem:[%s18404_s27 + $0x130] ss:$2 sm:$0xff]  ;;  %v10484_v36 = vld [vmem:[%s18404_s27 + $0x101] ss:$2 sm:$0xff]  ;;  %11292 = vmatprep.subr.bf16.mxu0 %v13006_v14 }
  0x2d   :  { %139 = vst.msk [vmem:[#allocation2 + $0x210] sm:$0xff] %vm71_vm0, %v13353_v1  ;;  %140 = vst.msk [vmem:[#allocation2 + $0x218] sm:$0xff] %vm71_vm0, %v13353_v1  ;;  %v10485_v37 = vld [vmem:[%s18404_s27 + $0x111] ss:$2 sm:$0xff]  ;;  %v10486_v38 = vld [vmem:[%s18404_s27 + $0x121] ss:$2 sm:$0xff]  ;;  %v780_v41 = vmax.f32 %v10356_v24, %v10484_v36  ;;  %11293 = vmatpush3.bf16.msra.mxu0 %v13006_v14 }
  0x2e   :  { %141 = vst.msk [vmem:[#allocation2 + $0x220] sm:$0x3] %vm74_vm1, %v13353_v1  ;;  %144 = vst.msk [vmem:[#allocation2 + $0x238] sm:$0x3] %vm74_vm1, %v13353_v1  ;;  %v10487_v40 = vld [vmem:[%s18404_s27 + $0x131] ss:$2 sm:$0xff]  ;;  %v781_v42 = vmax.f32 %v10357_v25, %v10485_v37 }
  0x2f   :  { %142 = vst.msk [vmem:[#allocation2 + $0x228] sm:$0xff] %vm71_vm0, %v13353_v1  ;;  %143 = vst.msk [vmem:[#allocation2 + $0x230] sm:$0xff] %vm71_vm0, %v13353_v1  ;;  %v10360_v44 = vld [vmem:[%s18404_s27 + $0x140] ss:$2 sm:$0xff]  ;;  %v10361_v47 = vld [vmem:[%s18404_s27 + $0x150] ss:$2 sm:$0xff] }
  0x30   :  { %145 = vst.msk [vmem:[#allocation2 + $0x240] sm:$0xff] %vm71_vm0, %v13353_v1  ;;  %146 = vst.msk [vmem:[#allocation2 + $0x248] sm:$0xff] %vm71_vm0, %v13353_v1  ;;  %v10362_v48 = vld [vmem:[%s18404_s27 + $0x160] ss:$2 sm:$0xff]  ;;  %v10488_v49 = vld [vmem:[%s18404_s27 + $0x141] ss:$2 sm:$0xff] }
  0x31   :  { %147 = vst.msk [vmem:[#allocation2 + $0x250] sm:$0x3] %vm74_vm1, %v13353_v1  ;;  %150 = vst.msk [vmem:[#allocation2 + $0x268] sm:$0x3] %vm74_vm1, %v13353_v1  ;;  %v916_v50 = vsel %vm71_vm0, %v780_v41, -inf  ;;  %v919_v52 = vsel %vm71_vm0, %v781_v42, -inf  ;;  %v784_v54 = vmax.f32 %v10360_v44, %v10488_v49 }
  0x32   :  { %148 = vst.msk [vmem:[#allocation2 + $0x258] sm:$0xff] %vm71_vm0, %v13353_v1  ;;  %149 = vst.msk [vmem:[#allocation2 + $0x260] sm:$0xff] %vm71_vm0, %v13353_v1  ;;  %v10363_v53 = vld [vmem:[%s18404_s27 + $0x170] ss:$2 sm:$0xff]  ;;  %v10489_v59 = vld [vmem:[%s18404_s27 + $0x151] ss:$2 sm:$0xff] }
  0x33   :  { %151 = vst.msk [vmem:[#allocation2 + $0x270] sm:$0xff] %vm71_vm0, %v13353_v1  ;;  %152 = vst.msk [vmem:[#allocation2 + $0x278] sm:$0xff] %vm71_vm0, %v13353_v1  ;;  %v10490_v60 = vld [vmem:[%s18404_s27 + $0x161] ss:$2 sm:$0xff]  ;;  %v10491_v61 = vld [vmem:[%s18404_s27 + $0x171] ss:$2 sm:$0xff]  ;;  %v785_v62 = vmax.f32 %v10361_v47, %v10489_v59 }
  0x34   :  { %153 = vst.msk [vmem:[#allocation2 + $0x280] sm:$0x3] %vm74_vm1, %v13353_v1  ;;  %156 = vst.msk [vmem:[#allocation2 + $0x298] sm:$0x3] %vm74_vm1, %v13353_v1  ;;  %v786_v63 = vmax.f32 %v10362_v48, %v10490_v60  ;;  %v787_v0 = vmax.f32 %v10363_v53, %v10491_v61  ;;  %v922_v2 = vsel %vm71_vm0, %v784_v54, -inf  ;;  %vm4227_vm9 = vcmask 523264  }
  0x35   :  { %154 = vst.msk [vmem:[#allocation2 + $0x288] sm:$0xff] %vm71_vm0, %v13353_v1  ;;  %155 = vst.msk [vmem:[#allocation2 + $0x290] sm:$0xff] %vm71_vm0, %v13353_v1  ;;  %v10364_v7 = vld [vmem:[%s18404_s27 + $0x180] ss:$2 sm:$0xff]  ;;  %v10365_v8 = vld [vmem:[%s18404_s27 + $0x190] ss:$2 sm:$0xff] }
  0x36   :  { %157 = vst.msk [vmem:[#allocation2 + $0x2a0] sm:$0xff] %vm71_vm0, %v13353_v1  ;;  %158 = vst.msk [vmem:[#allocation2 + $0x2a8] sm:$0xff] %vm71_vm0, %v13353_v1  ;;  %v10367_v13 = vld [vmem:[%s18404_s27 + $0x1b0] ss:$2 sm:$0xff]  ;;  %v10493_v19 = vld [vmem:[%s18404_s27 + $0x191] ss:$2 sm:$0xff] }
  0x37   :  { %159 = vst.msk [vmem:[#allocation2 + $0x2b0] sm:$0x3] %vm74_vm1, %v13353_v1  ;;  %162 = vst.msk [vmem:[#allocation2 + $0x2c8] sm:$0x3] %vm74_vm1, %v13353_v1  ;;  %v789_v24 = vmax.f32 %v10365_v8, %v10493_v19  ;;  %v10497_v41 = vld [vmem:[%s18404_s27 + $0x1d1] ss:$2 sm:$0xff] }
  0x38   :  { %160 = vst.msk [vmem:[#allocation2 + $0x2b8] sm:$0xff] %vm71_vm0, %v13353_v1  ;;  %161 = vst.msk [vmem:[#allocation2 + $0x2c0] sm:$0xff] %vm71_vm0, %v13353_v1  ;;  %v10498_v42 = vld [vmem:[%s18404_s27 + $0x1e1] ss:$2 sm:$0xff]  ;;  %v10499_v44 = vld [vmem:[%s18404_s27 + $0x1f1] ss:$2 sm:$0xff] }
  0x39   :  { %163 = vst.msk [vmem:[#allocation2 + $0x2d0] sm:$0xff] %vm71_vm0, %v13353_v1  ;;  %164 = vst.msk [vmem:[#allocation2 + $0x2d8] sm:$0xff] %vm71_vm0, %v13353_v1  ;;  %v10372_v47 = vld [vmem:[%s18404_s27 + $0x200] ss:$2 sm:$0xff]  ;;  %v10373_v48 = vld [vmem:[%s18404_s27 + $0x210] ss:$2 sm:$0xff] }
  0x3a   :  { %165 = vst.msk [vmem:[#allocation2 + $0x2e0] sm:$0x3] %vm74_vm1, %v13353_v1  ;;  %168 = vst.msk [vmem:[#allocation2 + $0x2f8] sm:$0x3] %vm74_vm1, %v13353_v1  ;;  %v10375_v54 = vld [vmem:[%s18404_s27 + $0x230] ss:$2 sm:$0xff] }
  0x3b   :  { %166 = vst.msk [vmem:[#allocation2 + $0x2e8] sm:$0xff] %vm71_vm0, %v13353_v1  ;;  %167 = vst.msk [vmem:[#allocation2 + $0x2f0] sm:$0xff] %vm71_vm0, %v13353_v1  ;;  %v10379_v19 = vld [vmem:[%s18404_s27 + $0x270] ss:$2 sm:$0xff]  ;;  %vm4367_vm10 = vcmask 588800   ;;  %vm183_vm11 = vcmask 254976  }
  0x3c   :  { %169 = vst.msk [vmem:[#allocation2 + $0x300] sm:$0xff] %vm71_vm0, %v13353_v1  ;;  %170 = vst.msk [vmem:[#allocation2 + $0x308] sm:$0xff] %vm71_vm0, %v13353_v1 }
  0x3d   :  { %171 = vst.msk [vmem:[#allocation2 + $0x310] sm:$0x3] %vm74_vm1, %v13353_v1  ;;  %174 = vst.msk [vmem:[#allocation2 + $0x328] sm:$0x3] %vm74_vm1, %v13353_v1 }
  0x3e   :  { %172 = vst.msk [vmem:[#allocation2 + $0x318] sm:$0xff] %vm71_vm0, %v13353_v1  ;;  %173 = vst.msk [vmem:[#allocation2 + $0x320] sm:$0xff] %vm71_vm0, %v13353_v1 }
  0x3f   :  { %175 = vst.msk [vmem:[#allocation2 + $0x330] sm:$0xff] %vm71_vm0, %v13353_v1  ;;  %176 = vst.msk [vmem:[#allocation2 + $0x338] sm:$0xff] %vm71_vm0, %v13353_v1 }
  0x40   :  { %177 = vst.msk [vmem:[#allocation2 + $0x340] sm:$0x3] %vm74_vm1, %v13353_v1  ;;  %180 = vst.msk [vmem:[#allocation2 + $0x358] sm:$0x3] %vm74_vm1, %v13353_v1 }
  0x41   :  { %178 = vst.msk [vmem:[#allocation2 + $0x348] sm:$0xff] %vm71_vm0, %v13353_v1  ;;  %179 = vst.msk [vmem:[#allocation2 + $0x350] sm:$0xff] %vm71_vm0, %v13353_v1 }
  0x42   :  { %236 = vst [vmem:[#allocation8] sm:$0xf] %v13353_v1  ;;  %237 = vst [vmem:[#allocation8 + $0x4] sm:$0xf] %v13353_v1 }
  0x43   :  { %238 = vst [vmem:[#allocation8 + $0x8] sm:$0xf] %v13353_v1  ;;  %239 = vst [vmem:[#allocation8 + $0xc] sm:$0xf] %v13353_v1 }
  0x44   :  { %240 = vst [vmem:[#allocation8 + $0x10] sm:$0xf] %v13353_v1  ;;  %241 = vst [vmem:[#allocation8 + $0x14] sm:$0xf] %v13353_v1 }
  0x45   :  { %242 = vst [vmem:[#allocation8 + $0x18] sm:$0xf] %v13353_v1  ;;  %243 = vst [vmem:[#allocation8 + $0x1c] sm:$0xf] %v13353_v1 }
  0x46   :  { %1085 = vst.msk [vmem:[#allocation2 + $0x19] sm:$0xff] %vm71_vm0, %v894_v28  ;;  %1086 = vst.msk [vmem:[#allocation2 + $0x21] sm:$0xff] %vm71_vm0, %v897_v29  ;;  %v915_v28 = vmax.f32 %v913_v20, %v914_v23  ;;  %v10358_v29 = vld [vmem:[%s18404_s27 + $0x120] ss:$2 sm:$0xff]  ;;  %v10494_v20 = vld [vmem:[%s18404_s27 + $0x1a1] ss:$2 sm:$0xff] }
  0x47   :  { %1087 = vst.msk [vmem:[#allocation2 + $0x31] sm:$0xff] %vm71_vm0, %v900_v45  ;;  %1088 = vst.msk [vmem:[#allocation2 + $0x39] sm:$0xff] %vm71_vm0, %v903_v46  ;;  %v782_v43 = vmax.f32 %v10358_v29, %v10486_v38  ;;  %v783_v46 = vmax.f32 %v10359_v34, %v10487_v40 }
  0x48   :  { %1089 = vst.msk [vmem:[#allocation2 + $0x49] sm:$0xff] %vm71_vm0, %v906_v5  ;;  %1090 = vst.msk [vmem:[#allocation2 + $0x51] sm:$0xff] %vm71_vm0, %v909_v6  ;;  %v923_v5 = vsel %vm71_vm0, %v786_v63, -inf  ;;  %v925_v6 = vsel %vm71_vm0, %v785_v62, -inf }
  0x49   :  { %182 = vst.msk [vmem:[#allocation4] sm:$0xff] %vm181_vm2, %v13353_v1  ;;  %185 = vst.msk [vmem:[#allocation4 + $0x10] sm:$0xff] %vm181_vm2, %v13353_v1  ;;  %v917_v51 = vsel %vm71_vm0, %v782_v43, -inf  ;;  %v920_v56 = vsel %vm71_vm0, %v783_v46, -inf }
  0x4a   :  { %187 = vst.msk [vmem:[#allocation4 + $0x20] sm:$0xff] %vm181_vm2, %v13353_v1  ;;  %189 = vst.msk [vmem:[#allocation4 + $0x30] sm:$0xff] %vm181_vm2, %v13353_v1  ;;  %v918_v55 = vmax.f32 %v916_v50, %v917_v51  ;;  %v921_v58 = vmax.f32 %v919_v52, %v920_v56  ;;  %v10374_v50 = vld [vmem:[%s18404_s27 + $0x220] ss:$2 sm:$0xff]  ;;  %v10500_v51 = vld [vmem:[%s18404_s27 + $0x201] ss:$2 sm:$0xff] }
  0x4b   :  { %191 = vst.msk [vmem:[#allocation4 + $0x40] sm:$0xff] %vm181_vm2, %v13353_v1  ;;  %193 = vst.msk [vmem:[#allocation4 + $0x50] sm:$0xff] %vm181_vm2, %v13353_v1  ;;  %v796_v56 = vmax.f32 %v10372_v47, %v10500_v51  ;;  %v10509_v47 = vld [vmem:[%s18404_s27 + $0x291] ss:$2 sm:$0xff] }
  0x4c   :  { %195 = vst.msk [vmem:[#allocation4 + $0x60] sm:$0xff] %vm181_vm2, %v13353_v1  ;;  %197 = vst.msk [vmem:[#allocation4 + $0x70] sm:$0xff] %vm181_vm2, %v13353_v1 }
  0x4d   :  { %v1279_v10 = vld [vmem:[#allocation2 + $0x1a] sm:$0xff]  ;;  %v1280_v11 = vld [vmem:[#allocation2 + $0x22] sm:$0xff]  ;;  %199 = vst.msk [vmem:[#allocation4 + $0x80] sm:$0xff] %vm181_vm2, %v13353_v1  ;;  %201 = vst.msk [vmem:[#allocation4 + $0x90] sm:$0xff] %vm181_vm2, %v13353_v1 }
  0x4e   :  { %v1215_v12 = vld [vmem:[#allocation2 + $0x19] sm:$0xff]  ;;  %v13820_v15 = vpack.i.bf16 %v1280_v11, %v1279_v10  ;;  %v1216_v16 = vld [vmem:[#allocation2 + $0x21] sm:$0xff]  ;;  %203 = vst.msk [vmem:[#allocation4 + $0xa0] sm:$0xff] %vm181_vm2, %v13353_v1  ;;  %205 = vst.msk [vmem:[#allocation4 + $0xb0] sm:$0xff] %vm181_vm2, %v13353_v1  ;;  %v924_v10 = vmax.f32 %v922_v2, %v923_v5  ;;  %v926_v11 = vsel %vm71_vm0, %v787_v0, -inf }
  0x4f   :  { %v1341_v17 = vld [vmem:[#allocation2 + $0x18] sm:$0xff]  ;;  %v1342_v18 = vld [vmem:[#allocation2 + $0x20] sm:$0xff]  ;;  %v13826_v21 = vpack.i.bf16 %v1216_v16, %v1215_v12  ;;  %207 = vst.msk [vmem:[#allocation4 + $0xc0] sm:$0xff] %vm181_vm2, %v13353_v1  ;;  %209 = vst.msk [vmem:[#allocation4 + $0xd0] sm:$0xff] %vm181_vm2, %v13353_v1 }
  0x50   :  { %211 = vst.msk [vmem:[#allocation4 + $0xe0] sm:$0xff] %vm181_vm2, %v13353_v1  ;;  %213 = vst.msk [vmem:[#allocation4 + $0xf0] sm:$0xff] %vm181_vm2, %v13353_v1  ;;  %11501 = vrot.lane.b32.xlu1 %v13820_v15, %s18383_s25  ;;  %v1343_v26 = vld [vmem:[#allocation2 + $0x30] sm:$0xff]  ;;  %v1344_v27 = vld [vmem:[#allocation2 + $0x38] sm:$0xff]  ;;  %v11505_v31 = vpack.i.bf16 %v1342_v18, %v1341_v17  ;;  %v927_v17 = vmax.f32 %v925_v6, %v926_v11 }
  0x51   :  { %215 = vst.msk [vmem:[#allocation4 + $0x100] sm:$0xff] %vm181_vm2, %v13353_v1  ;;  %217 = vst.msk [vmem:[#allocation4 + $0x110] sm:$0xff] %vm181_vm2, %v13353_v1  ;;  %11496 = vrot.lane.b32.xlu0 %v13826_v21, %s18387_s29  ;;  %v13882_v30 = vpack.i.bf16 %v1344_v27, %v1343_v26  ;;  %v1407_v32 = vld [vmem:[#allocation2 + $0x31] sm:$0xff]  ;;  %v1408_v33 = vld [vmem:[#allocation2 + $0x39] sm:$0xff] }
  0x52   :  { %219 = vst.msk [vmem:[#allocation4 + $0x120] sm:$0xff] %vm181_vm2, %v13353_v1  ;;  %221 = vst.msk [vmem:[#allocation4 + $0x130] sm:$0xff] %vm181_vm2, %v13353_v1  ;;  %v1471_v35 = vld [vmem:[#allocation2 + $0x32] sm:$0xff]  ;;  %v1472_v39 = vld [vmem:[#allocation2 + $0x3a] sm:$0xff]  ;;  %v13906_v45 = vpack.i.bf16 %v1408_v33, %v1407_v32  ;;  %v931_v32 = vsel %vm71_vm0, %v789_v24, -inf }
  0x53   :  { %1091 = vst.msk [vmem:[#allocation2 + $0x61] sm:$0xff] %vm71_vm0, %v912_v22  ;;  %1092 = vst.msk [vmem:[#allocation2 + $0x69] sm:$0xff] %vm71_vm0, %v915_v28  ;;  %v13925_v57 = vpack.i.bf16 %v1472_v39, %v1471_v35  ;;  %v1536_v3 = vld [vmem:[#allocation2 + $0x48] sm:$0xff]  ;;  %v1537_v4 = vld [vmem:[#allocation2 + $0x50] sm:$0xff] }
  0x54   :  { %11511 = vrot.lane.b32.xlu1 %v13882_v30, %s18381_s2  ;;  %1093 = vst.msk [vmem:[#allocation2 + $0x79] sm:$0xff] %vm71_vm0, %v918_v55  ;;  %1094 = vst.msk [vmem:[#allocation2 + $0x81] sm:$0xff] %vm71_vm0, %v921_v58  ;;  %v1600_v9 = vld [vmem:[#allocation2 + $0x49] sm:$0xff]  ;;  %v13963_v16 = vpack.i.bf16 %v1537_v4, %v1536_v3  ;;  %v10495_v22 = vld [vmem:[%s18404_s27 + $0x1b1] ss:$2 sm:$0xff]  ;;  %v940_v3 = vsel %vm71_vm0, %v796_v56, -inf }
  0x55   :  { %11506 = vrot.lane.b32.xlu0 %v11505_v31, %s18381_s2  ;;  %v10366_v12 = vld [vmem:[%s18404_s27 + $0x1a0] ss:$2 sm:$0xff]  ;;  %v10492_v18 = vld [vmem:[%s18404_s27 + $0x181] ss:$2 sm:$0xff]  ;;  %1095 = vst.msk [vmem:[#allocation2 + $0x91] sm:$0xff] %vm71_vm0, %v924_v10  ;;  %1096 = vst.msk [vmem:[#allocation2 + $0x99] sm:$0xff] %vm71_vm0, %v927_v17  ;;  %v791_v27 = vmax.f32 %v10367_v13, %v10495_v22 }
  0x56   :  { %v788_v23 = vmax.f32 %v10364_v7, %v10492_v18  ;;  %v790_v25 = vmax.f32 %v10366_v12, %v10494_v20  ;;  %v10368_v26 = vld [vmem:[%s18404_s27 + $0x1c0] ss:$2 sm:$0xff]  ;;  %v10496_v28 = vld [vmem:[%s18404_s27 + $0x1c1] ss:$2 sm:$0xff]  ;;  %v10371_v39 = vld [vmem:[%s18404_s27 + $0x1f0] ss:$2 sm:$0xff] }
  0x57   :  { %v10370_v33 = vld [vmem:[%s18404_s27 + $0x1e0] ss:$2 sm:$0xff]  ;;  %v792_v34 = vmax.f32 %v10368_v26, %v10496_v28  ;;  %v932_v38 = vsel %vm71_vm0, %v791_v27, -inf  ;;  %v795_v49 = vmax.f32 %v10371_v39, %v10499_v44  ;;  %v10501_v55 = vld [vmem:[%s18404_s27 + $0x211] ss:$2 sm:$0xff] }
  0x58   :  { %11521 = vrot.lane.b32.xlu1 %v13906_v45, %s18391_s3  ;;  %v928_v29 = vsel %vm71_vm0, %v788_v23, -inf  ;;  %v929_v31 = vsel %vm71_vm0, %v790_v25, -inf  ;;  %v13007_v35 = vld [vmem:[%s18405_s26 + $0x8] sm:$0xff]   ;;  %v933_v40 = vmax.f32 %v931_v32, %v932_v38  ;;  %v797_v61 = vmax.f32 %v10373_v48, %v10501_v55  ;;  %v1665_v62 = vld [vmem:[#allocation2 + $0x52] sm:$0xff]  ;;  %v13010_v39 = vld [vmem:[%s18405_s26 + $0x20] ss:$0 sps:$4 sm:$0xff]  }
  0x59   :  { %11516 = vrot.lane.b32.xlu0 %v13826_v21, %s18391_s3  ;;  %v1601_v21 = vld [vmem:[#allocation2 + $0x51] sm:$0xff]  ;;  %v930_v37 = vmax.f32 %v928_v29, %v929_v31  ;;  %v934_v43 = vsel %vm71_vm0, %v792_v34, -inf  ;;  %11294 = vmatprep.subr.bf16.mxu0 %v13007_v35  ;;  %v938_v60 = vsel %vm71_vm0, %v795_v49, -inf  ;;  %v10502_v0 = vld [vmem:[%s18404_s27 + $0x221] ss:$2 sm:$0xff] }
  0x5a   :  { %v14001_v36 = vpack.i.bf16 %v1601_v21, %v1600_v9  ;;  %11295 = vmatpush3.bf16.msra.mxu0 %v13007_v35  ;;  %1098 = vst.msk [vmem:[#allocation2 + $0xb1] sm:$0xff] %vm71_vm0, %v933_v40  ;;  %v1664_v58 = vld [vmem:[#allocation2 + $0x4a] sm:$0xff]  ;;  %v798_v4 = vmax.f32 %v10374_v50, %v10502_v0  ;;  %v943_v6 = vsel %vm71_vm0, %v797_v61, -inf  ;;  %v1347_v14 = vld [vmem:[#allocation2 + $0x60] sm:$0xff]  ;;  %v13009_v38 = vld [vmem:[%s18405_s26 + $0x18] sm:$0xff]  }
  0x5b   :  { %1097 = vst.msk [vmem:[#allocation2 + $0xa9] sm:$0xff] %vm71_vm0, %v930_v37  ;;  %v10503_v2 = vld [vmem:[%s18404_s27 + $0x231] ss:$2 sm:$0xff]  ;;  %v14063_v8 = vpack.i.bf16 %v1665_v62, %v1664_v58  ;;  %v10376_v13 = vld [vmem:[%s18404_s27 + $0x240] ss:$2 sm:$0xff] }
  0x5c   :  { %11531 = vrot.lane.b32.xlu1 %v13925_v57, %s18389_s28  ;;  %v799_v5 = vmax.f32 %v10375_v54, %v10503_v2  ;;  %v13008_v7 = vld [vmem:[%s18405_s26 + $0x10] sm:$0xff]   ;;  %v941_v9 = vsel %vm71_vm0, %v798_v4, -inf  ;;  %v1348_v17 = vld [vmem:[#allocation2 + $0x68] sm:$0xff]  ;;  %v1540_v54 = vld [vmem:[#allocation2 + $0x78] sm:$0xff]  ;;  %s18407_s26 = smov 56  }
  0x5d   :  { %11526 = vrot.lane.b32.xlu0 %v13820_v15, %s18389_s28  ;;  %v10369_v15 = vld [vmem:[%s18404_s27 + $0x1d0] ss:$2 sm:$0xff]  ;;  %11296 = vmatprep.subr.bf16.mxu0 %v13008_v7  ;;  %v942_v11 = vmax.f32 %v940_v3, %v941_v9  ;;  %v10378_v18 = vld [vmem:[%s18404_s27 + $0x260] ss:$2 sm:$0xff]  ;;  %v10504_v20 = vld [vmem:[%s18404_s27 + $0x241] ss:$2 sm:$0xff]  ;;  %v14102_v31 = vpack.i.bf16 %v1348_v17, %v1347_v14 }
  0x5e   :  { %v793_v46 = vmax.f32 %v10369_v15, %v10497_v41  ;;  %v944_v10 = vsel %vm71_vm0, %v799_v5, -inf  ;;  %11297 = vmatpush3.bf16.msra.mxu0 %v13008_v7  ;;  %v10505_v21 = vld [vmem:[%s18404_s27 + $0x251] ss:$2 sm:$0xff]  ;;  %v10506_v22 = vld [vmem:[%s18404_s27 + $0x261] ss:$2 sm:$0xff]  ;;  %v800_v24 = vmax.f32 %v10376_v13, %v10504_v20 }
  0x5f   :  { %v945_v12 = vmax.f32 %v943_v6, %v944_v10  ;;  %1101 = vst.msk [vmem:[#allocation2 + $0xd9] sm:$0xff] %vm71_vm0, %v942_v11  ;;  %v10507_v23 = vld [vmem:[%s18404_s27 + $0x271] ss:$2 sm:$0xff]  ;;  %v802_v26 = vmax.f32 %v10378_v18, %v10506_v22  ;;  %v1411_v32 = vld [vmem:[#allocation2 + $0x61] sm:$0xff]  ;;  %v1412_v35 = vld [vmem:[#allocation2 + $0x69] sm:$0xff]  ;;  %11298 = vmatprep.subr.bf16.mxu0 %v13009_v38 }
  0x60   :  { %11541 = vrot.lane.b32.xlu1 %v13963_v16, %s18377_s0  ;;  %v937_v53 = vsel %vm71_vm0, %v793_v46, -inf  ;;  %v803_v27 = vmax.f32 %v10379_v19, %v10507_v23  ;;  %v946_v15 = vsel %vm71_vm0, %v800_v24, -inf  ;;  %v1475_v40 = vld [vmem:[#allocation2 + $0x62] sm:$0xff]  ;;  %v1476_v41 = vld [vmem:[#allocation2 + $0x6a] sm:$0xff]  ;;  %v1604_v10 = vld [vmem:[#allocation2 + $0x79] sm:$0xff] }
  0x61   :  { %11536 = vrot.lane.b32.xlu0 %v13882_v30, %s18377_s0  ;;  %v794_v30 = vmax.f32 %v10370_v33, %v10498_v42  ;;  %s18379_s0 = smov 56   ;;  %v939_v63 = vmax.f32 %v937_v53, %v938_v60  ;;  %1102 = vst.msk [vmem:[#allocation2 + $0xe1] sm:$0xff] %vm71_vm0, %v945_v12  ;;  %v947_v28 = vsel %vm71_vm0, %v802_v26, -inf  ;;  %v4466_v42 = vsel %vm4464_vm3, %v13010_v39, 0  ;;  %v10381_v44 = vld [vmem:[%s18404_s27 + $0x290] ss:$2 sm:$0xff] }
  0x62   :  { %v948_v33 = vmax.f32 %v946_v15, %v947_v28  ;;  %v950_v34 = vsel %vm71_vm0, %v803_v27, -inf  ;;  %11299 = vmatpush3.bf16.msra.mxu0 %v13009_v38  ;;  %v10382_v46 = vld [vmem:[%s18404_s27 + $0x2a0] ss:$2 sm:$0xff]  ;;  %v10510_v48 = vld [vmem:[%s18404_s27 + $0x2a1] ss:$2 sm:$0xff]  ;;  %v805_v51 = vmax.f32 %v10381_v44, %v10509_v47  ;;  %v14152_v53 = vpack.i.bf16 %v1476_v41, %v1475_v40 }
  0x63   :  { %v935_v52 = vsel %vm71_vm0, %v794_v30, -inf  ;;  %1100 = vst.msk [vmem:[#allocation2 + $0xc9] sm:$0xff] %vm71_vm0, %v939_v63  ;;  %11469 = vmatprep.subr.msk.bf16.mxu0 %vm4464_vm3, %v13010_v39  ;;  %v10383_v30 = vld [vmem:[%s18404_s27 + $0x2b0] ss:$2 sm:$0xff]  ;;  %v10511_v49 = vld [vmem:[%s18404_s27 + $0x2b1] ss:$2 sm:$0xff]  ;;  %v806_v56 = vmax.f32 %v10382_v46, %v10510_v48 }
  0x64   :  { %11551 = vrot.lane.b32.xlu1 %v14001_v36, %s18379_s0  ;;  %v936_v59 = vmax.f32 %v934_v43, %v935_v52  ;;  %1103 = vst.msk [vmem:[#allocation2 + $0xf1] sm:$0xff] %vm71_vm0, %v948_v33  ;;  %v10380_v43 = vld [vmem:[%s18404_s27 + $0x280] ss:$2 sm:$0xff]  ;;  %v807_v58 = vmax.f32 %v10383_v30, %v10511_v49  ;;  %v955_v61 = vsel %vm71_vm0, %v805_v51, -inf  ;;  %v10512_v63 = vld [vmem:[%s18404_s27 + $0x2c1] ss:$2 sm:$0xff] }
  0x65   :  { %11546 = vrot.lane.b32.xlu0 %v13906_v45, %s18379_s0  ;;  %v10384_v52 = vld [vmem:[%s18404_s27 + $0x2c0] ss:$2 sm:$0xff]  ;;  %v953_v0 = vsel %vm71_vm0, %v806_v56, -inf  ;;  %v10513_v6 = vld [vmem:[%s18404_s27 + $0x2d1] ss:$2 sm:$0xff] }
  0x66   :  { %1099 = vst.msk [vmem:[#allocation2 + $0xc1] sm:$0xff] %vm71_vm0, %v936_v59  ;;  %v1541_v55 = vld [vmem:[#allocation2 + $0x80] sm:$0xff]  ;;  %11301 = vmatpush3.bf16.msra.mxu0 %v4466_v42  ;;  %v10385_v59 = vld [vmem:[%s18404_s27 + $0x2d0] ss:$2 sm:$0xff]  ;;  %v956_v2 = vsel %vm71_vm0, %v807_v58, -inf  ;;  %v808_v3 = vmax.f32 %v10384_v52, %v10512_v63 }
  0x67   :  { %v10386_v62 = vld [vmem:[%s18404_s27 + $0x2e0] ss:$2 sm:$0xff]  ;;  %v957_v5 = vmax.f32 %v955_v61, %v956_v2  ;;  %v10514_v7 = vld [vmem:[%s18404_s27 + $0x2e1] ss:$2 sm:$0xff]  ;;  %v14180_v9 = vpack.i.bf16 %v1541_v55, %v1540_v54  ;;  %v10515_v11 = vld [vmem:[%s18404_s27 + $0x2f1] ss:$2 sm:$0xff]  ;;  %v809_v12 = vmax.f32 %v10385_v59, %v10513_v6 }
  0x68   :  { %11561 = vrot.lane.b32.xlu1 %v13906_v45, %s18387_s29  ;;  %v10377_v45 = vld [vmem:[%s18404_s27 + $0x250] ss:$2 sm:$0xff]  ;;  %v810_v13 = vmax.f32 %v10386_v62, %v10514_v7  ;;  %v1605_v14 = vld [vmem:[#allocation2 + $0x81] sm:$0xff]  ;;  %v10517_v26 = vld [vmem:[%s18404_s27 + $0x311] ss:$2 sm:$0xff] }
  0x69   :  { %11556 = vrot.lane.b32.xlu0 %v13925_v57, %s18385_s5  ;;  %v801_v25 = vmax.f32 %v10377_v45, %v10505_v21  ;;  %v958_v45 = vsel %vm71_vm0, %v808_v3, -inf  ;;  %1106 = vst.msk [vmem:[#allocation2 + $0x111] sm:$0xff] %vm71_vm0, %v957_v5  ;;  %v10388_v18 = vld [vmem:[%s18404_s27 + $0x300] ss:$2 sm:$0xff]  ;;  %v10389_v19 = vld [vmem:[%s18404_s27 + $0x310] ss:$2 sm:$0xff]  ;;  %v14213_v27 = vpack.i.bf16 %v1605_v14, %v1604_v10 }
  0x6a   :  { %v959_v20 = vsel %vm71_vm0, %v810_v13, -inf  ;;  %v961_v21 = vsel %vm71_vm0, %v809_v12, -inf  ;;  %v10391_v22 = vld [vmem:[%s18404_s27 + $0x330] ss:$2 sm:$0xff]  ;;  %v10518_v28 = vld [vmem:[%s18404_s27 + $0x321] ss:$2 sm:$0xff]  ;;  %v813_v33 = vmax.f32 %v10389_v19, %v10517_v26 }
  0x6b   :  { %v949_v29 = vsel %vm71_vm0, %v801_v25, -inf  ;;  %v960_v23 = vmax.f32 %v958_v45, %v959_v20  ;;  %v10516_v25 = vld [vmem:[%s18404_s27 + $0x301] ss:$2 sm:$0xff]  ;;  %v10392_v44 = vld [vmem:[%s18404_s27 + $0x340] ss:$2 sm:$0xff]  ;;  %v1351_v61 = vld [vmem:[#allocation2 + $0x90] sm:$0xff] }
  0x6c   :  { %11571 = vrot.lane.b32.xlu1 %v14001_v36, %s18387_s29  ;;  %v951_v37 = vmax.f32 %v949_v29, %v950_v34  ;;  %v10519_v29 = vld [vmem:[%s18404_s27 + $0x331] ss:$2 sm:$0xff]  ;;  %v967_v38 = vsel %vm71_vm0, %v813_v33, -inf  ;;  %v10393_v46 = vld [vmem:[%s18404_s27 + $0x350] ss:$2 sm:$0xff] }
  0x6d   :  { %11566 = vrot.lane.b32.xlu0 %v14063_v8, %s18385_s5  ;;  %s18406_s5 = smov 48   ;;  %1107 = vst.msk [vmem:[#allocation2 + $0x121] sm:$0xff] %vm71_vm0, %v960_v23  ;;  %v10394_v30 = vld [vmem:[%s18404_s27 + $0x360] ss:$2 sm:$0xff]  ;;  %v10521_v47 = vld [vmem:[%s18404_s27 + $0x351] ss:$2 sm:$0xff] }
  0x6e   :  { %1104 = vst.msk [vmem:[#allocation2 + $0xf9] sm:$0xff] %vm71_vm0, %v951_v37  ;;  %v10395_v48 = vld [vmem:[%s18404_s27 + $0x370] ss:$2 sm:$0xff]  ;;  %v10522_v49 = vld [vmem:[%s18404_s27 + $0x361] ss:$2 sm:$0xff]  ;;  %v817_v51 = vmax.f32 %v10393_v46, %v10521_v47 }
  0x6f   :  { %v818_v54 = vmax.f32 %v10394_v30, %v10522_v49  ;;  %v10523_v55 = vld [vmem:[%s18404_s27 + $0x371] ss:$2 sm:$0xff]  ;;  %v10397_v5 = vld [vmem:[%s18404_s27 + $0x390] ss:$2 sm:$0xff]  ;;  %v10398_v6 = vld [vmem:[%s18404_s27 + $0x3a0] ss:$2 sm:$0xff] }
  0x70   :  { %11581 = vrot.lane.b32.xlu1 %v14063_v8, %s18383_s25  ;;  %v973_v56 = vsel %vm71_vm0, %v817_v51, -inf  ;;  %v819_v58 = vmax.f32 %v10395_v48, %v10523_v55  ;;  %v1352_v62 = vld [vmem:[#allocation2 + $0x98] sm:$0xff]  ;;  %v10526_v12 = vld [vmem:[%s18404_s27 + $0x3a1] ss:$2 sm:$0xff]  ;;  %188 = vst.msk [vmem:[#allocation4 + $0x28] sm:$0x3] %vm183_vm11, %v13353_v1 }
  0x71   :  { %11576 = vrot.lane.b32.xlu0 %v13925_v57, %s18383_s25  ;;  %v14117_v57 = vpack.i.bf16 %v1412_v35, %v1411_v32  ;;  %v812_v32 = vmax.f32 %v10388_v18, %v10516_v25  ;;  %v815_v35 = vmax.f32 %v10391_v22, %v10519_v29  ;;  %s18408_s25 = smov 64   ;;  %v971_v59 = vsel %vm71_vm0, %v818_v54, -inf  ;;  %v1415_v2 = vld [vmem:[#allocation2 + $0x91] sm:$0xff]  ;;  %v1480_v20 = vld [vmem:[#allocation2 + $0x9a] sm:$0xff]  ;;  %190 = vst.msk [vmem:[#allocation4 + $0x38] sm:$0x3] %vm183_vm11, %v13353_v1 }
  0x72   :  { %v974_v63 = vsel %vm71_vm0, %v819_v58, -inf  ;;  %v11670_v3 = vpack.i.bf16 %v1352_v62, %v1351_v61  ;;  %v10399_v7 = vld [vmem:[%s18404_s27 + $0x3b0] ss:$2 sm:$0xff]  ;;  %v10525_v10 = vld [vmem:[%s18404_s27 + $0x391] ss:$2 sm:$0xff]  ;;  %v822_v18 = vmax.f32 %v10398_v6, %v10526_v12  ;;  %v1355_v51 = vld [vmem:[#allocation2 + $0xc0] sm:$0xff] }
  0x73   :  { %v964_v37 = vsel %vm71_vm0, %v812_v32, -inf  ;;  %v968_v40 = vsel %vm71_vm0, %v815_v35, -inf  ;;  %v10527_v13 = vld [vmem:[%s18404_s27 + $0x3b1] ss:$2 sm:$0xff]  ;;  %v821_v14 = vmax.f32 %v10397_v5, %v10525_v10  ;;  %v10400_v35 = vld [vmem:[%s18404_s27 + $0x3c0] ss:$2 sm:$0xff] }
  0x74   :  { %11591 = vrot.lane.b32.xlu1 %v14102_v31, %s18381_s2  ;;  %v969_v42 = vmax.f32 %v967_v38, %v968_v40  ;;  %v823_v19 = vmax.f32 %v10399_v7, %v10527_v13  ;;  %v977_v22 = vsel %vm71_vm0, %v822_v18, -inf  ;;  %v1545_v25 = vld [vmem:[#allocation2 + $0xb0] sm:$0xff]  ;;  %v10402_v38 = vld [vmem:[%s18404_s27 + $0x3e0] ss:$2 sm:$0xff]  ;;  %v10528_v40 = vld [vmem:[%s18404_s27 + $0x3c1] ss:$2 sm:$0xff] }
  0x75   :  { %11586 = vrot.lane.b32.xlu0 %v13963_v16, %s18381_s2  ;;  %v10508_v16 = vld [vmem:[%s18404_s27 + $0x281] ss:$2 sm:$0xff]  ;;  %v1609_v29 = vld [vmem:[#allocation2 + $0xb1] sm:$0xff]  ;;  %v10404_v6 = vld [vmem:[%s18404_s27 + $0x400] ss:$2 sm:$0xff] }
  0x76   :  { %v804_v50 = vmax.f32 %v10380_v43, %v10508_v16  ;;  %v1669_v43 = vld [vmem:[#allocation2 + $0x82] sm:$0xff]  ;;  %1110 = vst.msk [vmem:[#allocation2 + $0x141] sm:$0xff] %vm71_vm0, %v969_v42  ;;  %v980_v23 = vsel %vm71_vm0, %v823_v19, -inf  ;;  %v1484_v61 = vld [vmem:[#allocation2 + $0xca] sm:$0xff]  ;;  %v1548_v62 = vld [vmem:[#allocation2 + $0xd8] sm:$0xff] }
  0x77   :  { %v10520_v16 = vld [vmem:[%s18404_s27 + $0x341] ss:$2 sm:$0xff]  ;;  %v10405_v7 = vld [vmem:[%s18404_s27 + $0x410] ss:$2 sm:$0xff]  ;;  %v10533_v13 = vld [vmem:[%s18404_s27 + $0x411] ss:$2 sm:$0xff] }
  0x78   :  { %11601 = vrot.lane.b32.xlu1 %v14117_v57, %s18391_s3  ;;  %v952_v60 = vsel %vm71_vm0, %v804_v50, -inf  ;;  %v816_v50 = vmax.f32 %v10392_v44, %v10520_v16  ;;  %v10530_v42 = vld [vmem:[%s18404_s27 + $0x3e1] ss:$2 sm:$0xff]  ;;  %v10407_v10 = vld [vmem:[%s18404_s27 + $0x430] ss:$2 sm:$0xff]  ;;  %v829_v18 = vmax.f32 %v10405_v7, %v10533_v13 }
  0x79   :  { %11596 = vrot.lane.b32.xlu0 %v14001_v36, %s18391_s3  ;;  %v10387_v36 = vld [vmem:[%s18404_s27 + $0x2f0] ss:$2 sm:$0xff]  ;;  %v954_v4 = vmax.f32 %v952_v60, %v953_v0  ;;  %v975_v0 = vmax.f32 %v973_v56, %v974_v63  ;;  %v826_v46 = vmax.f32 %v10402_v38, %v10530_v42  ;;  %v1549_v63 = vld [vmem:[#allocation2 + $0xe0] sm:$0xff]  ;;  %v10537_v38 = vld [vmem:[%s18404_s27 + $0x451] ss:$2 sm:$0xff] }
  0x7a   :  { %v811_v17 = vmax.f32 %v10387_v36, %v10515_v11  ;;  %v1416_v36 = vld [vmem:[#allocation2 + $0x99] sm:$0xff]  ;;  %v1420_v56 = vld [vmem:[#allocation2 + $0xc9] sm:$0xff]  ;;  %v1613_v5 = vld [vmem:[#allocation2 + $0xe1] sm:$0xff]  ;;  %184 = vst.msk [vmem:[#allocation4 + $0x8] sm:$0x3] %vm183_vm11, %v13353_v1 }
  0x7b   :  { %1105 = vst.msk [vmem:[#allocation2 + $0x109] sm:$0xff] %vm71_vm0, %v954_v4  ;;  %1112 = vst.msk [vmem:[#allocation2 + $0x159] sm:$0xff] %vm71_vm0, %v975_v0  ;;  %v10396_v4 = vld [vmem:[%s18404_s27 + $0x380] ss:$2 sm:$0xff]  ;;  %v1479_v11 = vld [vmem:[#allocation2 + $0x92] sm:$0xff]  ;;  %v983_v49 = vsel %vm71_vm0, %v826_v46, -inf }
  0x7c   :  { %11611 = vrot.lane.b32.xlu1 %v14152_v53, %s18389_s28  ;;  %v962_v24 = vsel %vm71_vm0, %v811_v17, -inf  ;;  %v11680_v17 = vpack.i.bf16 %v1416_v36, %v1415_v2  ;;  %v14363_v36 = vpack.i.bf16 %v1549_v63, %v1548_v62  ;;  %v1149_v46 = vld [vmem:[#allocation2] sm:$0xff]  ;;  %186 = vst.msk [vmem:[#allocation4 + $0x18] sm:$0x3] %vm183_vm11, %v13353_v1  ;;  %192 = vst.msk [vmem:[#allocation4 + $0x48] sm:$0x3] %vm183_vm11, %v13353_v1 }
  0x7d   :  { %11606 = vrot.lane.b32.xlu0 %v14063_v8, %s18389_s28  ;;  %v10390_v8 = vld [vmem:[%s18404_s27 + $0x320] ss:$2 sm:$0xff]  ;;  %v963_v15 = vmax.f32 %v961_v21, %v962_v24  ;;  %194 = vst.msk [vmem:[#allocation4 + $0x58] sm:$0x3] %vm183_vm11, %v13353_v1  ;;  %196 = vst.msk [vmem:[#allocation4 + $0x68] sm:$0x3] %vm183_vm11, %v13353_v1 }
  0x7e   :  { %v814_v34 = vmax.f32 %v10390_v8, %v10518_v28  ;;  %v979_v8 = vsel %vm71_vm0, %v821_v14, -inf  ;;  %v1544_v24 = vld [vmem:[#allocation2 + $0xa8] sm:$0xff]  ;;  %v11690_v28 = vpack.i.bf16 %v1480_v20, %v1479_v11  ;;  %v10535_v14 = vld [vmem:[%s18404_s27 + $0x431] ss:$2 sm:$0xff]  ;;  %198 = vst.msk [vmem:[#allocation4 + $0x78] sm:$0x3] %vm183_vm11, %v13353_v1 }
  0x7f   :  { %1108 = vst.msk [vmem:[#allocation2 + $0x129] sm:$0xff] %vm71_vm0, %v963_v15  ;;  %v981_v15 = vmax.f32 %v979_v8, %v980_v23  ;;  %v11700_v32 = vpack.i.bf16 %v1545_v25, %v1544_v24  ;;  %v10532_v11 = vld [vmem:[%s18404_s27 + $0x401] ss:$2 sm:$0xff]  ;;  %v831_v20 = vmax.f32 %v10407_v10, %v10535_v14  ;;  %v991_v25 = vsel %vm71_vm0, %v829_v18, -inf }
  0x80   :  { %11621 = vrot.lane.b32.xlu1 %v14180_v9, %s18406_s5  ;;  %v965_v39 = vsel %vm71_vm0, %v814_v34, -inf  ;;  %v1672_v34 = vld [vmem:[#allocation2 + $0xaa] sm:$0xff]  ;;  %200 = vst.msk [vmem:[#allocation4 + $0x88] sm:$0x3] %vm183_vm11, %v13353_v1  ;;  %202 = vst.msk [vmem:[#allocation4 + $0x98] sm:$0x3] %vm183_vm11, %v13353_v1 }
  0x81   :  { %11616 = vrot.lane.b32.xlu0 %v14102_v31, %s18406_s5  ;;  %v966_v41 = vmax.f32 %v964_v37, %v965_v39  ;;  %v1668_v31 = vld [vmem:[#allocation2 + $0x7a] sm:$0xff]  ;;  %1114 = vst.msk [vmem:[#allocation2 + $0x171] sm:$0xff] %vm71_vm0, %v981_v15  ;;  %v992_v15 = vsel %vm71_vm0, %v831_v20, -inf }
  0x82   :  { %v11645_v52 = vpack.i.bf16 %v1669_v43, %v1668_v31  ;;  %v10401_v37 = vld [vmem:[%s18404_s27 + $0x3d0] ss:$2 sm:$0xff]  ;;  %v10531_v31 = vld [vmem:[%s18404_s27 + $0x3f1] ss:$2 sm:$0xff]  ;;  %v824_v43 = vmax.f32 %v10400_v35, %v10528_v40  ;;  %204 = vst.msk [vmem:[#allocation4 + $0xa8] sm:$0x3] %vm183_vm11, %v13353_v1 }
  0x83   :  { %1109 = vst.msk [vmem:[#allocation2 + $0x139] sm:$0xff] %vm71_vm0, %v966_v41  ;;  %v10403_v39 = vld [vmem:[%s18404_s27 + $0x3f0] ss:$2 sm:$0xff]  ;;  %v10529_v41 = vld [vmem:[%s18404_s27 + $0x3d1] ss:$2 sm:$0xff] }
  0x84   :  { %11631 = vrot.lane.b32.xlu1 %v14213_v27, %s18407_s26  ;;  %v825_v44 = vmax.f32 %v10401_v37, %v10529_v41  ;;  %v827_v30 = vmax.f32 %v10403_v39, %v10531_v31  ;;  %v982_v47 = vsel %vm71_vm0, %v824_v43, -inf  ;;  %v10411_v35 = vld [vmem:[%s18404_s27 + $0x470] ss:$2 sm:$0xff]  ;;  %v10536_v37 = vld [vmem:[%s18404_s27 + $0x441] ss:$2 sm:$0xff] }
  0x85   :  { %11626 = vrot.lane.b32.xlu0 %v14117_v57, %s18407_s26  ;;  %v984_v54 = vmax.f32 %v982_v47, %v983_v49  ;;  %v10538_v39 = vld [vmem:[%s18404_s27 + $0x461] ss:$2 sm:$0xff]  ;;  %v10539_v40 = vld [vmem:[%s18404_s27 + $0x471] ss:$2 sm:$0xff]  ;;  %206 = vst.msk [vmem:[#allocation4 + $0xb8] sm:$0x3] %vm183_vm11, %v13353_v1 }
  0x86   :  { %v985_v48 = vsel %vm71_vm0, %v825_v44, -inf  ;;  %v1150_v44 = vld [vmem:[#allocation2 + $0x8] sm:$0xff]  ;;  %v1360_v47 = vld [vmem:[#allocation2 + $0xf8] sm:$0xff]  ;;  %v1553_v14 = vld [vmem:[#allocation2 + $0x110] sm:$0xff]  ;;  %208 = vst.msk [vmem:[#allocation4 + $0xc8] sm:$0x3] %vm183_vm11, %v13353_v1 }
  0x87   :  { %1115 = vst.msk [vmem:[#allocation2 + $0x181] sm:$0xff] %vm71_vm0, %v984_v54 }
  0x88   :  { %11641 = vrot.lane.b32.xlu1 %v14117_v57, %s18387_s29  ;;  %v970_v57 = vsel %vm71_vm0, %v816_v50, -inf  ;;  %v986_v50 = vsel %vm71_vm0, %v827_v30, -inf  ;;  %210 = vst.msk [vmem:[#allocation4 + $0xd8] sm:$0x3] %vm183_vm11, %v13353_v1  ;;  %212 = vst.msk [vmem:[#allocation4 + $0xe8] sm:$0x3] %vm183_vm11, %v13353_v1 }
  0x89   :  { %11636 = vrot.lane.b32.xlu0 %v14152_v53, %s18408_s25  ;;  %v972_v60 = vmax.f32 %v970_v57, %v971_v59  ;;  %v987_v55 = vmax.f32 %v985_v48, %v986_v50  ;;  %v1419_v57 = vld [vmem:[#allocation2 + $0xc1] sm:$0xff]  ;;  %v835_v48 = vmax.f32 %v10411_v35, %v10539_v40  ;;  %214 = vst.msk [vmem:[#allocation4 + $0xf8] sm:$0x3] %vm183_vm11, %v13353_v1  ;;  %216 = vst.msk [vmem:[#allocation4 + $0x108] sm:$0x3] %vm183_vm11, %v13353_v1 }
  0x8a   :  { %v11760_v59 = vpack.i.bf16 %v1420_v56, %v1419_v57  ;;  %218 = vst.msk [vmem:[#allocation4 + $0x118] sm:$0x3] %vm183_vm11, %v13353_v1  ;;  %220 = vst.msk [vmem:[#allocation4 + $0x128] sm:$0x3] %vm183_vm11, %v13353_v1 }
  0x8b   :  { %1111 = vst.msk [vmem:[#allocation2 + $0x151] sm:$0xff] %vm71_vm0, %v972_v60  ;;  %1116 = vst.msk [vmem:[#allocation2 + $0x189] sm:$0xff] %vm71_vm0, %v987_v55  ;;  %v1483_v60 = vld [vmem:[#allocation2 + $0xc2] sm:$0xff] }
  0x8c   :  { %11651 = vrot.lane.b32.xlu1 %v14213_v27, %s18387_s29  ;;  %s18412_s29 = smov 40   ;;  %v14356_v0 = vpack.i.bf16 %v1484_v61, %v1483_v60  ;;  %v998_v60 = vsel %vm71_vm0, %v835_v48, -inf  ;;  %222 = vst.msk [vmem:[#allocation4 + $0x138] sm:$0x3] %vm183_vm11, %v13353_v1 }
  0x8d   :  { %11646 = vrot.lane.b32.xlu0 %v11645_v52, %s18408_s25 }
  0x90   :  { %11661 = vrot.lane.b32.xlu1 %v11645_v52, %s18409_s1 }
  0x91   :  { %11656 = vrot.lane.b32.xlu0 %v14152_v53, %s18409_s1  ;;  %v10524_v53 = vld [vmem:[%s18404_s27 + $0x381] ss:$2 sm:$0xff] }
  0x92   :  { %v820_v45 = vmax.f32 %v10396_v4, %v10524_v53  ;;  %v14361_v2 = vpop.permute.xlu1 %11491  ;;  %v1612_v4 = vld [vmem:[#allocation2 + $0xd9] sm:$0xff] }
  0x93   :  { %v10406_v53 = vld [vmem:[%s18404_s27 + $0x420] ss:$2 sm:$0xff]  ;;  %v14385_v12 = vpack.i.bf16 %v1613_v5, %v1612_v4  ;;  %v11494_v61 = vunpack.i.h.bf16 %v14361_v2  ;;  %v11493_v62 = vunpack.i.l.bf16 %v14361_v2  ;;  %v1487_v5 = vld [vmem:[#allocation2 + $0xf2] sm:$0xff] }
  0x94   :  { %11671 = vrot.lane.b32.xlu1 %v11670_v3, %s18410_s30  ;;  %v976_v21 = vsel %vm71_vm0, %v820_v45, -inf  ;;  %v10534_v45 = vld [vmem:[%s18404_s27 + $0x421] ss:$2 sm:$0xff]  ;;  %v1424_v4 = vld [vmem:[#allocation2 + $0xf9] sm:$0xff] }
  0x95   :  { %11666 = vrot.lane.b32.xlu0 %v14180_v9, %s18410_s30  ;;  %v978_v26 = vmax.f32 %v976_v21, %v977_v22  ;;  %v1608_v9 = vld [vmem:[#allocation2 + $0xa9] sm:$0xff]  ;;  %v830_v19 = vmax.f32 %v10406_v53, %v10534_v45  ;;  %v1488_v2 = vld [vmem:[#allocation2 + $0xfa] sm:$0xff] }
  0x96   :  { %v11710_v33 = vpack.i.bf16 %v1609_v29, %v1608_v9  ;;  %v1677_v29 = vld [vmem:[#allocation2 + $0xe2] sm:$0xff] }
  0x97   :  { %1113 = vst.msk [vmem:[#allocation2 + $0x169] sm:$0xff] %vm71_vm0, %v978_v26  ;;  %v989_v23 = vsel %vm71_vm0, %v830_v19, -inf  ;;  %v1676_v26 = vld [vmem:[#allocation2 + $0xda] sm:$0xff]  ;;  %v1552_v45 = vld [vmem:[#allocation2 + $0x108] sm:$0xff] }
  0x98   :  { %11681 = vrot.lane.b32.xlu1 %v11680_v17, %s18411_s21  ;;  %v14441_v42 = vpack.i.bf16 %v1677_v29, %v1676_v26  ;;  %v13326_v19 = vld [vmem:[#allocation2 + $0x18] sm:$0xff] }
  0x99   :  { %11676 = vrot.lane.b32.xlu0 %v14213_v27, %s18411_s21  ;;  %v1673_v27 = vld [vmem:[#allocation2 + $0xb2] sm:$0xff] }
  0x9a   :  { %v11725_v16 = vpack.i.bf16 %v1673_v27, %v1672_v34  ;;  %v10410_v34 = vld [vmem:[%s18404_s27 + $0x460] ss:$2 sm:$0xff]  ;;  %v10415_v29 = vld [vmem:[%s18404_s27 + $0x4b0] ss:$2 sm:$0xff] }
  0x9b   :  { %v834_v43 = vmax.f32 %v10410_v34, %v10538_v39  ;;  %v10542_v39 = vld [vmem:[%s18404_s27 + $0x4a1] ss:$2 sm:$0xff] }
  0x9c   :  { %11691 = vrot.lane.b32.xlu1 %v11690_v28, %s18412_s29 }
  0x9d   :  { %11686 = vrot.lane.b32.xlu0 %v11645_v52, %s18412_s29  ;;  %v1356_v52 = vld [vmem:[#allocation2 + $0xc8] sm:$0xff]  ;;  %v995_v54 = vsel %vm71_vm0, %v834_v43, -inf }
  0x9e   :  { %v11750_v58 = vpack.i.bf16 %v1356_v52, %v1355_v51 }
  0xa0   :  { %11701 = vrot.lane.b32.xlu1 %v11700_v32, %s18406_s5 }
  0xa1   :  { %11696 = vrot.lane.b32.xlu0 %v11670_v3, %s18406_s5  ;;  %v14366_v3 = vpop.permute.xlu0 %11486 }
  0xa2   :  { %v11489_v50 = vunpack.i.h.bf16 %v14366_v3  ;;  %v11488_v51 = vunpack.i.l.bf16 %v14366_v3 }
  0xa4   :  { %11711 = vrot.lane.b32.xlu1 %v11710_v33, %s18407_s26  ;;  %v3775_v7 = vsel %vm71_vm0, %v1150_v44, %v11489_v50  ;;  %v3774_v53 = vsel %vm71_vm0, %v1149_v46, %v11488_v51 }
  0xa5   :  { %11706 = vrot.lane.b32.xlu0 %v11680_v17, %s18407_s26  ;;  %v3839_v34 = vsel %vm3838_vm4, %v3774_v53, %v11493_v62 }
  0xa8   :  { %11721 = vrot.lane.b32.xlu1 %v11680_v17, %s18413_s23  ;;  %v828_v17 = vmax.f32 %v10404_v6, %v10532_v11 }
  0xa9   :  { %11716 = vrot.lane.b32.xlu0 %v11690_v28, %s18408_s25 }
  0xaa   :  { %v988_v8 = vsel %vm71_vm0, %v828_v17, -inf  ;;  %v13325_v17 = vld [vmem:[#allocation2 + $0x20] sm:$0xff] }
  0xab   :  { %v990_v24 = vmax.f32 %v988_v8, %v989_v23 }
  0xac   :  { %11731 = vrot.lane.b32.xlu1 %v11710_v33, %s18413_s23 }
  0xad   :  { %11726 = vrot.lane.b32.xlu0 %v11725_v16, %s18408_s25  ;;  %1117 = vst.msk [vmem:[#allocation2 + $0x1c9] sm:$0xff] %vm71_vm0, %v990_v24  ;;  %v10412_v24 = vld [vmem:[%s18404_s27 + $0x480] ss:$2 sm:$0xff] }
  0xb0   :  { %11741 = vrot.lane.b32.xlu1 %v11725_v16, %s18409_s1 }
  0xb1   :  { %11736 = vrot.lane.b32.xlu0 %v11690_v28, %s18409_s1  ;;  %v10408_v28 = vld [vmem:[%s18404_s27 + $0x440] ss:$2 sm:$0xff] }
  0xb2   :  { %v832_v41 = vmax.f32 %v10408_v28, %v10536_v37  ;;  %v14493_v28 = vpack.i.bf16 %v1488_v2, %v1487_v5  ;;  %v10540_v37 = vld [vmem:[%s18404_s27 + $0x481] ss:$2 sm:$0xff] }
  0xb3   :  { %v836_v43 = vmax.f32 %v10412_v24, %v10540_v37  ;;  %v1616_v2 = vld [vmem:[#allocation2 + $0x109] sm:$0xff] }
  0xb4   :  { %11751 = vrot.lane.b32.xlu1 %v11750_v58, %s18410_s30  ;;  %v994_v49 = vsel %vm71_vm0, %v832_v41, -inf }
  0xb5   :  { %11746 = vrot.lane.b32.xlu0 %v11700_v32, %s18410_s30  ;;  %v993_v32 = vmax.f32 %v991_v25, %v992_v15  ;;  %v996_v56 = vmax.f32 %v994_v49, %v995_v54  ;;  %v10413_v25 = vld [vmem:[%s18404_s27 + $0x490] ss:$2 sm:$0xff]  ;;  %v1000_v54 = vsel %vm71_vm0, %v836_v43, -inf }
  0xb7   :  { %1118 = vst.msk [vmem:[#allocation2 + $0x1d1] sm:$0xff] %vm71_vm0, %v993_v32  ;;  %1119 = vst.msk [vmem:[#allocation2 + $0x1e1] sm:$0xff] %vm71_vm0, %v996_v56 }
  0xb8   :  { %11761 = vrot.lane.b32.xlu1 %v11760_v59, %s18411_s21 }
  0xb9   :  { %11756 = vrot.lane.b32.xlu0 %v11710_v33, %s18411_s21  ;;  %v10409_v33 = vld [vmem:[%s18404_s27 + $0x450] ss:$2 sm:$0xff] }
  0xba   :  { %v833_v31 = vmax.f32 %v10409_v33, %v10537_v38  ;;  %v10541_v38 = vld [vmem:[%s18404_s27 + $0x491] ss:$2 sm:$0xff] }
  0xbb   :  { %v837_v44 = vmax.f32 %v10413_v25, %v10541_v38 }
  0xbc   :  { %11771 = vrot.lane.b32.xlu1 %v14356_v0, %s18412_s29 }
  0xbd   :  { %11766 = vrot.lane.b32.xlu0 %v11725_v16, %s18412_s29  ;;  %v1359_v16 = vld [vmem:[#allocation2 + $0xf0] sm:$0xff] }
  0xbe   :  { %v14463_v3 = vpack.i.bf16 %v1360_v47, %v1359_v16 }
  0xc0   :  { %11781 = vrot.lane.b32.xlu1 %v14363_v36, %s18406_s5 }
  0xc1   :  { %11776 = vrot.lane.b32.xlu0 %v11750_v58, %s18406_s5  ;;  %v997_v58 = vsel %vm71_vm0, %v833_v31, -inf  ;;  %v10543_v31 = vld [vmem:[%s18404_s27 + $0x4b1] ss:$2 sm:$0xff] }
  0xc2   :  { %v14397_v21 = vpop.permute.xlu1 %11501  ;;  %v999_v6 = vmax.f32 %v997_v58, %v998_v60  ;;  %v839_v48 = vmax.f32 %v10415_v29, %v10543_v31 }
  0xc3   :  { %v14400_v22 = vpop.permute.xlu0 %11496  ;;  %v11504_v10 = vunpack.i.h.bf16 %v14397_v21  ;;  %v11503_v11 = vunpack.i.l.bf16 %v14397_v21 }
  0xc4   :  { %11791 = vrot.lane.b32.xlu1 %v14385_v12, %s18407_s26  ;;  %v11499_v55 = vunpack.i.h.bf16 %v14400_v22  ;;  %v11498_v57 = vunpack.i.l.bf16 %v14400_v22  ;;  %1120 = vst.msk [vmem:[#allocation2 + $0x1e9] sm:$0xff] %vm71_vm0, %v999_v6 }
  0xc5   :  { %11786 = vrot.lane.b32.xlu0 %v11760_v59, %s18407_s26 }
  0xc6   :  { %v14411_v9 = vpop.permute.xlu1 %11511  ;;  %v3777_v18 = vsel %vm71_vm0, %v13325_v17, %v11499_v55  ;;  %v3776_v20 = vsel %vm71_vm0, %v13326_v19, %v11498_v57  ;;  %v1003_v55 = vsel %vm71_vm0, %v837_v44, -inf  ;;  %v1617_v19 = vld [vmem:[#allocation2 + $0x111] sm:$0xff] }
  0xc7   :  { %v14420_v27 = vpop.permute.xlu0 %11506  ;;  %v11514_v8 = vunpack.i.h.bf16 %v14411_v9  ;;  %v11513_v22 = vunpack.i.l.bf16 %v14411_v9  ;;  %v14495_v9 = vpack.i.bf16 %v1553_v14, %v1552_v45  ;;  %v3841_v32 = vsel %vm3838_vm4, %v3776_v20, %v11503_v11 }
  0xc8   :  { %11801 = vrot.lane.b32.xlu1 %v11760_v59, %s18413_s23  ;;  %v1423_v59 = vld [vmem:[#allocation2 + $0xf1] sm:$0xff]  ;;  %v11509_v21 = vunpack.i.h.bf16 %v14420_v27  ;;  %v11508_v23 = vunpack.i.l.bf16 %v14420_v27  ;;  %v3842_v33 = vsel %vm3838_vm4, %v3777_v18, %v11504_v10  ;;  %v3840_v27 = vsel %vm3838_vm4, %v3775_v7, %v11494_v61 }
  0xc9   :  { %11796 = vrot.lane.b32.xlu0 %v14356_v0, %s18408_s25  ;;  %v14491_v15 = vpack.i.bf16 %v1424_v4, %v1423_v59  ;;  %v3906_v40 = vsel %vm3903_vm5, %v3841_v32, %v11513_v22  ;;  %v3907_v41 = vsel %vm3903_vm5, %v3842_v33, %v11514_v8  ;;  %v14569_v37 = vpack.i.bf16 %v1617_v19, %v1616_v2  ;;  %v1428_v2 = vld [vmem:[#allocation2 + $0x129] sm:$0xff]  ;;  %v1557_v19 = vld [vmem:[#allocation2 + $0x140] sm:$0xff] }
  0xca   :  { %v14443_v30 = vpop.permute.xlu1 %11521  ;;  %v3904_v46 = vsel %vm3903_vm5, %v3839_v34, %v11508_v23  ;;  %v3905_v16 = vsel %vm3903_vm5, %v3840_v27, %v11509_v21 }
  0xcb   :  { %v14448_v52 = vpop.permute.xlu0 %11516  ;;  %v11524_v60 = vunpack.i.h.bf16 %v14443_v30  ;;  %v11523_v61 = vunpack.i.l.bf16 %v14443_v30 }
  0xcc   :  { %11811 = vrot.lane.b32.xlu1 %v14385_v12, %s18413_s23  ;;  %v11519_v49 = vunpack.i.h.bf16 %v14448_v52  ;;  %v11518_v50 = vunpack.i.l.bf16 %v14448_v52 }
  0xcd   :  { %11806 = vrot.lane.b32.xlu0 %v14441_v42, %s18408_s25 }
  0xce   :  { %v14461_v63 = vpop.permute.xlu1 %11531  ;;  %v3968_v53 = vsel %vm181_vm2, %v3904_v46, %v11518_v50  ;;  %v3969_v10 = vsel %vm181_vm2, %v3905_v16, %v11519_v49  ;;  %v1680_v49 = vld [vmem:[#allocation2 + $0x10a] sm:$0xff]  ;;  %v1681_v50 = vld [vmem:[#allocation2 + $0x112] sm:$0xff] }
  0xcf   :  { %v14470_v13 = vpop.permute.xlu0 %11526  ;;  %v11534_v11 = vunpack.i.h.bf16 %v14461_v63  ;;  %v11533_v30 = vunpack.i.l.bf16 %v14461_v63 }
  0xd0   :  { %11821 = vrot.lane.b32.xlu1 %v14441_v42, %s18409_s1  ;;  %v11529_v57 = vunpack.i.h.bf16 %v14470_v13  ;;  %v11528_v56 = vunpack.i.l.bf16 %v14470_v13 }
  0xd1   :  { %11816 = vrot.lane.b32.xlu0 %v14356_v0, %s18409_s1  ;;  %v10414_v0 = vld [vmem:[%s18404_s27 + $0x4a0] ss:$2 sm:$0xff] }
  0xd2   :  { %v14489_v26 = vpop.permute.xlu1 %11541  ;;  %v838_v47 = vmax.f32 %v10414_v0, %v10542_v39  ;;  %v4033_v45 = vsel %vm4032_vm6, %v3968_v53, %v11528_v56  ;;  %v4034_v14 = vsel %vm4032_vm6, %v3969_v10, %v11529_v57  ;;  %v3971_v0 = vsel %vm181_vm2, %v3907_v41, %v11524_v60  ;;  %v10419_v57 = vld [vmem:[%s18404_s27 + $0x4f0] ss:$2 sm:$0xff]  ;;  %v10544_v56 = vld [vmem:[%s18404_s27 + $0x4c1] ss:$2 sm:$0xff]  ;;  %v10547_v60 = vld [vmem:[%s18404_s27 + $0x4f1] ss:$2 sm:$0xff] }
  0xd3   :  { %v11537_v35 = vpop.permute.xlu0 %11536  ;;  %v11544_v17 = vunpack.i.h.bf16 %v14489_v26  ;;  %v4036_v27 = vsel %vm4032_vm6, %v3971_v0, %v11534_v11  ;;  %v1363_v10 = vld [vmem:[#allocation2 + $0x120] sm:$0xff]  ;;  %v1364_v11 = vld [vmem:[#allocation2 + $0x128] sm:$0xff] }
  0xd4   :  { %11831 = vrot.lane.b32.xlu1 %v14463_v3, %s18410_s30  ;;  %v1001_v59 = vsel %vm71_vm0, %v838_v47, -inf  ;;  %v11539_v52 = vunpack.i.h.bf16 %v11537_v35  ;;  %v11538_v62 = vunpack.i.l.bf16 %v11537_v35 }
  0xd5   :  { %11826 = vrot.lane.b32.xlu0 %v14363_v36, %s18410_s30  ;;  %v1004_v36 = vsel %vm71_vm0, %v839_v48, -inf  ;;  %v1002_v6 = vmax.f32 %v1000_v54, %v1001_v59  ;;  %v4101_v39 = vsel %vm4097_vm7, %v4036_v27, %v11544_v17  ;;  %v10418_v54 = vld [vmem:[%s18404_s27 + $0x4e0] ss:$2 sm:$0xff] }
  0xd6   :  { %v11552_v51 = vpop.permute.xlu1 %11551  ;;  %v1005_v7 = vmax.f32 %v1003_v55, %v1004_v36  ;;  %v4098_v63 = vsel %vm4097_vm7, %v4033_v45, %v11538_v62  ;;  %v4099_v22 = vsel %vm4097_vm7, %v4034_v14, %v11539_v52  ;;  %v10546_v36 = vld [vmem:[%s18404_s27 + $0x4e1] ss:$2 sm:$0xff] }
  0xd7   :  { %v11547_v58 = vpop.permute.xlu0 %11546  ;;  %1121 = vst.msk [vmem:[#allocation2 + $0x1f9] sm:$0xff] %vm71_vm0, %v1002_v6  ;;  %v11554_v21 = vunpack.i.h.bf16 %v11552_v51  ;;  %v11553_v23 = vunpack.i.l.bf16 %v11552_v51  ;;  %v10417_v51 = vld [vmem:[%s18404_s27 + $0x4d0] ss:$2 sm:$0xff]  ;;  %v842_v62 = vmax.f32 %v10418_v54, %v10546_v36  ;;  %v1491_v17 = vld [vmem:[#allocation2 + $0x122] sm:$0xff]  ;;  %v10549_v54 = vld [vmem:[%s18404_s27 + $0x511] ss:$2 sm:$0xff] }
  0xd8   :  { %11841 = vrot.lane.b32.xlu1 %v14491_v15, %s18411_s21  ;;  %v11549_v4 = vunpack.i.h.bf16 %v11547_v58  ;;  %v11548_v5 = vunpack.i.l.bf16 %v11547_v58  ;;  %1122 = vst.msk [vmem:[#allocation2 + $0x201] sm:$0xff] %vm71_vm0, %v1005_v7  ;;  %v10545_v58 = vld [vmem:[%s18404_s27 + $0x4d1] ss:$2 sm:$0xff] }
  0xd9   :  { %11836 = vrot.lane.b32.xlu0 %v14385_v12, %s18411_s21  ;;  %v11543_v12 = vunpack.i.l.bf16 %v14489_v26  ;;  %v3970_v26 = vsel %vm181_vm2, %v3906_v40, %v11523_v61  ;;  %v4166_v43 = vsel %vm4162_vm8, %v4101_v39, %v11554_v21  ;;  %v841_v52 = vmax.f32 %v10417_v51, %v10545_v58  ;;  %v1154_v21 = vld [vmem:[#allocation2 + $0x38] sm:$0xff]  ;;  %v10548_v51 = vld [vmem:[%s18404_s27 + $0x501] ss:$2 sm:$0xff] }
  0xda   :  { %v14545_v13 = vpop.permute.xlu1 %11561  ;;  %v4163_v24 = vsel %vm4162_vm8, %v4098_v63, %v11548_v5  ;;  %v4164_v25 = vsel %vm4162_vm8, %v4099_v22, %v11549_v4  ;;  %v4035_v34 = vsel %vm4032_vm6, %v3970_v26, %v11533_v30  ;;  %v843_v4 = vmax.f32 %v10419_v57, %v10547_v60  ;;  %v1427_v30 = vld [vmem:[#allocation2 + $0x121] sm:$0xff]  ;;  %v1153_v22 = vld [vmem:[#allocation2 + $0x30] sm:$0xff] }
  0xdb   :  { %v11557_v18 = vpop.permute.xlu0 %11556  ;;  %v4100_v38 = vsel %vm4097_vm7, %v4035_v34, %v11543_v12  ;;  %v14623_v5 = vpack.i.bf16 %v1681_v50, %v1680_v49  ;;  %v1009_v7 = vsel %vm71_vm0, %v841_v52, -inf  ;;  %v1007_v45 = vsel %vm71_vm0, %v842_v62, -inf  ;;  %v1492_v12 = vld [vmem:[#allocation2 + $0x12a] sm:$0xff] }
  0xdc   :  { %v11559_v20 = vunpack.i.h.bf16 %v11557_v18  ;;  %v11558_v8 = vunpack.i.l.bf16 %v11557_v18  ;;  %11851 = vrot.lane.b32.xlu1 %v14493_v28, %s18412_s29  ;;  %v4165_v31 = vsel %vm4162_vm8, %v4100_v38, %v11553_v23  ;;  %v1556_v18 = vld [vmem:[#allocation2 + $0x138] sm:$0xff]  ;;  %v1156_v23 = vld [vmem:[#allocation2 + $0x50] sm:$0xff]  ;;  %v11563_v26 = vunpack.i.l.bf16 %v14545_v13  ;;  %v10550_v58 = vld [vmem:[%s18404_s27 + $0x521] ss:$2 sm:$0xff] }
  0xdd   :  { %11846 = vrot.lane.b32.xlu0 %v14441_v42, %s18412_s29  ;;  %v14659_v39 = vpack.i.bf16 %v1557_v19, %v1556_v18  ;;  %v10551_v36 = vld [vmem:[%s18404_s27 + $0x531] ss:$2 sm:$0xff] }
  0xde   :  { %v14563_v29 = vpop.permute.xlu1 %11571  ;;  %v4228_v32 = vsel %vm4227_vm9, %v4163_v24, %v11558_v8  ;;  %v4229_v33 = vsel %vm4227_vm9, %v4164_v25, %v11559_v20  ;;  %v1155_v8 = vld [vmem:[#allocation2 + $0x48] sm:$0xff]  ;;  %v11564_v25 = vunpack.i.h.bf16 %v14545_v13 }
  0xdf   :  { %v11567_v35 = vpop.permute.xlu0 %11566  ;;  %v4292_v42 = vpack.c.bf16 %v4229_v33, %v4228_v32  ;;  %v11573_v24 = vunpack.i.l.bf16 %v14563_v29  ;;  %v11574_v0 = vunpack.i.h.bf16 %v14563_v29  ;;  %v14657_v29 = vpack.i.bf16 %v1492_v12, %v1491_v17 }
  0xe0   :  { %v11569_v40 = vunpack.i.h.bf16 %v11567_v35  ;;  %v11568_v41 = vunpack.i.l.bf16 %v11567_v35  ;;  %11861 = vrot.lane.b32.xlu1 %v14495_v9, %s18406_s5  ;;  %v14649_v35 = vpack.i.bf16 %v1364_v11, %v1363_v10 }
  0xe1   :  { %11856 = vrot.lane.b32.xlu0 %v14463_v3, %s18406_s5  ;;  %11302 = vmatprep.mubr.msk.bf16.mxu0 %vm4367_vm10, %v4292_v42  ;;  %v10416_v3 = vld [vmem:[%s18404_s27 + $0x4c0] ss:$2 sm:$0xff]  ;;  %v14651_v42 = vpack.i.bf16 %v1428_v2, %v1427_v30  ;;  %v3781_v49 = vsel %vm71_vm0, %v1156_v23, %v11574_v0 }
  0xe2   :  { %v4230_v44 = vsel %vm4227_vm9, %v4165_v31, %v11568_v41  ;;  %v4231_v46 = vsel %vm4227_vm9, %v4166_v43, %v11569_v40  ;;  %v14582_v16 = vpop.permute.xlu1 %11581  ;;  %v840_v61 = vmax.f32 %v10416_v3, %v10544_v56  ;;  %v3780_v40 = vsel %vm71_vm0, %v1155_v8, %v11573_v24  ;;  %v10423_v3 = vld [vmem:[%s18404_s27 + $0x530] ss:$2 sm:$0xff] }
  0xe3   :  { %v14584_v47 = vpop.permute.xlu0 %11576  ;;  %v4293_v48 = vpack.c.bf16 %v4231_v46, %v4230_v44  ;;  %v11583_v32 = vunpack.i.l.bf16 %v14582_v16  ;;  %v11584_v34 = vunpack.i.h.bf16 %v14582_v16  ;;  %v10420_v44 = vld [vmem:[%s18404_s27 + $0x500] ss:$2 sm:$0xff]  ;;  %v10421_v46 = vld [vmem:[%s18404_s27 + $0x510] ss:$2 sm:$0xff] }
  0xe4   :  { %11871 = vrot.lane.b32.xlu1 %v14569_v37, %s18407_s26  ;;  %v1006_v6 = vsel %vm71_vm0, %v840_v61, -inf  ;;  %v11579_v38 = vunpack.i.h.bf16 %v14584_v47  ;;  %v11578_v13 = vunpack.i.l.bf16 %v14584_v47  ;;  %v10422_v16 = vld [vmem:[%s18404_s27 + $0x520] ss:$2 sm:$0xff]  ;;  %v3779_v47 = vsel %vm71_vm0, %v1154_v21, %v11564_v25 }
  0xe5   :  { %11866 = vrot.lane.b32.xlu0 %v14491_v15, %s18407_s26  ;;  %11303 = vmatmul.mubr.msk.bf16.vlgmr.msra.gmra.mrb[0].mxu0 %vm4367_vm10, %v4293_v48  ;;  %v1008_v20 = vmax.f32 %v1006_v6, %v1007_v45  ;;  %v3778_v48 = vsel %vm71_vm0, %v1153_v22, %v11563_v26  ;;  %v844_v60 = vmax.f32 %v10420_v44, %v10548_v51 }
  0xe6   :  { %v14600_v55 = vpop.permute.xlu1 %11591  ;;  %v845_v61 = vmax.f32 %v10421_v46, %v10549_v54  ;;  %v3844_v52 = vsel %vm3838_vm4, %v3779_v47, %v11579_v38  ;;  %v3843_v62 = vsel %vm3838_vm4, %v3778_v48, %v11578_v13  ;;  %v1620_v38 = vld [vmem:[#allocation2 + $0x139] sm:$0xff] }
  0xe7   :  { %v14611_v59 = vpop.permute.xlu0 %11586  ;;  %1123 = vst.msk [vmem:[#allocation2 + $0x211] sm:$0xff] %vm71_vm0, %v1008_v20  ;;  %v11594_v41 = vunpack.i.h.bf16 %v14600_v55  ;;  %v11593_v31 = vunpack.i.l.bf16 %v14600_v55  ;;  %v3846_v55 = vsel %vm3838_vm4, %v3781_v49, %v11584_v34  ;;  %v1012_v11 = vsel %vm71_vm0, %v844_v60, -inf }
  0xe8   :  { %11881 = vrot.lane.b32.xlu1 %v14491_v15, %s18413_s23  ;;  %v1010_v15 = vsel %vm71_vm0, %v843_v4, -inf  ;;  %v11588_v43 = vunpack.i.l.bf16 %v14611_v59  ;;  %v11589_v57 = vunpack.i.h.bf16 %v14611_v59  ;;  %v846_v4 = vmax.f32 %v10422_v16, %v10550_v58 }
  0xe9   :  { %11876 = vrot.lane.b32.xlu0 %v14493_v28, %s18408_s25  ;;  %v1011_v63 = vmax.f32 %v1009_v7, %v1010_v15  ;;  %v847_v59 = vmax.f32 %v10423_v3, %v10551_v36  ;;  %v3911_v7 = vsel %vm3903_vm5, %v3846_v55, %v11594_v41  ;;  %v1015_v17 = vsel %vm71_vm0, %v845_v61, -inf }
  0xea   :  { %v14627_v53 = vpop.permute.xlu1 %11601  ;;  %v3908_v10 = vsel %vm3903_vm5, %v3843_v62, %v11588_v43  ;;  %v1013_v15 = vsel %vm71_vm0, %v846_v4, -inf  ;;  %v3909_v12 = vsel %vm3903_vm5, %v3844_v52, %v11589_v57 }
  0xeb   :  { %v14631_v14 = vpop.permute.xlu0 %11596  ;;  %1124 = vst.msk [vmem:[#allocation2 + $0x219] sm:$0xff] %vm71_vm0, %v1011_v63  ;;  %v1014_v8 = vmax.f32 %v1012_v11, %v1013_v15  ;;  %v11603_v21 = vunpack.i.l.bf16 %v14627_v53  ;;  %v10426_v15 = vld [vmem:[%s18404_s27 + $0x560] ss:$2 sm:$0xff] }
  0xec   :  { %11891 = vrot.lane.b32.xlu1 %v14569_v37, %s18413_s23  ;;  %v11599_v30 = vunpack.i.h.bf16 %v14631_v14  ;;  %v11598_v2 = vunpack.i.l.bf16 %v14631_v14  ;;  %v1016_v14 = vsel %vm71_vm0, %v847_v59, -inf }
  0xed   :  { %11886 = vrot.lane.b32.xlu0 %v14623_v5, %s18408_s25  ;;  %v1017_v25 = vmax.f32 %v1015_v17, %v1016_v14  ;;  %1125 = vst.msk [vmem:[#allocation2 + $0x229] sm:$0xff] %vm71_vm0, %v1014_v8  ;;  %v10554_v8 = vld [vmem:[%s18404_s27 + $0x561] ss:$2 sm:$0xff] }
  0xee   :  { %v14643_v33 = vpop.permute.xlu1 %11611  ;;  %v3972_v26 = vsel %vm181_vm2, %v3908_v10, %v11598_v2  ;;  %v3973_v0 = vsel %vm181_vm2, %v3909_v12, %v11599_v30  ;;  %v1684_v30 = vld [vmem:[#allocation2 + $0x13a] sm:$0xff]  ;;  %v1685_v2 = vld [vmem:[#allocation2 + $0x142] sm:$0xff]  ;;  %v850_v14 = vmax.f32 %v10426_v15, %v10554_v8 }
  0xef   :  { %v14647_v27 = vpop.permute.xlu0 %11606  ;;  %v11613_v34 = vunpack.i.l.bf16 %v14643_v33  ;;  %1126 = vst.msk [vmem:[#allocation2 + $0x231] sm:$0xff] %vm71_vm0, %v1017_v25  ;;  %v10427_v12 = vld [vmem:[%s18404_s27 + $0x570] ss:$2 sm:$0xff]  ;;  %v10557_v15 = vld [vmem:[%s18404_s27 + $0x591] ss:$2 sm:$0xff] }
  0xf0   :  { %11901 = vrot.lane.b32.xlu1 %v14623_v5, %s18409_s1  ;;  %v11609_v18 = vunpack.i.h.bf16 %v14647_v27  ;;  %v11608_v19 = vunpack.i.l.bf16 %v14647_v27  ;;  %v10559_v8 = vld [vmem:[%s18404_s27 + $0x5b1] ss:$2 sm:$0xff] }
  0xf1   :  { %11896 = vrot.lane.b32.xlu0 %v14493_v28, %s18409_s1  ;;  %v3845_v28 = vsel %vm3838_vm4, %v3780_v40, %v11583_v32  ;;  %v11614_v32 = vunpack.i.h.bf16 %v14643_v33 }
  0xf2   :  { %v14680_v50 = vpop.permute.xlu1 %11621  ;;  %v3910_v6 = vsel %vm3903_vm5, %v3845_v28, %v11593_v31  ;;  %v4038_v13 = vsel %vm4032_vm6, %v3973_v0, %v11609_v18  ;;  %v1621_v31 = vld [vmem:[#allocation2 + $0x141] sm:$0xff]  ;;  %v1367_v0 = vld [vmem:[#allocation2 + $0x150] sm:$0xff] }
  0xf3   :  { %v11617_v56 = vpop.permute.xlu0 %11616  ;;  %v11623_v40 = vunpack.i.l.bf16 %v14680_v50  ;;  %v3974_v28 = vsel %vm181_vm2, %v3910_v6, %v11603_v21  ;;  %v14751_v36 = vpack.i.bf16 %v1621_v31, %v1620_v38  ;;  %v10552_v18 = vld [vmem:[%s18404_s27 + $0x541] ss:$2 sm:$0xff]  ;;  %v1432_v38 = vld [vmem:[#allocation2 + $0x159] sm:$0xff]  ;;  %v1561_v31 = vld [vmem:[#allocation2 + $0x170] sm:$0xff] }
  0xf4   :  { %11911 = vrot.lane.b32.xlu1 %v14649_v35, %s18410_s30  ;;  %v11619_v63 = vunpack.i.h.bf16 %v11617_v56  ;;  %v11618_v22 = vunpack.i.l.bf16 %v11617_v56  ;;  %v4039_v55 = vsel %vm4032_vm6, %v3974_v28, %v11613_v34  ;;  %v1431_v34 = vld [vmem:[#allocation2 + $0x151] sm:$0xff] }
  0xf5   :  { %11906 = vrot.lane.b32.xlu0 %v14495_v9, %s18410_s30  ;;  %v11604_v9 = vunpack.i.h.bf16 %v14627_v53  ;;  %v4037_v53 = vsel %vm4032_vm6, %v3972_v26, %v11608_v19  ;;  %v10553_v19 = vld [vmem:[%s18404_s27 + $0x551] ss:$2 sm:$0xff] }
  0xf6   :  { %v11632_v45 = vpop.permute.xlu1 %11631  ;;  %v4102_v43 = vsel %vm4097_vm7, %v4037_v53, %v11618_v22  ;;  %v4103_v44 = vsel %vm4097_vm7, %v4038_v13, %v11619_v63  ;;  %v1019_v53 = vsel %vm71_vm0, %v850_v14, -inf }
  0xf7   :  { %v11627_v20 = vpop.permute.xlu0 %11626  ;;  %v11634_v16 = vunpack.i.h.bf16 %v11632_v45  ;;  %v11633_v47 = vunpack.i.l.bf16 %v11632_v45  ;;  %v10425_v45 = vld [vmem:[%s18404_s27 + $0x550] ss:$2 sm:$0xff] }
  0xf8   :  { %11921 = vrot.lane.b32.xlu1 %v14651_v42, %s18411_s21  ;;  %v11629_v23 = vunpack.i.h.bf16 %v11627_v20  ;;  %v11628_v24 = vunpack.i.l.bf16 %v11627_v20  ;;  %v849_v22 = vmax.f32 %v10425_v45, %v10553_v19  ;;  %v10556_v45 = vld [vmem:[%s18404_s27 + $0x581] ss:$2 sm:$0xff] }
  0xf9   :  { %11916 = vrot.lane.b32.xlu0 %v14569_v37, %s18411_s21  ;;  %v11624_v37 = vunpack.i.h.bf16 %v14680_v50  ;;  %v3975_v50 = vsel %vm181_vm2, %v3911_v7, %v11604_v9  ;;  %v10555_v9 = vld [vmem:[%s18404_s27 + $0x571] ss:$2 sm:$0xff]  ;;  %v10558_v19 = vld [vmem:[%s18404_s27 + $0x5a1] ss:$2 sm:$0xff] }
  0xfa   :  { %v14728_v27 = vpop.permute.xlu1 %11641  ;;  %v4167_v48 = vsel %vm4162_vm8, %v4102_v43, %v11628_v24  ;;  %v4168_v49 = vsel %vm4162_vm8, %v4103_v44, %v11629_v23  ;;  %v4040_v57 = vsel %vm4032_vm6, %v3975_v50, %v11614_v32  ;;  %v851_v21 = vmax.f32 %v10427_v12, %v10555_v9  ;;  %v1368_v32 = vld [vmem:[#allocation2 + $0x158] sm:$0xff] }
  0xfb   :  { %v11637_v41 = vpop.permute.xlu0 %11636  ;;  %v4105_v60 = vsel %vm4097_vm7, %v4040_v57, %v11624_v37  ;;  %v14805_v23 = vpack.i.bf16 %v1685_v2, %v1684_v30  ;;  %v1021_v25 = vsel %vm71_vm0, %v849_v22, -inf  ;;  %v1495_v37 = vld [vmem:[#allocation2 + $0x152] sm:$0xff]  ;;  %v11643_v28 = vunpack.i.l.bf16 %v14728_v27 }
  0xfc   :  { %v11639_v33 = vunpack.i.h.bf16 %v11637_v41  ;;  %v11638_v46 = vunpack.i.l.bf16 %v11637_v41  ;;  %11931 = vrot.lane.b32.xlu1 %v14657_v29, %s18412_s29  ;;  %v4170_v4 = vsel %vm4162_vm8, %v4105_v60, %v11634_v16  ;;  %v1560_v41 = vld [vmem:[#allocation2 + $0x168] sm:$0xff]  ;;  %v1159_v44 = vld [vmem:[#allocation2 + $0x78] sm:$0xff] }
  0xfd   :  { %11926 = vrot.lane.b32.xlu0 %v14623_v5, %s18412_s29  ;;  %v4104_v5 = vsel %vm4097_vm7, %v4039_v55, %v11623_v40  ;;  %v1496_v40 = vld [vmem:[#allocation2 + $0x15a] sm:$0xff]  ;;  %v1158_v16 = vld [vmem:[#allocation2 + $0x68] sm:$0xff]  ;;  %v14841_v60 = vpack.i.bf16 %v1561_v31, %v1560_v41 }
  0xfe   :  { %v4232_v3 = vsel %vm4227_vm9, %v4167_v48, %v11638_v46  ;;  %v4233_v51 = vsel %vm4227_vm9, %v4168_v49, %v11639_v33  ;;  %v14747_v54 = vpop.permute.xlu1 %11651  ;;  %v4169_v62 = vsel %vm4162_vm8, %v4104_v5, %v11633_v47  ;;  %v1157_v46 = vld [vmem:[#allocation2 + $0x60] sm:$0xff]  ;;  %v11644_v49 = vunpack.i.h.bf16 %v14728_v27 }
  0xff   :  { %v11647_v56 = vpop.permute.xlu0 %11646  ;;  %v4294_v58 = vpack.c.bf16 %v4233_v51, %v4232_v3  ;;  %v1160_v47 = vld [vmem:[#allocation2 + $0x80] sm:$0xff]  ;;  %v11653_v48 = vunpack.i.l.bf16 %v14747_v54  ;;  %v11654_v50 = vunpack.i.h.bf16 %v14747_v54  ;;  %v14839_v54 = vpack.i.bf16 %v1496_v40, %v1495_v37 }
 0x100   :  { %v11649_v61 = vunpack.i.h.bf16 %v11647_v56  ;;  %v11648_v52 = vunpack.i.l.bf16 %v11647_v56  ;;  %11941 = vrot.lane.b32.xlu1 %v14659_v39, %s18406_s5  ;;  %v14831_v56 = vpack.i.bf16 %v1368_v32, %v1367_v0 }
 0x101   :  { %11936 = vrot.lane.b32.xlu0 %v14649_v35, %s18406_s5  ;;  %11306 = vmatprep.mubr.msk.bf16.mxu0 %vm4367_vm10, %v4294_v58  ;;  %v10424_v35 = vld [vmem:[%s18404_s27 + $0x540] ss:$2 sm:$0xff]  ;;  %v14833_v58 = vpack.i.bf16 %v1432_v38, %v1431_v34  ;;  %v3785_v30 = vsel %vm71_vm0, %v1160_v47, %v11654_v50 }
 0x102   :  { %v4235_v59 = vsel %vm4227_vm9, %v4170_v4, %v11649_v61  ;;  %v4234_v6 = vsel %vm4227_vm9, %v4169_v62, %v11648_v52  ;;  %v14764_v7 = vpop.permute.xlu1 %11661  ;;  %v848_v63 = vmax.f32 %v10424_v35, %v10552_v18  ;;  %v3784_v61 = vsel %vm71_vm0, %v1159_v44, %v11653_v48  ;;  %v10431_v35 = vld [vmem:[%s18404_s27 + $0x5b0] ss:$2 sm:$0xff] }
 0x103   :  { %v14766_v10 = vpop.permute.xlu0 %11656  ;;  %v4295_v11 = vpack.c.bf16 %v4235_v59, %v4234_v6  ;;  %v11663_v3 = vunpack.i.l.bf16 %v14764_v7  ;;  %v11664_v55 = vunpack.i.h.bf16 %v14764_v7  ;;  %v10428_v59 = vld [vmem:[%s18404_s27 + $0x580] ss:$2 sm:$0xff]  ;;  %v10429_v6 = vld [vmem:[%s18404_s27 + $0x590] ss:$2 sm:$0xff] }
 0x104   :  { %11951 = vrot.lane.b32.xlu1 %v14751_v36, %s18407_s26  ;;  %v1018_v24 = vsel %vm71_vm0, %v848_v63, -inf  ;;  %v11659_v5 = vunpack.i.h.bf16 %v14766_v10  ;;  %v11658_v27 = vunpack.i.l.bf16 %v14766_v10  ;;  %v10430_v7 = vld [vmem:[%s18404_s27 + $0x5a0] ss:$2 sm:$0xff]  ;;  %v3783_v10 = vsel %vm71_vm0, %v1158_v16, %v11644_v49 }
 0x105   :  { %11946 = vrot.lane.b32.xlu0 %v14651_v42, %s18407_s26  ;;  %11307 = vmatmul.mubr.msk.bf16.gmra.mrb[4].mxu0 %vm4367_vm10, %v4295_v11  ;;  %v1020_v43 = vmax.f32 %v1018_v24, %v1019_v53  ;;  %v3782_v11 = vsel %vm71_vm0, %v1157_v46, %v11643_v28  ;;  %v852_v9 = vmax.f32 %v10428_v59, %v10556_v45 }
 0x106   :  { %v14782_v17 = vpop.permute.xlu1 %11671  ;;  %v853_v63 = vmax.f32 %v10429_v6, %v10557_v15  ;;  %v3848_v22 = vsel %vm3838_vm4, %v3783_v10, %v11659_v5  ;;  %v3847_v14 = vsel %vm3838_vm4, %v3782_v11, %v11658_v27  ;;  %v1624_v5 = vld [vmem:[#allocation2 + $0x169] sm:$0xff] }
 0x107   :  { %v14793_v20 = vpop.permute.xlu0 %11666  ;;  %1127 = vst.msk [vmem:[#allocation2 + $0x241] sm:$0xff] %vm71_vm0, %v1020_v43  ;;  %v11674_v52 = vunpack.i.h.bf16 %v14782_v17  ;;  %v11673_v62 = vunpack.i.l.bf16 %v14782_v17  ;;  %v3850_v17 = vsel %vm3838_vm4, %v3785_v30, %v11664_v55  ;;  %v1024_v32 = vsel %vm71_vm0, %v852_v9, -inf }
 0x108   :  { %11961 = vrot.lane.b32.xlu1 %v14651_v42, %s18413_s23  ;;  %v1022_v42 = vsel %vm71_vm0, %v851_v21, -inf  ;;  %v11668_v4 = vunpack.i.l.bf16 %v14793_v20  ;;  %v11669_v12 = vunpack.i.h.bf16 %v14793_v20  ;;  %v854_v21 = vmax.f32 %v10430_v7, %v10558_v19 }
 0x109   :  { %11956 = vrot.lane.b32.xlu0 %v14657_v29, %s18408_s25  ;;  %v1023_v33 = vmax.f32 %v1021_v25, %v1022_v42  ;;  %v855_v20 = vmax.f32 %v10431_v35, %v10559_v8  ;;  %v3915_v25 = vsel %vm3903_vm5, %v3850_v17, %v11674_v52  ;;  %v1027_v37 = vsel %vm71_vm0, %v853_v63, -inf }
 0x10a   :  { %v14809_v26 = vpop.permute.xlu1 %11681  ;;  %v3912_v0 = vsel %vm3903_vm5, %v3847_v14, %v11668_v4  ;;  %v1025_v42 = vsel %vm71_vm0, %v854_v21, -inf  ;;  %v3913_v40 = vsel %vm3903_vm5, %v3848_v22, %v11669_v12 }
 0x10b   :  { %v14813_v13 = vpop.permute.xlu0 %11676  ;;  %1128 = vst.msk [vmem:[#allocation2 + $0x249] sm:$0xff] %vm71_vm0, %v1023_v33  ;;  %v1026_v44 = vmax.f32 %v1024_v32, %v1025_v42  ;;  %v11683_v16 = vunpack.i.l.bf16 %v14809_v26  ;;  %v10434_v42 = vld [vmem:[%s18404_s27 + $0x5e0] ss:$2 sm:$0xff] }
 0x10c   :  { %11971 = vrot.lane.b32.xlu1 %v14751_v36, %s18413_s23  ;;  %v11679_v34 = vunpack.i.h.bf16 %v14813_v13  ;;  %v11678_v38 = vunpack.i.l.bf16 %v14813_v13  ;;  %v1028_v13 = vsel %vm71_vm0, %v855_v20, -inf }
 0x10d   :  { %11966 = vrot.lane.b32.xlu0 %v14805_v23, %s18408_s25  ;;  %v1029_v49 = vmax.f32 %v1027_v37, %v1028_v13  ;;  %1129 = vst.msk [vmem:[#allocation2 + $0x259] sm:$0xff] %vm71_vm0, %v1026_v44  ;;  %v10562_v44 = vld [vmem:[%s18404_s27 + $0x5e1] ss:$2 sm:$0xff] }
 0x10e   :  { %v14825_v51 = vpop.permute.xlu1 %11691  ;;  %v3976_v28 = vsel %vm181_vm2, %v3912_v0, %v11678_v38  ;;  %v3977_v50 = vsel %vm181_vm2, %v3913_v40, %v11679_v34  ;;  %v1688_v34 = vld [vmem:[#allocation2 + $0x16a] sm:$0xff]  ;;  %v1689_v38 = vld [vmem:[#allocation2 + $0x172] sm:$0xff]  ;;  %v858_v13 = vmax.f32 %v10434_v42, %v10562_v44 }
 0x10f   :  { %v14829_v57 = vpop.permute.xlu0 %11686  ;;  %v11693_v55 = vunpack.i.l.bf16 %v14825_v51  ;;  %1130 = vst.msk [vmem:[#allocation2 + $0x261] sm:$0xff] %vm71_vm0, %v1029_v49  ;;  %v10435_v40 = vld [vmem:[%s18404_s27 + $0x5f0] ss:$2 sm:$0xff]  ;;  %v10565_v42 = vld [vmem:[%s18404_s27 + $0x611] ss:$2 sm:$0xff] }
 0x110   :  { %11981 = vrot.lane.b32.xlu1 %v14805_v23, %s18409_s1  ;;  %v11689_v41 = vunpack.i.h.bf16 %v14829_v57  ;;  %v11688_v31 = vunpack.i.l.bf16 %v14829_v57  ;;  %v10567_v44 = vld [vmem:[%s18404_s27 + $0x631] ss:$2 sm:$0xff] }
 0x111   :  { %11976 = vrot.lane.b32.xlu0 %v14657_v29, %s18409_s1  ;;  %v3849_v29 = vsel %vm3838_vm4, %v3784_v61, %v11663_v3  ;;  %v11694_v3 = vunpack.i.h.bf16 %v14825_v51 }
 0x112   :  { %v14862_v2 = vpop.permute.xlu1 %11701  ;;  %v3914_v24 = vsel %vm3903_vm5, %v3849_v29, %v11673_v62  ;;  %v4042_v27 = vsel %vm4032_vm6, %v3977_v50, %v11689_v41  ;;  %v1625_v62 = vld [vmem:[#allocation2 + $0x171] sm:$0xff]  ;;  %v10560_v41 = vld [vmem:[%s18404_s27 + $0x5c1] ss:$2 sm:$0xff] }
 0x113   :  { %v11697_v18 = vpop.permute.xlu0 %11696  ;;  %v11703_v61 = vunpack.i.l.bf16 %v14862_v2  ;;  %v3978_v29 = vsel %vm181_vm2, %v3914_v24, %v11683_v16  ;;  %v14933_v8 = vpack.i.bf16 %v1625_v62, %v1624_v5  ;;  %v1371_v50 = vld [vmem:[#allocation2 + $0x180] sm:$0xff]  ;;  %v1436_v5 = vld [vmem:[#allocation2 + $0x189] sm:$0xff] }
 0x114   :  { %11991 = vrot.lane.b32.xlu1 %v14831_v56, %s18410_s30  ;;  %v11699_v33 = vunpack.i.h.bf16 %v11697_v18  ;;  %v11698_v46 = vunpack.i.l.bf16 %v11697_v18  ;;  %v4043_v17 = vsel %vm4032_vm6, %v3978_v29, %v11693_v55  ;;  %v1435_v55 = vld [vmem:[#allocation2 + $0x181] sm:$0xff] }
 0x115   :  { %11986 = vrot.lane.b32.xlu0 %v14659_v39, %s18410_s30  ;;  %v11684_v39 = vunpack.i.h.bf16 %v14809_v26  ;;  %v4041_v26 = vsel %vm4032_vm6, %v3976_v28, %v11688_v31  ;;  %v10561_v31 = vld [vmem:[%s18404_s27 + $0x5d1] ss:$2 sm:$0xff]  ;;  %v14999_v62 = vld [vmem:[#allocation2 + $0x1a0] sm:$0xff] }
 0x116   :  { %v11712_v53 = vpop.permute.xlu1 %11711  ;;  %v4106_v4 = vsel %vm4097_vm7, %v4041_v26, %v11698_v46  ;;  %v4107_v59 = vsel %vm4097_vm7, %v4042_v27, %v11699_v33  ;;  %v1031_v26 = vsel %vm71_vm0, %v858_v13, -inf }
 0x117   :  { %v11707_v43 = vpop.permute.xlu0 %11706  ;;  %v11714_v7 = vunpack.i.h.bf16 %v11712_v53  ;;  %v11713_v10 = vunpack.i.l.bf16 %v11712_v53  ;;  %v10433_v53 = vld [vmem:[%s18404_s27 + $0x5d0] ss:$2 sm:$0xff] }
 0x118   :  { %12001 = vrot.lane.b32.xlu1 %v14833_v58, %s18411_s21  ;;  %v11709_v47 = vunpack.i.h.bf16 %v11707_v43  ;;  %v11708_v48 = vunpack.i.l.bf16 %v11707_v43  ;;  %v857_v46 = vmax.f32 %v10433_v53, %v10561_v31  ;;  %v10564_v53 = vld [vmem:[%s18404_s27 + $0x601] ss:$2 sm:$0xff] }
 0x119   :  { %11996 = vrot.lane.b32.xlu0 %v14751_v36, %s18411_s21  ;;  %v11704_v36 = vunpack.i.h.bf16 %v14862_v2  ;;  %v3979_v2 = vsel %vm181_vm2, %v3915_v25, %v11684_v39  ;;  %v10563_v39 = vld [vmem:[%s18404_s27 + $0x5f1] ss:$2 sm:$0xff]  ;;  %v10566_v31 = vld [vmem:[%s18404_s27 + $0x621] ss:$2 sm:$0xff] }
 0x11a   :  { %v14910_v57 = vpop.permute.xlu1 %11721  ;;  %v4171_v11 = vsel %vm4162_vm8, %v4106_v4, %v11708_v48  ;;  %v4172_v30 = vsel %vm4162_vm8, %v4107_v59, %v11709_v47  ;;  %v4044_v12 = vsel %vm4032_vm6, %v3979_v2, %v11694_v3  ;;  %v859_v16 = vmax.f32 %v10435_v40, %v10563_v39  ;;  %v1372_v3 = vld [vmem:[#allocation2 + $0x188] sm:$0xff] }
 0x11b   :  { %v11717_v52 = vpop.permute.xlu0 %11716  ;;  %v4109_v9 = vsel %vm4097_vm7, %v4044_v12, %v11704_v36  ;;  %v14987_v47 = vpack.i.bf16 %v1689_v38, %v1688_v34  ;;  %v1033_v49 = vsel %vm71_vm0, %v857_v46, -inf  ;;  %v1499_v36 = vld [vmem:[#allocation2 + $0x182] sm:$0xff]  ;;  %v11723_v29 = vunpack.i.l.bf16 %v14910_v57 }
 0x11c   :  { %v11719_v51 = vunpack.i.h.bf16 %v11717_v52  ;;  %v11718_v6 = vunpack.i.l.bf16 %v11717_v52  ;;  %12011 = vrot.lane.b32.xlu1 %v14839_v54, %s18412_s29  ;;  %v4174_v21 = vsel %vm4162_vm8, %v4109_v9, %v11714_v7  ;;  %v14997_v52 = vld [vmem:[#allocation2 + $0x198] sm:$0xff]  ;;  %v1163_v59 = vld [vmem:[#allocation2 + $0xa8] sm:$0xff] }
 0x11d   :  { %12006 = vrot.lane.b32.xlu0 %v14805_v23, %s18412_s29  ;;  %v4108_v23 = vsel %vm4097_vm7, %v4043_v17, %v11703_v61  ;;  %v1500_v61 = vld [vmem:[#allocation2 + $0x18a] sm:$0xff]  ;;  %v1162_v7 = vld [vmem:[#allocation2 + $0x98] sm:$0xff]  ;;  %v12100_v9 = vpack.i.bf16 %v14999_v62, %v14997_v52 }
 0x11e   :  { %v4236_v35 = vsel %vm4227_vm9, %v4171_v11, %v11718_v6  ;;  %v4237_v45 = vsel %vm4227_vm9, %v4172_v30, %v11719_v51  ;;  %v14929_v15 = vpop.permute.xlu1 %11731  ;;  %v4173_v14 = vsel %vm4162_vm8, %v4108_v23, %v11713_v10  ;;  %v1161_v6 = vld [vmem:[#allocation2 + $0x90] sm:$0xff]  ;;  %v11724_v30 = vunpack.i.h.bf16 %v14910_v57 }
 0x11f   :  { %v11727_v18 = vpop.permute.xlu0 %11726  ;;  %v4296_v19 = vpack.c.bf16 %v4237_v45, %v4236_v35  ;;  %v1164_v10 = vld [vmem:[#allocation2 + $0xb0] sm:$0xff]  ;;  %v11733_v11 = vunpack.i.l.bf16 %v14929_v15  ;;  %v11734_v2 = vunpack.i.h.bf16 %v14929_v15  ;;  %v15025_v15 = vpack.i.bf16 %v1500_v61, %v1499_v36 }
 0x120   :  { %v11729_v63 = vunpack.i.h.bf16 %v11727_v18  ;;  %v11728_v22 = vunpack.i.l.bf16 %v11727_v18  ;;  %12021 = vrot.lane.b32.xlu1 %v14841_v60, %s18406_s5  ;;  %v15017_v18 = vpack.i.bf16 %v1372_v3, %v1371_v50  ;;  %v1247_v62 = vld [vmem:[#allocation2 + $0x1c9] sm:$0xff] }
 0x121   :  { %12016 = vrot.lane.b32.xlu0 %v14831_v56, %s18406_s5  ;;  %11310 = vmatprep.mubr.msk.bf16.mxu0 %vm4367_vm10, %v4296_v19  ;;  %v10432_v56 = vld [vmem:[%s18404_s27 + $0x5c0] ss:$2 sm:$0xff]  ;;  %v15019_v19 = vpack.i.bf16 %v1436_v5, %v1435_v55  ;;  %v3789_v34 = vsel %vm71_vm0, %v1164_v10, %v11734_v2 }
 0x122   :  { %v4239_v20 = vsel %vm4227_vm9, %v4174_v21, %v11729_v63  ;;  %v4238_v24 = vsel %vm4227_vm9, %v4173_v14, %v11728_v22  ;;  %v14946_v25 = vpop.permute.xlu1 %11741  ;;  %v856_v33 = vmax.f32 %v10432_v56, %v10560_v41  ;;  %v3788_v63 = vsel %vm71_vm0, %v1163_v59, %v11733_v11  ;;  %v10439_v56 = vld [vmem:[%s18404_s27 + $0x630] ss:$2 sm:$0xff] }
 0x123   :  { %v14948_v0 = vpop.permute.xlu0 %11736  ;;  %v4297_v32 = vpack.c.bf16 %v4239_v20, %v4238_v24  ;;  %v11743_v35 = vunpack.i.l.bf16 %v14946_v25  ;;  %v11744_v17 = vunpack.i.h.bf16 %v14946_v25  ;;  %v10436_v20 = vld [vmem:[%s18404_s27 + $0x600] ss:$2 sm:$0xff]  ;;  %v10437_v24 = vld [vmem:[%s18404_s27 + $0x610] ss:$2 sm:$0xff] }
 0x124   :  { %12031 = vrot.lane.b32.xlu1 %v14933_v8, %s18407_s26  ;;  %v1030_v48 = vsel %vm71_vm0, %v856_v33, -inf  ;;  %v11739_v23 = vunpack.i.h.bf16 %v14948_v0  ;;  %v11738_v57 = vunpack.i.l.bf16 %v14948_v0  ;;  %v10438_v25 = vld [vmem:[%s18404_s27 + $0x620] ss:$2 sm:$0xff]  ;;  %v3787_v0 = vsel %vm71_vm0, %v1162_v7, %v11724_v30 }
 0x125   :  { %12026 = vrot.lane.b32.xlu0 %v14833_v58, %s18407_s26  ;;  %11311 = vmatmul.mubr.msk.bf16.gmra.mrb[8].mxu0 %vm4367_vm10, %v4297_v32  ;;  %v1032_v4 = vmax.f32 %v1030_v48, %v1031_v26  ;;  %v3786_v32 = vsel %vm71_vm0, %v1161_v6, %v11723_v29  ;;  %v860_v39 = vmax.f32 %v10436_v20, %v10564_v53 }
 0x126   :  { %v14964_v37 = vpop.permute.xlu1 %11751  ;;  %v861_v33 = vmax.f32 %v10437_v24, %v10565_v42  ;;  %v3852_v46 = vsel %vm3838_vm4, %v3787_v0, %v11739_v23  ;;  %v3851_v13 = vsel %vm3838_vm4, %v3786_v32, %v11738_v57 }
 0x127   :  { %v14975_v43 = vpop.permute.xlu0 %11746  ;;  %1131 = vst.msk [vmem:[#allocation2 + $0x271] sm:$0xff] %vm71_vm0, %v1032_v4  ;;  %v11754_v22 = vunpack.i.h.bf16 %v14964_v37  ;;  %v11753_v14 = vunpack.i.l.bf16 %v14964_v37  ;;  %v3854_v37 = vsel %vm3838_vm4, %v3789_v34, %v11744_v17  ;;  %v1036_v3 = vsel %vm71_vm0, %v860_v39, -inf }
 0x128   :  { %12041 = vrot.lane.b32.xlu1 %v14833_v58, %s18413_s23  ;;  %v1034_v58 = vsel %vm71_vm0, %v859_v16, -inf  ;;  %v11748_v21 = vunpack.i.l.bf16 %v14975_v43  ;;  %v11749_v40 = vunpack.i.h.bf16 %v14975_v43  ;;  %v862_v16 = vmax.f32 %v10438_v25, %v10566_v31 }
 0x129   :  { %12036 = vrot.lane.b32.xlu0 %v14839_v54, %s18408_s25  ;;  %v1035_v51 = vmax.f32 %v1033_v49, %v1034_v58  ;;  %v863_v43 = vmax.f32 %v10439_v56, %v10567_v44  ;;  %v3919_v49 = vsel %vm3903_vm5, %v3854_v37, %v11754_v22  ;;  %v1039_v36 = vsel %vm71_vm0, %v861_v33, -inf }
 0x12a   :  { %v14991_v28 = vpop.permute.xlu1 %11761  ;;  %v3916_v50 = vsel %vm3903_vm5, %v3851_v13, %v11748_v21  ;;  %v1037_v58 = vsel %vm71_vm0, %v862_v16, -inf  ;;  %v3917_v61 = vsel %vm3903_vm5, %v3852_v46, %v11749_v40  ;;  %v1245_v46 = vld [vmem:[#allocation2 + $0x1b1] sm:$0xff] }
 0x12b   :  { %v14995_v27 = vpop.permute.xlu0 %11756  ;;  %1132 = vst.msk [vmem:[#allocation2 + $0x279] sm:$0xff] %vm71_vm0, %v1035_v51  ;;  %v1038_v6 = vmax.f32 %v1036_v3, %v1037_v58  ;;  %v11763_v11 = vunpack.i.l.bf16 %v14991_v28 }
 0x12c   :  { %12051 = vrot.lane.b32.xlu1 %v14933_v8, %s18413_s23  ;;  %v11759_v55 = vunpack.i.h.bf16 %v14995_v27  ;;  %v11758_v5 = vunpack.i.l.bf16 %v14995_v27  ;;  %v1040_v27 = vsel %vm71_vm0, %v863_v43, -inf }
 0x12d   :  { %12046 = vrot.lane.b32.xlu0 %v14987_v47, %s18408_s25  ;;  %v1041_v2 = vmax.f32 %v1039_v36, %v1040_v27  ;;  %1133 = vst.msk [vmem:[#allocation2 + $0x289] sm:$0xff] %vm71_vm0, %v1038_v6  ;;  %v1692_v36 = vld [vmem:[#allocation2 + $0x19a] sm:$0xff]  ;;  %v1312_v27 = vld [vmem:[#allocation2 + $0x1d2] sm:$0xff] }
 0x12e   :  { %v15011_v45 = vpop.permute.xlu1 %11771  ;;  %v3981_v17 = vsel %vm181_vm2, %v3917_v61, %v11759_v55  ;;  %v1693_v61 = vld [vmem:[#allocation2 + $0x1a2] sm:$0xff] }
 0x12f   :  { %v15015_v12 = vpop.permute.xlu0 %11766  ;;  %v11773_v23 = vunpack.i.l.bf16 %v15011_v45  ;;  %1134 = vst.msk [vmem:[#allocation2 + $0x291] sm:$0xff] %vm71_vm0, %v1041_v2  ;;  %v10568_v6 = vld [vmem:[%s18404_s27 + $0x641] ss:$2 sm:$0xff] }
 0x130   :  { %12061 = vrot.lane.b32.xlu1 %v14987_v47, %s18409_s1  ;;  %v11769_v4 = vunpack.i.h.bf16 %v15015_v12  ;;  %v11768_v59 = vunpack.i.l.bf16 %v15015_v12  ;;  %v11774_v12 = vunpack.i.h.bf16 %v15011_v45 }
 0x131   :  { %12056 = vrot.lane.b32.xlu0 %v14839_v54, %s18409_s1  ;;  %v3853_v54 = vsel %vm3838_vm4, %v3788_v63, %v11743_v35  ;;  %v3980_v35 = vsel %vm181_vm2, %v3916_v50, %v11758_v5  ;;  %v1628_v63 = vld [vmem:[#allocation2 + $0x199] sm:$0xff] }
 0x132   :  { %v15048_v38 = vpop.permute.xlu1 %11781  ;;  %v3918_v48 = vsel %vm3903_vm5, %v3853_v54, %v11753_v14  ;;  %v4045_v22 = vsel %vm4032_vm6, %v3980_v35, %v11768_v59  ;;  %v4046_v14 = vsel %vm4032_vm6, %v3981_v17, %v11769_v4  ;;  %v10441_v4 = vld [vmem:[%s18404_s27 + $0x650] ss:$2 sm:$0xff]  ;;  %v10442_v59 = vld [vmem:[%s18404_s27 + $0x660] ss:$2 sm:$0xff] }
 0x133   :  { %v11777_v41 = vpop.permute.xlu0 %11776  ;;  %v11783_v21 = vunpack.i.l.bf16 %v15048_v38  ;;  %v15171_v17 = vld [vmem:[#allocation2 + $0x1b2] sm:$0xff] }
 0x134   :  { %12071 = vrot.lane.b32.xlu1 %v15017_v18, %s18410_s30  ;;  %v11779_v7 = vunpack.i.h.bf16 %v11777_v41  ;;  %v11778_v10 = vunpack.i.l.bf16 %v11777_v41 }
 0x135   :  { %12066 = vrot.lane.b32.xlu0 %v14841_v60, %s18410_s30  ;;  %v11764_v60 = vunpack.i.h.bf16 %v14991_v28  ;;  %v1629_v28 = vld [vmem:[#allocation2 + $0x1a1] sm:$0xff] }
 0x136   :  { %v11792_v26 = vpop.permute.xlu1 %11791  ;;  %v4110_v24 = vsel %vm4097_vm7, %v4045_v22, %v11778_v10  ;;  %v4111_v25 = vsel %vm4097_vm7, %v4046_v14, %v11779_v7  ;;  %v12110_v33 = vpack.i.bf16 %v1629_v28, %v1628_v63  ;;  %v1311_v10 = vld [vmem:[#allocation2 + $0x1ca] sm:$0xff]  ;;  %v12125_v28 = vpack.i.bf16 %v1693_v61, %v1692_v36 }
 0x137   :  { %v11787_v51 = vpop.permute.xlu0 %11786  ;;  %v11794_v32 = vunpack.i.h.bf16 %v11792_v26  ;;  %v11793_v34 = vunpack.i.l.bf16 %v11792_v26  ;;  %v3983_v53 = vsel %vm181_vm2, %v3919_v49, %v11764_v60  ;;  %v10569_v60 = vld [vmem:[%s18404_s27 + $0x651] ss:$2 sm:$0xff] }
 0x138   :  { %12081 = vrot.lane.b32.xlu1 %v15019_v19, %s18411_s21  ;;  %v11789_v30 = vunpack.i.h.bf16 %v11787_v51  ;;  %v11788_v29 = vunpack.i.l.bf16 %v11787_v51  ;;  %v4048_v31 = vsel %vm4032_vm6, %v3983_v53, %v11774_v12  ;;  %v865_v2 = vmax.f32 %v10441_v4, %v10569_v60  ;;  %v15173_v12 = vld [vmem:[#allocation2 + $0x1ba] sm:$0xff] }
 0x139   :  { %12076 = vrot.lane.b32.xlu0 %v14933_v8, %s18411_s21  ;;  %v11784_v8 = vunpack.i.h.bf16 %v15048_v38  ;;  %v3982_v38 = vsel %vm181_vm2, %v3918_v48, %v11763_v11  ;;  %v1246_v48 = vld [vmem:[#allocation2 + $0x1b9] sm:$0xff]  ;;  %v10570_v11 = vld [vmem:[%s18404_s27 + $0x661] ss:$2 sm:$0xff] }
 0x13a   :  { %v15096_v57 = vpop.permute.xlu1 %11801  ;;  %v4175_v54 = vsel %vm4162_vm8, %v4110_v24, %v11788_v29  ;;  %v4176_v56 = vsel %vm4162_vm8, %v4111_v25, %v11789_v30  ;;  %v4047_v41 = vsel %vm4032_vm6, %v3982_v38, %v11773_v23  ;;  %v12120_v58 = vpack.i.bf16 %v1246_v48, %v1245_v46  ;;  %v10571_v30 = vld [vmem:[%s18404_s27 + $0x671] ss:$2 sm:$0xff]  ;;  %v15181_v24 = vld [vmem:[#allocation2 + $0x1c8] sm:$0xff]  ;;  %v1569_v53 = vld [vmem:[#allocation2 + $0x200] sm:$0xff] }
 0x13b   :  { %v11797_v20 = vpop.permute.xlu0 %11796  ;;  %v4113_v13 = vsel %vm4097_vm7, %v4048_v31, %v11784_v8  ;;  %v866_v23 = vmax.f32 %v10442_v59, %v10570_v11  ;;  %v1045_v14 = vsel %vm71_vm0, %v865_v2, -inf  ;;  %v15183_v25 = vld [vmem:[#allocation2 + $0x1d0] sm:$0xff]  ;;  %v1568_v38 = vld [vmem:[#allocation2 + $0x1f8] sm:$0xff]  ;;  %v10446_v59 = vld [vmem:[%s18404_s27 + $0x6a0] ss:$2 sm:$0xff] }
 0x13c   :  { %v11799_v45 = vunpack.i.h.bf16 %v11797_v20  ;;  %v11798_v0 = vunpack.i.l.bf16 %v11797_v20  ;;  %12091 = vrot.lane.b32.xlu1 %v15025_v15, %s18412_s29  ;;  %v4178_v50 = vsel %vm4162_vm8, %v4113_v13, %v11794_v32  ;;  %v1376_v20 = vld [vmem:[#allocation2 + $0x1e8] sm:$0xff]  ;;  %v11804_v13 = vunpack.i.h.bf16 %v15096_v57  ;;  %v10445_v4 = vld [vmem:[%s18404_s27 + $0x690] ss:$2 sm:$0xff] }
 0x13d   :  { %12086 = vrot.lane.b32.xlu0 %v14987_v47, %s18412_s29  ;;  %v4112_v47 = vsel %vm4097_vm7, %v4047_v41, %v11783_v21  ;;  %v1375_v21 = vld [vmem:[#allocation2 + $0x1e0] sm:$0xff]  ;;  %v1043_v32 = vsel %vm71_vm0, %v866_v23, -inf  ;;  %v15191_v41 = vpack.i.bf16 %v1312_v27, %v1311_v10  ;;  %v10447_v27 = vld [vmem:[%s18404_s27 + $0x6b0] ss:$2 sm:$0xff]  ;;  %v10575_v23 = vld [vmem:[%s18404_s27 + $0x6b1] ss:$2 sm:$0xff] }
 0x13e   :  { %v4240_v42 = vsel %vm4227_vm9, %v4175_v54, %v11798_v0  ;;  %v4241_v37 = vsel %vm4227_vm9, %v4176_v56, %v11799_v45  ;;  %v15115_v40 = vpop.permute.xlu1 %11811  ;;  %v4177_v49 = vsel %vm4162_vm8, %v4112_v47, %v11793_v34  ;;  %v1439_v45 = vld [vmem:[#allocation2 + $0x1e1] sm:$0xff]  ;;  %v1440_v0 = vld [vmem:[#allocation2 + $0x1e9] sm:$0xff]  ;;  %v12135_v47 = vpack.i.bf16 %v15173_v12, %v15171_v17 }
 0x13f   :  { %v11807_v44 = vpop.permute.xlu0 %11806  ;;  %v4298_v39 = vpack.c.bf16 %v4241_v37, %v4240_v42  ;;  %v1503_v54 = vld [vmem:[#allocation2 + $0x1e2] sm:$0xff]  ;;  %v1504_v56 = vld [vmem:[#allocation2 + $0x1ea] sm:$0xff]  ;;  %v1167_v37 = vld [vmem:[#allocation2 + $0xd8] sm:$0xff]  ;;  %v11813_v46 = vunpack.i.l.bf16 %v15115_v40 }
 0x140   :  { %v11809_v16 = vunpack.i.h.bf16 %v11807_v44  ;;  %v11808_v43 = vunpack.i.l.bf16 %v11807_v44  ;;  %12101 = vrot.lane.b32.xlu1 %v12100_v9, %s18406_s5  ;;  %v1248_v9 = vld [vmem:[#allocation2 + $0x1d1] sm:$0xff]  ;;  %v1165_v44 = vld [vmem:[#allocation2 + $0xc0] sm:$0xff] }
 0x141   :  { %12096 = vrot.lane.b32.xlu0 %v15017_v18, %s18406_s5  ;;  %11314 = vmatprep.mubr.msk.bf16.mxu0 %vm4367_vm10, %v4298_v39  ;;  %v10440_v18 = vld [vmem:[%s18404_s27 + $0x640] ss:$2 sm:$0xff]  ;;  %v15169_v35 = vpack.i.bf16 %v1248_v9, %v1247_v62  ;;  %v15252_v62 = vpack.i.bf16 %v1440_v0, %v1439_v45  ;;  %v15258_v9 = vpack.i.bf16 %v1504_v56, %v1503_v54  ;;  %v10572_v11 = vld [vmem:[%s18404_s27 + $0x681] ss:$2 sm:$0xff] }
 0x142   :  { %v4243_v3 = vsel %vm4227_vm9, %v4178_v50, %v11809_v16  ;;  %v4242_v55 = vsel %vm4227_vm9, %v4177_v49, %v11808_v43  ;;  %v15132_v5 = vpop.permute.xlu1 %11821  ;;  %v864_v29 = vmax.f32 %v10440_v18, %v10568_v6  ;;  %v1166_v39 = vld [vmem:[#allocation2 + $0xc8] sm:$0xff]  ;;  %v11803_v16 = vunpack.i.l.bf16 %v15096_v57 }
 0x143   :  { %v15134_v26 = vpop.permute.xlu0 %11816  ;;  %v4299_v52 = vpack.c.bf16 %v4243_v3, %v4242_v55  ;;  %v11814_v43 = vunpack.i.h.bf16 %v15115_v40  ;;  %v11823_v48 = vunpack.i.l.bf16 %v15132_v5  ;;  %v11824_v50 = vunpack.i.h.bf16 %v15132_v5  ;;  %v10574_v12 = vld [vmem:[%s18404_s27 + $0x6a1] ss:$2 sm:$0xff] }
 0x144   :  { %12111 = vrot.lane.b32.xlu1 %v12110_v33, %s18407_s26  ;;  %v1042_v22 = vsel %vm71_vm0, %v864_v29, -inf  ;;  %v1168_v33 = vld [vmem:[#allocation2 + $0xe0] sm:$0xff]  ;;  %v15248_v55 = vpack.i.bf16 %v1376_v20, %v1375_v21  ;;  %v11819_v57 = vunpack.i.h.bf16 %v15134_v26  ;;  %v11818_v40 = vunpack.i.l.bf16 %v15134_v26 }
 0x145   :  { %12106 = vrot.lane.b32.xlu0 %v15019_v19, %s18407_s26  ;;  %11315 = vmatmul.mubr.msk.bf16.gmra.mrb[12].mxu0 %vm4367_vm10, %v4299_v52  ;;  %v10443_v19 = vld [vmem:[%s18404_s27 + $0x670] ss:$2 sm:$0xff]  ;;  %v1044_v42 = vmax.f32 %v1042_v22, %v1043_v32  ;;  %v12145_v52 = vpack.i.bf16 %v15183_v25, %v15181_v24  ;;  %v3792_v5 = vsel %vm71_vm0, %v1167_v37, %v11813_v46  ;;  %v10444_v26 = vld [vmem:[%s18404_s27 + $0x680] ss:$2 sm:$0xff] }
 0x146   :  { %v15149_v51 = vpop.permute.xlu1 %11831  ;;  %v867_v63 = vmax.f32 %v10443_v19, %v10571_v30  ;;  %v3791_v19 = vsel %vm71_vm0, %v1166_v39, %v11804_v13  ;;  %v3793_v6 = vsel %vm71_vm0, %v1168_v33, %v11814_v43  ;;  %v3857_v60 = vsel %vm3838_vm4, %v3792_v5, %v11823_v48  ;;  %v10573_v30 = vld [vmem:[%s18404_s27 + $0x691] ss:$2 sm:$0xff] }
 0x147   :  { %v15160_v7 = vpop.permute.xlu0 %11826  ;;  %1135 = vst.msk [vmem:[#allocation2 + $0x2a1] sm:$0xff] %vm71_vm0, %v1044_v42  ;;  %v11834_v36 = vunpack.i.h.bf16 %v15149_v51  ;;  %v11833_v61 = vunpack.i.l.bf16 %v15149_v51  ;;  %v3790_v51 = vsel %vm71_vm0, %v1165_v44, %v11803_v16  ;;  %v3858_v29 = vsel %vm3838_vm4, %v3793_v6, %v11824_v50 }
 0x148   :  { %12121 = vrot.lane.b32.xlu1 %v12120_v58, %s18413_s23  ;;  %v1046_v34 = vsel %vm71_vm0, %v867_v63, -inf  ;;  %v15260_v58 = vpack.i.bf16 %v1569_v53, %v1568_v38  ;;  %v11828_v18 = vunpack.i.l.bf16 %v15160_v7  ;;  %v11829_v2 = vunpack.i.h.bf16 %v15160_v7 }
 0x149   :  { %12116 = vrot.lane.b32.xlu0 %v15025_v15, %s18408_s25  ;;  %v1047_v31 = vmax.f32 %v1045_v14, %v1046_v34  ;;  %v868_v63 = vmax.f32 %v10444_v26, %v10572_v11  ;;  %v3856_v22 = vsel %vm3838_vm4, %v3791_v19, %v11819_v57  ;;  %v3855_v14 = vsel %vm3838_vm4, %v3790_v51, %v11818_v40  ;;  %v1632_v57 = vld [vmem:[#allocation2 + $0x1f9] sm:$0xff] }
 0x14a   :  { %v15179_v8 = vpop.permute.xlu1 %11841  ;;  %v870_v21 = vmax.f32 %v10446_v59, %v10574_v12  ;;  %v871_v7 = vmax.f32 %v10447_v27, %v10575_v23  ;;  %v3922_v20 = vsel %vm3903_vm5, %v3857_v60, %v11833_v61  ;;  %v3923_v24 = vsel %vm3903_vm5, %v3858_v29, %v11834_v36 }
 0x14b   :  { %v15187_v15 = vpop.permute.xlu0 %11836  ;;  %1136 = vst.msk [vmem:[#allocation2 + $0x2a9] sm:$0xff] %vm71_vm0, %v1047_v31  ;;  %v3920_v25 = vsel %vm3903_vm5, %v3855_v14, %v11828_v18  ;;  %v1048_v45 = vsel %vm71_vm0, %v868_v63, -inf  ;;  %v3921_v38 = vsel %vm3903_vm5, %v3856_v22, %v11829_v2  ;;  %v11844_v44 = vunpack.i.h.bf16 %v15179_v8 }
 0x14c   :  { %12131 = vrot.lane.b32.xlu1 %v15169_v35, %s18413_s23  ;;  %v11839_v0 = vunpack.i.h.bf16 %v15187_v15  ;;  %v11838_v32 = vunpack.i.l.bf16 %v15187_v15  ;;  %v1049_v54 = vsel %vm71_vm0, %v870_v21, -inf  ;;  %v1052_v15 = vsel %vm71_vm0, %v871_v7, -inf }
 0x14d   :  { %12126 = vrot.lane.b32.xlu0 %v12125_v28, %s18408_s25  ;;  %v869_v28 = vmax.f32 %v10445_v4, %v10573_v30  ;;  %v1050_v31 = vmax.f32 %v1048_v45, %v1049_v54  ;;  %v11843_v46 = vunpack.i.l.bf16 %v15179_v8  ;;  %v1633_v8 = vld [vmem:[#allocation2 + $0x201] sm:$0xff] }
 0x14e   :  { %v15242_v49 = vpop.permute.xlu1 %11851  ;;  %v3984_v43 = vsel %vm181_vm2, %v3920_v25, %v11838_v32  ;;  %v3985_v48 = vsel %vm181_vm2, %v3921_v38, %v11839_v0  ;;  %v15350_v23 = vpack.i.bf16 %v1633_v8, %v1632_v57 }
 0x14f   :  { %v15246_v3 = vpop.permute.xlu0 %11846  ;;  %v1051_v56 = vsel %vm71_vm0, %v869_v28, -inf  ;;  %1137 = vst.msk [vmem:[#allocation2 + $0x2b9] sm:$0xff] %vm71_vm0, %v1050_v31  ;;  %v11854_v50 = vunpack.i.h.bf16 %v15242_v49  ;;  %v3986_v60 = vsel %vm181_vm2, %v3922_v20, %v11843_v46 }
 0x150   :  { %12141 = vrot.lane.b32.xlu1 %v15191_v41, %s18409_s1  ;;  %v11849_v53 = vunpack.i.h.bf16 %v15246_v3  ;;  %v11848_v42 = vunpack.i.l.bf16 %v15246_v3  ;;  %v1053_v16 = vmax.f32 %v1051_v56, %v1052_v15  ;;  %v11853_v3 = vunpack.i.l.bf16 %v15242_v49 }
 0x151   :  { %12136 = vrot.lane.b32.xlu0 %v12135_v47, %s18409_s1 }
 0x152   :  { %v15280_v10 = vpop.permute.xlu1 %11861  ;;  %v4049_v40 = vsel %vm4032_vm6, %v3984_v43, %v11848_v42  ;;  %v4050_v5 = vsel %vm4032_vm6, %v3985_v48, %v11849_v53  ;;  %1138 = vst.msk [vmem:[#allocation2 + $0x2c1] sm:$0xff] %vm71_vm0, %v1053_v16  ;;  %v4051_v29 = vsel %vm4032_vm6, %v3986_v60, %v11853_v3 }
 0x153   :  { %v11857_v17 = vpop.permute.xlu0 %11856  ;;  %v11863_v36 = vunpack.i.l.bf16 %v15280_v10 }
 0x154   :  { %12151 = vrot.lane.b32.xlu1 %v15248_v55, %s18410_s30  ;;  %v11859_v39 = vunpack.i.h.bf16 %v11857_v17  ;;  %v11858_v33 = vunpack.i.l.bf16 %v11857_v17 }
 0x155   :  { %12146 = vrot.lane.b32.xlu0 %v12145_v52, %s18410_s30 }
 0x156   :  { %v11872_v34 = vpop.permute.xlu1 %11871  ;;  %v4114_v18 = vsel %vm4097_vm7, %v4049_v40, %v11858_v33  ;;  %v4115_v26 = vsel %vm4097_vm7, %v4050_v5, %v11859_v39 }
 0x157   :  { %v11867_v37 = vpop.permute.xlu0 %11866  ;;  %v11874_v59 = vunpack.i.h.bf16 %v11872_v34  ;;  %v11873_v19 = vunpack.i.l.bf16 %v11872_v34 }
 0x158   :  { %12161 = vrot.lane.b32.xlu1 %v15252_v62, %s18411_s21  ;;  %v11869_v47 = vunpack.i.h.bf16 %v11867_v37  ;;  %v11868_v13 = vunpack.i.l.bf16 %v11867_v37 }
 0x159   :  { %12156 = vrot.lane.b32.xlu0 %v15169_v35, %s18411_s21  ;;  %v11864_v35 = vunpack.i.h.bf16 %v15280_v10  ;;  %v3987_v10 = vsel %vm181_vm2, %v3923_v24, %v11844_v44 }
 0x15a   :  { %v15327_v52 = vpop.permute.xlu1 %11881  ;;  %v4179_v51 = vsel %vm4162_vm8, %v4114_v18, %v11868_v13  ;;  %v4180_v6 = vsel %vm4162_vm8, %v4115_v26, %v11869_v47  ;;  %v4052_v2 = vsel %vm4032_vm6, %v3987_v10, %v11854_v50 }
 0x15b   :  { %v11877_v61 = vpop.permute.xlu0 %11876  ;;  %v4117_v63 = vsel %vm4097_vm7, %v4052_v2, %v11864_v35 }
 0x15c   :  { %v11879_v49 = vunpack.i.h.bf16 %v11877_v61  ;;  %v11878_v4 = vunpack.i.l.bf16 %v11877_v61  ;;  %12171 = vrot.lane.b32.xlu1 %v15258_v9, %s18412_s29 }
 0x15d   :  { %12166 = vrot.lane.b32.xlu0 %v15191_v41, %s18412_s29  ;;  %v4116_v41 = vsel %vm4097_vm7, %v4051_v29, %v11863_v36 }
 0x15e   :  { %v4244_v27 = vsel %vm4227_vm9, %v4179_v51, %v11878_v4  ;;  %v4245_v11 = vsel %vm4227_vm9, %v4180_v6, %v11879_v49  ;;  %v15346_v30 = vpop.permute.xlu1 %11891 }
 0x15f   :  { %v11887_v17 = vpop.permute.xlu0 %11886  ;;  %v4300_v12 = vpack.c.bf16 %v4245_v11, %v4244_v27 }
 0x160   :  { %v11889_v28 = vunpack.i.h.bf16 %v11887_v17  ;;  %v11888_v22 = vunpack.i.l.bf16 %v11887_v17  ;;  %12181 = vrot.lane.b32.xlu1 %v15260_v58, %s18406_s5 }
 0x161   :  { %29 = vsyncpa [#allocation13], 0  ;;  %v4181_v14 = vsel %vm4162_vm8, %v4116_v41, %v11873_v19  ;;  %v4182_v21 = vsel %vm4162_vm8, %v4117_v63, %v11874_v59  ;;  %12176 = vrot.lane.b32.xlu0 %v15248_v55, %s18406_s5  ;;  %11318 = vmatprep.mubr.msk.bf16.mxu0 %vm4367_vm10, %v4300_v12  ;;  %v1696_v0 = vld [vmem:[#allocation2 + $0x1fa] sm:$0xff]  ;;  %v1697_v32 = vld [vmem:[#allocation2 + $0x202] sm:$0xff]  ;;  %v11893_v61 = vunpack.i.l.bf16 %v15346_v30  ;;  %v11884_v4 = vunpack.i.h.bf16 %v15327_v52  ;;  %s18414_s18 = sld [smem:[#allocation18_spill]]  ;;  %s18415_s3 = sld [smem:[#allocation19_spill]] }
 0x162   :  { %v4247_v7 = vsel %vm4227_vm9, %v4182_v21, %v11889_v28  ;;  %v4246_v20 = vsel %vm4227_vm9, %v4181_v14, %v11888_v22  ;;  %v15363_v24 = vpop.permute.xlu1 %11901  ;;  %v10448_v55 = vld [vmem:[%s18404_s27 + $0x6c0] ss:$2 sm:$0xff]  ;;  %v10449_v34 = vld [vmem:[%s18404_s27 + $0x6d0] ss:$2 sm:$0xff]  ;;  %v10576_v53 = vld [vmem:[%s18404_s27 + $0x6c1] ss:$2 sm:$0xff]  ;;  %v15404_v47 = vpack.i.bf16 %v1697_v32, %v1696_v0  ;;  %v11883_v59 = vunpack.i.l.bf16 %v15327_v52 }
 0x163   :  { %v15365_v25 = vpop.permute.xlu0 %11896  ;;  %v4301_v45 = vpack.c.bf16 %v4247_v7, %v4246_v20  ;;  %v10450_v54 = vld [vmem:[%s18404_s27 + $0x6e0] ss:$2 sm:$0xff]  ;;  %v10451_v38 = vld [vmem:[%s18404_s27 + $0x6f0] ss:$2 sm:$0xff]  ;;  %v10577_v42 = vld [vmem:[%s18404_s27 + $0x6d1] ss:$2 sm:$0xff]  ;;  %v872_v39 = vmax.f32 %v10448_v55, %v10576_v53  ;;  %v11894_v51 = vunpack.i.h.bf16 %v15346_v30  ;;  %v11903_v6 = vunpack.i.l.bf16 %v15363_v24 }
 0x164   :  { %12191 = vrot.lane.b32.xlu1 %v15350_v23, %s18407_s26  ;;  %v10578_v31 = vld [vmem:[%s18404_s27 + $0x6e1] ss:$2 sm:$0xff]  ;;  %v10579_v44 = vld [vmem:[%s18404_s27 + $0x6f1] ss:$2 sm:$0xff]  ;;  %v873_v33 = vmax.f32 %v10449_v34, %v10577_v42  ;;  %v11904_v29 = vunpack.i.h.bf16 %v15363_v24  ;;  %v11899_v52 = vunpack.i.h.bf16 %v15365_v25  ;;  %v11898_v30 = vunpack.i.l.bf16 %v15365_v25  ;;  %v10452_v7 = vld [vmem:[%s18404_s27 + $0x700] ss:$2 sm:$0xff] }
 0x165   :  { %12186 = vrot.lane.b32.xlu0 %v15252_v62, %s18407_s26  ;;  %11319 = vmatmul.mubr.msk.bf16.gmra.mrb[16].mxu0 %vm4367_vm10, %v4301_v45  ;;  %v874_v15 = vmax.f32 %v10450_v54, %v10578_v31  ;;  %v875_v46 = vmax.f32 %v10451_v38, %v10579_v44  ;;  %v1054_v13 = vsel %vm71_vm0, %v872_v39, -inf  ;;  %v1380_v57 = vld [vmem:[#allocation2 + $0x218] sm:$0xff]  ;;  %v1572_v26 = vld [vmem:[#allocation2 + $0x228] sm:$0xff]  ;;  %v1573_v49 = vld [vmem:[#allocation2 + $0x230] sm:$0xff]  ;;  %vm5670_vm12 = vcmask 785408   ;;  %s18417_s2 = sld [smem:[#allocation16_spill]] }
 0x166   :  { %v15381_v56 = vpop.permute.xlu1 %11911  ;;  %v1057_v16 = vsel %vm71_vm0, %v873_v33, -inf  ;;  %v1443_v40 = vld [vmem:[#allocation2 + $0x211] sm:$0xff]  ;;  %v1444_v5 = vld [vmem:[#allocation2 + $0x219] sm:$0xff]  ;;  %v1171_v19 = vld [vmem:[#allocation2 + $0x108] sm:$0xff]  ;;  %v15440_v63 = vpack.i.bf16 %v1573_v49, %v1572_v26  ;;  %vm223_vm13 = vcmask 521216   ;;  %vm244_vm14 = vcmask 519168  }
 0x167   :  { %v15392_v37 = vpop.permute.xlu0 %11906  ;;  %v1055_v48 = vsel %vm71_vm0, %v874_v15, -inf  ;;  %v1058_v50 = vsel %vm71_vm0, %v875_v46, -inf  ;;  %v1507_v35 = vld [vmem:[#allocation2 + $0x212] sm:$0xff]  ;;  %v1508_v18 = vld [vmem:[#allocation2 + $0x21a] sm:$0xff]  ;;  %v15432_v12 = vpack.i.bf16 %v1444_v5, %v1443_v40  ;;  %v3796_v28 = vsel %vm71_vm0, %v1171_v19, %v11893_v61  ;;  %229 = vst.msk [vmem:[#allocation6 + $0x28] sm:$0x3f] %vm223_vm13, %v13353_v1 }
 0x168   :  { %12201 = vrot.lane.b32.xlu1 %v15252_v62, %s18413_s23  ;;  %v1379_v62 = vld [vmem:[#allocation2 + $0x210] sm:$0xff]  ;;  %v1056_v8 = vmax.f32 %v1054_v13, %v1055_v48  ;;  %v1059_v36 = vmax.f32 %v1057_v16, %v1058_v50  ;;  %v1170_v27 = vld [vmem:[#allocation2 + $0xf8] sm:$0xff]  ;;  %v15438_v41 = vpack.i.bf16 %v1508_v18, %v1507_v35  ;;  %v11914_v22 = vunpack.i.h.bf16 %v15381_v56  ;;  %v10454_v24 = vld [vmem:[%s18404_s27 + $0x720] ss:$2 sm:$0xff]  ;;  %224 = vst.msk [vmem:[#allocation6] sm:$0x3f] %vm223_vm13, %v13353_v1 }
 0x169   :  { %12196 = vrot.lane.b32.xlu0 %v15258_v9, %s18408_s25  ;;  %v1169_v10 = vld [vmem:[#allocation2 + $0xf0] sm:$0xff]  ;;  %v15430_v17 = vpack.i.bf16 %v1380_v57, %v1379_v62  ;;  %v11913_v14 = vunpack.i.l.bf16 %v15381_v56  ;;  %v11908_v21 = vunpack.i.l.bf16 %v15392_v37  ;;  %v3795_v25 = vsel %vm71_vm0, %v1170_v27, %v11884_v4  ;;  %v10580_v34 = vld [vmem:[%s18404_s27 + $0x701] ss:$2 sm:$0xff]  ;;  %225 = vst.msk [vmem:[#allocation6 + $0x8] sm:$0x3f] %vm223_vm13, %v13353_v1 }
 0x16a   :  { %v15408_v43 = vpop.permute.xlu1 %11921  ;;  %1139 = vst.msk [vmem:[#allocation2 + $0x2d1] sm:$0xff] %vm71_vm0, %v1056_v8  ;;  %1140 = vst.msk [vmem:[#allocation2 + $0x2d9] sm:$0xff] %vm71_vm0, %v1059_v36  ;;  %v1172_v11 = vld [vmem:[#allocation2 + $0x110] sm:$0xff]  ;;  %v3794_v45 = vsel %vm71_vm0, %v1169_v10, %v11883_v59  ;;  %v11909_v38 = vunpack.i.h.bf16 %v15392_v37  ;;  %v10582_v42 = vld [vmem:[%s18404_s27 + $0x721] ss:$2 sm:$0xff]  ;;  %v876_v44 = vmax.f32 %v10452_v7, %v10580_v34  ;;  %v3860_v33 = vsel %vm3838_vm4, %v3795_v25, %v11899_v52 }
 0x16b   :  { %v15412_v3 = vpop.permute.xlu0 %11916  ;;  %v10453_v20 = vld [vmem:[%s18404_s27 + $0x710] ss:$2 sm:$0xff]  ;;  %v3797_v0 = vsel %vm71_vm0, %v1172_v11, %v11894_v51  ;;  %v10581_v54 = vld [vmem:[%s18404_s27 + $0x711] ss:$2 sm:$0xff]  ;;  %v3859_v15 = vsel %vm3838_vm4, %v3794_v45, %v11898_v30  ;;  %v878_v46 = vmax.f32 %v10454_v24, %v10582_v42  ;;  %v11923_v59 = vunpack.i.l.bf16 %v15408_v43  ;;  %226 = vst.msk [vmem:[#allocation6 + $0x10] sm:$0x3f] %vm223_vm13, %v13353_v1 }
 0x16c   :  { %12211 = vrot.lane.b32.xlu1 %v15350_v23, %s18413_s23  ;;  %v10455_v55 = vld [vmem:[%s18404_s27 + $0x730] ss:$2 sm:$0xff]  ;;  %v3862_v56 = vsel %vm3838_vm4, %v3797_v0, %v11904_v29  ;;  %v10583_v31 = vld [vmem:[%s18404_s27 + $0x731] ss:$2 sm:$0xff]  ;;  %v877_v39 = vmax.f32 %v10453_v20, %v10581_v54  ;;  %v3924_v48 = vsel %vm3903_vm5, %v3859_v15, %v11908_v21  ;;  %v1060_v50 = vsel %vm71_vm0, %v876_v44, -inf }
 0x16d   :  { %12206 = vrot.lane.b32.xlu0 %v15404_v47, %s18408_s25  ;;  %v879_v37 = vmax.f32 %v10455_v55, %v10583_v31  ;;  %v3927_v16 = vsel %vm3903_vm5, %v3862_v56, %v11914_v22  ;;  %v11919_v62 = vunpack.i.h.bf16 %v15412_v3  ;;  %v11918_v57 = vunpack.i.l.bf16 %v15412_v3  ;;  %v1637_v20 = vld [vmem:[#allocation2 + $0x231] sm:$0xff]  ;;  %227 = vst.msk [vmem:[#allocation6 + $0x18] sm:$0x3f] %vm223_vm13, %v13353_v1  ;;  %228 = vst.msk [vmem:[#allocation6 + $0x20] sm:$0x3f] %vm223_vm13, %v13353_v1 }
 0x16e   :  { %v15424_v60 = vpop.permute.xlu1 %11931  ;;  %v1061_v40 = vsel %vm71_vm0, %v878_v46, -inf  ;;  %v1063_v5 = vsel %vm71_vm0, %v877_v39, -inf  ;;  %v3925_v35 = vsel %vm3903_vm5, %v3860_v33, %v11909_v38  ;;  %230 = vst.msk [vmem:[#allocation6 + $0x30] sm:$0x3f] %vm223_vm13, %v13353_v1  ;;  %231 = vst.msk [vmem:[#allocation6 + $0x38] sm:$0x3f] %vm223_vm13, %v13353_v1 }
 0x16f   :  { %v15428_v2 = vpop.permute.xlu0 %11926  ;;  %v1062_v26 = vmax.f32 %v1060_v50, %v1061_v40  ;;  %v1064_v3 = vsel %vm71_vm0, %v879_v37, -inf  ;;  %v3988_v10 = vsel %vm181_vm2, %v3924_v48, %v11918_v57  ;;  %v3989_v27 = vsel %vm181_vm2, %v3925_v35, %v11919_v62  ;;  %v1700_v62 = vld [vmem:[#allocation2 + $0x22a] sm:$0xff]  ;;  %v1701_v57 = vld [vmem:[#allocation2 + $0x232] sm:$0xff]  ;;  %232 = vst.msk [vmem:[#allocation6 + $0x40] sm:$0x3f] %vm223_vm13, %v13353_v1 }
 0x170   :  { %12221 = vrot.lane.b32.xlu1 %v15404_v47, %s18409_s1  ;;  %v11929_v36 = vunpack.i.h.bf16 %v15428_v2  ;;  %v11928_v61 = vunpack.i.l.bf16 %v15428_v2  ;;  %v11934_v11 = vunpack.i.h.bf16 %v15424_v60  ;;  %v11933_v29 = vunpack.i.l.bf16 %v15424_v60  ;;  %v1636_v60 = vld [vmem:[#allocation2 + $0x229] sm:$0xff]  ;;  %233 = vst.msk [vmem:[#allocation6 + $0x48] sm:$0x3f] %vm223_vm13, %v13353_v1  ;;  %234 = vst.msk [vmem:[#allocation6 + $0x50] sm:$0x3f] %vm223_vm13, %v13353_v1 }
 0x171   :  { %12216 = vrot.lane.b32.xlu0 %v15258_v9, %s18409_s1  ;;  %v3861_v9 = vsel %vm3838_vm4, %v3796_v28, %v11903_v6  ;;  %v1065_v6 = vmax.f32 %v1063_v5, %v1064_v3  ;;  %1141 = vst.msk [vmem:[#allocation2 + $0x2e9] sm:$0xff] %vm71_vm0, %v1062_v26  ;;  %v15532_v31 = vpack.i.bf16 %v1637_v20, %v1636_v60  ;;  %v10458_v40 = vld [vmem:[%s18404_s27 + $0x760] ss:$2 sm:$0xff]  ;;  %v10459_v35 = vld [vmem:[%s18404_s27 + $0x770] ss:$2 sm:$0xff]  ;;  %vm7122_vm15 = vcmask 1041408  }
 0x172   :  { %v15461_v32 = vpop.permute.xlu1 %11941  ;;  %v3926_v13 = vsel %vm3903_vm5, %v3861_v9, %v11913_v14  ;;  %v4054_v52 = vsel %vm4032_vm6, %v3989_v27, %v11929_v36  ;;  %v10584_v36 = vld [vmem:[%s18404_s27 + $0x741] ss:$2 sm:$0xff]  ;;  %235 = vst.msk [vmem:[#allocation6 + $0x58] sm:$0x3f] %vm223_vm13, %v13353_v1  ;;  %vm13364_vm1 = vmmov 0  }
 0x173   :  { %v11937_v53 = vpop.permute.xlu0 %11936  ;;  %v11944_v30 = vunpack.i.h.bf16 %v15461_v32  ;;  %1142 = vst.msk [vmem:[#allocation2 + $0x2f1] sm:$0xff] %vm71_vm0, %v1065_v6  ;;  %v3990_v9 = vsel %vm181_vm2, %v3926_v13, %v11923_v59  ;;  %v10586_v26 = vld [vmem:[%s18404_s27 + $0x761] ss:$2 sm:$0xff] }
 0x174   :  { %12231 = vrot.lane.b32.xlu1 %v15430_v17, %s18410_s30  ;;  %v11939_v49 = vunpack.i.h.bf16 %v11937_v53  ;;  %v11938_v4 = vunpack.i.l.bf16 %v11937_v53  ;;  %v4055_v56 = vsel %vm4032_vm6, %v3990_v9, %v11933_v29  ;;  %v882_v3 = vmax.f32 %v10458_v40, %v10586_v26  ;;  %v1577_v60 = vld [vmem:[#allocation2 + $0x260] sm:$0xff]  ;;  %v10589_v40 = vld [vmem:[%s18404_s27 + $0x791] ss:$2 sm:$0xff]  ;;  %245 = vst.msk [vmem:[#allocation9] sm:$0xf] %vm244_vm14, %v13353_v1 }
 0x175   :  { %12226 = vrot.lane.b32.xlu0 %v15260_v58, %s18410_s30  ;;  %v11924_v58 = vunpack.i.h.bf16 %v15408_v43  ;;  %v4053_v43 = vsel %vm4032_vm6, %v3988_v10, %v11928_v61  ;;  %v10585_v61 = vld [vmem:[%s18404_s27 + $0x751] ss:$2 sm:$0xff]  ;;  %246 = vst.msk [vmem:[#allocation9 + $0x4] sm:$0xf] %vm244_vm14, %v13353_v1  ;;  %247 = vst.msk [vmem:[#allocation9 + $0x8] sm:$0xf] %vm244_vm14, %v13353_v1 }
 0x176   :  { %v11952_v8 = vpop.permute.xlu1 %11951  ;;  %v4118_v22 = vsel %vm4097_vm7, %v4053_v43, %v11938_v4  ;;  %v4119_v14 = vsel %vm4097_vm7, %v4054_v52, %v11939_v49  ;;  %v1067_v27 = vsel %vm71_vm0, %v882_v3, -inf  ;;  %v1384_v43 = vld [vmem:[#allocation2 + $0x248] sm:$0xff]  ;;  %v10591_v26 = vld [vmem:[%s18404_s27 + $0x7b1] ss:$2 sm:$0xff]  ;;  %248 = vst.msk [vmem:[#allocation9 + $0xc] sm:$0xf] %vm244_vm14, %v13353_v1 }
 0x177   :  { %v11947_v18 = vpop.permute.xlu0 %11946  ;;  %v11954_v24 = vunpack.i.h.bf16 %v11952_v8  ;;  %v11953_v25 = vunpack.i.l.bf16 %v11952_v8  ;;  %v10457_v8 = vld [vmem:[%s18404_s27 + $0x750] ss:$2 sm:$0xff]  ;;  %249 = vst.msk [vmem:[#allocation9 + $0x10] sm:$0xf] %vm244_vm14, %v13353_v1  ;;  %250 = vst.msk [vmem:[#allocation9 + $0x14] sm:$0xf] %vm244_vm14, %v13353_v1 }
 0x178   :  { %12241 = vrot.lane.b32.xlu1 %v15432_v12, %s18411_s21  ;;  %v11949_v19 = vunpack.i.h.bf16 %v11947_v18  ;;  %v11948_v51 = vunpack.i.l.bf16 %v11947_v18  ;;  %v881_v4 = vmax.f32 %v10457_v8, %v10585_v61  ;;  %v10588_v8 = vld [vmem:[%s18404_s27 + $0x781] ss:$2 sm:$0xff]  ;;  %251 = vst.msk [vmem:[#allocation9 + $0x18] sm:$0xf] %vm244_vm14, %v13353_v1  ;;  %252 = vst.msk [vmem:[#allocation9 + $0x1c] sm:$0xf] %vm244_vm14, %v13353_v1 }
 0x179   :  { %12236 = vrot.lane.b32.xlu0 %v15350_v23, %s18411_s21  ;;  %v11943_v23 = vunpack.i.l.bf16 %v15461_v32  ;;  %v3991_v32 = vsel %vm181_vm2, %v3927_v16, %v11924_v58  ;;  %v10587_v58 = vld [vmem:[%s18404_s27 + $0x771] ss:$2 sm:$0xff]  ;;  %v10590_v61 = vld [vmem:[%s18404_s27 + $0x7a1] ss:$2 sm:$0xff] }
 0x17a   :  { %v15509_v2 = vpop.permute.xlu1 %11961  ;;  %v4183_v45 = vsel %vm4162_vm8, %v4118_v22, %v11948_v51  ;;  %v4184_v0 = vsel %vm4162_vm8, %v4119_v14, %v11949_v19  ;;  %v4056_v38 = vsel %vm4032_vm6, %v3991_v32, %v11934_v11  ;;  %v883_v59 = vmax.f32 %v10459_v35, %v10587_v58  ;;  %v1173_v32 = vld [vmem:[#allocation2 + $0x120] sm:$0xff] }
 0x17b   :  { %v11957_v28 = vpop.permute.xlu0 %11956  ;;  %v4121_v44 = vsel %vm4097_vm7, %v4056_v38, %v11944_v30  ;;  %v15586_v19 = vpack.i.bf16 %v1701_v57, %v1700_v62  ;;  %v1069_v6 = vsel %vm71_vm0, %v881_v4, -inf  ;;  %v1447_v30 = vld [vmem:[#allocation2 + $0x241] sm:$0xff]  ;;  %v11964_v20 = vunpack.i.h.bf16 %v15509_v2 }
 0x17c   :  { %v11959_v21 = vunpack.i.h.bf16 %v11957_v28  ;;  %v11958_v7 = vunpack.i.l.bf16 %v11957_v28  ;;  %12251 = vrot.lane.b32.xlu1 %v15438_v41, %s18412_s29  ;;  %v4186_v46 = vsel %vm4162_vm8, %v4121_v44, %v11954_v24  ;;  %v1070_v11 = vsel %vm71_vm0, %v883_v59, -inf  ;;  %v1511_v28 = vld [vmem:[#allocation2 + $0x242] sm:$0xff] }
 0x17d   :  { %12246 = vrot.lane.b32.xlu0 %v15404_v47, %s18412_s29  ;;  %v4120_v47 = vsel %vm4097_vm7, %v4055_v56, %v11943_v23  ;;  %v1448_v23 = vld [vmem:[#allocation2 + $0x249] sm:$0xff]  ;;  %v1071_v22 = vmax.f32 %v1069_v6, %v1070_v11  ;;  %v11963_v24 = vunpack.i.l.bf16 %v15509_v2 }
 0x17e   :  { %v4248_v55 = vsel %vm4227_vm9, %v4183_v45, %v11958_v7  ;;  %v4249_v34 = vsel %vm4227_vm9, %v4184_v0, %v11959_v21  ;;  %v15528_v54 = vpop.permute.xlu1 %11971  ;;  %v4185_v15 = vsel %vm4162_vm8, %v4120_v47, %v11953_v25  ;;  %v1512_v21 = vld [vmem:[#allocation2 + $0x24a] sm:$0xff]  ;;  %v1576_v7 = vld [vmem:[#allocation2 + $0x258] sm:$0xff] }
 0x17f   :  { %v11967_v53 = vpop.permute.xlu0 %11966  ;;  %v4302_v42 = vpack.c.bf16 %v4249_v34, %v4248_v55  ;;  %v11973_v14 = vunpack.i.l.bf16 %v15528_v54  ;;  %v1175_v25 = vld [vmem:[#allocation2 + $0x138] sm:$0xff]  ;;  %v11974_v45 = vunpack.i.h.bf16 %v15528_v54  ;;  %1144 = vst.msk [vmem:[#allocation2 + $0x309] sm:$0xff] %vm71_vm0, %v1071_v22  ;;  %v1174_v55 = vld [vmem:[#allocation2 + $0x128] sm:$0xff]  ;;  %v1176_v34 = vld [vmem:[#allocation2 + $0x140] sm:$0xff]  ;;  %v15620_v47 = vpack.i.bf16 %v1512_v21, %v1511_v28 }
 0x180   :  { %v11969_v39 = vunpack.i.h.bf16 %v11967_v53  ;;  %v11968_v33 = vunpack.i.l.bf16 %v11967_v53  ;;  %12261 = vrot.lane.b32.xlu1 %v15440_v63, %s18406_s5  ;;  %v15622_v44 = vpack.i.bf16 %v1577_v60, %v1576_v7 }
 0x181   :  { %12256 = vrot.lane.b32.xlu0 %v15430_v17, %s18406_s5  ;;  %11322 = vmatprep.mubr.msk.bf16.mxu0 %vm4367_vm10, %v4302_v42  ;;  %v10456_v17 = vld [vmem:[%s18404_s27 + $0x740] ss:$2 sm:$0xff]  ;;  %v15614_v42 = vpack.i.bf16 %v1448_v23, %v1447_v30  ;;  %v3801_v62 = vsel %vm71_vm0, %v1176_v34, %v11974_v45 }
 0x182   :  { %v4251_v37 = vsel %vm4227_vm9, %v4186_v46, %v11969_v39  ;;  %v4250_v13 = vsel %vm4227_vm9, %v4185_v15, %v11968_v33  ;;  %v15545_v16 = vpop.permute.xlu1 %11981  ;;  %v880_v49 = vmax.f32 %v10456_v17, %v10584_v36  ;;  %v3800_v39 = vsel %vm71_vm0, %v1175_v25, %v11973_v14  ;;  %v10463_v17 = vld [vmem:[%s18404_s27 + $0x7b0] ss:$2 sm:$0xff] }
 0x183   :  { %v15547_v48 = vpop.permute.xlu0 %11976  ;;  %v4303_v50 = vpack.c.bf16 %v4251_v37, %v4250_v13  ;;  %v11983_v0 = vunpack.i.l.bf16 %v15545_v16  ;;  %v11984_v56 = vunpack.i.h.bf16 %v15545_v16  ;;  %v10460_v37 = vld [vmem:[%s18404_s27 + $0x780] ss:$2 sm:$0xff]  ;;  %v10461_v13 = vld [vmem:[%s18404_s27 + $0x790] ss:$2 sm:$0xff] }
 0x184   :  { %12271 = vrot.lane.b32.xlu1 %v15532_v31, %s18407_s26  ;;  %v1066_v51 = vsel %vm71_vm0, %v880_v49, -inf  ;;  %v11979_v2 = vunpack.i.h.bf16 %v15547_v48  ;;  %v11978_v54 = vunpack.i.l.bf16 %v15547_v48  ;;  %v10462_v16 = vld [vmem:[%s18404_s27 + $0x7a0] ss:$2 sm:$0xff]  ;;  %v3799_v48 = vsel %vm71_vm0, %v1174_v55, %v11964_v20 }
 0x185   :  { %12266 = vrot.lane.b32.xlu0 %v15432_v12, %s18407_s26  ;;  %11323 = vmatmul.mubr.msk.bf16.gmra.mrb[20].mxu0 %vm4367_vm10, %v4303_v50  ;;  %v1068_v52 = vmax.f32 %v1066_v51, %v1067_v27  ;;  %v3798_v50 = vsel %vm71_vm0, %v1173_v32, %v11963_v24  ;;  %v884_v58 = vmax.f32 %v10460_v37, %v10588_v8 }
 0x186   :  { %v15563_v5 = vpop.permute.xlu1 %11991  ;;  %v885_v49 = vmax.f32 %v10461_v13, %v10589_v40  ;;  %v3864_v4 = vsel %vm3838_vm4, %v3799_v48, %v11979_v2  ;;  %v3863_v3 = vsel %vm3838_vm4, %v3798_v50, %v11978_v54  ;;  %v886_v59 = vmax.f32 %v10462_v16, %v10590_v61  ;;  %v1641_v13 = vld [vmem:[#allocation2 + $0x261] sm:$0xff] }
 0x187   :  { %v15574_v18 = vpop.permute.xlu0 %11986  ;;  %1143 = vst.msk [vmem:[#allocation2 + $0x301] sm:$0xff] %vm71_vm0, %v1068_v52  ;;  %v11994_v33 = vunpack.i.h.bf16 %v15563_v5  ;;  %v11993_v15 = vunpack.i.l.bf16 %v15563_v5  ;;  %v3866_v5 = vsel %vm3838_vm4, %v3801_v62, %v11984_v56  ;;  %v1072_v11 = vsel %vm71_vm0, %v884_v58, -inf }
 0x188   :  { %12281 = vrot.lane.b32.xlu1 %v15432_v12, %s18413_s23  ;;  %v1383_v12 = vld [vmem:[#allocation2 + $0x240] sm:$0xff]  ;;  %v11988_v46 = vunpack.i.l.bf16 %v15574_v18  ;;  %v11989_v35 = vunpack.i.h.bf16 %v15574_v18  ;;  %v887_v18 = vmax.f32 %v10463_v17, %v10591_v26  ;;  %v1073_v30 = vsel %vm71_vm0, %v886_v59, -inf }
 0x189   :  { %12276 = vrot.lane.b32.xlu0 %v15438_v41, %s18408_s25  ;;  %v15612_v53 = vpack.i.bf16 %v1384_v43, %v1383_v12  ;;  %v3931_v6 = vsel %vm3903_vm5, %v3866_v5, %v11994_v33  ;;  %v1075_v23 = vsel %vm71_vm0, %v885_v49, -inf  ;;  %v1074_v7 = vmax.f32 %v1072_v11, %v1073_v30  ;;  %v10466_v30 = vld [vmem:[%s18404_s27 + $0x7e0] ss:$2 sm:$0xff] }
 0x18a   :  { %v15590_v10 = vpop.permute.xlu1 %12001  ;;  %v3928_v27 = vsel %vm3903_vm5, %v3863_v3, %v11988_v46  ;;  %v3929_v28 = vsel %vm3903_vm5, %v3864_v4, %v11989_v35 }
 0x18b   :  { %v15594_v29 = vpop.permute.xlu0 %11996  ;;  %v12003_v24 = vunpack.i.l.bf16 %v15590_v10  ;;  %1145 = vst.msk [vmem:[#allocation2 + $0x319] sm:$0xff] %vm71_vm0, %v1074_v7  ;;  %v10594_v7 = vld [vmem:[%s18404_s27 + $0x7e1] ss:$2 sm:$0xff] }
 0x18c   :  { %12291 = vrot.lane.b32.xlu1 %v15532_v31, %s18413_s23  ;;  %v11999_v12 = vunpack.i.h.bf16 %v15594_v29  ;;  %v11998_v43 = vunpack.i.l.bf16 %v15594_v29  ;;  %v1076_v29 = vsel %vm71_vm0, %v887_v18, -inf }
 0x18d   :  { %12286 = vrot.lane.b32.xlu0 %v15586_v19, %s18408_s25 }
 0x18e   :  { %v15606_v9 = vpop.permute.xlu1 %12011  ;;  %v3992_v32 = vsel %vm181_vm2, %v3928_v27, %v11998_v43  ;;  %v3993_v55 = vsel %vm181_vm2, %v3929_v28, %v11999_v12  ;;  %v1704_v12 = vld [vmem:[#allocation2 + $0x25a] sm:$0xff]  ;;  %v1705_v43 = vld [vmem:[#allocation2 + $0x262] sm:$0xff] }
 0x18f   :  { %v15610_v38 = vpop.permute.xlu0 %12006  ;;  %v12014_v34 = vunpack.i.h.bf16 %v15606_v9  ;;  %v12013_v56 = vunpack.i.l.bf16 %v15606_v9  ;;  %v1640_v9 = vld [vmem:[#allocation2 + $0x259] sm:$0xff] }
 0x190   :  { %12301 = vrot.lane.b32.xlu1 %v15586_v19, %s18409_s1  ;;  %v12009_v22 = vunpack.i.h.bf16 %v15610_v38  ;;  %v12008_v14 = vunpack.i.l.bf16 %v15610_v38  ;;  %v15714_v26 = vpack.i.bf16 %v1641_v13, %v1640_v9  ;;  %v10467_v28 = vld [vmem:[%s18404_s27 + $0x7f0] ss:$2 sm:$0xff] }
 0x191   :  { %12296 = vrot.lane.b32.xlu0 %v15438_v41, %s18409_s1  ;;  %v3865_v41 = vsel %vm3838_vm4, %v3800_v39, %v11983_v0  ;;  %v1077_v0 = vmax.f32 %v1075_v23, %v1076_v29  ;;  %v890_v29 = vmax.f32 %v10466_v30, %v10594_v7  ;;  %v1581_v9 = vld [vmem:[#allocation2 + $0x290] sm:$0xff]  ;;  %v1178_v13 = vld [vmem:[#allocation2 + $0x158] sm:$0xff] }
 0x192   :  { %v15643_v57 = vpop.permute.xlu1 %12021  ;;  %v3930_v51 = vsel %vm3903_vm5, %v3865_v41, %v11993_v15  ;;  %v4058_v2 = vsel %vm4032_vm6, %v3993_v55, %v12009_v22  ;;  %v10592_v22 = vld [vmem:[%s18404_s27 + $0x7c1] ss:$2 sm:$0xff] }
 0x193   :  { %v12017_v36 = vpop.permute.xlu0 %12016  ;;  %v12024_v54 = vunpack.i.h.bf16 %v15643_v57  ;;  %1146 = vst.msk [vmem:[#allocation2 + $0x321] sm:$0xff] %vm71_vm0, %v1077_v0  ;;  %v3994_v41 = vsel %vm181_vm2, %v3930_v51, %v12003_v24  ;;  %v1079_v55 = vsel %vm71_vm0, %v890_v29, -inf }
 0x194   :  { %12311 = vrot.lane.b32.xlu1 %v15612_v53, %s18410_s30  ;;  %v12019_v60 = vunpack.i.h.bf16 %v12017_v36  ;;  %v12018_v20 = vunpack.i.l.bf16 %v12017_v36  ;;  %v4059_v5 = vsel %vm4032_vm6, %v3994_v41, %v12013_v56 }
 0x195   :  { %12306 = vrot.lane.b32.xlu0 %v15440_v63, %s18410_s30  ;;  %v12004_v63 = vunpack.i.h.bf16 %v15590_v10  ;;  %v4057_v10 = vsel %vm4032_vm6, %v3992_v32, %v12008_v14  ;;  %v10593_v14 = vld [vmem:[%s18404_s27 + $0x7d1] ss:$2 sm:$0xff] }
 0x196   :  { %v12032_v52 = vpop.permute.xlu1 %12031  ;;  %v4122_v33 = vsel %vm4097_vm7, %v4057_v10, %v12018_v20  ;;  %v4123_v15 = vsel %vm4097_vm7, %v4058_v2, %v12019_v60  ;;  %v1388_v10 = vld [vmem:[#allocation2 + $0x278] sm:$0xff] }
 0x197   :  { %v12027_v21 = vpop.permute.xlu0 %12026  ;;  %v12034_v16 = vunpack.i.h.bf16 %v12032_v52  ;;  %v12033_v48 = vunpack.i.l.bf16 %v12032_v52  ;;  %v10465_v52 = vld [vmem:[%s18404_s27 + $0x7d0] ss:$2 sm:$0xff] }
 0x198   :  { %12321 = vrot.lane.b32.xlu1 %v15614_v42, %s18411_s21  ;;  %v12029_v25 = vunpack.i.h.bf16 %v12027_v21  ;;  %v12028_v45 = vunpack.i.l.bf16 %v12027_v21  ;;  %v889_v20 = vmax.f32 %v10465_v52, %v10593_v14 }
 0x199   :  { %12316 = vrot.lane.b32.xlu0 %v15532_v31, %s18411_s21  ;;  %v12023_v31 = vunpack.i.l.bf16 %v15643_v57  ;;  %v3995_v57 = vsel %vm181_vm2, %v3931_v6, %v12004_v63  ;;  %v10595_v63 = vld [vmem:[%s18404_s27 + $0x7f1] ss:$2 sm:$0xff] }
 0x19a   :  { %v15691_v38 = vpop.permute.xlu1 %12041  ;;  %v4187_v50 = vsel %vm4162_vm8, %v4122_v33, %v12028_v45  ;;  %v4188_v62 = vsel %vm4162_vm8, %v4123_v15, %v12029_v25  ;;  %v4060_v35 = vsel %vm4032_vm6, %v3995_v57, %v12014_v34  ;;  %v891_v24 = vmax.f32 %v10467_v28, %v10595_v63 }
 0x19b   :  { %v12037_v39 = vpop.permute.xlu0 %12036  ;;  %v4125_v58 = vsel %vm4097_vm7, %v4060_v35, %v12024_v54  ;;  %v15768_v25 = vpack.i.bf16 %v1705_v43, %v1704_v12  ;;  %v1081_v0 = vsel %vm71_vm0, %v889_v20, -inf  ;;  %v1451_v54 = vld [vmem:[#allocation2 + $0x271] sm:$0xff]  ;;  %v12044_v15 = vunpack.i.h.bf16 %v15691_v38 }
 0x19c   :  { %v12039_v46 = vunpack.i.h.bf16 %v12037_v39  ;;  %v12038_v37 = vunpack.i.l.bf16 %v12037_v39  ;;  %12331 = vrot.lane.b32.xlu1 %v15620_v47, %s18412_s29  ;;  %v4190_v59 = vsel %vm4162_vm8, %v4125_v58, %v12034_v16  ;;  %v1082_v34 = vsel %vm71_vm0, %v891_v24, -inf  ;;  %v1515_v39 = vld [vmem:[#allocation2 + $0x272] sm:$0xff]  ;;  %v15836_v24 = vld [vmem:[%s18414_s18] ss:$0 sm:$0xff] }
 0x19d   :  { %12326 = vrot.lane.b32.xlu0 %v15586_v19, %s18412_s29  ;;  %v4124_v19 = vsel %vm4097_vm7, %v4059_v5, %v12023_v31  ;;  %v1452_v31 = vld [vmem:[#allocation2 + $0x279] sm:$0xff]  ;;  %v1083_v33 = vmax.f32 %v1081_v0, %v1082_v34  ;;  %v12043_v16 = vunpack.i.l.bf16 %v15691_v38  ;;  %v1179_v5 = vld [vmem:[#allocation2 + $0x168] sm:$0xff]  ;;  %v1180_v35 = vld [vmem:[#allocation2 + $0x170] sm:$0xff] }
 0x19e   :  { %v4252_v17 = vsel %vm4227_vm9, %v4187_v50, %v12038_v37  ;;  %v4253_v8 = vsel %vm4227_vm9, %v4188_v62, %v12039_v46  ;;  %v15710_v40 = vpop.permute.xlu1 %12051  ;;  %v4189_v3 = vsel %vm4162_vm8, %v4124_v19, %v12033_v48  ;;  %v1516_v46 = vld [vmem:[#allocation2 + $0x27a] sm:$0xff]  ;;  %v1580_v37 = vld [vmem:[#allocation2 + $0x288] sm:$0xff]  ;;  %v1177_v50 = vld [vmem:[#allocation2 + $0x150] sm:$0xff] }
 0x19f   :  { %v12047_v36 = vpop.permute.xlu0 %12046  ;;  %v4304_v61 = vpack.c.bf16 %v4253_v8, %v4252_v17  ;;  %1148 = vst.msk [vmem:[#allocation2 + $0x339] sm:$0xff] %vm71_vm0, %v1083_v33  ;;  %v12054_v62 = vunpack.i.h.bf16 %v15710_v40  ;;  %v12053_v41 = vunpack.i.l.bf16 %v15710_v40  ;;  %v15792_v8 = vpack.i.bf16 %v1452_v31, %v1451_v54 }
 0x1a0   :  { %v12049_v49 = vunpack.i.h.bf16 %v12047_v36  ;;  %v12048_v4 = vunpack.i.l.bf16 %v12047_v36  ;;  %12341 = vrot.lane.b32.xlu1 %v15622_v44, %s18406_s5  ;;  %v15800_v19 = vpack.i.bf16 %v1581_v9, %v1580_v37  ;;  %v3803_v40 = vsel %vm71_vm0, %v1178_v13, %v12044_v15 }
 0x1a1   :  { %12336 = vrot.lane.b32.xlu0 %v15612_v53, %s18406_s5  ;;  %11326 = vmatprep.mubr.msk.bf16.mxu0 %vm4367_vm10, %v4304_v61  ;;  %v10464_v53 = vld [vmem:[%s18404_s27 + $0x7c0] ss:$2 sm:$0xff]  ;;  %v15798_v61 = vpack.i.bf16 %v1516_v46, %v1515_v39  ;;  %v3804_v12 = vsel %vm71_vm0, %v1179_v5, %v12053_v41  ;;  %s18419_s27 = sld [smem:[#allocation22_spill]] }
 0x1a2   :  { %v4255_v18 = vsel %vm4227_vm9, %v4190_v59, %v12049_v49  ;;  %v4254_v51 = vsel %vm4227_vm9, %v4189_v3, %v12048_v4  ;;  %v15727_v6 = vpop.permute.xlu1 %12061  ;;  %v888_v60 = vmax.f32 %v10464_v53, %v10592_v22  ;;  %v3802_v3 = vsel %vm71_vm0, %v1177_v50, %v12043_v16 }
 0x1a3   :  { %v15729_v27 = vpop.permute.xlu0 %12056  ;;  %v4305_v11 = vpack.c.bf16 %v4255_v18, %v4254_v51  ;;  %v12064_v36 = vunpack.i.h.bf16 %v15727_v6  ;;  %v12063_v38 = vunpack.i.l.bf16 %v15727_v6 }
 0x1a4   :  { %12351 = vrot.lane.b32.xlu1 %v15714_v26, %s18407_s26  ;;  %v1078_v45 = vsel %vm71_vm0, %v888_v60, -inf  ;;  %v12059_v58 = vunpack.i.h.bf16 %v15729_v27  ;;  %v12058_v49 = vunpack.i.l.bf16 %v15729_v27 }
 0x1a5   :  { %12346 = vrot.lane.b32.xlu0 %v15614_v42, %s18407_s26  ;;  %11327 = vmatmul.mubr.msk.bf16.gmra.mrb[24].mxu0 %vm4367_vm10, %v4305_v11  ;;  %v1080_v2 = vmax.f32 %v1078_v45, %v1079_v55  ;;  %v3805_v11 = vsel %vm71_vm0, %v1180_v35, %v12054_v62 }
 0x1a6   :  { %v15745_v23 = vpop.permute.xlu1 %12071  ;;  %v3870_v52 = vsel %vm3838_vm4, %v3805_v11, %v12064_v36  ;;  %v3868_v28 = vsel %vm3838_vm4, %v3803_v40, %v12059_v58  ;;  %v3867_v22 = vsel %vm3838_vm4, %v3802_v3, %v12058_v49  ;;  %v1644_v58 = vld [vmem:[#allocation2 + $0x289] sm:$0xff]  ;;  %v1645_v49 = vld [vmem:[#allocation2 + $0x291] sm:$0xff] }
 0x1a7   :  { %v15756_v21 = vpop.permute.xlu0 %12066  ;;  %1147 = vst.msk [vmem:[#allocation2 + $0x331] sm:$0xff] %vm71_vm0, %v1080_v2  ;;  %v12073_v4 = vunpack.i.l.bf16 %v15745_v23  ;;  %v12074_v59 = vunpack.i.h.bf16 %v15745_v23 }
 0x1a8   :  { %12361 = vrot.lane.b32.xlu1 %v15614_v42, %s18413_s23  ;;  %v1387_v42 = vld [vmem:[#allocation2 + $0x270] sm:$0xff]  ;;  %v12069_v18 = vunpack.i.h.bf16 %v15756_v21  ;;  %v12068_v51 = vunpack.i.l.bf16 %v15756_v21 }
 0x1a9   :  { %12356 = vrot.lane.b32.xlu0 %v15620_v47, %s18408_s25  ;;  %v15790_v17 = vpack.i.bf16 %v1388_v10, %v1387_v42  ;;  %v3935_v7 = vsel %vm3903_vm5, %v3870_v52, %v12074_v59 }
 0x1aa   :  { %v15772_v32 = vpop.permute.xlu1 %12081  ;;  %v3932_v63 = vsel %vm3903_vm5, %v3867_v22, %v12068_v51  ;;  %v3933_v60 = vsel %vm3903_vm5, %v3868_v28, %v12069_v18 }
 0x1ab   :  { %v15776_v56 = vpop.permute.xlu0 %12076  ;;  %v12083_v27 = vunpack.i.l.bf16 %v15772_v32  ;;  %v12084_v45 = vunpack.i.h.bf16 %v15772_v32 }
 0x1ac   :  { %12371 = vrot.lane.b32.xlu1 %v15714_v26, %s18413_s23  ;;  %v12078_v43 = vunpack.i.l.bf16 %v15776_v56  ;;  %v12079_v30 = vunpack.i.h.bf16 %v15776_v56 }
 0x1ad   :  { %12366 = vrot.lane.b32.xlu0 %v15768_v25, %s18408_s25  ;;  %v3999_v51 = vsel %vm181_vm2, %v3935_v7, %v12084_v45 }
 0x1ae   :  { %v15785_v48 = vpop.permute.xlu1 %12091  ;;  %v3997_v56 = vsel %vm181_vm2, %v3933_v60, %v12079_v30 }
 0x1af   :  { %v12087_v57 = vpop.permute.xlu0 %12086  ;;  %v12094_v42 = vunpack.i.h.bf16 %v15785_v48  ;;  %v12093_v10 = vunpack.i.l.bf16 %v15785_v48 }
 0x1b0   :  { %12381 = vrot.lane.b32.xlu1 %v15768_v25, %s18409_s1  ;;  %v12088_v23 = vunpack.i.l.bf16 %v12087_v57  ;;  %v12089_v21 = vunpack.i.h.bf16 %v12087_v57 }
 0x1b1   :  { %12376 = vrot.lane.b32.xlu0 %v15620_v47, %s18409_s1  ;;  %v3869_v47 = vsel %vm3838_vm4, %v3804_v12, %v12063_v38 }
 0x1b2   :  { %v15812_v6 = vpop.permute.xlu1 %12101  ;;  %v3934_v14 = vsel %vm3903_vm5, %v3869_v47, %v12073_v4  ;;  %v4062_v32 = vsel %vm4032_vm6, %v3997_v56, %v12089_v21 }
 0x1b3   :  { %v12097_v53 = vpop.permute.xlu0 %12096  ;;  %v3998_v0 = vsel %vm181_vm2, %v3934_v14, %v12083_v27  ;;  %v12104_v46 = vunpack.i.h.bf16 %v15812_v6  ;;  %v12103_v37 = vunpack.i.l.bf16 %v15812_v6 }
 0x1b4   :  { %12391 = vrot.lane.b32.xlu1 %v15790_v17, %s18410_s30  ;;  %v12098_v20 = vunpack.i.l.bf16 %v12097_v53  ;;  %v12099_v55 = vunpack.i.h.bf16 %v12097_v53  ;;  %v4064_v53 = vsel %vm4032_vm6, %v3999_v51, %v12094_v42 }
 0x1b5   :  { %12386 = vrot.lane.b32.xlu0 %v15622_v44, %s18410_s30  ;;  %v3996_v44 = vsel %vm181_vm2, %v3932_v63, %v12078_v43  ;;  %v4063_v43 = vsel %vm4032_vm6, %v3998_v0, %v12093_v10 }
 0x1b6   :  { %v15831_v29 = vpop.permute.xlu1 %12111  ;;  %v4061_v2 = vsel %vm4032_vm6, %v3996_v44, %v12088_v23  ;;  %v4127_v50 = vsel %vm4097_vm7, %v4062_v32, %v12099_v55  ;;  %v4128_v30 = vsel %vm4097_vm7, %v4063_v43, %v12103_v37  ;;  %v4129_v23 = vsel %vm4097_vm7, %v4064_v53, %v12104_v46  ;;  %v1709_v55 = vld [vmem:[#allocation2 + $0x292] sm:$0xff]  ;;  %v1391_v46 = vld [vmem:[#allocation2 + $0x2a0] sm:$0xff]  ;;  %v1392_v37 = vld [vmem:[#allocation2 + $0x2a8] sm:$0xff] }
 0x1b7   :  { %v12107_v34 = vpop.permute.xlu0 %12106  ;;  %v4126_v9 = vsel %vm4097_vm7, %v4061_v2, %v12098_v20  ;;  %v12114_v62 = vunpack.i.h.bf16 %v15831_v29  ;;  %v12113_v4 = vunpack.i.l.bf16 %v15831_v29  ;;  %v13012_v53 = vld [vmem:[%s18415_s3 + $0x88] sm:$0xff]  }
 0x1b8   :  { %v11304_v54 = vpop.f32.mrb[0].mxu0  ;;  %12401 = vrot.lane.b32.xlu1 %v15792_v8, %s18411_s21  ;;  %v12109_v31 = vunpack.i.h.bf16 %v12107_v34  ;;  %v12108_v39 = vunpack.i.l.bf16 %v12107_v34 }
 0x1b9   :  { %v4511_v33 = vadd.f32 %v11304_v54, %v15836_v24  ;;  %12396 = vrot.lane.b32.xlu0 %v15714_v26, %s18411_s21  ;;  %v4502_v15 = vpop.f32.mrb[1].mxu0  ;;  %v4193_v14 = vsel %vm4162_vm8, %v4128_v30, %v12113_v4  ;;  %v4194_v21 = vsel %vm4162_vm8, %v4129_v23, %v12114_v62  ;;  %v1584_v62 = vld [vmem:[#allocation2 + $0x2b8] sm:$0xff] }
 0x1ba   :  { %v4503_v13 = vadd.f32 %v15836_v24, %v4502_v15  ;;  %v11305_v16 = vpop.f32.mrb[2].mxu0  ;;  %v15855_v48 = vpop.permute.xlu1 %12121  ;;  %v4191_v3 = vsel %vm4162_vm8, %v4126_v9, %v12108_v39  ;;  %v4192_v59 = vsel %vm4162_vm8, %v4127_v50, %v12109_v31  ;;  %v1455_v9 = vld [vmem:[#allocation2 + $0x2a1] sm:$0xff] }
 0x1bb   :  { %v4759_v41 = vmax.f32 %v4511_v33, 0.0  ;;  %v4514_v57 = vadd.f32 %v11305_v16, %v15836_v24  ;;  %v12117_v26 = vpop.permute.xlu0 %12116  ;;  %v4505_v5 = vpop.f32.mrb[3].mxu0  ;;  %v1520_v16 = vld [vmem:[#allocation2 + $0x2aa] sm:$0xff]  ;;  %v12124_v50 = vunpack.i.h.bf16 %v15855_v48 }
 0x1bc   :  { %v4757_v35 = vmax.f32 %v4503_v13, 0.0  ;;  %v12119_v36 = vunpack.i.h.bf16 %v12117_v26  ;;  %v12118_v38 = vunpack.i.l.bf16 %v12117_v26  ;;  %v4506_v40 = vadd.f32 %v15836_v24, %v4505_v5  ;;  %12411 = vrot.lane.b32.xlu1 %v15798_v61, %s18412_s29  ;;  %v1519_v13 = vld [vmem:[#allocation2 + $0x2a2] sm:$0xff]  ;;  %v1182_v26 = vld [vmem:[#allocation2 + $0x1b8] sm:$0xff] }
 0x1bd   :  { %4823 = vst.msk [vmem:[#allocation3 + $0x10] sm:$0xff] %vm181_vm2, %v4759_v41  ;;  %v4760_v18 = vmax.f32 %v4514_v57, 0.0  ;;  %12406 = vrot.lane.b32.xlu0 %v15768_v25, %s18412_s29  ;;  %v15878_v25 = vpack.i.bf16 %v1645_v49, %v1644_v58  ;;  %v1585_v41 = vld [vmem:[#allocation2 + $0x2c0] sm:$0xff]  ;;  %v12123_v5 = vunpack.i.l.bf16 %v15855_v48  ;;  %v15931_v49 = vpack.i.bf16 %v1392_v37, %v1391_v46 }
 0x1be   :  { %4821 = vst.msk [vmem:[#allocation3] sm:$0xff] %vm181_vm2, %v4757_v35  ;;  %v4256_v6 = vsel %vm4227_vm9, %v4191_v3, %v12118_v38  ;;  %v4257_v11 = vsel %vm4227_vm9, %v4192_v59, %v12119_v36  ;;  %v4758_v12 = vmax.f32 %v4506_v40, 0.0  ;;  %v15873_v27 = vpop.permute.xlu1 %12131  ;;  %v13011_v57 = vld [vmem:[%s18415_s3 + $0x80] sm:$0xff]   ;;  %v1181_v36 = vld [vmem:[#allocation2 + $0x1b0] sm:$0xff]  ;;  %v1183_v3 = vld [vmem:[#allocation2 + $0x1c8] sm:$0xff]  ;;  %v15939_v48 = vpack.i.bf16 %v1520_v16, %v1519_v13 }
 0x1bf   :  { %4824 = vst.msk [vmem:[#allocation3 + $0x18] sm:$0xff] %vm181_vm2, %v4760_v18  ;;  %v12127_v47 = vpop.permute.xlu0 %12126  ;;  %v4306_v52 = vpack.c.bf16 %v4257_v11, %v4256_v6  ;;  %v12134_v38 = vunpack.i.h.bf16 %v15873_v27  ;;  %v12133_v40 = vunpack.i.l.bf16 %v15873_v27  ;;  %11366 = vmatprep.subr.bf16.mxu1 %v13011_v57  ;;  %v1184_v59 = vld [vmem:[#allocation2 + $0x1d0] sm:$0xff]  ;;  %v15941_v6 = vpack.i.bf16 %v1585_v41, %v1584_v62 }
 0x1c0   :  { %4822 = vst.msk [vmem:[#allocation3 + $0x8] sm:$0xff] %vm181_vm2, %v4758_v12  ;;  %v12129_v28 = vunpack.i.h.bf16 %v12127_v47  ;;  %v12128_v22 = vunpack.i.l.bf16 %v12127_v47  ;;  %12421 = vrot.lane.b32.xlu1 %v15800_v19, %s18406_s5  ;;  %11367 = vmatpush3.bf16.msra.mxu1 %v13011_v57  ;;  %v3807_v11 = vsel %vm71_vm0, %v1182_v26, %v12124_v50  ;;  %v3806_v47 = vsel %vm71_vm0, %v1181_v36, %v12123_v5 }
 0x1c1   :  { %12416 = vrot.lane.b32.xlu0 %v15790_v17, %s18406_s5  ;;  %11330 = vmatprep.mubr.msk.bf16.mxu0 %vm4367_vm10, %v4306_v52  ;;  %v1708_v17 = vld [vmem:[#allocation2 + $0x28a] sm:$0xff] }
 0x1c2   :  { %v4259_v7 = vsel %vm4227_vm9, %v4194_v21, %v12129_v28  ;;  %v4258_v63 = vsel %vm4227_vm9, %v4193_v14, %v12128_v22  ;;  %v15892_v60 = vpop.permute.xlu1 %12141  ;;  %v15910_v32 = vpack.i.bf16 %v1709_v55, %v1708_v17  ;;  %v3809_v22 = vsel %vm71_vm0, %v1184_v59, %v12134_v38  ;;  %11368 = vmatprep.subr.bf16.mxu1 %v13012_v53 }
 0x1c3   :  { %v15894_v20 = vpop.permute.xlu0 %12136  ;;  %v4307_v29 = vpack.c.bf16 %v4259_v7, %v4258_v63  ;;  %v12144_v18 = vunpack.i.h.bf16 %v15892_v60  ;;  %v12143_v51 = vunpack.i.l.bf16 %v15892_v60  ;;  %v3808_v14 = vsel %vm71_vm0, %v1183_v3, %v12133_v40 }
 0x1c4   :  { %12431 = vrot.lane.b32.xlu1 %v15878_v25, %s18407_s26  ;;  %v12139_v12 = vunpack.i.h.bf16 %v15894_v20  ;;  %v12138_v27 = vunpack.i.l.bf16 %v15894_v20  ;;  %11369 = vmatpush3.bf16.msra.mxu1 %v13012_v53 }
 0x1c5   :  { %12426 = vrot.lane.b32.xlu0 %v15792_v8, %s18407_s26  ;;  %11331 = vmatmul.mubr.msk.bf16.gmra.mrb[28].mxu0 %vm4367_vm10, %v4307_v29  ;;  %v3873_v63 = vsel %vm3838_vm4, %v3808_v14, %v12143_v51  ;;  %v3874_v60 = vsel %vm3838_vm4, %v3809_v22, %v12144_v18 }
 0x1c6   :  { %v4887_v45 = vld [vmem:[#allocation3 + $0x10] ss:$2 sm:$0xff]  ;;  %v4951_v0 = vld [vmem:[#allocation3 + $0x11] ss:$2 sm:$0xff]  ;;  %v15901_v44 = vpop.permute.xlu1 %12151  ;;  %v3872_v17 = vsel %vm3838_vm4, %v3807_v11, %v12139_v12 }
 0x1c7   :  { %v5013_v34 = vmax.f32 %v4887_v45, %v4951_v0  ;;  %v4885_v56 = vld [vmem:[#allocation3] ss:$2 sm:$0xff]  ;;  %v4949_v42 = vld [vmem:[#allocation3 + $0x1] ss:$2 sm:$0xff]  ;;  %v15903_v10 = vpop.permute.xlu0 %12146  ;;  %v12153_v43 = vunpack.i.l.bf16 %v15901_v44  ;;  %v12154_v52 = vunpack.i.h.bf16 %v15901_v44  ;;  %v3871_v45 = vsel %vm3838_vm4, %v3806_v47, %v12138_v27 }
 0x1c8   :  { %v5012_v2 = vmax.f32 %v4885_v56, %v4949_v42  ;;  %12441 = vrot.lane.b32.xlu1 %v15792_v8, %s18413_s23  ;;  %v1456_v8 = vld [vmem:[#allocation2 + $0x2a9] sm:$0xff]  ;;  %v12149_v30 = vunpack.i.h.bf16 %v15903_v10  ;;  %v12148_v23 = vunpack.i.l.bf16 %v15903_v10  ;;  %v1648_v27 = vld [vmem:[#allocation2 + $0x2b9] sm:$0xff] }
 0x1c9   :  { %v5045_v54 = vsel %vm181_vm2, %v5013_v34, -inf  ;;  %12436 = vrot.lane.b32.xlu0 %v15798_v61, %s18408_s25  ;;  %v15933_v4 = vpack.i.bf16 %v1456_v8, %v1455_v9  ;;  %v3938_v0 = vsel %vm3903_vm5, %v3873_v63, %v12153_v43  ;;  %v3939_v55 = vsel %vm3903_vm5, %v3874_v60, %v12154_v52  ;;  %v1649_v43 = vld [vmem:[#allocation2 + $0x2c1] sm:$0xff] }
 0x1ca   :  { %v5044_v31 = vsel %vm181_vm2, %v5012_v2, -inf  ;;  %v15913_v39 = vpop.permute.xlu1 %12161  ;;  %v3936_v34 = vsel %vm3903_vm5, %v3871_v45, %v12148_v23  ;;  %v3937_v56 = vsel %vm3903_vm5, %v3872_v17, %v12149_v30 }
 0x1cb   :  { %v5046_v33 = vmax.f32 %v5044_v31, %v5045_v54  ;;  %v15915_v15 = vpop.permute.xlu0 %12156  ;;  %v12164_v2 = vunpack.i.h.bf16 %v15913_v39 }
 0x1cc   :  { %12451 = vrot.lane.b32.xlu1 %v15878_v25, %s18413_s23  ;;  %v12158_v21 = vunpack.i.l.bf16 %v15915_v15  ;;  %v12159_v20 = vunpack.i.h.bf16 %v15915_v15 }
 0x1cd   :  { %12446 = vrot.lane.b32.xlu0 %v15910_v32, %s18408_s25  ;;  %5093 = vst.msk [vmem:[#allocation4 + $0x11] sm:$0xff] %vm181_vm2, %v5046_v33  ;;  %v4003_v23 = vsel %vm181_vm2, %v3939_v55, %v12164_v2 }
 0x1ce   :  { %v15927_v35 = vpop.permute.xlu1 %12171  ;;  %v4000_v31 = vsel %vm181_vm2, %v3936_v34, %v12158_v21  ;;  %v4001_v46 = vsel %vm181_vm2, %v3937_v56, %v12159_v20 }
 0x1cf   :  { %v12167_v58 = vpop.permute.xlu0 %12166  ;;  %v12173_v37 = vunpack.i.l.bf16 %v15927_v35 }
 0x1d0   :  { %12461 = vrot.lane.b32.xlu1 %v15910_v32, %s18409_s1  ;;  %v12168_v29 = vunpack.i.l.bf16 %v12167_v58  ;;  %v12169_v44 = vunpack.i.h.bf16 %v12167_v58 }
 0x1d1   :  { %12456 = vrot.lane.b32.xlu0 %v15798_v61, %s18409_s1  ;;  %v12163_v61 = vunpack.i.l.bf16 %v15913_v39 }
 0x1d2   :  { %v15956_v28 = vpop.permute.xlu1 %12181  ;;  %v4065_v9 = vsel %vm4032_vm6, %v4000_v31, %v12168_v29  ;;  %v4066_v39 = vsel %vm4032_vm6, %v4001_v46, %v12169_v44 }
 0x1d3   :  { %v12177_v7 = vpop.permute.xlu0 %12176  ;;  %v4002_v54 = vsel %vm181_vm2, %v3938_v0, %v12163_v61  ;;  %v12184_v41 = vunpack.i.h.bf16 %v15956_v28  ;;  %v12183_v57 = vunpack.i.l.bf16 %v15956_v28 }
 0x1d4   :  { %12471 = vrot.lane.b32.xlu1 %v15931_v49, %s18410_s30  ;;  %v12178_v42 = vunpack.i.l.bf16 %v12177_v7  ;;  %v12179_v33 = vunpack.i.h.bf16 %v12177_v7  ;;  %v4067_v21 = vsel %vm4032_vm6, %v4002_v54, %v12173_v37 }
 0x1d5   :  { %12466 = vrot.lane.b32.xlu0 %v15800_v19, %s18410_s30  ;;  %v12174_v19 = vunpack.i.h.bf16 %v15927_v35  ;;  %v4132_v20 = vsel %vm4097_vm7, %v4067_v21, %v12183_v57  ;;  %v1396_v57 = vld [vmem:[#allocation2 + $0x2d8] sm:$0xff] }
 0x1d6   :  { %v15975_v10 = vpop.permute.xlu1 %12191  ;;  %v4130_v26 = vsel %vm4097_vm7, %v4065_v9, %v12178_v42  ;;  %v4131_v38 = vsel %vm4097_vm7, %v4066_v39, %v12179_v33  ;;  %v1713_v33 = vld [vmem:[#allocation2 + $0x2c2] sm:$0xff] }
 0x1d7   :  { %v12187_v15 = vpop.permute.xlu0 %12186  ;;  %v12194_v40 = vunpack.i.h.bf16 %v15975_v10  ;;  %v12193_v53 = vunpack.i.l.bf16 %v15975_v10  ;;  %v4068_v7 = vsel %vm4032_vm6, %v4003_v23, %v12174_v19 }
 0x1d8   :  { %v11308_v8 = vpop.f32.mrb[4].mxu0  ;;  %12481 = vrot.lane.b32.xlu1 %v15933_v4, %s18411_s21  ;;  %v12189_v13 = vunpack.i.h.bf16 %v12187_v15  ;;  %v12188_v16 = vunpack.i.l.bf16 %v12187_v15  ;;  %v4133_v29 = vsel %vm4097_vm7, %v4068_v7, %v12184_v41  ;;  %v1395_v41 = vld [vmem:[#allocation2 + $0x2d0] sm:$0xff] }
 0x1d9   :  { %v4527_v50 = vadd.f32 %v11308_v8, %v15836_v24  ;;  %12476 = vrot.lane.b32.xlu0 %v15878_v25, %s18411_s21  ;;  %v4518_v62 = vpop.f32.mrb[5].mxu0  ;;  %v4197_v0 = vsel %vm4162_vm8, %v4132_v20, %v12193_v53  ;;  %v4198_v44 = vsel %vm4162_vm8, %v4133_v29, %v12194_v40  ;;  %v1588_v40 = vld [vmem:[#allocation2 + $0x2e8] sm:$0xff]  ;;  %v1187_v53 = vld [vmem:[#allocation2 + $0x1f8] sm:$0xff] }
 0x1da   :  { %v4519_v5 = vadd.f32 %v15836_v24, %v4518_v62  ;;  %v11309_v35 = vpop.f32.mrb[6].mxu0  ;;  %v15994_v36 = vpop.permute.xlu1 %12201  ;;  %v4195_v47 = vsel %vm4162_vm8, %v4130_v26, %v12188_v16  ;;  %v4196_v52 = vsel %vm4162_vm8, %v4131_v38, %v12189_v13  ;;  %v1460_v26 = vld [vmem:[#allocation2 + $0x2d9] sm:$0xff] }
 0x1db   :  { %v4763_v58 = vmax.f32 %v4527_v50, 0.0  ;;  %v4530_v3 = vadd.f32 %v11309_v35, %v15836_v24  ;;  %v12197_v25 = vpop.permute.xlu0 %12196  ;;  %v4521_v59 = vpop.f32.mrb[7].mxu0  ;;  %v12204_v35 = vunpack.i.h.bf16 %v15994_v36  ;;  %v1524_v38 = vld [vmem:[#allocation2 + $0x2da] sm:$0xff] }
 0x1dc   :  { %v4761_v18 = vmax.f32 %v4519_v5, 0.0  ;;  %v12199_v51 = vunpack.i.h.bf16 %v12197_v25  ;;  %v12198_v11 = vunpack.i.l.bf16 %v12197_v25  ;;  %v4522_v12 = vadd.f32 %v15836_v24, %v4521_v59  ;;  %12491 = vrot.lane.b32.xlu1 %v15939_v48, %s18412_s29  ;;  %v1523_v5 = vld [vmem:[#allocation2 + $0x2d2] sm:$0xff] }
 0x1dd   :  { %4827 = vst.msk [vmem:[#allocation3 + $0x30] sm:$0xff] %vm181_vm2, %v4763_v58  ;;  %v4764_v30 = vmax.f32 %v4530_v3, 0.0  ;;  %12486 = vrot.lane.b32.xlu0 %v15910_v32, %s18412_s29  ;;  %v16017_v32 = vpack.i.bf16 %v1649_v43, %v1648_v27  ;;  %v1589_v58 = vld [vmem:[#allocation2 + $0x2f0] sm:$0xff]  ;;  %v1186_v3 = vld [vmem:[#allocation2 + $0x1e8] sm:$0xff]  ;;  %v12203_v25 = vunpack.i.l.bf16 %v15994_v36  ;;  %v16067_v27 = vpack.i.bf16 %v1396_v57, %v1395_v41 }
 0x1de   :  { %4825 = vst.msk [vmem:[#allocation3 + $0x20] sm:$0xff] %vm181_vm2, %v4761_v18  ;;  %v4260_v28 = vsel %vm4227_vm9, %v4195_v47, %v12198_v11  ;;  %v4261_v22 = vsel %vm4227_vm9, %v4196_v52, %v12199_v51  ;;  %v4762_v14 = vmax.f32 %v4522_v12, 0.0  ;;  %v16012_v61 = vpop.permute.xlu1 %12211  ;;  %v1185_v18 = vld [vmem:[#allocation2 + $0x1e0] sm:$0xff]  ;;  %v16075_v36 = vpack.i.bf16 %v1524_v38, %v1523_v5 }
 0x1df   :  { %4828 = vst.msk [vmem:[#allocation3 + $0x38] sm:$0xff] %vm181_vm2, %v4764_v30  ;;  %v12207_v63 = vpop.permute.xlu0 %12206  ;;  %v4308_v60 = vpack.c.bf16 %v4261_v22, %v4260_v28  ;;  %v12214_v51 = vunpack.i.h.bf16 %v16012_v61  ;;  %v12213_v11 = vunpack.i.l.bf16 %v16012_v61  ;;  %v1188_v47 = vld [vmem:[#allocation2 + $0x200] sm:$0xff]  ;;  %v16077_v23 = vpack.i.bf16 %v1589_v58, %v1588_v40 }
 0x1e0   :  { %4826 = vst.msk [vmem:[#allocation3 + $0x28] sm:$0xff] %vm181_vm2, %v4762_v14  ;;  %v12209_v17 = vunpack.i.h.bf16 %v12207_v63  ;;  %v12208_v45 = vunpack.i.l.bf16 %v12207_v63  ;;  %12501 = vrot.lane.b32.xlu1 %v15941_v6, %s18406_s5  ;;  %v3811_v28 = vsel %vm71_vm0, %v1186_v3, %v12204_v35  ;;  %v3810_v21 = vsel %vm71_vm0, %v1185_v18, %v12203_v25 }
 0x1e1   :  { %12496 = vrot.lane.b32.xlu0 %v15931_v49, %s18406_s5  ;;  %11334 = vmatprep.mubr.msk.bf16.mxu0 %vm4367_vm10, %v4308_v60  ;;  %v1712_v49 = vld [vmem:[#allocation2 + $0x2ba] sm:$0xff]  ;;  %v3813_v29 = vsel %vm71_vm0, %v1188_v47, %v12214_v51 }
 0x1e2   :  { %v4263_v55 = vsel %vm4227_vm9, %v4198_v44, %v12209_v17  ;;  %v4262_v34 = vsel %vm4227_vm9, %v4197_v0, %v12208_v45  ;;  %v16031_v56 = vpop.permute.xlu1 %12221  ;;  %v16049_v39 = vpack.i.bf16 %v1713_v33, %v1712_v49  ;;  %v3812_v17 = vsel %vm71_vm0, %v1187_v53, %v12213_v11 }
 0x1e3   :  { %v16033_v42 = vpop.permute.xlu0 %12216  ;;  %v4309_v10 = vpack.c.bf16 %v4263_v55, %v4262_v34  ;;  %v12224_v52 = vunpack.i.h.bf16 %v16031_v56  ;;  %v12223_v30 = vunpack.i.l.bf16 %v16031_v56 }
 0x1e4   :  { %12511 = vrot.lane.b32.xlu1 %v16017_v32, %s18407_s26  ;;  %v12219_v22 = vunpack.i.h.bf16 %v16033_v42  ;;  %v12218_v14 = vunpack.i.l.bf16 %v16033_v42 }
 0x1e5   :  { %12506 = vrot.lane.b32.xlu0 %v15933_v4, %s18407_s26  ;;  %11335 = vmatmul.mubr.msk.bf16.gmra.mrb[32].mxu0 %vm4367_vm10, %v4309_v10  ;;  %v3878_v55 = vsel %vm3838_vm4, %v3813_v29, %v12224_v52 }
 0x1e6   :  { %v4891_v2 = vld [vmem:[#allocation3 + $0x30] ss:$2 sm:$0xff]  ;;  %v4955_v54 = vld [vmem:[#allocation3 + $0x31] ss:$2 sm:$0xff]  ;;  %v16040_v31 = vpop.permute.xlu1 %12231  ;;  %v3876_v42 = vsel %vm3838_vm4, %v3811_v28, %v12219_v22  ;;  %v3875_v10 = vsel %vm3838_vm4, %v3810_v21, %v12218_v14 }
 0x1e7   :  { %v5015_v15 = vmax.f32 %v4891_v2, %v4955_v54  ;;  %v4889_v46 = vld [vmem:[#allocation3 + $0x20] ss:$2 sm:$0xff]  ;;  %v4953_v19 = vld [vmem:[#allocation3 + $0x21] ss:$2 sm:$0xff]  ;;  %v16042_v37 = vpop.permute.xlu0 %12226  ;;  %v12233_v61 = vunpack.i.l.bf16 %v16040_v31  ;;  %v12234_v7 = vunpack.i.h.bf16 %v16040_v31  ;;  %v1653_v14 = vld [vmem:[#allocation2 + $0x2f1] sm:$0xff] }
 0x1e8   :  { %v5014_v9 = vmax.f32 %v4889_v46, %v4953_v19  ;;  %12521 = vrot.lane.b32.xlu1 %v15933_v4, %s18413_s23  ;;  %v1459_v4 = vld [vmem:[#allocation2 + $0x2d1] sm:$0xff]  ;;  %v12229_v63 = vunpack.i.h.bf16 %v16042_v37  ;;  %v12228_v60 = vunpack.i.l.bf16 %v16042_v37  ;;  %v1652_v22 = vld [vmem:[#allocation2 + $0x2e9] sm:$0xff] }
 0x1e9   :  { %v5048_v8 = vsel %vm181_vm2, %v5015_v15, -inf  ;;  %12516 = vrot.lane.b32.xlu0 %v15939_v48, %s18408_s25  ;;  %v16069_v43 = vpack.i.bf16 %v1460_v26, %v1459_v4  ;;  %v3943_v54 = vsel %vm3903_vm5, %v3878_v55, %v12234_v7 }
 0x1ea   :  { %v5047_v13 = vsel %vm181_vm2, %v5014_v9, -inf  ;;  %v16052_v16 = vpop.permute.xlu1 %12241  ;;  %v3940_v31 = vsel %vm3903_vm5, %v3875_v10, %v12228_v60  ;;  %v3941_v33 = vsel %vm3903_vm5, %v3876_v42, %v12229_v63 }
 0x1eb   :  { %v5049_v50 = vmax.f32 %v5047_v13, %v5048_v8  ;;  %v16054_v62 = vpop.permute.xlu0 %12236  ;;  %v12243_v45 = vunpack.i.l.bf16 %v16052_v16  ;;  %v12244_v19 = vunpack.i.h.bf16 %v16052_v16 }
 0x1ec   :  { %12531 = vrot.lane.b32.xlu1 %v16017_v32, %s18413_s23  ;;  %v12238_v0 = vunpack.i.l.bf16 %v16054_v62  ;;  %v12239_v34 = vunpack.i.h.bf16 %v16054_v62 }
 0x1ed   :  { %12526 = vrot.lane.b32.xlu0 %v16049_v39, %s18408_s25  ;;  %5094 = vst.msk [vmem:[#allocation4 + $0x21] sm:$0xff] %vm181_vm2, %v5049_v50  ;;  %v4007_v60 = vsel %vm181_vm2, %v3943_v54, %v12244_v19 }
 0x1ee   :  { %v16063_v59 = vpop.permute.xlu1 %12251  ;;  %v4004_v9 = vsel %vm181_vm2, %v3940_v31, %v12238_v0  ;;  %v4005_v50 = vsel %vm181_vm2, %v3941_v33, %v12239_v34 }
 0x1ef   :  { %v12247_v12 = vpop.permute.xlu0 %12246  ;;  %v12253_v62 = vunpack.i.l.bf16 %v16063_v59 }
 0x1f0   :  { %12541 = vrot.lane.b32.xlu1 %v16049_v39, %s18409_s1  ;;  %v12248_v56 = vunpack.i.l.bf16 %v12247_v12  ;;  %v12249_v2 = vunpack.i.h.bf16 %v12247_v12 }
 0x1f1   :  { %12536 = vrot.lane.b32.xlu0 %v15939_v48, %s18409_s1  ;;  %v3877_v48 = vsel %vm3838_vm4, %v3812_v17, %v12223_v30 }
 0x1f2   :  { %v16089_v20 = vpop.permute.xlu1 %12261  ;;  %v3942_v49 = vsel %vm3903_vm5, %v3877_v48, %v12233_v61  ;;  %v4069_v41 = vsel %vm4032_vm6, %v4004_v9, %v12248_v56  ;;  %v4070_v16 = vsel %vm4032_vm6, %v4005_v50, %v12249_v2 }
 0x1f3   :  { %v12257_v44 = vpop.permute.xlu0 %12256  ;;  %v4006_v37 = vsel %vm181_vm2, %v3942_v49, %v12243_v45  ;;  %v12264_v38 = vunpack.i.h.bf16 %v16089_v20  ;;  %v12263_v40 = vunpack.i.l.bf16 %v16089_v20 }
 0x1f4   :  { %12551 = vrot.lane.b32.xlu1 %v16067_v27, %s18410_s30  ;;  %v12258_v15 = vunpack.i.l.bf16 %v12257_v44  ;;  %v12259_v8 = vunpack.i.h.bf16 %v12257_v44  ;;  %v4071_v0 = vsel %vm4032_vm6, %v4006_v37, %v12253_v62 }
 0x1f5   :  { %12546 = vrot.lane.b32.xlu0 %v15941_v6, %s18410_s30  ;;  %v12254_v6 = vunpack.i.h.bf16 %v16063_v59  ;;  %v4136_v34 = vsel %vm4097_vm7, %v4071_v0, %v12263_v40  ;;  %v1400_v40 = vld [vmem:[#allocation2 + $0x308] sm:$0xff] }
 0x1f6   :  { %v16108_v46 = vpop.permute.xlu1 %12271  ;;  %v4134_v58 = vsel %vm4097_vm7, %v4069_v41, %v12258_v15  ;;  %v4135_v18 = vsel %vm4097_vm7, %v4070_v16, %v12259_v8  ;;  %v1717_v8 = vld [vmem:[#allocation2 + $0x2f2] sm:$0xff] }
 0x1f7   :  { %v12267_v13 = vpop.permute.xlu0 %12266  ;;  %v12274_v51 = vunpack.i.h.bf16 %v16108_v46  ;;  %v12273_v61 = vunpack.i.l.bf16 %v16108_v46  ;;  %v4072_v44 = vsel %vm4032_vm6, %v4007_v60, %v12254_v6 }
 0x1f8   :  { %v11312_v57 = vpop.f32.mrb[8].mxu0  ;;  %12561 = vrot.lane.b32.xlu1 %v16069_v43, %s18411_s21  ;;  %v12269_v4 = vunpack.i.h.bf16 %v12267_v13  ;;  %v12268_v26 = vunpack.i.l.bf16 %v12267_v13  ;;  %v4137_v56 = vsel %vm4097_vm7, %v4072_v44, %v12264_v38  ;;  %v1399_v38 = vld [vmem:[#allocation2 + $0x300] sm:$0xff] }
 0x1f9   :  { %v4543_v5 = vadd.f32 %v11312_v57, %v15836_v24  ;;  %12556 = vrot.lane.b32.xlu0 %v16017_v32, %s18411_s21  ;;  %v4534_v35 = vpop.f32.mrb[9].mxu0  ;;  %v4201_v49 = vsel %vm4162_vm8, %v4136_v34, %v12273_v61  ;;  %v4202_v2 = vsel %vm4162_vm8, %v4137_v56, %v12274_v51  ;;  %v1528_v51 = vld [vmem:[#allocation2 + $0x30a] sm:$0xff] }
 0x1fa   :  { %v4535_v3 = vadd.f32 %v15836_v24, %v4534_v35  ;;  %v11313_v25 = vpop.f32.mrb[10].mxu0  ;;  %v16127_v59 = vpop.permute.xlu1 %12281  ;;  %v4199_v21 = vsel %vm4162_vm8, %v4134_v58, %v12268_v26  ;;  %v4200_v7 = vsel %vm4162_vm8, %v4135_v18, %v12269_v4  ;;  %v1464_v58 = vld [vmem:[#allocation2 + $0x309] sm:$0xff] }
 0x1fb   :  { %v4767_v11 = vmax.f32 %v4543_v5, 0.0  ;;  %v4546_v12 = vadd.f32 %v11313_v25, %v15836_v24  ;;  %v12277_v32 = vpop.permute.xlu0 %12276  ;;  %v4537_v53 = vpop.f32.mrb[11].mxu0  ;;  %v12284_v25 = vunpack.i.h.bf16 %v16127_v59  ;;  %v12283_v18 = vunpack.i.l.bf16 %v16127_v59 }
 0x1fc   :  { %v4765_v47 = vmax.f32 %v4535_v3, 0.0  ;;  %v12279_v52 = vunpack.i.h.bf16 %v12277_v32  ;;  %v12278_v30 = vunpack.i.l.bf16 %v12277_v32  ;;  %v4538_v28 = vadd.f32 %v15836_v24, %v4537_v53  ;;  %12571 = vrot.lane.b32.xlu1 %v16075_v36, %s18412_s29  ;;  %v1527_v3 = vld [vmem:[#allocation2 + $0x302] sm:$0xff]  ;;  %v1189_v32 = vld [vmem:[#allocation2 + $0x210] sm:$0xff]  ;;  %v1190_v53 = vld [vmem:[#allocation2 + $0x218] sm:$0xff] }
 0x1fd   :  { %4831 = vst.msk [vmem:[#allocation3 + $0x50] sm:$0xff] %vm181_vm2, %v4767_v11  ;;  %v4768_v63 = vmax.f32 %v4546_v12, 0.0  ;;  %12566 = vrot.lane.b32.xlu0 %v16049_v39, %s18412_s29  ;;  %v16150_v39 = vpack.i.bf16 %v1653_v14, %v1652_v22  ;;  %v1592_v11 = vld [vmem:[#allocation2 + $0x318] sm:$0xff]  ;;  %v1593_v12 = vld [vmem:[#allocation2 + $0x320] sm:$0xff]  ;;  %v1192_v22 = vld [vmem:[#allocation2 + $0x230] sm:$0xff] }
 0x1fe   :  { %4829 = vst.msk [vmem:[#allocation3 + $0x40] sm:$0xff] %vm181_vm2, %v4765_v47  ;;  %v4264_v20 = vsel %vm4227_vm9, %v4199_v21, %v12278_v30  ;;  %v4265_v29 = vsel %vm4227_vm9, %v4200_v7, %v12279_v52  ;;  %v4766_v17 = vmax.f32 %v4538_v28, 0.0  ;;  %v16145_v45 = vpop.permute.xlu1 %12291  ;;  %v1191_v28 = vld [vmem:[#allocation2 + $0x228] sm:$0xff]  ;;  %v16202_v21 = vpack.i.bf16 %v1400_v40, %v1399_v38 }
 0x1ff   :  { %4832 = vst.msk [vmem:[#allocation3 + $0x58] sm:$0xff] %vm181_vm2, %v4768_v63  ;;  %v12287_v48 = vpop.permute.xlu0 %12286  ;;  %v4310_v55 = vpack.c.bf16 %v4265_v29, %v4264_v20  ;;  %v12294_v47 = vunpack.i.h.bf16 %v16145_v45  ;;  %v12293_v52 = vunpack.i.l.bf16 %v16145_v45  ;;  %v16210_v20 = vpack.i.bf16 %v1528_v51, %v1527_v3 }
 0x200   :  { %4830 = vst.msk [vmem:[#allocation3 + $0x48] sm:$0xff] %vm181_vm2, %v4766_v17  ;;  %v12289_v42 = vunpack.i.h.bf16 %v12287_v48  ;;  %v12288_v10 = vunpack.i.l.bf16 %v12287_v48  ;;  %12581 = vrot.lane.b32.xlu1 %v16077_v23, %s18406_s5  ;;  %v16212_v29 = vpack.i.bf16 %v1593_v12, %v1592_v11  ;;  %v3815_v17 = vsel %vm71_vm0, %v1190_v53, %v12284_v25 }
 0x201   :  { %12576 = vrot.lane.b32.xlu0 %v16067_v27, %s18406_s5  ;;  %11338 = vmatprep.mubr.msk.bf16.mxu0 %vm4367_vm10, %v4310_v55  ;;  %v1716_v27 = vld [vmem:[#allocation2 + $0x2ea] sm:$0xff]  ;;  %v3814_v45 = vsel %vm71_vm0, %v1189_v32, %v12283_v18  ;;  %v3817_v48 = vsel %vm71_vm0, %v1192_v22, %v12294_v47  ;;  %v3816_v55 = vsel %vm71_vm0, %v1191_v28, %v12293_v52 }
 0x202   :  { %v4267_v54 = vsel %vm4227_vm9, %v4202_v2, %v12289_v42  ;;  %v4266_v31 = vsel %vm4227_vm9, %v4201_v49, %v12288_v10  ;;  %v16164_v33 = vpop.permute.xlu1 %12301  ;;  %v16182_v16 = vpack.i.bf16 %v1717_v8, %v1716_v27  ;;  %v16235_v27 = vld [vmem:[#allocation4 + $0x22] sm:$0xff] }
 0x203   :  { %v16166_v15 = vpop.permute.xlu0 %12296  ;;  %v4311_v46 = vpack.c.bf16 %v4267_v54, %v4266_v31  ;;  %v12304_v59 = vunpack.i.h.bf16 %v16164_v33  ;;  %v12303_v14 = vunpack.i.l.bf16 %v16164_v33 }
 0x204   :  { %12591 = vrot.lane.b32.xlu1 %v16150_v39, %s18407_s26  ;;  %v12299_v63 = vunpack.i.h.bf16 %v16166_v15  ;;  %v12298_v60 = vunpack.i.l.bf16 %v16166_v15 }
 0x205   :  { %12586 = vrot.lane.b32.xlu0 %v16069_v43, %s18407_s26  ;;  %11339 = vmatmul.mubr.msk.bf16.gmra.mrb[36].mxu0 %vm4367_vm10, %v4311_v46  ;;  %v3881_v10 = vsel %vm3838_vm4, %v3816_v55, %v12303_v14  ;;  %v3882_v49 = vsel %vm3838_vm4, %v3817_v48, %v12304_v59  ;;  %v1657_v48 = vld [vmem:[#allocation2 + $0x321] sm:$0xff] }
 0x206   :  { %v4895_v19 = vld [vmem:[#allocation3 + $0x50] ss:$2 sm:$0xff]  ;;  %v4959_v37 = vld [vmem:[#allocation3 + $0x51] ss:$2 sm:$0xff]  ;;  %v16173_v9 = vpop.permute.xlu1 %12311  ;;  %v3879_v33 = vsel %vm3838_vm4, %v3814_v45, %v12298_v60 }
 0x207   :  { %v5017_v13 = vmax.f32 %v4895_v19, %v4959_v37  ;;  %v4893_v50 = vld [vmem:[#allocation3 + $0x40] ss:$2 sm:$0xff]  ;;  %v4957_v6 = vld [vmem:[#allocation3 + $0x41] ss:$2 sm:$0xff]  ;;  %v16175_v62 = vpop.permute.xlu0 %12306  ;;  %v12314_v0 = vunpack.i.h.bf16 %v16173_v9  ;;  %v12313_v44 = vunpack.i.l.bf16 %v16173_v9 }
 0x208   :  { %v5016_v41 = vmax.f32 %v4893_v50, %v4957_v6  ;;  %12601 = vrot.lane.b32.xlu1 %v16069_v43, %s18413_s23  ;;  %v1463_v43 = vld [vmem:[#allocation2 + $0x301] sm:$0xff]  ;;  %v12309_v34 = vunpack.i.h.bf16 %v16175_v62  ;;  %v12308_v56 = vunpack.i.l.bf16 %v16175_v62 }
 0x209   :  { %v5051_v57 = vsel %vm181_vm2, %v5017_v13, -inf  ;;  %12596 = vrot.lane.b32.xlu0 %v16075_v36, %s18408_s25  ;;  %v16204_v7 = vpack.i.bf16 %v1464_v58, %v1463_v43  ;;  %v3946_v37 = vsel %vm3903_vm5, %v3881_v10, %v12313_v44  ;;  %v3947_v9 = vsel %vm3903_vm5, %v3882_v49, %v12314_v0  ;;  %v1656_v44 = vld [vmem:[#allocation2 + $0x319] sm:$0xff] }
 0x20a   :  { %v5050_v4 = vsel %vm181_vm2, %v5016_v41, -inf  ;;  %v16185_v26 = vpop.permute.xlu1 %12321  ;;  %v3944_v50 = vsel %vm3903_vm5, %v3879_v33, %v12308_v56 }
 0x20b   :  { %v5052_v5 = vmax.f32 %v5050_v4, %v5051_v57  ;;  %v16187_v35 = vpop.permute.xlu0 %12316  ;;  %v12323_v2 = vunpack.i.l.bf16 %v16185_v26  ;;  %v12324_v4 = vunpack.i.h.bf16 %v16185_v26 }
 0x20c   :  { %12611 = vrot.lane.b32.xlu1 %v16150_v39, %s18413_s23  ;;  %v12318_v54 = vunpack.i.l.bf16 %v16187_v35  ;;  %v12319_v15 = vunpack.i.h.bf16 %v16187_v35 }
 0x20d   :  { %12606 = vrot.lane.b32.xlu0 %v16182_v16, %s18408_s25  ;;  %5095 = vst.msk [vmem:[#allocation4 + $0x31] sm:$0xff] %vm181_vm2, %v5052_v5  ;;  %v4010_v5 = vsel %vm181_vm2, %v3946_v37, %v12323_v2  ;;  %v4011_v10 = vsel %vm181_vm2, %v3947_v9, %v12324_v4 }
 0x20e   :  { %v16198_v30 = vpop.permute.xlu1 %12331  ;;  %v4008_v35 = vsel %vm181_vm2, %v3944_v50, %v12318_v54 }
 0x20f   :  { %v12327_v61 = vpop.permute.xlu0 %12326  ;;  %v12334_v43 = vunpack.i.h.bf16 %v16198_v30  ;;  %v12333_v58 = vunpack.i.l.bf16 %v16198_v30 }
 0x210   :  { %12621 = vrot.lane.b32.xlu1 %v16182_v16, %s18409_s1  ;;  %v12328_v46 = vunpack.i.l.bf16 %v12327_v61  ;;  %v12329_v8 = vunpack.i.h.bf16 %v12327_v61 }
 0x211   :  { %12616 = vrot.lane.b32.xlu0 %v16075_v36, %s18409_s1  ;;  %v3880_v36 = vsel %vm3838_vm4, %v3815_v17, %v12299_v63 }
 0x212   :  { %v16224_v42 = vpop.permute.xlu1 %12341  ;;  %v3945_v6 = vsel %vm3903_vm5, %v3880_v36, %v12309_v34  ;;  %v4073_v3 = vsel %vm4032_vm6, %v4008_v35, %v12328_v46  ;;  %v4076_v36 = vsel %vm4032_vm6, %v4011_v10, %v12334_v43  ;;  %v1195_v10 = vld [vmem:[#allocation2 + $0x258] sm:$0xff] }
 0x213   :  { %v12337_v31 = vpop.permute.xlu0 %12336  ;;  %v4009_v40 = vsel %vm181_vm2, %v3945_v6, %v12319_v15  ;;  %v12344_v32 = vunpack.i.h.bf16 %v16224_v42  ;;  %v12343_v53 = vunpack.i.l.bf16 %v16224_v42 }
 0x214   :  { %12631 = vrot.lane.b32.xlu1 %v16202_v21, %s18410_s30  ;;  %v16237_v19 = vld [vmem:[#allocation4 + $0x32] sm:$0xff]  ;;  %v12338_v62 = vunpack.i.l.bf16 %v12337_v31  ;;  %v4074_v26 = vsel %vm4032_vm6, %v4009_v40, %v12329_v8  ;;  %v1721_v40 = vld [vmem:[#allocation2 + $0x322] sm:$0xff] }
 0x215   :  { %12626 = vrot.lane.b32.xlu0 %v16077_v23, %s18410_s30  ;;  %v5737_v13 = vpack.c.bf16 %v16237_v19, %v16235_v27  ;;  %v12810_v57 = vpack.i.bf16 %v16237_v19, %v16235_v27  ;;  %v12339_v23 = vunpack.i.h.bf16 %v12337_v31  ;;  %v4075_v31 = vsel %vm4032_vm6, %v4010_v5, %v12333_v58 }
 0x216   :  { %v16247_v41 = vpop.permute.xlu1 %12351  ;;  %v4138_v47 = vsel %vm4097_vm7, %v4073_v3, %v12338_v62  ;;  %v4140_v46 = vsel %vm4097_vm7, %v4075_v31, %v12343_v53  ;;  %v4141_v37 = vsel %vm4097_vm7, %v4076_v36, %v12344_v32 }
 0x217   :  { %v12347_v38 = vpop.permute.xlu0 %12346  ;;  %11370 = vmatprep.mubr.msk.bf16.mxu1 %vm181_vm2, %v5737_v13  ;;  %v4139_v22 = vsel %vm4097_vm7, %v4074_v26, %v12339_v23  ;;  %v12354_v59 = vunpack.i.h.bf16 %v16247_v41  ;;  %v12353_v55 = vunpack.i.l.bf16 %v16247_v41 }
 0x218   :  { %v11316_v25 = vpop.f32.mrb[12].mxu0  ;;  %12641 = vrot.lane.b32.xlu1 %v16204_v7, %s18411_s21  ;;  %v12349_v18 = vunpack.i.h.bf16 %v12347_v38  ;;  %v12348_v51 = vunpack.i.l.bf16 %v12347_v38 }
 0x219   :  { %v4559_v11 = vadd.f32 %v11316_v25, %v15836_v24  ;;  %12636 = vrot.lane.b32.xlu0 %v16150_v39, %s18411_s21  ;;  %v4550_v12 = vpop.f32.mrb[13].mxu0  ;;  %v4205_v13 = vsel %vm4162_vm8, %v4140_v46, %v12353_v55  ;;  %v4206_v50 = vsel %vm4162_vm8, %v4141_v37, %v12354_v59  ;;  %v1532_v59 = vld [vmem:[#allocation2 + $0x33a] sm:$0xff]  ;;  %v13015_v46 = vld [vmem:[%s18415_s3 + $0x48] sm:$0xff]  }
 0x21a   :  { %v4551_v52 = vadd.f32 %v15836_v24, %v4550_v12  ;;  %v11317_v30 = vpop.f32.mrb[14].mxu0  ;;  %v16269_v28 = vpop.permute.xlu1 %12361  ;;  %v4203_v34 = vsel %vm4162_vm8, %v4138_v47, %v12348_v51  ;;  %v4204_v56 = vsel %vm4162_vm8, %v4139_v22, %v12349_v18  ;;  %v1403_v47 = vld [vmem:[#allocation2 + $0x330] sm:$0xff] }
 0x21b   :  { %v4771_v14 = vmax.f32 %v4559_v11, 0.0  ;;  %v4562_v61 = vadd.f32 %v11317_v30, %v15836_v24  ;;  %v12357_v39 = vpop.permute.xlu0 %12356  ;;  %v4553_v63 = vpop.f32.mrb[15].mxu0  ;;  %v1467_v30 = vld [vmem:[#allocation2 + $0x331] sm:$0xff] }
 0x21c   :  { %v4769_v60 = vmax.f32 %v4551_v52, 0.0  ;;  %v12359_v17 = vunpack.i.h.bf16 %v12357_v39  ;;  %v12358_v45 = vunpack.i.l.bf16 %v12357_v39  ;;  %v4554_v0 = vadd.f32 %v15836_v24, %v4553_v63  ;;  %12651 = vrot.lane.b32.xlu1 %v16210_v20, %s18412_s29  ;;  %v1404_v52 = vld [vmem:[#allocation2 + $0x338] sm:$0xff]  ;;  %v16339_v39 = vld [vmem:[#allocation2 + $0x350] sm:$0xff]  ;;  %v13013_v63 = vld [vmem:[%s18415_s3 + $0x40] sm:$0xff]  }
 0x21d   :  { %4835 = vst.msk [vmem:[#allocation3 + $0x70] sm:$0xff] %vm181_vm2, %v4771_v14  ;;  %v4772_v42 = vmax.f32 %v4562_v61, 0.0  ;;  %12646 = vrot.lane.b32.xlu0 %v16182_v16, %s18412_s29  ;;  %v16292_v16 = vpack.i.bf16 %v1657_v48, %v1656_v44  ;;  %v1531_v22 = vld [vmem:[#allocation2 + $0x332] sm:$0xff]  ;;  %v12364_v14 = vunpack.i.h.bf16 %v16269_v28  ;;  %v16337_v61 = vld [vmem:[#allocation2 + $0x348] sm:$0xff]  ;;  %v1193_v44 = vld [vmem:[#allocation2 + $0x240] sm:$0xff]  ;;  %11000 = vmatprep.subr.bf16.mxu0 %v13013_v63 }
 0x21e   :  { %4833 = vst.msk [vmem:[#allocation3 + $0x60] sm:$0xff] %vm181_vm2, %v4769_v60  ;;  %v4268_v24 = vsel %vm4227_vm9, %v4203_v34, %v12358_v45  ;;  %v4269_v49 = vsel %vm4227_vm9, %v4204_v56, %v12359_v17  ;;  %v4770_v2 = vmax.f32 %v4554_v0, 0.0  ;;  %v16287_v54 = vpop.permute.xlu1 %12371  ;;  %v1194_v60 = vld [vmem:[#allocation2 + $0x248] sm:$0xff]  ;;  %v12363_v17 = vunpack.i.l.bf16 %v16269_v28  ;;  %v13014_v0 = vld [vmem:[%s18415_s3] sm:$0xff]  }
 0x21f   :  { %4836 = vst.msk [vmem:[#allocation3 + $0x78] sm:$0xff] %vm181_vm2, %v4772_v42  ;;  %v12367_v33 = vpop.permute.xlu0 %12366  ;;  %v4312_v15 = vpack.c.bf16 %v4269_v49, %v4268_v24  ;;  %v12374_v48 = vunpack.i.h.bf16 %v16287_v54  ;;  %v12373_v55 = vunpack.i.l.bf16 %v16287_v54  ;;  %v16354_v56 = vpack.i.bf16 %v1404_v52, %v1403_v47  ;;  %v1196_v28 = vld [vmem:[#allocation2 + $0x260] sm:$0xff]  ;;  %11001 = vmatpush3.bf16.msra.mxu0 %v13014_v0  ;;  %v13018_v47 = vld [vmem:[%s18415_s3 + $0x10] sm:$0xff]  }
 0x220   :  { %4834 = vst.msk [vmem:[#allocation3 + $0x68] sm:$0xff] %vm181_vm2, %v4770_v2  ;;  %v12369_v9 = vunpack.i.h.bf16 %v12367_v33  ;;  %v12368_v8 = vunpack.i.l.bf16 %v12367_v33  ;;  %12661 = vrot.lane.b32.xlu1 %v16212_v29, %s18406_s5  ;;  %v16362_v2 = vpack.i.bf16 %v1532_v59, %v1531_v22  ;;  %v12740_v54 = vpack.i.bf16 %v16339_v39, %v16337_v61  ;;  %11002 = vmatprep.subr.bf16.mxu0 %v13015_v46  ;;  %v13023_v61 = vld [vmem:[%s18415_s3 + $0x68] sm:$0xff]  }
 0x221   :  { %12656 = vrot.lane.b32.xlu0 %v16202_v21, %s18406_s5  ;;  %11342 = vmatprep.mubr.msk.bf16.mxu0 %vm4367_vm10, %v4312_v15  ;;  %v1720_v21 = vld [vmem:[#allocation2 + $0x31a] sm:$0xff]  ;;  %v3819_v31 = vsel %vm71_vm0, %v1194_v60, %v12364_v14  ;;  %v3818_v37 = vsel %vm71_vm0, %v1193_v44, %v12363_v17 }
 0x222   :  { %v4271_v6 = vsel %vm4227_vm9, %v4206_v50, %v12369_v9  ;;  %v4270_v62 = vsel %vm4227_vm9, %v4205_v13, %v12368_v8  ;;  %v16306_v41 = vpop.permute.xlu1 %12381  ;;  %v16324_v51 = vpack.i.bf16 %v1721_v40, %v1720_v21 }
 0x223   :  { %v16308_v4 = vpop.permute.xlu0 %12376  ;;  %v4313_v5 = vpack.c.bf16 %v4271_v6, %v4270_v62  ;;  %v12384_v24 = vunpack.i.h.bf16 %v16306_v41  ;;  %v12383_v49 = vunpack.i.l.bf16 %v16306_v41  ;;  %v13016_v6 = vld [vmem:[%s18415_s3 + $0x8] sm:$0xff]   ;;  %v3820_v62 = vsel %vm71_vm0, %v1195_v10, %v12373_v55 }
 0x224   :  { %12671 = vrot.lane.b32.xlu1 %v16292_v16, %s18407_s26  ;;  %v12379_v36 = vunpack.i.h.bf16 %v16308_v4  ;;  %v12378_v33 = vunpack.i.l.bf16 %v16308_v4  ;;  %11003 = vmatpush3.bf16.msra.mxu0 %v13016_v6 }
 0x225   :  { %12666 = vrot.lane.b32.xlu0 %v16204_v7, %s18407_s26  ;;  %11343 = vmatmul.mubr.msk.bf16.gmra.mrb[40].mxu0 %vm4367_vm10, %v4313_v5  ;;  %v3885_v21 = vsel %vm3838_vm4, %v3820_v62, %v12383_v49  ;;  %v1660_v62 = vld [vmem:[#allocation2 + $0x349] sm:$0xff] }
 0x226   :  { %v4899_v35 = vld [vmem:[#allocation3 + $0x70] ss:$2 sm:$0xff]  ;;  %v4963_v23 = vld [vmem:[#allocation3 + $0x71] ss:$2 sm:$0xff]  ;;  %v16315_v38 = vpop.permute.xlu1 %12391  ;;  %v3884_v40 = vsel %vm3838_vm4, %v3819_v31, %v12379_v36 }
 0x227   :  { %v5019_v43 = vmax.f32 %v4899_v35, %v4963_v23  ;;  %v4897_v58 = vld [vmem:[#allocation3 + $0x60] ss:$2 sm:$0xff]  ;;  %v4961_v3 = vld [vmem:[#allocation3 + $0x61] ss:$2 sm:$0xff]  ;;  %v16317_v25 = vpop.permute.xlu0 %12386  ;;  %v12393_v15 = vunpack.i.l.bf16 %v16315_v38  ;;  %v12394_v9 = vunpack.i.h.bf16 %v16315_v38 }
 0x228   :  { %v5018_v26 = vmax.f32 %v4897_v58, %v4961_v3  ;;  %12681 = vrot.lane.b32.xlu1 %v16204_v7, %s18413_s23  ;;  %v1468_v7 = vld [vmem:[#allocation2 + $0x339] sm:$0xff]  ;;  %v12389_v8 = vunpack.i.h.bf16 %v16317_v25  ;;  %v12388_v13 = vunpack.i.l.bf16 %v16317_v25  ;;  %v13017_v25 = vld [vmem:[%s18415_s3 + $0x50] sm:$0xff]  }
 0x229   :  { %v5054_v18 = vsel %vm181_vm2, %v5019_v43, -inf  ;;  %12676 = vrot.lane.b32.xlu0 %v16210_v20, %s18408_s25  ;;  %v16356_v42 = vpack.i.bf16 %v1468_v7, %v1467_v30  ;;  %v3883_v43 = vsel %vm3838_vm4, %v3818_v37, %v12378_v33  ;;  %v3950_v58 = vsel %vm3903_vm5, %v3885_v21, %v12393_v15  ;;  %11004 = vmatprep.subr.bf16.mxu0 %v13017_v25  ;;  %v13022_v25 = vld [vmem:[%s18415_s3 + $0x20] sm:$0xff]  }
 0x22a   :  { %v5053_v11 = vsel %vm181_vm2, %v5018_v26, -inf  ;;  %v16327_v12 = vpop.permute.xlu1 %12401  ;;  %11005 = vmatpush3.bf16.msra.mxu0 %v13018_v47 }
 0x22b   :  { %v5055_v32 = vmax.f32 %v5053_v11, %v5054_v18  ;;  %v16329_v53 = vpop.permute.xlu0 %12396  ;;  %v12403_v41 = vunpack.i.l.bf16 %v16327_v12  ;;  %v3948_v18 = vsel %vm3903_vm5, %v3883_v43, %v12388_v13  ;;  %v3949_v11 = vsel %vm3903_vm5, %v3884_v40, %v12389_v8 }
 0x22c   :  { %12691 = vrot.lane.b32.xlu1 %v16292_v16, %s18413_s23  ;;  %v12398_v4 = vunpack.i.l.bf16 %v16329_v53  ;;  %v12399_v23 = vunpack.i.h.bf16 %v16329_v53  ;;  %v12404_v52 = vunpack.i.h.bf16 %v16327_v12 }
 0x22d   :  { %5096 = vst.msk [vmem:[#allocation4 + $0x41] sm:$0xff] %vm181_vm2, %v5055_v32  ;;  %12686 = vrot.lane.b32.xlu0 %v16324_v51, %s18408_s25 }
 0x22e   :  { %v16345_v45 = vpop.permute.xlu1 %12411  ;;  %v4012_v30 = vsel %vm181_vm2, %v3948_v18, %v12398_v4  ;;  %v4013_v59 = vsel %vm181_vm2, %v3949_v11, %v12399_v23  ;;  %v13021_v23 = vld [vmem:[%s18415_s3 + $0x60] sm:$0xff]  }
 0x22f   :  { %v16352_v34 = vpop.permute.xlu0 %12406  ;;  %v12414_v14 = vunpack.i.h.bf16 %v16345_v45  ;;  %v12413_v63 = vunpack.i.l.bf16 %v16345_v45 }
 0x230   :  { %12701 = vrot.lane.b32.xlu1 %v16324_v51, %s18409_s1  ;;  %v12408_v38 = vunpack.i.l.bf16 %v16352_v34  ;;  %v12409_v3 = vunpack.i.h.bf16 %v16352_v34  ;;  %v13019_v34 = vld [vmem:[%s18415_s3 + $0x58] sm:$0xff]  }
 0x231   :  { %12696 = vrot.lane.b32.xlu0 %v16210_v20, %s18409_s1  ;;  %v3821_v20 = vsel %vm71_vm0, %v1196_v28, %v12374_v48  ;;  %v16424_v48 = vld [vmem:[%s18414_s18] ss:$0 sm:$0xff]  ;;  %11006 = vmatprep.subr.bf16.mxu0 %v13019_v34  ;;  %v13025_v34 = vld [vmem:[%s18415_s3 + $0x70] sm:$0xff]   ;;  %s18416_s1 = sld [smem:[#allocation20_spill]] }
 0x232   :  { %v16379_v50 = vpop.permute.xlu1 %12421  ;;  %v3886_v35 = vsel %vm3838_vm4, %v3821_v20, %v12384_v24  ;;  %v4077_v60 = vsel %vm4032_vm6, %v4012_v30, %v12408_v38  ;;  %v4078_v12 = vsel %vm4032_vm6, %v4013_v59, %v12409_v3  ;;  %v1725_v59 = vld [vmem:[#allocation2 + $0x352] sm:$0xff] }
 0x233   :  { %v12417_v5 = vpop.permute.xlu0 %12416  ;;  %v3951_v26 = vsel %vm3903_vm5, %v3886_v35, %v12394_v9  ;;  %v12424_v10 = vunpack.i.h.bf16 %v16379_v50  ;;  %v12423_v28 = vunpack.i.l.bf16 %v16379_v50 }
 0x234   :  { %12711 = vrot.lane.b32.xlu1 %v16354_v56, %s18410_s30  ;;  %v12418_v32 = vunpack.i.l.bf16 %v12417_v5  ;;  %v12419_v7 = vunpack.i.h.bf16 %v12417_v5  ;;  %v4015_v38 = vsel %vm181_vm2, %v3951_v26, %v12404_v52 }
 0x235   :  { %12706 = vrot.lane.b32.xlu0 %v16212_v29, %s18410_s30  ;;  %v4014_v29 = vsel %vm181_vm2, %v3950_v58, %v12403_v41  ;;  %v1661_v41 = vld [vmem:[#allocation2 + $0x351] sm:$0xff]  ;;  %v4080_v18 = vsel %vm4032_vm6, %v4015_v38, %v12414_v14  ;;  %v16531_v38 = vld [vmem:[#allocation4 + $0x40] sm:$0xff] }
 0x236   :  { %v16406_v53 = vpop.permute.xlu1 %12431  ;;  %v4142_v24 = vsel %vm4097_vm7, %v4077_v60, %v12418_v32  ;;  %v4143_v33 = vsel %vm4097_vm7, %v4078_v12, %v12419_v7  ;;  %v12750_v32 = vpack.i.bf16 %v1661_v41, %v1660_v62  ;;  %v4145_v47 = vsel %vm4097_vm7, %v4080_v18, %v12424_v10  ;;  %v5125_v12 = vld [vmem:[#allocation4 + $0x1] sm:$0xff]  ;;  %v16524_v41 = vld [vmem:[#allocation4 + $0x30] sm:$0xff] }
 0x237   :  { %v12427_v22 = vpop.permute.xlu0 %12426  ;;  %v12434_v15 = vunpack.i.h.bf16 %v16406_v53  ;;  %v12433_v4 = vunpack.i.l.bf16 %v16406_v53  ;;  %v5222_v18 = vld [vmem:[#allocation4 + $0x21] sm:$0xff] }
 0x238   :  { %v11320_v17 = vpop.f32.mrb[16].mxu0  ;;  %12721 = vrot.lane.b32.xlu1 %v16356_v42, %s18411_s21  ;;  %v12429_v0 = vunpack.i.h.bf16 %v12427_v22  ;;  %v12428_v44 = vunpack.i.l.bf16 %v12427_v22  ;;  %v1724_v22 = vld [vmem:[#allocation2 + $0x34a] sm:$0xff] }
 0x239   :  { %v4575_v55 = vadd.f32 %v16424_v48, %v11320_v17  ;;  %12716 = vrot.lane.b32.xlu0 %v16292_v16, %s18411_s21  ;;  %v4566_v45 = vpop.f32.mrb[17].mxu0  ;;  %v13020_v16 = vld [vmem:[%s18415_s3 + $0x18] sm:$0xff]   ;;  %v4210_v7 = vsel %vm4162_vm8, %v4145_v47, %v12434_v15  ;;  %v12760_v17 = vpack.i.bf16 %v1725_v59, %v1724_v22  ;;  %v12820_v22 = vpack.i.bf16 %v16531_v38, %v16524_v41 }
 0x23a   :  { %v4567_v49 = vadd.f32 %v16424_v48, %v4566_v45  ;;  %v11321_v31 = vpop.f32.mrb[18].mxu0  ;;  %v16436_v36 = vpop.permute.xlu1 %12441  ;;  %11007 = vmatpush3.bf16.msra.mxu0 %v13020_v16  ;;  %v4207_v5 = vsel %vm4162_vm8, %v4142_v24, %v12428_v44  ;;  %v4208_v21 = vsel %vm4162_vm8, %v4143_v33, %v12429_v0  ;;  %v5126_v0 = vld [vmem:[#allocation4 + $0x11] sm:$0xff] }
 0x23b   :  { %v4775_v46 = vmax.f32 %v4575_v55, 0.0  ;;  %v4578_v37 = vadd.f32 %v16424_v48, %v11321_v31  ;;  %v12437_v9 = vpop.permute.xlu0 %12436  ;;  %v4569_v8 = vpop.f32.mrb[19].mxu0  ;;  %11008 = vmatprep.subr.bf16.mxu0 %v13021_v23  ;;  %v12444_v62 = vunpack.i.h.bf16 %v16436_v36  ;;  %v5157_v23 = vld [vmem:[#allocation4 + $0x10] sm:$0xff] }
 0x23c   :  { %v4773_v13 = vmax.f32 %v4567_v49, 0.0  ;;  %v12439_v50 = vunpack.i.h.bf16 %v12437_v9  ;;  %v12438_v6 = vunpack.i.l.bf16 %v12437_v9  ;;  %v4570_v20 = vadd.f32 %v16424_v48, %v4569_v8  ;;  %12731 = vrot.lane.b32.xlu1 %v16362_v2, %s18412_s29  ;;  %v13027_v9 = vld [vmem:[%s18415_s3 + $0x78] sm:$0xff]  }
 0x23d   :  { %4839 = vst.msk [vmem:[#allocation3 + $0x90] sm:$0xff] %vm181_vm2, %v4775_v46  ;;  %v4776_v35 = vmax.f32 %v4578_v37, 0.0  ;;  %12726 = vrot.lane.b32.xlu0 %v16324_v51, %s18412_s29  ;;  %v4079_v51 = vsel %vm4032_vm6, %v4014_v29, %v12413_v63  ;;  %v5189_v46 = vld [vmem:[#allocation4 + $0x12] sm:$0xff]  ;;  %v12770_v37 = vpack.i.bf16 %v5126_v0, %v5125_v12 }
 0x23e   :  { %4837 = vst.msk [vmem:[#allocation3 + $0x80] sm:$0xff] %vm181_vm2, %v4773_v13  ;;  %v4272_v40 = vsel %vm4227_vm9, %v4207_v5, %v12438_v6  ;;  %v4273_v43 = vsel %vm4227_vm9, %v4208_v21, %v12439_v50  ;;  %v4774_v58 = vmax.f32 %v4570_v20, 0.0  ;;  %v16460_v3 = vpop.permute.xlu1 %12451  ;;  %v4144_v53 = vsel %vm4097_vm7, %v4079_v51, %v12423_v28  ;;  %11009 = vmatpush3.bf16.msra.mxu0 %v13022_v25  ;;  %v5206_v6 = vld [vmem:[#allocation4 + $0x20] sm:$0xff]  ;;  %v1198_v21 = vld [vmem:[#allocation2 + $0x278] sm:$0xff] }
 0x23f   :  { %4840 = vst.msk [vmem:[#allocation3 + $0x98] sm:$0xff] %vm181_vm2, %v4776_v35  ;;  %v12447_v26 = vpop.permute.xlu0 %12446  ;;  %v4314_v11 = vpack.c.bf16 %v4273_v43, %v4272_v40  ;;  %v4209_v29 = vsel %vm4162_vm8, %v4144_v53, %v12433_v4  ;;  %11010 = vmatprep.subr.bf16.mxu0 %v13023_v61  ;;  %v12765_v50 = vpack.i.bf16 %v16235_v27, %v5189_v46  ;;  %v5141_v20 = vld [vmem:[#allocation4 + $0x2] sm:$0xff]  ;;  %v5223_v4 = vld [vmem:[#allocation4 + $0x31] sm:$0xff]  ;;  %v12443_v35 = vunpack.i.l.bf16 %v16436_v36 }
 0x240   :  { %4838 = vst.msk [vmem:[#allocation3 + $0x88] sm:$0xff] %vm181_vm2, %v4774_v58  ;;  %v12449_v52 = vunpack.i.h.bf16 %v12447_v26  ;;  %v12448_v30 = vunpack.i.l.bf16 %v12447_v26  ;;  %12741 = vrot.lane.b32.xlu1 %v12740_v54, %s18406_s5  ;;  %v16526_v5 = vld [vmem:[#allocation4 + $0x42] sm:$0xff]  ;;  %v1197_v40 = vld [vmem:[#allocation2 + $0x270] sm:$0xff]  ;;  %v12454_v43 = vunpack.i.h.bf16 %v16460_v3  ;;  %v12453_v58 = vunpack.i.l.bf16 %v16460_v3 }
 0x241   :  { %12736 = vrot.lane.b32.xlu0 %v16354_v56, %s18406_s5  ;;  %11346 = vmatprep.mubr.msk.bf16.mxu0 %vm4367_vm10, %v4314_v11  ;;  %v13024_v56 = vld [vmem:[%s18415_s3 + $0x28] sm:$0xff]   ;;  %v12780_v51 = vpack.i.bf16 %v5189_v46, %v5141_v20  ;;  %v12790_v26 = vpack.i.bf16 %v5206_v6, %v5157_v23  ;;  %v1200_v36 = vld [vmem:[#allocation2 + $0x290] sm:$0xff]  ;;  %v12775_v47 = vpack.i.bf16 %v16524_v41, %v5206_v6 }
 0x242   :  { %v4275_v14 = vsel %vm4227_vm9, %v4210_v7, %v12449_v52  ;;  %v4274_v63 = vsel %vm4227_vm9, %v4209_v29, %v12448_v30  ;;  %v16482_v60 = vpop.permute.xlu1 %12461  ;;  %11011 = vmatpush3.bf16.msra.mxu0 %v13024_v56  ;;  %v1199_v11 = vld [vmem:[#allocation2 + $0x288] sm:$0xff]  ;;  %v12785_v52 = vpack.i.bf16 %v5223_v4, %v5222_v18  ;;  %v12795_v30 = vpack.i.bf16 %v16526_v5, %v16237_v19 }
 0x243   :  { %v16487_v39 = vpop.permute.xlu0 %12456  ;;  %v4315_v54 = vpack.c.bf16 %v4275_v14, %v4274_v63  ;;  %11012 = vmatprep.subr.bf16.mxu0 %v13025_v34  ;;  %v3823_v29 = vsel %vm71_vm0, %v1198_v21, %v12444_v62  ;;  %v12464_v3 = vunpack.i.h.bf16 %v16482_v60  ;;  %v3822_v59 = vsel %vm71_vm0, %v1197_v40, %v12443_v35 }
 0x244   :  { %12751 = vrot.lane.b32.xlu1 %v12750_v32, %s18407_s26  ;;  %v12463_v32 = vunpack.i.l.bf16 %v16482_v60  ;;  %v12459_v7 = vunpack.i.h.bf16 %v16487_v39  ;;  %v12458_v14 = vunpack.i.l.bf16 %v16487_v39  ;;  %v3824_v60 = vsel %vm71_vm0, %v1199_v11, %v12453_v58 }
 0x245   :  { %12746 = vrot.lane.b32.xlu0 %v16356_v42, %s18407_s26  ;;  %11347 = vmatmul.mubr.msk.bf16.gmra.mrb[44].mxu0 %vm4367_vm10, %v4315_v54  ;;  %v13026_v42 = vld [vmem:[%s18415_s3 + $0x30] sm:$0xff]   ;;  %v3825_v54 = vsel %vm71_vm0, %v1200_v36, %v12454_v43 }
 0x246   :  { %v4903_v44 = vld [vmem:[#allocation3 + $0x90] ss:$2 sm:$0xff]  ;;  %v4967_v55 = vld [vmem:[#allocation3 + $0x91] ss:$2 sm:$0xff]  ;;  %v16496_v45 = vpop.permute.xlu1 %12471  ;;  %11013 = vmatpush3.bf16.msra.mxu0 %v13026_v42  ;;  %v3889_v0 = vsel %vm3838_vm4, %v3824_v60, %v12463_v32  ;;  %v3890_v34 = vsel %vm3838_vm4, %v3825_v54, %v12464_v3  ;;  %v3887_v42 = vsel %vm3838_vm4, %v3822_v59, %v12458_v14 }
 0x247   :  { %v5021_v10 = vmax.f32 %v4903_v44, %v4967_v55  ;;  %v4901_v28 = vld [vmem:[#allocation3 + $0x80] ss:$2 sm:$0xff]  ;;  %v4965_v24 = vld [vmem:[#allocation3 + $0x81] ss:$2 sm:$0xff]  ;;  %v16501_v49 = vpop.permute.xlu0 %12466  ;;  %11014 = vmatprep.subr.bf16.mxu0 %v13027_v9  ;;  %v12474_v63 = vunpack.i.h.bf16 %v16496_v45  ;;  %v12473_v61 = vunpack.i.l.bf16 %v16496_v45 }
 0x248   :  { %v5020_v31 = vmax.f32 %v4901_v28, %v4965_v24  ;;  %12761 = vrot.lane.b32.xlu1 %v12760_v17, %s18408_s25  ;;  %v12469_v56 = vunpack.i.h.bf16 %v16501_v49  ;;  %v12468_v17 = vunpack.i.l.bf16 %v16501_v49 }
 0x249   :  { %v5057_v16 = vsel %vm181_vm2, %v5021_v10, -inf  ;;  %12756 = vrot.lane.b32.xlu0 %v16362_v2, %s18408_s25  ;;  %v13028_v2 = vld [vmem:[%s18415_s3 + $0x38] sm:$0xff]   ;;  %v3888_v10 = vsel %vm3838_vm4, %v3823_v29, %v12459_v7  ;;  %s13362_s3 = smov 96  }
 0x24a   :  { %v5056_v33 = vsel %vm181_vm2, %v5020_v31, -inf  ;;  %v16511_v15 = vpop.permute.xlu1 %12481  ;;  %11015 = vmatpush3.bf16.msra.mxu0 %v13028_v2  ;;  %v3954_v31 = vsel %vm3903_vm5, %v3889_v0, %v12473_v61  ;;  %v3952_v46 = vsel %vm3903_vm5, %v3887_v42, %v12468_v17 }
 0x24b   :  { %v5058_v8 = vmax.f32 %v5056_v33, %v5057_v16  ;;  %v16516_v13 = vpop.permute.xlu0 %12476  ;;  %v12483_v39 = vunpack.i.l.bf16 %v16511_v15  ;;  %v3955_v16 = vsel %vm3903_vm5, %v3890_v34, %v12474_v63  ;;  %v12484_v9 = vunpack.i.h.bf16 %v16511_v15 }
 0x24c   :  { %12771 = vrot.lane.b32.xlu1 %v12770_v37, %s18411_s21  ;;  %v12479_v44 = vunpack.i.h.bf16 %v16516_v13  ;;  %v12478_v55 = vunpack.i.l.bf16 %v16516_v13  ;;  %v3953_v37 = vsel %vm3903_vm5, %v3888_v10, %v12469_v56 }
 0x24d   :  { %5097 = vst.msk [vmem:[#allocation4 + $0x51] sm:$0xff] %vm181_vm2, %v5058_v8  ;;  %12766 = vrot.lane.b32.xlu0 %v12765_v50, %s18411_s21  ;;  %v4018_v50 = vsel %vm181_vm2, %v3954_v31, %v12483_v39  ;;  %v4019_v39 = vsel %vm181_vm2, %v3955_v16, %v12484_v9 }
 0x24e   :  { %v16535_v25 = vpop.permute.xlu1 %12491  ;;  %v4016_v6 = vsel %vm181_vm2, %v3952_v46, %v12478_v55  ;;  %v4017_v20 = vsel %vm181_vm2, %v3953_v37, %v12479_v44  ;;  %v16616_v55 = vld [vmem:[#allocation4 + $0x41] sm:$0xff] }
 0x24f   :  { %v12487_v53 = vpop.permute.xlu0 %12486  ;;  %v12494_v21 = vunpack.i.h.bf16 %v16535_v25  ;;  %v12493_v35 = vunpack.i.l.bf16 %v16535_v25 }
 0x250   :  { %12781 = vrot.lane.b32.xlu1 %v12780_v51, %s18408_s25  ;;  %v12489_v28 = vunpack.i.h.bf16 %v12487_v53  ;;  %v12488_v24 = vunpack.i.l.bf16 %v12487_v53 }
 0x251   :  { %12776 = vrot.lane.b32.xlu0 %v12775_v47, %s18408_s25  ;;  %v4084_v34 = vsel %vm4032_vm6, %v4019_v39, %v12494_v21 }
 0x252   :  { %v16556_v12 = vpop.permute.xlu1 %12501  ;;  %v4081_v15 = vsel %vm4032_vm6, %v4016_v6, %v12488_v24  ;;  %v4082_v23 = vsel %vm4032_vm6, %v4017_v20, %v12489_v28 }
 0x253   :  { %v12497_v45 = vpop.permute.xlu0 %12496  ;;  %v12504_v43 = vunpack.i.h.bf16 %v16556_v12  ;;  %v12503_v11 = vunpack.i.l.bf16 %v16556_v12 }
 0x254   :  { %12791 = vrot.lane.b32.xlu1 %v12790_v26, %s13362_s3  ;;  %v16565_v49 = vld [vmem:[#allocation4 + $0x52] sm:$0xff]  ;;  %v12498_v8 = vunpack.i.l.bf16 %v12497_v45  ;;  %v12499_v2 = vunpack.i.h.bf16 %v12497_v45  ;;  %v4083_v45 = vsel %vm4032_vm6, %v4018_v50, %v12493_v35 }
 0x255   :  { %12786 = vrot.lane.b32.xlu0 %v12785_v52, %s13362_s3  ;;  %v5740_v33 = vpack.c.bf16 %v16565_v49, %v16526_v5  ;;  %v16582_v4 = vld [vmem:[#allocation4 + $0x50] sm:$0xff]  ;;  %v4148_v42 = vsel %vm4097_vm7, %v4083_v45, %v12503_v11  ;;  %v4149_v31 = vsel %vm4097_vm7, %v4084_v34, %v12504_v43  ;;  %v12840_v20 = vpack.i.bf16 %v16565_v49, %v16526_v5  ;;  %v1201_v11 = vld [vmem:[#allocation2 + $0x2a0] sm:$0xff] }
 0x256   :  { %v16576_v13 = vpop.permute.xlu1 %12511  ;;  %v4146_v25 = vsel %vm4097_vm7, %v4081_v15, %v12498_v8  ;;  %v12805_v47 = vpack.i.bf16 %v16582_v4, %v16531_v38  ;;  %v5225_v60 = vld [vmem:[#allocation4 + $0x51] sm:$0xff] }
 0x257   :  { %v12507_v62 = vpop.permute.xlu0 %12506  ;;  %11371 = vmatmul.mubr.msk.bf16.vlgmr.msra.gmra.mrb[0].mxu1 %vm181_vm2, %v5740_v33  ;;  %v12514_v29 = vunpack.i.h.bf16 %v16576_v13  ;;  %v12513_v56 = vunpack.i.l.bf16 %v16576_v13  ;;  %v12815_v24 = vpack.i.bf16 %v5225_v60, %v16616_v55 }
 0x258   :  { %v11324_v40 = vpop.f32.mrb[20].mxu0  ;;  %12801 = vrot.lane.b32.xlu1 %v12785_v52, %s18411_s21  ;;  %v12509_v58 = vunpack.i.h.bf16 %v12507_v62  ;;  %v12508_v51 = vunpack.i.l.bf16 %v12507_v62  ;;  %v4147_v52 = vsel %vm4097_vm7, %v4082_v23, %v12499_v2 }
 0x259   :  { %v4591_v18 = vadd.f32 %v16424_v48, %v11324_v40  ;;  %v4582_v26 = vpop.f32.mrb[21].mxu0  ;;  %12796 = vrot.lane.b32.xlu0 %v12795_v30, %s18411_s21  ;;  %v4213_v46 = vsel %vm4162_vm8, %v4148_v42, %v12513_v56  ;;  %v4214_v37 = vsel %vm4162_vm8, %v4149_v31, %v12514_v29 }
 0x25a   :  { %v4583_v36 = vadd.f32 %v16424_v48, %v4582_v26  ;;  %v11325_v32 = vpop.f32.mrb[22].mxu0  ;;  %v16595_v53 = vpop.permute.xlu1 %12521  ;;  %v4211_v17 = vsel %vm4162_vm8, %v4146_v25, %v12508_v51  ;;  %v4212_v12 = vsel %vm4162_vm8, %v4147_v52, %v12509_v58  ;;  %v1202_v25 = vld [vmem:[#allocation2 + $0x2a8] sm:$0xff]  ;;  %v1203_v52 = vld [vmem:[#allocation2 + $0x2b8] sm:$0xff] }
 0x25b   :  { %v4779_v3 = vmax.f32 %v4591_v18, 0.0  ;;  %v4594_v7 = vadd.f32 %v16424_v48, %v11325_v32  ;;  %v12517_v30 = vpop.permute.xlu0 %12516  ;;  %v4585_v59 = vpop.f32.mrb[23].mxu0  ;;  %v12524_v18 = vunpack.i.h.bf16 %v16595_v53  ;;  %v12523_v26 = vunpack.i.l.bf16 %v16595_v53 }
 0x25c   :  { %v4777_v14 = vmax.f32 %v4583_v36, 0.0  ;;  %v12519_v63 = vunpack.i.h.bf16 %v12517_v30  ;;  %v12518_v61 = vunpack.i.l.bf16 %v12517_v30  ;;  %v4586_v54 = vadd.f32 %v16424_v48, %v4585_v59  ;;  %12811 = vrot.lane.b32.xlu1 %v12810_v57, %s18408_s25  ;;  %v1204_v36 = vld [vmem:[#allocation2 + $0x2c0] sm:$0xff] }
 0x25d   :  { %4843 = vst.msk [vmem:[#allocation3 + $0xb0] sm:$0xff] %vm181_vm2, %v4779_v3  ;;  %v4780_v0 = vmax.f32 %v4594_v7, 0.0  ;;  %12806 = vrot.lane.b32.xlu0 %v12805_v47, %s18408_s25 }
 0x25e   :  { %4841 = vst.msk [vmem:[#allocation3 + $0xa0] sm:$0xff] %vm181_vm2, %v4777_v14  ;;  %v4276_v44 = vsel %vm4227_vm9, %v4211_v17, %v12518_v61  ;;  %v4277_v27 = vsel %vm4227_vm9, %v4212_v12, %v12519_v63  ;;  %v4778_v19 = vmax.f32 %v4586_v54, 0.0  ;;  %v12532_v57 = vpop.permute.xlu1 %12531  ;;  %v3827_v14 = vsel %vm71_vm0, %v1202_v25, %v12524_v18 }
 0x25f   :  { %4844 = vst.msk [vmem:[#allocation3 + $0xb8] sm:$0xff] %vm181_vm2, %v4780_v0  ;;  %v12527_v10 = vpop.permute.xlu0 %12526  ;;  %v4316_v28 = vpack.c.bf16 %v4277_v27, %v4276_v44  ;;  %v12534_v5 = vunpack.i.h.bf16 %v12532_v57  ;;  %v12533_v32 = vunpack.i.l.bf16 %v12532_v57  ;;  %v3826_v63 = vsel %vm71_vm0, %v1201_v11, %v12523_v26 }
 0x260   :  { %4842 = vst.msk [vmem:[#allocation3 + $0xa8] sm:$0xff] %vm181_vm2, %v4778_v19  ;;  %v12529_v16 = vunpack.i.h.bf16 %v12527_v10  ;;  %v12528_v33 = vunpack.i.l.bf16 %v12527_v10  ;;  %12821 = vrot.lane.b32.xlu1 %v12820_v22, %s13362_s3 }
 0x261   :  { %11350 = vmatprep.mubr.msk.bf16.mxu0 %vm4367_vm10, %v4316_v28  ;;  %12816 = vrot.lane.b32.xlu0 %v12815_v24, %s13362_s3  ;;  %v3829_v53 = vsel %vm71_vm0, %v1204_v36, %v12534_v5  ;;  %v3828_v54 = vsel %vm71_vm0, %v1203_v52, %v12533_v32 }
 0x262   :  { %v4279_v9 = vsel %vm4227_vm9, %v4214_v37, %v12529_v16  ;;  %v4278_v8 = vsel %vm4227_vm9, %v4213_v46, %v12528_v33  ;;  %v12542_v13 = vpop.permute.xlu1 %12541 }
 0x263   :  { %v12537_v50 = vpop.permute.xlu0 %12536  ;;  %v4317_v6 = vpack.c.bf16 %v4279_v9, %v4278_v8  ;;  %v12544_v29 = vunpack.i.h.bf16 %v12542_v13  ;;  %v12543_v3 = vunpack.i.l.bf16 %v12542_v13 }
 0x264   :  { %12831 = vrot.lane.b32.xlu1 %v12815_v24, %s18411_s21  ;;  %v12539_v30 = vunpack.i.h.bf16 %v12537_v50  ;;  %v12538_v59 = vunpack.i.l.bf16 %v12537_v50 }
 0x265   :  { %11351 = vmatmul.mubr.msk.bf16.gmra.mrb[48].mxu0 %vm4367_vm10, %v4317_v6  ;;  %v3893_v0 = vsel %vm3838_vm4, %v3828_v54, %v12543_v3  ;;  %v3894_v39 = vsel %vm3838_vm4, %v3829_v53, %v12544_v29 }
 0x266   :  { %v4907_v41 = vld [vmem:[#allocation3 + $0xb0] ss:$2 sm:$0xff]  ;;  %v4971_v38 = vld [vmem:[#allocation3 + $0xb1] ss:$2 sm:$0xff]  ;;  %v12552_v22 = vpop.permute.xlu1 %12551  ;;  %v3892_v57 = vsel %vm3838_vm4, %v3827_v14, %v12539_v30  ;;  %v3891_v45 = vsel %vm3838_vm4, %v3826_v63, %v12538_v59 }
 0x267   :  { %v5023_v2 = vmax.f32 %v4907_v41, %v4971_v38  ;;  %v4905_v62 = vld [vmem:[#allocation3 + $0xa0] ss:$2 sm:$0xff]  ;;  %v4969_v21 = vld [vmem:[#allocation3 + $0xa1] ss:$2 sm:$0xff]  ;;  %v12547_v35 = vpop.permute.xlu0 %12546  ;;  %v12553_v61 = vunpack.i.l.bf16 %v12552_v22  ;;  %v12554_v60 = vunpack.i.h.bf16 %v12552_v22 }
 0x268   :  { %v5022_v15 = vmax.f32 %v4905_v62, %v4969_v21  ;;  %12841 = vrot.lane.b32.xlu1 %v12840_v20, %s18408_s25  ;;  %v12549_v56 = vunpack.i.h.bf16 %v12547_v35  ;;  %v12548_v17 = vunpack.i.l.bf16 %v12547_v35 }
 0x269   :  { %v5060_v23 = vsel %vm181_vm2, %v5023_v2, -inf  ;;  %v3958_v42 = vsel %vm3903_vm5, %v3893_v0, %v12553_v61  ;;  %v3959_v46 = vsel %vm3903_vm5, %v3894_v39, %v12554_v60 }
 0x26a   :  { %v5059_v40 = vsel %vm181_vm2, %v5022_v15, -inf  ;;  %v16642_v43 = vpop.permute.xlu1 %12561  ;;  %v3956_v37 = vsel %vm3903_vm5, %v3891_v45, %v12548_v17  ;;  %v3957_v9 = vsel %vm3903_vm5, %v3892_v57, %v12549_v56 }
 0x26b   :  { %v5061_v58 = vmax.f32 %v5059_v40, %v5060_v23  ;;  %v12557_v51 = vpop.permute.xlu0 %12556  ;;  %v12563_v44 = vunpack.i.l.bf16 %v16642_v43  ;;  %v12564_v50 = vunpack.i.h.bf16 %v16642_v43 }
 0x26c   :  { %v12558_v27 = vunpack.i.l.bf16 %v12557_v51  ;;  %v12559_v34 = vunpack.i.h.bf16 %v12557_v51 }
 0x26d   :  { %5098 = vst.msk [vmem:[#allocation4 + $0x61] sm:$0xff] %vm181_vm2, %v5061_v58  ;;  %v4022_v6 = vsel %vm181_vm2, %v3958_v42, %v12563_v44  ;;  %v4023_v61 = vsel %vm181_vm2, %v3959_v46, %v12564_v50 }
 0x26e   :  { %v16647_v47 = vpop.permute.xlu1 %12571  ;;  %v4020_v41 = vsel %vm181_vm2, %v3956_v37, %v12558_v27 }
 0x26f   :  { %v12567_v7 = vpop.permute.xlu0 %12566  ;;  %v12573_v20 = vunpack.i.l.bf16 %v16647_v47 }
 0x270   :  { %v12568_v10 = vunpack.i.l.bf16 %v12567_v7  ;;  %v12569_v31 = vunpack.i.h.bf16 %v12567_v7 }
 0x272   :  { %v16653_v12 = vpop.permute.xlu1 %12581  ;;  %v4085_v2 = vsel %vm4032_vm6, %v4020_v41, %v12568_v10 }
 0x273   :  { %v12577_v19 = vpop.permute.xlu0 %12576  ;;  %v12584_v43 = vunpack.i.h.bf16 %v16653_v12  ;;  %v12583_v58 = vunpack.i.l.bf16 %v16653_v12  ;;  %v4087_v12 = vsel %vm4032_vm6, %v4022_v6, %v12573_v20 }
 0x274   :  { %v16660_v28 = vld [vmem:[#allocation4 + $0x62] sm:$0xff]  ;;  %v12578_v8 = vunpack.i.l.bf16 %v12577_v19  ;;  %v12579_v38 = vunpack.i.h.bf16 %v12577_v19 }
 0x275   :  { %v16662_v24 = vld [vmem:[#allocation4 + $0x60] sm:$0xff]  ;;  %v12825_v16 = vpack.i.bf16 %v16660_v28, %v16565_v49  ;;  %v4021_v49 = vsel %vm181_vm2, %v3957_v9, %v12559_v34  ;;  %v4152_v27 = vsel %vm4097_vm7, %v4087_v12, %v12583_v58 }
 0x276   :  { %v12850_v33 = vpack.i.bf16 %v16662_v24, %v16582_v4  ;;  %v12592_v13 = vpop.permute.xlu1 %12591  ;;  %v12574_v4 = vunpack.i.h.bf16 %v16647_v47  ;;  %v4086_v21 = vsel %vm4032_vm6, %v4021_v49, %v12569_v31  ;;  %v4150_v51 = vsel %vm4097_vm7, %v4085_v2, %v12578_v8 }
 0x277   :  { %v12587_v22 = vpop.permute.xlu0 %12586  ;;  %12826 = vrot.lane.b32.xlu0 %v12825_v16, %s18411_s21  ;;  %v4151_v11 = vsel %vm4097_vm7, %v4086_v21, %v12579_v38  ;;  %v12594_v25 = vunpack.i.h.bf16 %v12592_v13  ;;  %v12593_v59 = vunpack.i.l.bf16 %v12592_v13  ;;  %v1206_v21 = vld [vmem:[#allocation2 + $0x2d8] sm:$0xff] }
 0x278   :  { %12851 = vrot.lane.b32.xlu1 %v12850_v33, %s13362_s3  ;;  %v11328_v62 = vpop.f32.mrb[24].mxu0  ;;  %v12589_v35 = vunpack.i.h.bf16 %v12587_v22  ;;  %v12588_v15 = vunpack.i.l.bf16 %v12587_v22  ;;  %v4088_v0 = vsel %vm4032_vm6, %v4023_v61, %v12574_v4 }
 0x279   :  { %v4607_v23 = vadd.f32 %v16424_v48, %v11328_v62  ;;  %v4598_v40 = vpop.f32.mrb[25].mxu0  ;;  %v4153_v19 = vsel %vm4097_vm7, %v4088_v0, %v12584_v43  ;;  %v4217_v34 = vsel %vm4162_vm8, %v4152_v27, %v12593_v59  ;;  %v1208_v43 = vld [vmem:[#allocation2 + $0x2f0] sm:$0xff] }
 0x27a   :  { %v4599_v18 = vadd.f32 %v16424_v48, %v4598_v40  ;;  %v11329_v26 = vpop.f32.mrb[26].mxu0  ;;  %v16687_v5 = vpop.permute.xlu1 %12601  ;;  %v4215_v14 = vsel %vm4162_vm8, %v4150_v51, %v12588_v15  ;;  %v4216_v63 = vsel %vm4162_vm8, %v4151_v11, %v12589_v35  ;;  %v4218_v10 = vsel %vm4162_vm8, %v4153_v19, %v12594_v25  ;;  %v1207_v40 = vld [vmem:[#allocation2 + $0x2e8] sm:$0xff] }
 0x27b   :  { %v4783_v36 = vmax.f32 %v4607_v23, 0.0  ;;  %v4610_v32 = vadd.f32 %v16424_v48, %v11329_v26  ;;  %v12597_v47 = vpop.permute.xlu0 %12596  ;;  %v4601_v52 = vpop.f32.mrb[27].mxu0  ;;  %v12604_v62 = vunpack.i.h.bf16 %v16687_v5  ;;  %v12603_v23 = vunpack.i.l.bf16 %v16687_v5  ;;  %v1205_v26 = vld [vmem:[#allocation2 + $0x2d0] sm:$0xff] }
 0x27c   :  { %v4781_v29 = vmax.f32 %v4599_v18, 0.0  ;;  %v12599_v3 = vunpack.i.h.bf16 %v12597_v47  ;;  %v12598_v7 = vunpack.i.l.bf16 %v12597_v47  ;;  %v4602_v30 = vadd.f32 %v16424_v48, %v4601_v52 }
 0x27d   :  { %4847 = vst.msk [vmem:[#allocation3 + $0xd0] sm:$0xff] %vm181_vm2, %v4783_v36  ;;  %v4784_v53 = vmax.f32 %v4610_v32, 0.0  ;;  %v3831_v36 = vsel %vm71_vm0, %v1206_v21, %v12604_v62  ;;  %v3830_v5 = vsel %vm71_vm0, %v1205_v26, %v12603_v23 }
 0x27e   :  { %4845 = vst.msk [vmem:[#allocation3 + $0xc0] sm:$0xff] %vm181_vm2, %v4781_v29  ;;  %v4280_v54 = vsel %vm4227_vm9, %v4215_v14, %v12598_v7  ;;  %v4281_v60 = vsel %vm4227_vm9, %v4216_v63, %v12599_v3  ;;  %v4782_v56 = vmax.f32 %v4602_v30, 0.0  ;;  %v12612_v17 = vpop.permute.xlu1 %12611 }
 0x27f   :  { %4848 = vst.msk [vmem:[#allocation3 + $0xd8] sm:$0xff] %vm181_vm2, %v4784_v53  ;;  %v12607_v39 = vpop.permute.xlu0 %12606  ;;  %v4318_v44 = vpack.c.bf16 %v4281_v60, %v4280_v54  ;;  %v12614_v35 = vunpack.i.h.bf16 %v12612_v17  ;;  %v12613_v15 = vunpack.i.l.bf16 %v12612_v17 }
 0x280   :  { %4846 = vst.msk [vmem:[#allocation3 + $0xc8] sm:$0xff] %vm181_vm2, %v4782_v56  ;;  %v12609_v57 = vunpack.i.h.bf16 %v12607_v39  ;;  %v12608_v45 = vunpack.i.l.bf16 %v12607_v39 }
 0x281   :  { %11354 = vmatprep.mubr.msk.bf16.mxu0 %vm4367_vm10, %v4318_v44  ;;  %v3833_v52 = vsel %vm71_vm0, %v1208_v43, %v12614_v35  ;;  %v3832_v29 = vsel %vm71_vm0, %v1207_v40, %v12613_v15 }
 0x282   :  { %v4283_v42 = vsel %vm4227_vm9, %v4218_v10, %v12609_v57  ;;  %v4282_v31 = vsel %vm4227_vm9, %v4217_v34, %v12608_v45  ;;  %v12622_v16 = vpop.permute.xlu1 %12621 }
 0x283   :  { %v12617_v33 = vpop.permute.xlu0 %12616  ;;  %v4319_v46 = vpack.c.bf16 %v4283_v42, %v4282_v31  ;;  %v12624_v58 = vunpack.i.h.bf16 %v12622_v16  ;;  %v12623_v51 = vunpack.i.l.bf16 %v12622_v16  ;;  %v16744_v42 = vld [vmem:[#allocation4 + $0x61] sm:$0xff] }
 0x284   :  { %v12619_v11 = vunpack.i.h.bf16 %v12617_v33  ;;  %v12618_v32 = vunpack.i.l.bf16 %v12617_v33 }
 0x285   :  { %11355 = vmatmul.mubr.msk.bf16.gmra.mrb[52].mxu0 %vm4367_vm10, %v4319_v46  ;;  %v3897_v30 = vsel %vm3838_vm4, %v3832_v29, %v12623_v51  ;;  %v3898_v59 = vsel %vm3838_vm4, %v3833_v52, %v12624_v58 }
 0x286   :  { %v4911_v37 = vld [vmem:[#allocation3 + $0xd0] ss:$2 sm:$0xff]  ;;  %v4975_v9 = vld [vmem:[#allocation3 + $0xd1] ss:$2 sm:$0xff]  ;;  %v12632_v8 = vpop.permute.xlu1 %12631  ;;  %v3896_v53 = vsel %vm3838_vm4, %v3831_v36, %v12619_v11  ;;  %v3895_v17 = vsel %vm3838_vm4, %v3830_v5, %v12618_v32 }
 0x287   :  { %v5025_v13 = vmax.f32 %v4911_v37, %v4975_v9  ;;  %v4909_v50 = vld [vmem:[#allocation3 + $0xc0] ss:$2 sm:$0xff]  ;;  %v4973_v6 = vld [vmem:[#allocation3 + $0xc1] ss:$2 sm:$0xff]  ;;  %v12627_v41 = vpop.permute.xlu0 %12626  ;;  %v12633_v47 = vunpack.i.l.bf16 %v12632_v8  ;;  %v12634_v3 = vunpack.i.h.bf16 %v12632_v8 }
 0x288   :  { %v5024_v38 = vmax.f32 %v4909_v50, %v4973_v6  ;;  %v12628_v7 = vunpack.i.l.bf16 %v12627_v41  ;;  %v12629_v14 = vunpack.i.h.bf16 %v12627_v41 }
 0x289   :  { %v5063_v22 = vsel %vm181_vm2, %v5025_v13, -inf  ;;  %v3962_v12 = vsel %vm3903_vm5, %v3897_v30, %v12633_v47  ;;  %v3963_v57 = vsel %vm3903_vm5, %v3898_v59, %v12634_v3 }
 0x28a   :  { %v5062_v49 = vsel %vm181_vm2, %v5024_v38, -inf  ;;  %v16713_v4 = vpop.permute.xlu1 %12641  ;;  %v3960_v45 = vsel %vm3903_vm5, %v3895_v17, %v12628_v7  ;;  %v3961_v31 = vsel %vm3903_vm5, %v3896_v53, %v12629_v14 }
 0x28b   :  { %v5064_v20 = vmax.f32 %v5062_v49, %v5063_v22  ;;  %v12637_v2 = vpop.permute.xlu0 %12636  ;;  %v12643_v61 = vunpack.i.l.bf16 %v16713_v4  ;;  %v12644_v16 = vunpack.i.h.bf16 %v16713_v4 }
 0x28c   :  { %v12639_v54 = vunpack.i.h.bf16 %v12637_v2  ;;  %v12638_v60 = vunpack.i.l.bf16 %v12637_v2 }
 0x28d   :  { %5099 = vst.msk [vmem:[#allocation4 + $0x71] sm:$0xff] %vm181_vm2, %v5064_v20  ;;  %v4026_v9 = vsel %vm181_vm2, %v3962_v12, %v12643_v61  ;;  %v4027_v30 = vsel %vm181_vm2, %v3963_v57, %v12644_v16 }
 0x28e   :  { %v16718_v18 = vpop.permute.xlu1 %12651  ;;  %v4024_v8 = vsel %vm181_vm2, %v3960_v45, %v12638_v60  ;;  %v4025_v13 = vsel %vm181_vm2, %v3961_v31, %v12639_v54 }
 0x28f   :  { %v12647_v25 = vpop.permute.xlu0 %12646  ;;  %v12653_v41 = vunpack.i.l.bf16 %v16718_v18 }
 0x290   :  { %v12649_v0 = vunpack.i.h.bf16 %v12647_v25  ;;  %v12648_v39 = vunpack.i.l.bf16 %v12647_v25 }
 0x291   :  { %v4091_v53 = vsel %vm4032_vm6, %v4026_v9, %v12653_v41 }
 0x292   :  { %v16726_v63 = vpop.permute.xlu1 %12661  ;;  %v4089_v38 = vsel %vm4032_vm6, %v4024_v8, %v12648_v39  ;;  %v4090_v22 = vsel %vm4032_vm6, %v4025_v13, %v12649_v0 }
 0x293   :  { %v12657_v56 = vpop.permute.xlu0 %12656  ;;  %v12664_v4 = vunpack.i.h.bf16 %v16726_v63  ;;  %v12663_v35 = vunpack.i.l.bf16 %v16726_v63 }
 0x294   :  { %v16732_v44 = vld [vmem:[#allocation4 + $0x72] sm:$0xff]  ;;  %v12658_v33 = vunpack.i.l.bf16 %v12657_v56  ;;  %v12659_v50 = vunpack.i.h.bf16 %v12657_v56 }
 0x295   :  { %v16734_v27 = vld [vmem:[#allocation4 + $0x70] sm:$0xff]  ;;  %v5743_v34 = vpack.c.bf16 %v16732_v44, %v16660_v28  ;;  %v12870_v58 = vpack.i.bf16 %v16732_v44, %v16660_v28  ;;  %v4156_v56 = vsel %vm4097_vm7, %v4091_v53, %v12663_v35 }
 0x296   :  { %v16736_v19 = vld [vmem:[#allocation4 + $0x71] sm:$0xff]  ;;  %v12835_v10 = vpack.i.bf16 %v16734_v27, %v16662_v24  ;;  %v12672_v46 = vpop.permute.xlu1 %12671  ;;  %v12654_v24 = vunpack.i.h.bf16 %v16718_v18  ;;  %v4154_v15 = vsel %vm4097_vm7, %v4089_v38, %v12658_v33  ;;  %v4155_v51 = vsel %vm4097_vm7, %v4090_v22, %v12659_v50 }
 0x297   :  { %v12860_v37 = vpack.i.bf16 %v16736_v19, %v16744_v42  ;;  %v12667_v6 = vpop.permute.xlu0 %12666  ;;  %11374 = vmatprep.mubr.msk.bf16.mxu1 %vm181_vm2, %v5743_v34  ;;  %v12674_v18 = vunpack.i.h.bf16 %v12672_v46  ;;  %v12673_v3 = vunpack.i.l.bf16 %v12672_v46 }
 0x298   :  { %12836 = vrot.lane.b32.xlu0 %v12835_v10, %s18408_s25  ;;  %v11332_v49 = vpop.f32.mrb[28].mxu0  ;;  %v12669_v20 = vunpack.i.h.bf16 %v12667_v6  ;;  %v12668_v2 = vunpack.i.l.bf16 %v12667_v6  ;;  %v4092_v61 = vsel %vm4032_vm6, %v4027_v30, %v12654_v24 }
 0x299   :  { %12861 = vrot.lane.b32.xlu1 %v12860_v37, %s18411_s21  ;;  %v4623_v62 = vadd.f32 %v16424_v48, %v11332_v49  ;;  %v4614_v21 = vpop.f32.mrb[29].mxu0  ;;  %v4157_v17 = vsel %vm4097_vm7, %v4092_v61, %v12664_v4  ;;  %v4221_v39 = vsel %vm4162_vm8, %v4156_v56, %v12673_v3 }
 0x29a   :  { %v4615_v23 = vadd.f32 %v16424_v48, %v4614_v21  ;;  %v11333_v40 = vpop.f32.mrb[30].mxu0  ;;  %v16765_v43 = vpop.permute.xlu1 %12681  ;;  %v4219_v28 = vsel %vm4162_vm8, %v4154_v15, %v12668_v2  ;;  %v4220_v7 = vsel %vm4162_vm8, %v4155_v51, %v12669_v20  ;;  %v4222_v57 = vsel %vm4162_vm8, %v4157_v17, %v12674_v18  ;;  %v1209_v20 = vld [vmem:[#allocation2 + $0x300] sm:$0xff]  ;;  %v1210_v2 = vld [vmem:[#allocation2 + $0x308] sm:$0xff]  ;;  %v1211_v21 = vld [vmem:[#allocation2 + $0x318] sm:$0xff] }
 0x29b   :  { %v4787_v26 = vmax.f32 %v4623_v62, 0.0  ;;  %v4626_v11 = vadd.f32 %v16424_v48, %v11333_v40  ;;  %v12677_v25 = vpop.permute.xlu0 %12676  ;;  %v4617_v36 = vpop.f32.mrb[31].mxu0  ;;  %v12684_v41 = vunpack.i.h.bf16 %v16765_v43  ;;  %v12683_v38 = vunpack.i.l.bf16 %v16765_v43  ;;  %v1212_v40 = vld [vmem:[#allocation2 + $0x320] sm:$0xff] }
 0x29c   :  { %12846 = vrot.lane.b32.xlu0 %v12860_v37, %s13362_s3  ;;  %v4785_v32 = vmax.f32 %v4615_v23, 0.0  ;;  %v12679_v47 = vunpack.i.h.bf16 %v12677_v25  ;;  %v12678_v52 = vunpack.i.l.bf16 %v12677_v25  ;;  %v4618_v29 = vadd.f32 %v16424_v48, %v4617_v36 }
 0x29d   :  { %12871 = vrot.lane.b32.xlu1 %v12870_v58, %s18408_s25  ;;  %4851 = vst.msk [vmem:[#allocation3 + $0xf0] sm:$0xff] %vm181_vm2, %v4787_v26  ;;  %v4788_v5 = vmax.f32 %v4626_v11, 0.0  ;;  %v3835_v43 = vsel %vm71_vm0, %v1210_v2, %v12684_v41  ;;  %v3834_v25 = vsel %vm71_vm0, %v1209_v20, %v12683_v38  ;;  %v5229_v2 = vld [vmem:[#allocation4 + $0x91] sm:$0xff] }
 0x29e   :  { %4849 = vst.msk [vmem:[#allocation3 + $0xe0] sm:$0xff] %vm181_vm2, %v4785_v32  ;;  %v4284_v59 = vsel %vm4227_vm9, %v4219_v28, %v12678_v52  ;;  %v4285_v14 = vsel %vm4227_vm9, %v4220_v7, %v12679_v47  ;;  %v4786_v63 = vmax.f32 %v4618_v29, 0.0  ;;  %v12692_v48 = vpop.permute.xlu1 %12691 }
 0x29f   :  { %4852 = vst.msk [vmem:[#allocation3 + $0xf8] sm:$0xff] %vm181_vm2, %v4788_v5  ;;  %v12687_v54 = vpop.permute.xlu0 %12686  ;;  %v4320_v60 = vpack.c.bf16 %v4285_v14, %v4284_v59  ;;  %v12693_v49 = vunpack.i.l.bf16 %v12692_v48  ;;  %v12694_v35 = vunpack.i.h.bf16 %v12692_v48 }
 0x2a0   :  { %4850 = vst.msk [vmem:[#allocation3 + $0xe8] sm:$0xff] %vm181_vm2, %v4786_v63  ;;  %v12689_v12 = vunpack.i.h.bf16 %v12687_v54  ;;  %v12688_v0 = vunpack.i.l.bf16 %v12687_v54 }
 0x2a1   :  { %11358 = vmatprep.mubr.msk.bf16.mxu0 %vm4367_vm10, %v4320_v60  ;;  %v3836_v36 = vsel %vm71_vm0, %v1211_v21, %v12693_v49  ;;  %v3837_v52 = vsel %vm71_vm0, %v1212_v40, %v12694_v35 }
 0x2a2   :  { %v4287_v45 = vsel %vm4227_vm9, %v4222_v57, %v12689_v12  ;;  %v4286_v34 = vsel %vm4227_vm9, %v4221_v39, %v12688_v0  ;;  %v12702_v10 = vpop.permute.xlu1 %12701  ;;  %v5245_v0 = vld [vmem:[#allocation4 + $0x92] sm:$0xff] }
 0x2a3   :  { %v12697_v31 = vpop.permute.xlu0 %12696  ;;  %v4321_v16 = vpack.c.bf16 %v4287_v45, %v4286_v34  ;;  %v12703_v15 = vunpack.i.l.bf16 %v12702_v10  ;;  %v12704_v58 = vunpack.i.h.bf16 %v12702_v10 }
 0x2a4   :  { %v12699_v51 = vunpack.i.h.bf16 %v12697_v31  ;;  %v12698_v18 = vunpack.i.l.bf16 %v12697_v31 }
 0x2a5   :  { %11359 = vmatmul.mubr.msk.bf16.gmra.mrb[56].mxu0 %vm4367_vm10, %v4321_v16  ;;  %v3901_v29 = vsel %vm3838_vm4, %v3836_v36, %v12703_v15  ;;  %v3902_v5 = vsel %vm3838_vm4, %v3837_v52, %v12704_v58 }
 0x2a6   :  { %v4915_v33 = vld [vmem:[#allocation3 + $0xf0] ss:$2 sm:$0xff]  ;;  %v4979_v46 = vld [vmem:[#allocation3 + $0xf1] ss:$2 sm:$0xff]  ;;  %v12712_v37 = vpop.permute.xlu1 %12711  ;;  %v3900_v30 = vsel %vm3838_vm4, %v3835_v43, %v12699_v51  ;;  %v3899_v59 = vsel %vm3838_vm4, %v3834_v25, %v12698_v18  ;;  %vm8291_vm4 = vcmask 517120  }
 0x2a7   :  { %v5027_v9 = vmax.f32 %v4915_v33, %v4979_v46  ;;  %v4913_v8 = vld [vmem:[#allocation3 + $0xe0] ss:$2 sm:$0xff]  ;;  %v4977_v13 = vld [vmem:[#allocation3 + $0xe1] ss:$2 sm:$0xff]  ;;  %v12707_v50 = vpop.permute.xlu0 %12706  ;;  %v12714_v26 = vunpack.i.h.bf16 %v12712_v37  ;;  %v12713_v11 = vunpack.i.l.bf16 %v12712_v37 }
 0x2a8   :  { %v5026_v6 = vmax.f32 %v4913_v8, %v4977_v13  ;;  %v12708_v32 = vunpack.i.l.bf16 %v12707_v50  ;;  %v12709_v3 = vunpack.i.h.bf16 %v12707_v50 }
 0x2a9   :  { %v5066_v24 = vsel %vm181_vm2, %v5027_v9, -inf  ;;  %v3966_v63 = vsel %vm3903_vm5, %v3901_v29, %v12713_v11  ;;  %v3967_v48 = vsel %vm3903_vm5, %v3902_v5, %v12714_v26  ;;  %v16832_v11 = vld [vmem:[%s18414_s18] ss:$0 sm:$0xff] }
 0x2aa   :  { %v5065_v22 = vsel %vm181_vm2, %v5026_v6, -inf  ;;  %v12722_v4 = vpop.permute.xlu1 %12721  ;;  %v3964_v54 = vsel %vm3903_vm5, %v3899_v59, %v12708_v32  ;;  %v3965_v39 = vsel %vm3903_vm5, %v3900_v30, %v12709_v3 }
 0x2ab   :  { %v5067_v62 = vmax.f32 %v5065_v22, %v5066_v24  ;;  %v12717_v23 = vpop.permute.xlu0 %12716  ;;  %v12723_v28 = vunpack.i.l.bf16 %v12722_v4  ;;  %v12724_v14 = vunpack.i.h.bf16 %v12722_v4  ;;  %v5213_v4 = vld [vmem:[#allocation4 + $0x90] sm:$0xff] }
 0x2ac   :  { %v12719_v53 = vunpack.i.h.bf16 %v12717_v23  ;;  %v12718_v61 = vunpack.i.l.bf16 %v12717_v23 }
 0x2ad   :  { %5100 = vst.msk [vmem:[#allocation4 + $0x81] sm:$0xff] %vm181_vm2, %v5067_v62  ;;  %v4030_v57 = vsel %vm181_vm2, %v3966_v63, %v12723_v28  ;;  %v4031_v31 = vsel %vm181_vm2, %v3967_v48, %v12724_v14 }
 0x2ae   :  { %v12732_v47 = vpop.permute.xlu1 %12731  ;;  %v4028_v8 = vsel %vm181_vm2, %v3964_v54, %v12718_v61  ;;  %v4029_v13 = vsel %vm181_vm2, %v3965_v39, %v12719_v53 }
 0x2af   :  { %v12727_v7 = vpop.permute.xlu0 %12726  ;;  %v12734_v60 = vunpack.i.h.bf16 %v12732_v47  ;;  %v12733_v56 = vunpack.i.l.bf16 %v12732_v47 }
 0x2b0   :  { %v12728_v17 = vunpack.i.l.bf16 %v12727_v7  ;;  %v12729_v45 = vunpack.i.h.bf16 %v12727_v7 }
 0x2b1   :  { %v4095_v24 = vsel %vm4032_vm6, %v4030_v57, %v12733_v56  ;;  %v4096_v41 = vsel %vm4032_vm6, %v4031_v31, %v12734_v60 }
 0x2b2   :  { %v12742_v12 = vpop.permute.xlu1 %12741  ;;  %v4093_v38 = vsel %vm4032_vm6, %v4028_v8, %v12728_v17  ;;  %v4094_v62 = vsel %vm4032_vm6, %v4029_v13, %v12729_v45 }
 0x2b3   :  { %v12743_v34 = vunpack.i.l.bf16 %v12742_v12  ;;  %v12737_v10 = vpop.permute.xlu0 %12736  ;;  %v12744_v16 = vunpack.i.h.bf16 %v12742_v12 }
 0x2b4   :  { %v12739_v33 = vunpack.i.h.bf16 %v12737_v10  ;;  %v12738_v46 = vunpack.i.l.bf16 %v12737_v10  ;;  %v5244_v37 = vld [vmem:[#allocation4 + $0x82] sm:$0xff] }
 0x2b5   :  { %v5164_v9 = vld [vmem:[#allocation4 + $0x80] sm:$0xff]  ;;  %v5746_v50 = vpack.c.bf16 %v5245_v0, %v5244_v37  ;;  %v12855_v6 = vpack.i.bf16 %v5244_v37, %v16732_v44  ;;  %v4160_v21 = vsel %vm4097_vm7, %v4095_v24, %v12743_v34  ;;  %v4161_v23 = vsel %vm4097_vm7, %v4096_v41, %v12744_v16 }
 0x2b6   :  { %v12752_v22 = vpop.permute.xlu1 %12751  ;;  %v12880_v49 = vpack.i.bf16 %v5164_v9, %v16734_v27  ;;  %v16819_v20 = vld [vmem:[#allocation4 + $0x81] sm:$0xff]  ;;  %v4158_v40 = vsel %vm4097_vm7, %v4093_v38, %v12738_v46  ;;  %v4159_v58 = vsel %vm4097_vm7, %v4094_v62, %v12739_v33  ;;  %v12865_v36 = vpack.i.bf16 %v5213_v4, %v5164_v9 }
 0x2b7   :  { %v12754_v35 = vunpack.i.h.bf16 %v12752_v22  ;;  %v12753_v15 = vunpack.i.l.bf16 %v12752_v22  ;;  %v12747_v44 = vpop.permute.xlu0 %12746  ;;  %11375 = vmatmul.mubr.msk.bf16.gmra.mrb[4].mxu1 %vm181_vm2, %v5746_v50  ;;  %12856 = vrot.lane.b32.xlu0 %v12855_v6, %s18411_s21  ;;  %v12875_v32 = vpack.i.bf16 %v5229_v2, %v16819_v20  ;;  %v5109_v9 = vld [vmem:[#allocation4] sm:$0xff]  ;;  %v5173_v22 = vld [vmem:[#allocation4 + $0x11] sm:$0xff] }
 0x2b8   :  { %v12748_v51 = vunpack.i.l.bf16 %v12747_v44  ;;  %12881 = vrot.lane.b32.xlu1 %v12880_v49, %s13362_s3  ;;  %v11336_v18 = vpop.f32.mrb[32].mxu0  ;;  %v12749_v26 = vunpack.i.h.bf16 %v12747_v44  ;;  %v5174_v38 = vld [vmem:[#allocation4 + $0x21] sm:$0xff]  ;;  %v5110_v49 = vld [vmem:[#allocation4 + $0x10] sm:$0xff] }
 0x2b9   :  { %v4639_v43 = vadd.f32 %v16832_v11, %v11336_v18  ;;  %v4630_v25 = vpop.f32.mrb[33].mxu0  ;;  %v4225_v47 = vsel %vm4162_vm8, %v4160_v21, %v12753_v15  ;;  %v4226_v52 = vsel %vm4162_vm8, %v4161_v23, %v12754_v35 }
 0x2ba   :  { %v4223_v29 = vsel %vm4162_vm8, %v4158_v40, %v12748_v51  ;;  %v4631_v3 = vadd.f32 %v16832_v11, %v4630_v25  ;;  %v11337_v28 = vpop.f32.mrb[34].mxu0  ;;  %v12762_v7 = vpop.permute.xlu1 %12761  ;;  %v4224_v56 = vsel %vm4162_vm8, %v4159_v58, %v12749_v26 }
 0x2bb   :  { %v4791_v5 = vmax.f32 %v4639_v43, 0.0  ;;  %v4642_v30 = vadd.f32 %v16832_v11, %v11337_v28  ;;  %v12764_v59 = vunpack.i.h.bf16 %v12762_v7  ;;  %v12763_v14 = vunpack.i.l.bf16 %v12762_v7  ;;  %v12757_v63 = vpop.permute.xlu0 %12756  ;;  %v4633_v48 = vpop.f32.mrb[35].mxu0  ;;  %12866 = vrot.lane.b32.xlu0 %v12865_v36, %s18408_s25 }
 0x2bc   :  { %v4789_v53 = vmax.f32 %v4631_v3, 0.0  ;;  %v12759_v61 = vunpack.i.h.bf16 %v12757_v63  ;;  %v12758_v54 = vunpack.i.l.bf16 %v12757_v63  ;;  %v4634_v60 = vadd.f32 %v16832_v11, %v4633_v48 }
 0x2bd   :  { %4855 = vst.msk [vmem:[#allocation3 + $0x110] sm:$0xff] %vm181_vm2, %v4791_v5  ;;  %v4792_v17 = vmax.f32 %v4642_v30, 0.0  ;;  %v4290_v12 = vsel %vm4227_vm9, %v4225_v47, %v12763_v14  ;;  %v4291_v0 = vsel %vm4227_vm9, %v4226_v52, %v12764_v59 }
 0x2be   :  { %4853 = vst.msk [vmem:[#allocation3 + $0x100] sm:$0xff] %vm181_vm2, %v4789_v53  ;;  %v4288_v39 = vsel %vm4227_vm9, %v4223_v29, %v12758_v54  ;;  %v4289_v57 = vsel %vm4227_vm9, %v4224_v56, %v12759_v61  ;;  %v4790_v45 = vmax.f32 %v4634_v60, 0.0  ;;  %v12772_v34 = vpop.permute.xlu1 %12771  ;;  %v4323_v10 = vpack.c.bf16 %v4291_v0, %v4290_v12 }
 0x2bf   :  { %4856 = vst.msk [vmem:[#allocation3 + $0x118] sm:$0xff] %vm181_vm2, %v4792_v17  ;;  %12876 = vrot.lane.b32.xlu0 %v12875_v32, %s13362_s3  ;;  %v12767_v31 = vpop.permute.xlu0 %12766  ;;  %v4322_v16 = vpack.c.bf16 %v4289_v57, %v4288_v39  ;;  %v12773_v33 = vunpack.i.l.bf16 %v12772_v34  ;;  %v12774_v8 = vunpack.i.h.bf16 %v12772_v34 }
 0x2c0   :  { %4854 = vst.msk [vmem:[#allocation3 + $0x108] sm:$0xff] %vm181_vm2, %v4790_v45  ;;  %v12769_v46 = vunpack.i.h.bf16 %v12767_v31  ;;  %v12768_v37 = vunpack.i.l.bf16 %v12767_v31  ;;  %v5112_v31 = vld [vmem:[#allocation4 + $0x30] sm:$0xff] }
 0x2c1   :  { %11362 = vmatprep.mubr.msk.bf16.mxu0 %vm4367_vm10, %v4322_v16  ;;  %v5638_v4 = vsel %vm181_vm2, %v5109_v9, %v12773_v33  ;;  %v5639_v44 = vsel %vm181_vm2, %v5110_v49, %v12774_v8  ;;  %v5175_v33 = vld [vmem:[#allocation4 + $0x31] sm:$0xff] }
 0x2c2   :  { %11363 = vmatmul.mubr.msk.bf16.gmra.mrb[60].mxu0 %vm4367_vm10, %v4323_v10  ;;  %v12782_v13 = vpop.permute.xlu1 %12781  ;;  %v5688_v35 = vsel %vm181_vm2, %v5174_v38, %v12769_v46  ;;  %v5687_v15 = vsel %vm181_vm2, %v5173_v22, %v12768_v37  ;;  %v5111_v10 = vld [vmem:[#allocation4 + $0x20] sm:$0xff] }
 0x2c3   :  { %v12777_v50 = vpop.permute.xlu0 %12776  ;;  %v12784_v6 = vunpack.i.h.bf16 %v12782_v13  ;;  %v12783_v24 = vunpack.i.l.bf16 %v12782_v13  ;;  %v5133_v13 = vld [vmem:[#allocation4 + $0xa1] sm:$0xff] }
 0x2c4   :  { %v12778_v41 = vunpack.i.l.bf16 %v12777_v50  ;;  %v12779_v2 = vunpack.i.h.bf16 %v12777_v50 }
 0x2c5   :  { %v5654_v23 = vsel %vm4227_vm9, %v5638_v4, %v12783_v24  ;;  %v5655_v26 = vsel %vm4227_vm9, %v5639_v44, %v12784_v6 }
 0x2c6   :  { %v4919_v62 = vld [vmem:[#allocation3 + $0x110] ss:$2 sm:$0xff]  ;;  %v4983_v21 = vld [vmem:[#allocation3 + $0x111] ss:$2 sm:$0xff]  ;;  %v12792_v40 = vpop.permute.xlu1 %12791  ;;  %v5703_v47 = vsel %vm4227_vm9, %v5687_v15, %v12778_v41  ;;  %v5704_v28 = vsel %vm4227_vm9, %v5688_v35, %v12779_v2 }
 0x2c7   :  { %v5029_v58 = vmax.f32 %v4919_v62, %v4983_v21  ;;  %v4917_v51 = vld [vmem:[#allocation3 + $0x100] ss:$2 sm:$0xff]  ;;  %v4981_v18 = vld [vmem:[#allocation3 + $0x101] ss:$2 sm:$0xff]  ;;  %v12787_v43 = vpop.permute.xlu0 %12786  ;;  %v12794_v25 = vunpack.i.h.bf16 %v12792_v40  ;;  %v12793_v36 = vunpack.i.l.bf16 %v12792_v40 }
 0x2c8   :  { %v5028_v32 = vmax.f32 %v4917_v51, %v4981_v18  ;;  %v12789_v52 = vunpack.i.h.bf16 %v12787_v43  ;;  %v12788_v29 = vunpack.i.l.bf16 %v12787_v43 }
 0x2c9   :  { %v5069_v3 = vsel %vm181_vm2, %v5029_v58, -inf  ;;  %v5671_v7 = vsel %vm5670_vm12, %v5654_v23, %v12793_v36  ;;  %v5672_v5 = vsel %vm5670_vm12, %v5655_v26, %v12794_v25  ;;  %v5149_v58 = vld [vmem:[#allocation4 + $0xa2] sm:$0xff] }
 0x2ca   :  { %v5068_v30 = vsel %vm181_vm2, %v5028_v32, -inf  ;;  %v5735_v59 = vpack.c.bf16 %v5672_v5, %v5671_v7  ;;  %v12802_v14 = vpop.permute.xlu1 %12801  ;;  %v5719_v63 = vsel %vm5670_vm12, %v5703_v47, %v12788_v29  ;;  %v5720_v48 = vsel %vm5670_vm12, %v5704_v28, %v12789_v52 }
 0x2cb   :  { %v5070_v53 = vmax.f32 %v5068_v30, %v5069_v3  ;;  %v12797_v61 = vpop.permute.xlu0 %12796  ;;  %v5736_v54 = vpack.c.bf16 %v5720_v48, %v5719_v63  ;;  %v12804_v56 = vunpack.i.h.bf16 %v12802_v14  ;;  %v12803_v17 = vunpack.i.l.bf16 %v12802_v14 }
 0x2cc   :  { %v12799_v60 = vunpack.i.h.bf16 %v12797_v61  ;;  %v12798_v0 = vunpack.i.l.bf16 %v12797_v61 }
 0x2cd   :  { %5101 = vst.msk [vmem:[#allocation4 + $0xb1] sm:$0xff] %vm181_vm2, %v5070_v53  ;;  %5966 = vmatprep.mubr.bf16.mxu0 %v5736_v54  ;;  %v5641_v37 = vsel %vm181_vm2, %v5112_v31, %v12804_v56  ;;  %v5640_v9 = vsel %vm181_vm2, %v5111_v10, %v12803_v17 }
 0x2ce   :  { %5967 = vmatmul.mubr.bf16.vlgmr.msra.gmra.mrb[64].mxu0 %v5735_v59  ;;  %v12812_v12 = vpop.permute.xlu1 %12811  ;;  %v5690_v46 = vsel %vm181_vm2, %v16616_v55, %v12799_v60  ;;  %v5689_v50 = vsel %vm181_vm2, %v5175_v33, %v12798_v0 }
 0x2cf   :  { %v12807_v39 = vpop.permute.xlu0 %12806  ;;  %v12813_v57 = vunpack.i.l.bf16 %v12812_v12  ;;  %v12814_v34 = vunpack.i.h.bf16 %v12812_v12 }
 0x2d0   :  { %v12808_v45 = vunpack.i.l.bf16 %v12807_v39  ;;  %v12809_v16 = vunpack.i.h.bf16 %v12807_v39 }
 0x2d1   :  { %v5656_v6 = vsel %vm4227_vm9, %v5640_v9, %v12813_v57  ;;  %v5657_v49 = vsel %vm4227_vm9, %v5641_v37, %v12814_v34 }
 0x2d2   :  { %v12822_v8 = vpop.permute.xlu1 %12821  ;;  %v5705_v22 = vsel %vm4227_vm9, %v5689_v50, %v12808_v45  ;;  %v5706_v62 = vsel %vm4227_vm9, %v5690_v46, %v12809_v16 }
 0x2d3   :  { %v12817_v24 = vpop.permute.xlu0 %12816  ;;  %v12824_v41 = vunpack.i.h.bf16 %v12822_v8  ;;  %v12823_v38 = vunpack.i.l.bf16 %v12822_v8 }
 0x2d4   :  { %v12819_v4 = vunpack.i.h.bf16 %v12817_v24  ;;  %v12818_v2 = vunpack.i.l.bf16 %v12817_v24  ;;  %v16878_v55 = vld [vmem:[#allocation4 + $0xb1] sm:$0xff] }
 0x2d5   :  { %v12890_v21 = vpack.i.bf16 %v16878_v55, %v5133_v13  ;;  %v5673_v35 = vsel %vm5670_vm12, %v5656_v6, %v12823_v38  ;;  %v5674_v15 = vsel %vm5670_vm12, %v5657_v49, %v12824_v41  ;;  %v5150_v51 = vld [vmem:[#allocation4 + $0xb2] sm:$0xff] }
 0x2d6   :  { %v5721_v44 = vsel %vm5670_vm12, %v5705_v22, %v12818_v2  ;;  %v5722_v23 = vsel %vm5670_vm12, %v5706_v62, %v12819_v4  ;;  %v5738_v40 = vpack.c.bf16 %v5674_v15, %v5673_v35  ;;  %v12900_v36 = vpack.i.bf16 %v5150_v51, %v5149_v58  ;;  %v16901_v12 = vld [vmem:[#allocation4 + $0xb0] sm:$0xff]  ;;  %v12832_v13 = vpop.permute.xlu1 %12831 }
 0x2d7   :  { %12891 = vrot.lane.b32.xlu1 %v12890_v21, %s18411_s21  ;;  %v5739_v18 = vpack.c.bf16 %v5722_v23, %v5721_v44  ;;  %v12834_v21 = vunpack.i.h.bf16 %v12832_v13  ;;  %v12833_v35 = vunpack.i.l.bf16 %v12832_v13 }
 0x2d8   :  { %v11340_v26 = vpop.f32.mrb[36].mxu0 }
 0x2d9   :  { %v4655_v43 = vadd.f32 %v16832_v11, %v11340_v26  ;;  %v4646_v25 = vpop.f32.mrb[37].mxu0  ;;  %5974 = vmatprep.mubr.bf16.mxu0 %v5739_v18 }
 0x2da   :  { %v4647_v32 = vadd.f32 %v16832_v11, %v4646_v25  ;;  %v11341_v47 = vpop.f32.mrb[38].mxu0  ;;  %5975 = vmatmul.mubr.bf16.gmra.mrb[68].mxu0 %v5738_v40  ;;  %v12842_v24 = vpop.permute.xlu1 %12841  ;;  %v5113_v25 = vld [vmem:[#allocation4 + $0x40] sm:$0xff] }
 0x2db   :  { %v4795_v52 = vmax.f32 %v4655_v43, 0.0  ;;  %v4658_v29 = vadd.f32 %v16832_v11, %v11341_v47  ;;  %v4649_v3 = vpop.f32.mrb[39].mxu0  ;;  %12901 = vrot.lane.b32.xlu1 %v12900_v36, %s18408_s25  ;;  %v12844_v44 = vunpack.i.h.bf16 %v12842_v24  ;;  %v12843_v23 = vunpack.i.l.bf16 %v12842_v24  ;;  %v5114_v36 = vld [vmem:[#allocation4 + $0x50] sm:$0xff] }
 0x2dc   :  { %v4793_v28 = vmax.f32 %v4647_v32, 0.0  ;;  %v4650_v7 = vadd.f32 %v16832_v11, %v4649_v3  ;;  %v5643_v3 = vsel %vm181_vm2, %v5114_v36, %v12834_v21 }
 0x2dd   :  { %4859 = vst.msk [vmem:[#allocation3 + $0x130] sm:$0xff] %vm181_vm2, %v4795_v52  ;;  %v4796_v5 = vmax.f32 %v4658_v29, 0.0 }
 0x2de   :  { %4857 = vst.msk [vmem:[#allocation3 + $0x120] sm:$0xff] %vm181_vm2, %v4793_v28  ;;  %v4794_v30 = vmax.f32 %v4650_v7, 0.0  ;;  %v5642_v28 = vsel %vm181_vm2, %v5113_v25, %v12833_v35 }
 0x2df   :  { %4860 = vst.msk [vmem:[#allocation3 + $0x138] sm:$0xff] %vm181_vm2, %v4796_v5  ;;  %v5658_v7 = vsel %vm4227_vm9, %v5642_v28, %v12843_v23  ;;  %v5659_v5 = vsel %vm4227_vm9, %v5643_v3, %v12844_v44 }
 0x2e0   :  { %4858 = vst.msk [vmem:[#allocation3 + $0x128] sm:$0xff] %vm181_vm2, %v4794_v30  ;;  %v5177_v30 = vld [vmem:[#allocation4 + $0x51] sm:$0xff] }
 0x2e6   :  { %v4923_v59 = vld [vmem:[#allocation3 + $0x130] ss:$2 sm:$0xff]  ;;  %v4987_v14 = vld [vmem:[#allocation3 + $0x131] ss:$2 sm:$0xff] }
 0x2e7   :  { %v5031_v63 = vmax.f32 %v4923_v59, %v4987_v14  ;;  %v4921_v48 = vld [vmem:[#allocation3 + $0x120] ss:$2 sm:$0xff]  ;;  %v4985_v53 = vld [vmem:[#allocation3 + $0x121] ss:$2 sm:$0xff] }
 0x2e8   :  { %v5030_v61 = vmax.f32 %v4921_v48, %v4985_v53 }
 0x2e9   :  { %v5072_v54 = vsel %vm181_vm2, %v5031_v63, -inf  ;;  %v12827_v41 = vpop.permute.xlu0 %12826 }
 0x2ea   :  { %v5071_v60 = vsel %vm181_vm2, %v5030_v61, -inf  ;;  %v12852_v49 = vpop.permute.xlu1 %12851  ;;  %v12828_v18 = vunpack.i.l.bf16 %v12827_v41 }
 0x2eb   :  { %v5073_v56 = vmax.f32 %v5071_v60, %v5072_v54  ;;  %v12854_v26 = vunpack.i.h.bf16 %v12852_v49  ;;  %v12853_v32 = vunpack.i.l.bf16 %v12852_v49 }
 0x2ec   :  { %v5691_v63 = vsel %vm181_vm2, %v5177_v30, %v12828_v18 }
 0x2ed   :  { %5102 = vst.msk [vmem:[#allocation4 + $0xc1] sm:$0xff] %vm181_vm2, %v5073_v56  ;;  %v5675_v60 = vsel %vm5670_vm12, %v5658_v7, %v12853_v32  ;;  %v5676_v56 = vsel %vm5670_vm12, %v5659_v5, %v12854_v26 }
 0x2f4   :  { %v16899_v17 = vld [vmem:[#allocation4 + $0xc2] sm:$0xff] }
 0x2f5   :  { %v16903_v0 = vld [vmem:[#allocation4 + $0xc0] sm:$0xff]  ;;  %v12885_v39 = vpack.i.bf16 %v16899_v17, %v5150_v51  ;;  %v12829_v51 = vunpack.i.h.bf16 %v12827_v41 }
 0x2f6   :  { %v12910_v57 = vpack.i.bf16 %v16903_v0, %v16901_v12 }
 0x2f7   :  { %12886 = vrot.lane.b32.xlu0 %v12885_v39, %s18411_s21  ;;  %v5692_v14 = vsel %vm181_vm2, %v16744_v42, %v12829_v51  ;;  %v16934_v42 = vld [vmem:[#allocation4 + $0xc1] sm:$0xff] }
 0x2f8   :  { %12911 = vrot.lane.b32.xlu1 %v12910_v57, %s13362_s3  ;;  %v11344_v45 = vpop.f32.mrb[40].mxu0 }
 0x2f9   :  { %v4671_v34 = vadd.f32 %v16832_v11, %v11344_v45  ;;  %v4662_v10 = vpop.f32.mrb[41].mxu0 }
 0x2fa   :  { %v4663_v31 = vadd.f32 %v16832_v11, %v4662_v10  ;;  %v11345_v16 = vpop.f32.mrb[42].mxu0 }
 0x2fb   :  { %v4799_v33 = vmax.f32 %v4671_v34, 0.0  ;;  %v4674_v46 = vadd.f32 %v16832_v11, %v11345_v16  ;;  %v4665_v37 = vpop.f32.mrb[43].mxu0  ;;  %v5741_v34 = vpack.c.bf16 %v5676_v56, %v5675_v60 }
 0x2fc   :  { %v4797_v9 = vmax.f32 %v4663_v31, 0.0  ;;  %v4666_v8 = vadd.f32 %v16832_v11, %v4665_v37 }
 0x2fd   :  { %4863 = vst.msk [vmem:[#allocation3 + $0x150] sm:$0xff] %vm181_vm2, %v4799_v33  ;;  %v4800_v50 = vmax.f32 %v4674_v46, 0.0 }
 0x2fe   :  { %4861 = vst.msk [vmem:[#allocation3 + $0x140] sm:$0xff] %vm181_vm2, %v4797_v9  ;;  %v4798_v6 = vmax.f32 %v4666_v8, 0.0 }
 0x2ff   :  { %4864 = vst.msk [vmem:[#allocation3 + $0x158] sm:$0xff] %vm181_vm2, %v4800_v50 }
 0x300   :  { %4862 = vst.msk [vmem:[#allocation3 + $0x148] sm:$0xff] %vm181_vm2, %v4798_v6 }
 0x306   :  { %v4927_v38 = vld [vmem:[#allocation3 + $0x150] ss:$2 sm:$0xff]  ;;  %v4991_v22 = vld [vmem:[#allocation3 + $0x151] ss:$2 sm:$0xff] }
 0x307   :  { %v5033_v4 = vmax.f32 %v4927_v38, %v4991_v22  ;;  %v4925_v2 = vld [vmem:[#allocation3 + $0x140] ss:$2 sm:$0xff]  ;;  %v4989_v62 = vld [vmem:[#allocation3 + $0x141] ss:$2 sm:$0xff] }
 0x308   :  { %v5032_v15 = vmax.f32 %v4925_v2, %v4989_v62 }
 0x309   :  { %v5075_v40 = vsel %vm181_vm2, %v5033_v4, -inf }
 0x30a   :  { %v12837_v58 = vpop.permute.xlu0 %12836  ;;  %v5074_v43 = vsel %vm181_vm2, %v5032_v15, -inf }
 0x30b   :  { %v5076_v47 = vmax.f32 %v5074_v43, %v5075_v40  ;;  %v12839_v52 = vunpack.i.h.bf16 %v12837_v58  ;;  %v12838_v29 = vunpack.i.l.bf16 %v12837_v58 }
 0x30d   :  { %5103 = vst.msk [vmem:[#allocation4 + $0xd1] sm:$0xff] %vm181_vm2, %v5076_v47  ;;  %v5707_v61 = vsel %vm4227_vm9, %v5691_v63, %v12838_v29  ;;  %v5708_v54 = vsel %vm4227_vm9, %v5692_v14, %v12839_v52 }
 0x30e   :  { %v12847_v59 = vpop.permute.xlu0 %12846 }
 0x30f   :  { %v12849_v48 = vunpack.i.h.bf16 %v12847_v59  ;;  %v12848_v53 = vunpack.i.l.bf16 %v12847_v59  ;;  %v5115_v59 = vld [vmem:[#allocation4 + $0x60] sm:$0xff] }
 0x311   :  { %v5723_v39 = vsel %vm5670_vm12, %v5707_v61, %v12848_v53  ;;  %v5724_v57 = vsel %vm5670_vm12, %v5708_v54, %v12849_v48 }
 0x312   :  { %v5742_v45 = vpack.c.bf16 %v5724_v57, %v5723_v39 }
 0x314   :  { %5982 = vmatprep.mubr.bf16.mxu0 %v5742_v45  ;;  %v16936_v10 = vld [vmem:[#allocation4 + $0xd2] sm:$0xff] }
 0x315   :  { %5983 = vmatmul.mubr.bf16.gmra.mrb[72].mxu0 %v5741_v34  ;;  %v16938_v31 = vld [vmem:[#allocation4 + $0xd0] sm:$0xff]  ;;  %v5749_v33 = vpack.c.bf16 %v16936_v10, %v16899_v17  ;;  %v12930_v24 = vpack.i.bf16 %v16936_v10, %v16899_v17  ;;  %v12862_v17 = vpop.permute.xlu1 %12861 }
 0x316   :  { %v16940_v16 = vld [vmem:[#allocation4 + $0xd1] sm:$0xff]  ;;  %v12895_v46 = vpack.i.bf16 %v16938_v31, %v16903_v0  ;;  %v12863_v32 = vunpack.i.l.bf16 %v12862_v17  ;;  %v12864_v29 = vunpack.i.h.bf16 %v12862_v17 }
 0x317   :  { %v12920_v37 = vpack.i.bf16 %v16940_v16, %v16934_v42  ;;  %11378 = vmatprep.mubr.msk.bf16.mxu1 %vm181_vm2, %v5749_v33 }
 0x318   :  { %12896 = vrot.lane.b32.xlu0 %v12895_v46, %s18408_s25  ;;  %v11348_v9 = vpop.f32.mrb[44].mxu0  ;;  %v5644_v53 = vsel %vm181_vm2, %v5115_v59, %v12863_v32  ;;  %v5645_v60 = vsel %vm181_vm2, %v16734_v27, %v12864_v29 }
 0x319   :  { %12921 = vrot.lane.b32.xlu1 %v12920_v37, %s18411_s21  ;;  %v4687_v8 = vadd.f32 %v16832_v11, %v11348_v9  ;;  %v4678_v13 = vpop.f32.mrb[45].mxu0  ;;  %v12872_v40 = vpop.permute.xlu1 %12871 }
 0x31a   :  { %v4679_v50 = vadd.f32 %v16832_v11, %v4678_v13  ;;  %v11349_v6 = vpop.f32.mrb[46].mxu0  ;;  %v12873_v3 = vunpack.i.l.bf16 %v12872_v40  ;;  %v12874_v14 = vunpack.i.h.bf16 %v12872_v40 }
 0x31b   :  { %v4803_v41 = vmax.f32 %v4687_v8, 0.0  ;;  %v4690_v38 = vadd.f32 %v16832_v11, %v11349_v6  ;;  %v4681_v22 = vpop.f32.mrb[47].mxu0 }
 0x31c   :  { %12906 = vrot.lane.b32.xlu0 %v12920_v37, %s13362_s3  ;;  %v4801_v49 = vmax.f32 %v4679_v50, 0.0  ;;  %v4682_v4 = vadd.f32 %v16832_v11, %v4681_v22  ;;  %v5660_v56 = vsel %vm4227_vm9, %v5644_v53, %v12873_v3  ;;  %v5661_v46 = vsel %vm4227_vm9, %v5645_v60, %v12874_v14 }
 0x31d   :  { %12931 = vrot.lane.b32.xlu1 %v12930_v24, %s18408_s25  ;;  %4867 = vst.msk [vmem:[#allocation3 + $0x170] sm:$0xff] %vm181_vm2, %v4803_v41  ;;  %v4804_v2 = vmax.f32 %v4690_v38, 0.0 }
 0x31e   :  { %4865 = vst.msk [vmem:[#allocation3 + $0x160] sm:$0xff] %vm181_vm2, %v4801_v49  ;;  %v4802_v62 = vmax.f32 %v4682_v4, 0.0 }
 0x31f   :  { %4868 = vst.msk [vmem:[#allocation3 + $0x178] sm:$0xff] %vm181_vm2, %v4804_v2 }
 0x320   :  { %4866 = vst.msk [vmem:[#allocation3 + $0x168] sm:$0xff] %vm181_vm2, %v4802_v62 }
 0x326   :  { %v4931_v21 = vld [vmem:[#allocation3 + $0x170] ss:$2 sm:$0xff]  ;;  %v4995_v35 = vld [vmem:[#allocation3 + $0x171] ss:$2 sm:$0xff] }
 0x327   :  { %v5035_v15 = vmax.f32 %v4931_v21, %v4995_v35  ;;  %v4929_v44 = vld [vmem:[#allocation3 + $0x160] ss:$2 sm:$0xff]  ;;  %v4993_v23 = vld [vmem:[#allocation3 + $0x161] ss:$2 sm:$0xff] }
 0x328   :  { %v5034_v58 = vmax.f32 %v4929_v44, %v4993_v23 }
 0x329   :  { %v5078_v51 = vsel %vm181_vm2, %v5035_v15, -inf  ;;  %v12857_v18 = vpop.permute.xlu0 %12856 }
 0x32a   :  { %v5077_v26 = vsel %vm181_vm2, %v5034_v58, -inf  ;;  %v16965_v43 = vpop.f32.mrb[0].mxu1  ;;  %v12882_v47 = vpop.permute.xlu1 %12881  ;;  %v12859_v5 = vunpack.i.h.bf16 %v12857_v18  ;;  %v12858_v30 = vunpack.i.l.bf16 %v12857_v18 }
 0x32b   :  { %v5079_v25 = vmax.f32 %v5077_v26, %v5078_v51  ;;  %v16967_v36 = vpop.f32.mrb[1].mxu1  ;;  %v12884_v61 = vunpack.i.h.bf16 %v12882_v47  ;;  %v12883_v54 = vunpack.i.l.bf16 %v12882_v47 }
 0x32c   :  { %v16969_v52 = vpop.f32.mrb[2].mxu1  ;;  %v5694_v57 = vsel %vm181_vm2, %v16819_v20, %v12859_v5  ;;  %v5693_v45 = vsel %vm181_vm2, %v16736_v19, %v12858_v30 }
 0x32d   :  { %5104 = vst.msk [vmem:[#allocation4 + $0xe1] sm:$0xff] %vm181_vm2, %v5079_v25  ;;  %v16972_v28 = vpop.f32.mrb[3].mxu1  ;;  %v12867_v7 = vpop.permute.xlu0 %12866  ;;  %v5677_v50 = vsel %vm5670_vm12, %v5660_v56, %v12883_v54  ;;  %v5678_v19 = vsel %vm5670_vm12, %v5661_v46, %v12884_v61 }
 0x32e   :  { %v12869_v63 = vunpack.i.h.bf16 %v12867_v7  ;;  %v12868_v48 = vunpack.i.l.bf16 %v12867_v7  ;;  %v5744_v38 = vpack.c.bf16 %v5678_v19, %v5677_v50 }
 0x330   :  { %v5709_v37 = vsel %vm4227_vm9, %v5693_v45, %v12868_v48  ;;  %v5710_v9 = vsel %vm4227_vm9, %v5694_v57, %v12869_v63 }
 0x331   :  { %v12877_v39 = vpop.permute.xlu0 %12876 }
 0x332   :  { %v12879_v34 = vunpack.i.h.bf16 %v12877_v39  ;;  %v12878_v33 = vunpack.i.l.bf16 %v12877_v39 }
 0x334   :  { %v16985_v8 = vld [vmem:[#allocation4 + $0xe2] sm:$0xff]  ;;  %v5725_v13 = vsel %vm5670_vm12, %v5709_v37, %v12878_v33  ;;  %v5726_v20 = vsel %vm5670_vm12, %v5710_v9, %v12879_v34 }
 0x335   :  { %v16987_v27 = vld [vmem:[#allocation4 + $0xe0] sm:$0xff]  ;;  %v12915_v6 = vpack.i.bf16 %v16985_v8, %v16936_v10  ;;  %v5745_v41 = vpack.c.bf16 %v5726_v20, %v5725_v13 }
 0x336   :  { %v12940_v24 = vpack.i.bf16 %v16987_v27, %v16938_v31  ;;  %v17050_v3 = vld [vmem:[#allocation4 + $0xe1] sm:$0xff] }
 0x337   :  { %12916 = vrot.lane.b32.xlu0 %v12915_v6, %s18411_s21  ;;  %5990 = vmatprep.mubr.bf16.mxu0 %v5745_v41 }
 0x338   :  { %12941 = vrot.lane.b32.xlu1 %v12940_v24, %s13362_s3  ;;  %v11352_v10 = vpop.f32.mrb[48].mxu0  ;;  %5991 = vmatmul.mubr.bf16.gmra.mrb[76].mxu0 %v5744_v38 }
 0x339   :  { %v4703_v22 = vadd.f32 %v16832_v11, %v11352_v10  ;;  %v4694_v49 = vpop.f32.mrb[49].mxu0 }
 0x33a   :  { %v4695_v4 = vadd.f32 %v16832_v11, %v4694_v49  ;;  %v11353_v2 = vpop.f32.mrb[50].mxu0 }
 0x33b   :  { %v4807_v62 = vmax.f32 %v4703_v22, 0.0  ;;  %v4706_v17 = vadd.f32 %v16832_v11, %v11353_v2  ;;  %v4697_v21 = vpop.f32.mrb[51].mxu0 }
 0x33c   :  { %v4805_v35 = vmax.f32 %v4695_v4, 0.0  ;;  %v4698_v15 = vadd.f32 %v16832_v11, %v4697_v21 }
 0x33d   :  { %4871 = vst.msk [vmem:[#allocation3 + $0x190] sm:$0xff] %vm181_vm2, %v4807_v62  ;;  %v4808_v44 = vmax.f32 %v4706_v17, 0.0 }
 0x33e   :  { %4869 = vst.msk [vmem:[#allocation3 + $0x180] sm:$0xff] %vm181_vm2, %v4805_v35  ;;  %v4806_v23 = vmax.f32 %v4698_v15, 0.0 }
 0x33f   :  { %4872 = vst.msk [vmem:[#allocation3 + $0x198] sm:$0xff] %vm181_vm2, %v4808_v44 }
 0x340   :  { %4870 = vst.msk [vmem:[#allocation3 + $0x188] sm:$0xff] %vm181_vm2, %v4806_v23 }
 0x346   :  { %v4935_v40 = vld [vmem:[#allocation3 + $0x190] ss:$2 sm:$0xff]  ;;  %v4999_v58 = vld [vmem:[#allocation3 + $0x191] ss:$2 sm:$0xff] }
 0x347   :  { %v5037_v51 = vmax.f32 %v4935_v40, %v4999_v58  ;;  %v4933_v18 = vld [vmem:[#allocation3 + $0x180] ss:$2 sm:$0xff]  ;;  %v4997_v26 = vld [vmem:[#allocation3 + $0x181] ss:$2 sm:$0xff] }
 0x348   :  { %v5036_v25 = vmax.f32 %v4933_v18, %v4997_v26 }
 0x349   :  { %v5081_v32 = vsel %vm181_vm2, %v5037_v51, -inf  ;;  %v12892_v58 = vpop.permute.xlu1 %12891 }
 0x34a   :  { %v5080_v47 = vsel %vm181_vm2, %v5036_v25, -inf }
 0x34b   :  { %v5082_v29 = vmax.f32 %v5080_v47, %v5081_v32 }
 0x34d   :  { %5105 = vst.msk [vmem:[#allocation4 + $0xf1] sm:$0xff] %vm181_vm2, %v5082_v29  ;;  %v12902_v26 = vpop.permute.xlu1 %12901 }
 0x354   :  { %v5249_v7 = vld [vmem:[#allocation4 + $0xf2] sm:$0xff] }
 0x355   :  { %v17052_v5 = vld [vmem:[#allocation4 + $0xf0] sm:$0xff]  ;;  %v5752_v59 = vpack.c.bf16 %v5249_v7, %v16985_v8  ;;  %v12960_v56 = vpack.i.bf16 %v5249_v7, %v16985_v8 }
 0x356   :  { %v17054_v30 = vld [vmem:[#allocation4 + $0xf1] sm:$0xff]  ;;  %v12925_v14 = vpack.i.bf16 %v17052_v5, %v16987_v27 }
 0x357   :  { %v12950_v63 = vpack.i.bf16 %v17054_v30, %v17050_v3  ;;  %11379 = vmatmul.mubr.msk.bf16.gmra.mrb[8].mxu1 %vm181_vm2, %v5752_v59 }
 0x358   :  { %12926 = vrot.lane.b32.xlu0 %v12925_v14, %s18408_s25  ;;  %v11356_v48 = vpop.f32.mrb[52].mxu0 }
 0x359   :  { %12951 = vrot.lane.b32.xlu1 %v12950_v63, %s18411_s21  ;;  %v4719_v53 = vadd.f32 %v16832_v11, %v11356_v48  ;;  %v4710_v61 = vpop.f32.mrb[53].mxu0  ;;  %v12893_v48 = vunpack.i.l.bf16 %v12892_v58 }
 0x35a   :  { %v4711_v54 = vadd.f32 %v16832_v11, %v4710_v61  ;;  %v11357_v60 = vpop.f32.mrb[54].mxu0  ;;  %v5117_v61 = vld [vmem:[#allocation4 + $0xa0] sm:$0xff] }
 0x35b   :  { %v4811_v39 = vmax.f32 %v4719_v53, 0.0  ;;  %v4722_v57 = vadd.f32 %v16832_v11, %v11357_v60  ;;  %v4713_v45 = vpop.f32.mrb[55].mxu0  ;;  %v12903_v60 = vunpack.i.l.bf16 %v12902_v26 }
 0x35c   :  { %12936 = vrot.lane.b32.xlu0 %v12950_v63, %s13362_s3  ;;  %v4809_v34 = vmax.f32 %v4711_v54, 0.0  ;;  %v4714_v33 = vadd.f32 %v16832_v11, %v4713_v45  ;;  %v12894_v63 = vunpack.i.h.bf16 %v12892_v58  ;;  %v12904_v54 = vunpack.i.h.bf16 %v12902_v26 }
 0x35d   :  { %12961 = vrot.lane.b32.xlu1 %v12960_v56, %s18408_s25  ;;  %4875 = vst.msk [vmem:[#allocation3 + $0x1b0] sm:$0xff] %vm181_vm2, %v4811_v39  ;;  %v4812_v46 = vmax.f32 %v4722_v57, 0.0 }
 0x35e   :  { %4873 = vst.msk [vmem:[#allocation3 + $0x1a0] sm:$0xff] %vm181_vm2, %v4809_v34  ;;  %v4810_v37 = vmax.f32 %v4714_v33, 0.0 }
 0x35f   :  { %4876 = vst.msk [vmem:[#allocation3 + $0x1b8] sm:$0xff] %vm181_vm2, %v4812_v46 }
 0x360   :  { %4874 = vst.msk [vmem:[#allocation3 + $0x1a8] sm:$0xff] %vm181_vm2, %v4810_v37 }
 0x366   :  { %v4939_v9 = vld [vmem:[#allocation3 + $0x1b0] ss:$2 sm:$0xff]  ;;  %v5003_v8 = vld [vmem:[#allocation3 + $0x1b1] ss:$2 sm:$0xff] }
 0x367   :  { %v5039_v13 = vmax.f32 %v4939_v9, %v5003_v8  ;;  %v4937_v20 = vld [vmem:[#allocation3 + $0x1a0] ss:$2 sm:$0xff]  ;;  %v5001_v50 = vld [vmem:[#allocation3 + $0x1a1] ss:$2 sm:$0xff] }
 0x368   :  { %v5038_v19 = vmax.f32 %v4937_v20, %v5001_v50  ;;  %v5647_v50 = vsel %vm181_vm2, %v16901_v12, %v12894_v63 }
 0x369   :  { %v5084_v6 = vsel %vm181_vm2, %v5039_v13, -inf  ;;  %v12887_v25 = vpop.permute.xlu0 %12886 }
 0x36a   :  { %v5083_v24 = vsel %vm181_vm2, %v5038_v19, -inf  ;;  %v12912_v29 = vpop.permute.xlu1 %12911  ;;  %v12889_v57 = vunpack.i.h.bf16 %v12887_v25  ;;  %v12888_v45 = vunpack.i.l.bf16 %v12887_v25  ;;  %v5646_v19 = vsel %vm181_vm2, %v5117_v61, %v12893_v48 }
 0x36b   :  { %v5085_v41 = vmax.f32 %v5083_v24, %v5084_v6  ;;  %v12914_v34 = vunpack.i.h.bf16 %v12912_v29  ;;  %v12913_v37 = vunpack.i.l.bf16 %v12912_v29  ;;  %v5662_v24 = vsel %vm4227_vm9, %v5646_v19, %v12903_v60 }
 0x36d   :  { %5106 = vst.msk [vmem:[#allocation4 + $0x101] sm:$0xff] %vm181_vm2, %v5085_v41  ;;  %v5663_v41 = vsel %vm4227_vm9, %v5647_v50, %v12904_v54 }
 0x374   :  { %v17078_v38 = vld [vmem:[#allocation4 + $0x102] sm:$0xff] }
 0x375   :  { %v17080_v10 = vld [vmem:[#allocation4 + $0x100] sm:$0xff]  ;;  %v12945_v22 = vpack.i.bf16 %v17078_v38, %v5249_v7 }
 0x376   :  { %v12970_v49 = vpack.i.bf16 %v17080_v10, %v17052_v5 }
 0x377   :  { %12946 = vrot.lane.b32.xlu0 %v12945_v22, %s18411_s21 }
 0x378   :  { %12971 = vrot.lane.b32.xlu1 %v12970_v49, %s13362_s3  ;;  %v11360_v4 = vpop.f32.mrb[56].mxu0 }
 0x379   :  { %v4735_v2 = vadd.f32 %v16832_v11, %v11360_v4  ;;  %v4726_v62 = vpop.f32.mrb[57].mxu0  ;;  %v5696_v4 = vsel %vm181_vm2, %v16934_v42, %v12889_v57  ;;  %v17121_v42 = vld [vmem:[#allocation4 + $0x101] sm:$0xff] }
 0x37a   :  { %v4727_v17 = vadd.f32 %v16832_v11, %v4726_v62  ;;  %v11361_v21 = vpop.f32.mrb[58].mxu0 }
 0x37b   :  { %v4815_v35 = vmax.f32 %v4735_v2, 0.0  ;;  %v4738_v15 = vadd.f32 %v16832_v11, %v11361_v21  ;;  %v4729_v44 = vpop.f32.mrb[59].mxu0  ;;  %v5695_v2 = vsel %vm181_vm2, %v16878_v55, %v12888_v45 }
 0x37c   :  { %v4813_v23 = vmax.f32 %v4727_v17, 0.0  ;;  %v4730_v40 = vadd.f32 %v16832_v11, %v4729_v44 }
 0x37d   :  { %4879 = vst.msk [vmem:[#allocation3 + $0x1d0] sm:$0xff] %vm181_vm2, %v4815_v35  ;;  %v4816_v51 = vmax.f32 %v4738_v15, 0.0  ;;  %v5679_v35 = vsel %vm5670_vm12, %v5662_v24, %v12913_v37  ;;  %v5680_v15 = vsel %vm5670_vm12, %v5663_v41, %v12914_v34 }
 0x37e   :  { %4877 = vst.msk [vmem:[#allocation3 + $0x1c0] sm:$0xff] %vm181_vm2, %v4813_v23  ;;  %v4814_v18 = vmax.f32 %v4730_v40, 0.0  ;;  %v5747_v58 = vpack.c.bf16 %v5680_v15, %v5679_v35 }
 0x37f   :  { %4880 = vst.msk [vmem:[#allocation3 + $0x1d8] sm:$0xff] %vm181_vm2, %v4816_v51 }
 0x380   :  { %4878 = vst.msk [vmem:[#allocation3 + $0x1c8] sm:$0xff] %vm181_vm2, %v4814_v18 }
 0x386   :  { %v4943_v32 = vld [vmem:[#allocation3 + $0x1d0] ss:$2 sm:$0xff]  ;;  %v5007_v47 = vld [vmem:[#allocation3 + $0x1d1] ss:$2 sm:$0xff] }
 0x387   :  { %v5041_v7 = vmax.f32 %v4943_v32, %v5007_v47  ;;  %v4941_v59 = vld [vmem:[#allocation3 + $0x1c0] ss:$2 sm:$0xff]  ;;  %v5005_v14 = vld [vmem:[#allocation3 + $0x1c1] ss:$2 sm:$0xff] }
 0x388   :  { %v5040_v53 = vmax.f32 %v4941_v59, %v5005_v14 }
 0x389   :  { %v5087_v56 = vsel %vm181_vm2, %v5041_v7, -inf }
 0x38a   :  { %v12897_v39 = vpop.permute.xlu0 %12896  ;;  %v5086_v33 = vsel %vm181_vm2, %v5040_v53, -inf  ;;  %v17097_v46 = vpop.f32.mrb[4].mxu1 }
 0x38b   :  { %v5088_v9 = vmax.f32 %v5086_v33, %v5087_v56  ;;  %v12899_v8 = vunpack.i.h.bf16 %v12897_v39  ;;  %v12898_v13 = vunpack.i.l.bf16 %v12897_v39  ;;  %v17099_v20 = vpop.f32.mrb[5].mxu1 }
 0x38c   :  { %v17104_v6 = vpop.f32.mrb[6].mxu1 }
 0x38d   :  { %5107 = vst.msk [vmem:[#allocation4 + $0x111] sm:$0xff] %vm181_vm2, %v5088_v9  ;;  %v17109_v22 = vpop.f32.mrb[7].mxu1  ;;  %v5711_v17 = vsel %vm4227_vm9, %v5695_v2, %v12898_v13  ;;  %v5712_v21 = vsel %vm4227_vm9, %v5696_v4, %v12899_v8 }
 0x38e   :  { %v12907_v49 = vpop.permute.xlu0 %12906 }
 0x38f   :  { %v12909_v12 = vunpack.i.h.bf16 %v12907_v49  ;;  %v12908_v62 = vunpack.i.l.bf16 %v12907_v49 }
 0x391   :  { %v5727_v44 = vsel %vm5670_vm12, %v5711_v17, %v12908_v62  ;;  %v5728_v23 = vsel %vm5670_vm12, %v5712_v21, %v12909_v12 }
 0x392   :  { %v5748_v40 = vpack.c.bf16 %v5728_v23, %v5727_v44 }
 0x394   :  { %5998 = vmatprep.mubr.bf16.mxu0 %v5748_v40  ;;  %v17123_v55 = vld [vmem:[#allocation4 + $0x112] sm:$0xff] }
 0x395   :  { %5999 = vmatmul.mubr.bf16.gmra.mrb[80].mxu0 %v5747_v58  ;;  %v17125_v51 = vld [vmem:[#allocation4 + $0x110] sm:$0xff]  ;;  %v11364_v26 = vpop.f32.mrb[60].mxu0  ;;  %v5755_v25 = vpack.c.bf16 %v17123_v55, %v17078_v38  ;;  %v12990_v56 = vpack.i.bf16 %v17123_v55, %v17078_v38 }
 0x396   :  { %v17127_v18 = vld [vmem:[#allocation4 + $0x111] sm:$0xff]  ;;  %v12955_v32 = vpack.i.bf16 %v17125_v51, %v17080_v10  ;;  %v4751_v29 = vadd.f32 %v16832_v11, %v11364_v26  ;;  %v4742_v7 = vpop.f32.mrb[61].mxu0 }
 0x397   :  { %v12980_v47 = vpack.i.bf16 %v17127_v18, %v17121_v42  ;;  %v4743_v59 = vadd.f32 %v16832_v11, %v4742_v7  ;;  %v11365_v14 = vpop.f32.mrb[62].mxu0  ;;  %11382 = vmatprep.mubr.msk.bf16.mxu1 %vm181_vm2, %v5755_v25  ;;  %v5253_v58 = vld [vmem:[#allocation4 + $0x132] sm:$0xff] }
 0x398   :  { %12956 = vrot.lane.b32.xlu0 %v12955_v32, %s18408_s25  ;;  %v4819_v63 = vmax.f32 %v4751_v29, 0.0  ;;  %v4754_v48 = vadd.f32 %v16832_v11, %v11365_v14  ;;  %v4745_v53 = vpop.f32.mrb[63].mxu0 }
 0x399   :  { %12981 = vrot.lane.b32.xlu1 %v12980_v47, %s18411_s21  ;;  %v4817_v61 = vmax.f32 %v4743_v59, 0.0  ;;  %v4746_v54 = vadd.f32 %v16832_v11, %v4745_v53  ;;  %v17153_v11 = vld [vmem:[%s18416_s1] ss:$0 sm:$0xff] }
 0x39a   :  { %4883 = vst.msk [vmem:[#allocation3 + $0x1f0] sm:$0xff] %vm181_vm2, %v4819_v63  ;;  %v4820_v60 = vmax.f32 %v4754_v48, 0.0 }
 0x39b   :  { %4881 = vst.msk [vmem:[#allocation3 + $0x1e0] sm:$0xff] %vm181_vm2, %v4817_v61  ;;  %v4818_v39 = vmax.f32 %v4746_v54, 0.0  ;;  %v5221_v61 = vld [vmem:[#allocation4 + $0x130] sm:$0xff] }
 0x39c   :  { %12966 = vrot.lane.b32.xlu0 %v12980_v47, %s13362_s3  ;;  %4884 = vst.msk [vmem:[#allocation3 + $0x1f8] sm:$0xff] %vm181_vm2, %v4820_v60 }
 0x39d   :  { %12991 = vrot.lane.b32.xlu1 %v12990_v56, %s18408_s25  ;;  %4882 = vst.msk [vmem:[#allocation3 + $0x1e8] sm:$0xff] %vm181_vm2, %v4818_v39 }
 0x3a1   :  { %v11016_v57 = vpop.f32.mrb[64].mxu0 }
 0x3a2   :  { %v11017_v45 = vpop.f32.mrb[65].mxu0 }
 0x3a3   :  { %v4947_v34 = vld [vmem:[#allocation3 + $0x1f0] ss:$2 sm:$0xff]  ;;  %v5011_v38 = vld [vmem:[#allocation3 + $0x1f1] ss:$2 sm:$0xff]  ;;  %v11018_v33 = vadd.f32 %v11017_v45, %v11016_v57  ;;  %v11019_v37 = vpop.f32.mrb[66].mxu0 }
 0x3a4   :  { %v5043_v9 = vmax.f32 %v4947_v34, %v5011_v38  ;;  %v4945_v8 = vld [vmem:[#allocation3 + $0x1e0] ss:$2 sm:$0xff]  ;;  %v5009_v13 = vld [vmem:[#allocation3 + $0x1e1] ss:$2 sm:$0xff]  ;;  %v11020_v50 = vpop.f32.mrb[67].mxu0  ;;  %v5237_v38 = vld [vmem:[#allocation4 + $0x131] sm:$0xff] }
 0x3a5   :  { %v5042_v19 = vmax.f32 %v4945_v8, %v5009_v13  ;;  %v5969_v24 = vadd.f32 %v11018_v33, %v17153_v11  ;;  %v11021_v41 = vadd.f32 %v11020_v50, %v11019_v37  ;;  %v6332_v45 = vld [vmem:[#allocation6 + $0x29] sm:$0xf]  ;;  %v6336_v8 = vld [vmem:[#allocation6 + $0x59] sm:$0xf]  ;;  %v6280_v13 = vld [vmem:[#allocation6 + $0x1] sm:$0xf]  ;;  %v12922_v50 = vpop.permute.xlu1 %12921 }
 0x3a6   :  { %v5090_v49 = vsel %vm181_vm2, %v5043_v9, -inf }
 0x3a7   :  { %v5089_v4 = vsel %vm181_vm2, %v5042_v19, -inf  ;;  %v6066_v2 = vadd.f32 %v16967_v36, %v5969_v24  ;;  %v5972_v12 = vadd.f32 %v11021_v41, %v17153_v11 }
 0x3a8   :  { %v5091_v62 = vmax.f32 %v5089_v4, %v5090_v49 }
 0x3a9   :  { %v6128_v17 = vmax.f32 %v6066_v2, 0.0  ;;  %v6069_v21 = vadd.f32 %v16972_v28, %v5972_v12 }
 0x3aa   :  { %5108 = vst.msk [vmem:[#allocation4 + $0x121] sm:$0xff] %vm181_vm2, %v5091_v62  ;;  %v6284_v62 = vld [vmem:[#allocation6 + $0x31] sm:$0xf] }
 0x3ab   :  { %6144 = vst.msk [vmem:[#allocation5] sm:$0xff] %vm4227_vm9, %v6128_v17  ;;  %v6129_v35 = vmax.f32 %v6069_v21, 0.0 }
 0x3ad   :  { %6145 = vst.msk [vmem:[#allocation5 + $0x8] sm:$0xff] %vm4227_vm9, %v6129_v35  ;;  %v11022_v15 = vpop.f32.mrb[68].mxu0  ;;  %v12932_v35 = vpop.permute.xlu1 %12931 }
 0x3ae   :  { %v11023_v44 = vpop.f32.mrb[69].mxu0 }
 0x3af   :  { %v11024_v23 = vadd.f32 %v11023_v44, %v11022_v15  ;;  %v11025_v40 = vpop.f32.mrb[70].mxu0  ;;  %v12917_v44 = vpop.permute.xlu0 %12916 }
 0x3b0   :  { %v11026_v26 = vpop.f32.mrb[71].mxu0 }
 0x3b1   :  { %v5977_v36 = vadd.f32 %v11024_v23, %v17153_v11  ;;  %v11027_v25 = vadd.f32 %v11026_v26, %v11025_v40  ;;  %v5252_v32 = vld [vmem:[#allocation4 + $0x122] sm:$0xff]  ;;  %v12924_v40 = vunpack.i.h.bf16 %v12922_v50  ;;  %v12942_v26 = vpop.permute.xlu1 %12941 }
 0x3b2   :  { %v5172_v47 = vld [vmem:[#allocation4 + $0x120] sm:$0xff]  ;;  %v5758_v7 = vpack.c.bf16 %v5253_v58, %v5252_v32  ;;  %v12975_v59 = vpack.i.bf16 %v5252_v32, %v17123_v55  ;;  %v12923_v58 = vunpack.i.l.bf16 %v12922_v50 }
 0x3b3   :  { %v6160_v29 = vld [vmem:[#allocation5] ss:$2 sm:$0xf]  ;;  %v6192_v28 = vld [vmem:[#allocation5 + $0x1] ss:$2 sm:$0xf]  ;;  %v13000_v14 = vpack.i.bf16 %v5172_v47, %v17125_v51  ;;  %v6074_v48 = vadd.f32 %v16965_v43, %v5977_v36  ;;  %v5980_v53 = vadd.f32 %v11027_v25, %v17153_v11  ;;  %v12985_v55 = vpack.i.bf16 %v5221_v61, %v5172_v47 }
 0x3b4   :  { %v6223_v63 = vmax.f32 %v6160_v29, %v6192_v28  ;;  %v6162_v54 = vld [vmem:[#allocation5 + $0x8] ss:$2 sm:$0xf]  ;;  %v6194_v60 = vld [vmem:[#allocation5 + $0x9] ss:$2 sm:$0xf]  ;;  %11383 = vmatmul.mubr.msk.bf16.gmra.mrb[12].mxu1 %vm181_vm2, %v5758_v7  ;;  %12976 = vrot.lane.b32.xlu0 %v12975_v59, %s18411_s21  ;;  %v12934_v36 = vunpack.i.h.bf16 %v12932_v35  ;;  %v12933_v25 = vunpack.i.l.bf16 %v12932_v35  ;;  %v12919_v47 = vunpack.i.h.bf16 %v12917_v44 }
 0x3b5   :  { %v6224_v56 = vmax.f32 %v6162_v54, %v6194_v60  ;;  %v6130_v39 = vmax.f32 %v6074_v48, 0.0  ;;  %v6077_v57 = vadd.f32 %v16969_v52, %v5980_v53  ;;  %13001 = vrot.lane.b32.xlu1 %v13000_v14, %s13362_s3  ;;  %v17174_v34 = vld [vmem:[#allocation4 + $0x121] sm:$0xff]  ;;  %v12918_v29 = vunpack.i.l.bf16 %v12917_v44 }
 0x3b6   :  { %v6239_v33 = vsel %vm244_vm14, %v6223_v63, -inf  ;;  %v12995_v52 = vpack.i.bf16 %v5237_v38, %v17174_v34  ;;  %v12944_v28 = vunpack.i.h.bf16 %v12942_v26  ;;  %v12943_v7 = vunpack.i.l.bf16 %v12942_v26 }
 0x3b7   :  { %6146 = vst.msk [vmem:[#allocation5 + $0x10] sm:$0xff] %vm4227_vm9, %v6130_v39  ;;  %v6131_v43 = vmax.f32 %v6077_v57, 0.0  ;;  %v6240_v37 = vsel %vm244_vm14, %v6224_v56, -inf  ;;  %v5649_v48 = vsel %vm181_vm2, %v16938_v31, %v12924_v40  ;;  %v5648_v53 = vsel %vm181_vm2, %v16903_v0, %v12923_v58 }
 0x3b8   :  { %12986 = vrot.lane.b32.xlu0 %v12985_v55, %s18408_s25  ;;  %v6241_v9 = vmax.f32 %v6239_v33, %v6240_v37  ;;  %v5664_v61 = vsel %vm4227_vm9, %v5648_v53, %v12933_v25  ;;  %v5665_v54 = vsel %vm4227_vm9, %v5649_v48, %v12934_v36  ;;  %v5698_v39 = vsel %vm181_vm2, %v17050_v3, %v12919_v47 }
 0x3b9   :  { %6147 = vst.msk [vmem:[#allocation5 + $0x18] sm:$0xff] %vm4227_vm9, %v6131_v43  ;;  %6455 = vrot.lane.b32.xlu1 %v6332_v45, %s18408_s25  ;;  %v5697_v57 = vsel %vm181_vm2, %v16940_v16, %v12918_v29  ;;  %v5681_v38 = vsel %vm5670_vm12, %v5664_v61, %v12943_v7  ;;  %v5682_v33 = vsel %vm5670_vm12, %v5665_v54, %v12944_v28 }
 0x3ba   :  { %6264 = vst.msk [vmem:[#allocation6 + $0x9] sm:$0xf] %vm244_vm14, %v6241_v9 }
 0x3bc   :  { %12996 = vrot.lane.b32.xlu0 %v12995_v52, %s13362_s3  ;;  %v5750_v52 = vpack.c.bf16 %v5682_v33, %v5681_v38  ;;  %v13034_v38 = vld [vmem:[%s18357_s6 + $0x8] sm:$0xff]  }
 0x3bd   :  { %6463 = vrot.lane.b32.xlu1 %v6336_v8, %s18408_s25  ;;  %v13035_v33 = vld [vmem:[%s18357_s6 + $0xc8] sm:$0xff]  }
 0x3be   :  { %v6164_v19 = vld [vmem:[#allocation5 + $0x10] ss:$2 sm:$0xf]  ;;  %v6196_v24 = vld [vmem:[#allocation5 + $0x11] ss:$2 sm:$0xf] }
 0x3bf   :  { %v6225_v41 = vmax.f32 %v6164_v19, %v6196_v24 }
 0x3c0   :  { %v6166_v49 = vld [vmem:[#allocation5 + $0x18] ss:$2 sm:$0xf]  ;;  %v6198_v4 = vld [vmem:[#allocation5 + $0x19] ss:$2 sm:$0xf]  ;;  %6353 = vrot.lane.b32.xlu0 %v6280_v13, %s18408_s25 }
 0x3c1   :  { %v6226_v2 = vmax.f32 %v6166_v49, %v6198_v4  ;;  %v6281_v12 = vld [vmem:[#allocation6 + $0x9] sm:$0xf]  ;;  %v6242_v17 = vsel %vm244_vm14, %v6225_v41, -inf }
 0x3c2   :  { %6355 = vrot.lane.b32.xlu1 %v6281_v12, %s18408_s25  ;;  %v6296_v23 = vld [vmem:[#allocation6 + $0x8] sm:$0xf] }
 0x3c3   :  { %v6243_v21 = vsel %vm244_vm14, %v6226_v2, -inf  ;;  %v6312_v63 = vld [vmem:[#allocation6 + $0xa] sm:$0xf] }
 0x3c4   :  { %6361 = vrot.lane.b32.xlu0 %v6284_v62, %s18408_s25  ;;  %v6244_v15 = vmax.f32 %v6242_v17, %v6243_v21 }
 0x3c6   :  { %6265 = vst.msk [vmem:[#allocation6 + $0x11] sm:$0xf] %vm244_vm14, %v6244_v15 }
 0x3c8   :  { %6385 = vrot.lane.b32.xlu0 %v6296_v23, %s18408_s25 }
 0x3ca   :  { %v12927_v32 = vpop.permute.xlu0 %12926 }
 0x3cb   :  { %v12929_v59 = vunpack.i.h.bf16 %v12927_v32  ;;  %v12928_v14 = vunpack.i.l.bf16 %v12927_v32  ;;  %v12952_v26 = vpop.permute.xlu1 %12951  ;;  %v13030_v32 = vld [vmem:[%s18357_s6] sm:$0xff]  }
 0x3cc   :  { %6417 = vrot.lane.b32.xlu0 %v6312_v63, %s18408_s25  ;;  %v12953_v28 = vunpack.i.l.bf16 %v12952_v26 }
 0x3cd   :  { %v6297_v56 = vld [vmem:[#allocation6 + $0x10] sm:$0xf]  ;;  %v5713_v0 = vsel %vm4227_vm9, %v5697_v57, %v12928_v14  ;;  %v5714_v31 = vsel %vm4227_vm9, %v5698_v39, %v12929_v59  ;;  %v12954_v59 = vunpack.i.h.bf16 %v12952_v26  ;;  %v13031_v39 = vld [vmem:[%s18357_s6 + $0xc0] sm:$0xff]   ;;  %v13032_v57 = vld [vmem:[%s18357_s6 + $0x48] sm:$0xff]  }
 0x3ce   :  { %v12937_v60 = vpop.permute.xlu0 %12936  ;;  %6387 = vrot.lane.b32.xlu1 %v6297_v56, %s18408_s25  ;;  %v6282_v43 = vld [vmem:[#allocation6 + $0x11] sm:$0xf]  ;;  %11102 = vmatprep.subr.bf16.mxu0 %v13031_v39 }
 0x3cf   :  { %v12939_v55 = vunpack.i.h.bf16 %v12937_v60  ;;  %v12938_v45 = vunpack.i.l.bf16 %v12937_v60  ;;  %v6313_v16 = vld [vmem:[#allocation6 + $0x12] sm:$0xf]  ;;  %v12962_v47 = vpop.permute.xlu1 %12961 }
 0x3d0   :  { %6357 = vrot.lane.b32.xlu0 %v6282_v43, %s18408_s25  ;;  %v6329_v8 = vld [vmem:[#allocation6 + $0x11] sm:$0xf]  ;;  %v12963_v14 = vunpack.i.l.bf16 %v12962_v47  ;;  %v12964_v53 = vunpack.i.h.bf16 %v12962_v47  ;;  %v13033_v43 = vld [vmem:[%s18357_s6 + $0x80] sm:$0xff]   ;;  %v13043_v47 = vld [vmem:[%s18357_s6 + $0xd8] sm:$0xff]  }
 0x3d1   :  { %v5729_v3 = vsel %vm5670_vm12, %v5713_v0, %v12938_v45  ;;  %v5730_v37 = vsel %vm5670_vm12, %v5714_v31, %v12939_v55  ;;  %v5650_v55 = vsel %vm181_vm2, %v16987_v27, %v12953_v28  ;;  %11103 = vmatpush3.bf16.msra.mxu0 %v13033_v43 }
 0x3d2   :  { %v5751_v9 = vpack.c.bf16 %v5730_v37, %v5729_v3  ;;  %6419 = vrot.lane.b32.xlu1 %v6313_v16, %s18408_s25  ;;  %v5651_v3 = vsel %vm181_vm2, %v17052_v5, %v12954_v59  ;;  %v5666_v27 = vsel %vm4227_vm9, %v5650_v55, %v12963_v14  ;;  %11104 = vmatprep.subr.bf16.mxu0 %v13035_v33  ;;  %v13045_v59 = vld [vmem:[%s18357_s6 + $0x98] sm:$0xff]   ;;  %v13046_v14 = vld [vmem:[%s18357_s6 + $0x20] sm:$0xff]   ;;  %v13054_v55 = vld [vmem:[%s18357_s6 + $0x30] sm:$0xff]  }
 0x3d3   :  { %v13056_v33 = vld [vmem:[%s18357_s6 + $0x78] sm:$0xff]  }
 0x3d4   :  { %6006 = vmatprep.mubr.bf16.mxu0 %v5751_v9  ;;  %6449 = vrot.lane.b32.xlu0 %v6329_v8, %s18408_s25  ;;  %v5667_v8 = vsel %vm4227_vm9, %v5651_v3, %v12964_v53  ;;  %v13050_v53 = vld [vmem:[%s18357_s6 + $0x28] sm:$0xff]  }
 0x3d5   :  { %6007 = vmatmul.mubr.bf16.gmra.mrb[84].mxu0 %v5750_v52  ;;  %v13036_v52 = vld [vmem:[%s18357_s6 + $0x50] sm:$0xff]  }
 0x3e8   :  { %v11028_v13 = vpop.f32.mrb[72].mxu0 }
 0x3e9   :  { %v11029_v50 = vpop.f32.mrb[73].mxu0  ;;  %v12947_v29 = vpop.permute.xlu0 %12946 }
 0x3ea   :  { %v11030_v19 = vadd.f32 %v11029_v50, %v11028_v13  ;;  %v11031_v24 = vpop.f32.mrb[74].mxu0  ;;  %v12972_v7 = vpop.permute.xlu1 %12971  ;;  %v12949_v61 = vunpack.i.h.bf16 %v12947_v29  ;;  %v12948_v54 = vunpack.i.l.bf16 %v12947_v29 }
 0x3eb   :  { %v11032_v49 = vpop.f32.mrb[75].mxu0  ;;  %v12973_v56 = vunpack.i.l.bf16 %v12972_v7  ;;  %v12974_v45 = vunpack.i.h.bf16 %v12972_v7 }
 0x3ec   :  { %v5985_v41 = vadd.f32 %v11030_v19, %v17153_v11  ;;  %v11033_v4 = vadd.f32 %v11032_v49, %v11031_v24  ;;  %v5700_v13 = vsel %vm181_vm2, %v17121_v42, %v12949_v61  ;;  %v5699_v50 = vsel %vm181_vm2, %v17054_v30, %v12948_v54  ;;  %v13037_v42 = vld [vmem:[%s18357_s6 + $0x88] sm:$0xff]   ;;  %v13038_v30 = vld [vmem:[%s18357_s6 + $0x10] sm:$0xff]  }
 0x3ed   :  { %11105 = vmatpush3.bf16.msra.mxu0 %v13037_v42  ;;  %v13051_v61 = vld [vmem:[%s18357_s6 + $0xe8] sm:$0xff]   ;;  %v13052_v54 = vld [vmem:[%s18357_s6 + $0x70] sm:$0xff]  }
 0x3ee   :  { %v6082_v2 = vadd.f32 %v17099_v20, %v5985_v41  ;;  %v5988_v12 = vadd.f32 %v11033_v4, %v17153_v11 }
 0x3f0   :  { %v6132_v62 = vmax.f32 %v6082_v2, 0.0  ;;  %v6085_v17 = vadd.f32 %v17109_v22, %v5988_v12  ;;  %v13029_v22 = vld [vmem:[%s18357_s6 + $0x40] sm:$0xff]   ;;  %v5683_v2 = vsel %vm5670_vm12, %v5666_v27, %v12973_v56 }
 0x3f1   :  { %11074 = vmatprep.subr.bf16.mxu1 %v13029_v22  ;;  %v13041_v22 = vld [vmem:[%s18357_s6 + $0x90] sm:$0xff]  }
 0x3f2   :  { %6148 = vst.msk [vmem:[#allocation5 + $0x20] sm:$0xff] %vm4227_vm9, %v6132_v62  ;;  %v6133_v21 = vmax.f32 %v6085_v17, 0.0  ;;  %11075 = vmatpush3.bf16.msra.mxu1 %v13030_v32  ;;  %v13042_v32 = vld [vmem:[%s18357_s6 + $0x18] sm:$0xff]  }
 0x3f3   :  { %11076 = vmatprep.subr.bf16.mxu1 %v13032_v57  ;;  %v13053_v57 = vld [vmem:[%s18357_s6 + $0xa8] sm:$0xff]  }
 0x3f4   :  { %6149 = vst.msk [vmem:[#allocation5 + $0x28] sm:$0xff] %vm4227_vm9, %v6133_v21  ;;  %v5684_v21 = vsel %vm5670_vm12, %v5667_v8, %v12974_v45 }
 0x3f6   :  { %11077 = vmatpush3.bf16.msra.mxu1 %v13034_v38  ;;  %v13055_v38 = vld [vmem:[%s18357_s6 + $0xf0] sm:$0xff]  }
 0x3f7   :  { %11078 = vmatprep.subr.bf16.mxu1 %v13036_v52 }
 0x3f9   :  { %v6168_v35 = vld [vmem:[#allocation5 + $0x20] ss:$2 sm:$0xf]  ;;  %v6200_v15 = vld [vmem:[#allocation5 + $0x21] ss:$2 sm:$0xf] }
 0x3fa   :  { %v6227_v44 = vmax.f32 %v6168_v35, %v6200_v15  ;;  %v13039_v35 = vld [vmem:[%s18357_s6 + $0xd0] sm:$0xff]   ;;  %11079 = vmatpush3.bf16.msra.mxu1 %v13038_v30 }
 0x3fb   :  { %v6170_v23 = vld [vmem:[#allocation5 + $0x28] ss:$2 sm:$0xf]  ;;  %v6202_v40 = vld [vmem:[#allocation5 + $0x29] ss:$2 sm:$0xf]  ;;  %11106 = vmatprep.subr.bf16.mxu0 %v13039_v35 }
 0x3fc   :  { %v6228_v58 = vmax.f32 %v6170_v23, %v6202_v40  ;;  %v6245_v36 = vsel %vm244_vm14, %v6227_v44, -inf  ;;  %11107 = vmatpush3.bf16.msra.mxu0 %v13041_v22 }
 0x3fd   :  { %11108 = vmatprep.subr.bf16.mxu0 %v13043_v47 }
 0x3fe   :  { %v6246_v20 = vsel %vm244_vm14, %v6228_v58, -inf  ;;  %v13040_v58 = vld [vmem:[%s18357_s6 + $0x58] sm:$0xff]  }
 0x3ff   :  { %v6247_v25 = vmax.f32 %v6245_v36, %v6246_v20  ;;  %11080 = vmatprep.subr.bf16.mxu1 %v13040_v58 }
 0x400   :  { %11081 = vmatpush3.bf16.msra.mxu1 %v13042_v32  ;;  %11109 = vmatpush3.bf16.msra.mxu0 %v13045_v59 }
 0x401   :  { %6266 = vst.msk [vmem:[#allocation6 + $0x19] sm:$0xf] %vm244_vm14, %v6247_v25  ;;  %v5753_v25 = vpack.c.bf16 %v5684_v21, %v5683_v2 }
 0x408   :  { %v6298_v63 = vld [vmem:[#allocation6 + $0x18] sm:$0xf] }
 0x409   :  { %v6283_v48 = vld [vmem:[#allocation6 + $0x19] sm:$0xf]  ;;  %6389 = vrot.lane.b32.xlu0 %v6298_v63, %s18408_s25  ;;  %v13048_v63 = vld [vmem:[%s18357_s6 + $0x68] sm:$0xff]  }
 0x40a   :  { %6359 = vrot.lane.b32.xlu1 %v6283_v48, %s18408_s25  ;;  %v12957_v60 = vpop.permute.xlu0 %12956  ;;  %v6314_v16 = vld [vmem:[#allocation6 + $0x1a] sm:$0xf]  ;;  %v13049_v48 = vld [vmem:[%s18357_s6 + $0xa0] sm:$0xff]  }
 0x40b   :  { %v12959_v0 = vunpack.i.h.bf16 %v12957_v60  ;;  %v12958_v31 = vunpack.i.l.bf16 %v12957_v60  ;;  %v11034_v37 = vpop.f32.mrb[76].mxu0  ;;  %v6330_v9 = vld [vmem:[#allocation6 + $0x19] sm:$0xf]  ;;  %v12982_v45 = vpop.permute.xlu1 %12981 }
 0x40c   :  { %v11035_v5 = vpop.f32.mrb[77].mxu0 }
 0x40d   :  { %6421 = vrot.lane.b32.xlu0 %v6314_v16, %s18408_s25  ;;  %v11036_v24 = vadd.f32 %v11035_v5, %v11034_v37  ;;  %v11037_v4 = vpop.f32.mrb[78].mxu0  ;;  %v5715_v12 = vsel %vm4227_vm9, %v5699_v50, %v12958_v31  ;;  %v5716_v62 = vsel %vm4227_vm9, %v5700_v13, %v12959_v0  ;;  %v13057_v37 = vld [vmem:[%s18357_s6 + $0xb0] sm:$0xff]   ;;  %v13058_v16 = vld [vmem:[%s18357_s6 + $0x38] sm:$0xff]   ;;  %v12984_v5 = vunpack.i.h.bf16 %v12982_v45 }
 0x40e   :  { %6451 = vrot.lane.b32.xlu1 %v6330_v9, %s18408_s25  ;;  %v12967_v19 = vpop.permute.xlu0 %12966  ;;  %v11038_v17 = vpop.f32.mrb[79].mxu0  ;;  %v13059_v13 = vld [vmem:[%s18357_s6 + $0xf8] sm:$0xff]  }
 0x40f   :  { %v12969_v41 = vunpack.i.h.bf16 %v12967_v19  ;;  %v12968_v49 = vunpack.i.l.bf16 %v12967_v19  ;;  %v5993_v15 = vadd.f32 %v11036_v24, %v17153_v11  ;;  %v11039_v44 = vadd.f32 %v11038_v17, %v11037_v4  ;;  %v12992_v52 = vpop.permute.xlu1 %12991  ;;  %v13060_v50 = vld [vmem:[%s18357_s6 + $0xb8] sm:$0xff]  }
 0x410   :  { %v12983_v19 = vunpack.i.l.bf16 %v12982_v45 }
 0x411   :  { %v5731_v23 = vsel %vm5670_vm12, %v5715_v12, %v12968_v49  ;;  %v5732_v40 = vsel %vm5670_vm12, %v5716_v62, %v12969_v41  ;;  %v6090_v36 = vadd.f32 %v17097_v46, %v5993_v15  ;;  %v5996_v20 = vadd.f32 %v11039_v44, %v17153_v11  ;;  %v13044_v46 = vld [vmem:[%s18357_s6 + $0x60] sm:$0xff]  }
 0x412   :  { %v5754_v26 = vpack.c.bf16 %v5732_v40, %v5731_v23  ;;  %11082 = vmatprep.subr.bf16.mxu1 %v13044_v46  ;;  %v12994_v41 = vunpack.i.h.bf16 %v12992_v52  ;;  %v12993_v49 = vunpack.i.l.bf16 %v12992_v52  ;;  %v5653_v40 = vsel %vm181_vm2, %v17125_v51, %v12984_v5 }
 0x413   :  { %v6134_v29 = vmax.f32 %v6090_v36, 0.0  ;;  %v6093_v28 = vadd.f32 %v17104_v6, %v5996_v20  ;;  %v13047_v6 = vld [vmem:[%s18357_s6 + $0xe0] sm:$0xff]   ;;  %11083 = vmatpush3.bf16.msra.mxu1 %v13046_v14  ;;  %v5652_v58 = vsel %vm181_vm2, %v17080_v10, %v12983_v19 }
 0x414   :  { %6014 = vmatprep.mubr.bf16.mxu0 %v5754_v26  ;;  %11110 = vmatprep.subr.bf16.mxu0 %v13047_v6  ;;  %v5668_v36 = vsel %vm4227_vm9, %v5652_v58, %v12993_v49  ;;  %v5669_v20 = vsel %vm4227_vm9, %v5653_v40, %v12994_v41  ;;  %v6324_v40 = vld [vmem:[#allocation6 + $0x28] sm:$0xf]  ;;  %v6272_v58 = vld [vmem:[#allocation6] sm:$0xf] }
 0x415   :  { %6015 = vmatmul.mubr.bf16.gmra.mrb[88].mxu0 %v5753_v25  ;;  %6150 = vst.msk [vmem:[#allocation5 + $0x30] sm:$0xff] %vm4227_vm9, %v6134_v29  ;;  %v6135_v7 = vmax.f32 %v6093_v28, 0.0  ;;  %11084 = vmatprep.subr.bf16.mxu1 %v13048_v63 }
 0x416   :  { %11111 = vmatpush3.bf16.msra.mxu0 %v13049_v48 }
 0x417   :  { %6151 = vst.msk [vmem:[#allocation5 + $0x38] sm:$0xff] %vm4227_vm9, %v6135_v7  ;;  %11085 = vmatpush3.bf16.msra.mxu1 %v13050_v53  ;;  %11112 = vmatprep.subr.bf16.mxu0 %v13051_v61 }
 0x418   :  { %11086 = vmatprep.subr.bf16.mxu1 %v13052_v54 }
 0x41a   :  { %11113 = vmatpush3.bf16.msra.mxu0 %v13053_v57 }
 0x41b   :  { %11087 = vmatpush3.bf16.msra.mxu1 %v13054_v55  ;;  %11114 = vmatprep.subr.bf16.mxu0 %v13055_v38 }
 0x41c   :  { %v6172_v60 = vld [vmem:[#allocation5 + $0x30] ss:$2 sm:$0xf]  ;;  %v6204_v56 = vld [vmem:[#allocation5 + $0x31] ss:$2 sm:$0xf]  ;;  %11088 = vmatprep.subr.bf16.mxu1 %v13056_v33 }
 0x41d   :  { %v6229_v39 = vmax.f32 %v6172_v60, %v6204_v56 }
 0x41e   :  { %v6174_v0 = vld [vmem:[#allocation5 + $0x38] ss:$2 sm:$0xf]  ;;  %v6206_v31 = vld [vmem:[#allocation5 + $0x39] ss:$2 sm:$0xf]  ;;  %11115 = vmatpush3.bf16.msra.mxu0 %v13057_v37 }
 0x41f   :  { %v6230_v43 = vmax.f32 %v6174_v0, %v6206_v31  ;;  %v6248_v3 = vsel %vm244_vm14, %v6229_v39, -inf  ;;  %11089 = vmatpush3.bf16.msra.mxu1 %v13058_v16  ;;  %11116 = vmatprep.subr.bf16.mxu0 %v13059_v13 }
 0x421   :  { %v6249_v27 = vsel %vm244_vm14, %v6230_v43, -inf }
 0x422   :  { %v6250_v9 = vmax.f32 %v6248_v3, %v6249_v27  ;;  %11117 = vmatpush3.bf16.msra.mxu0 %v13060_v50 }
 0x424   :  { %6267 = vst.msk [vmem:[#allocation6 + $0x21] sm:$0xf] %vm244_vm14, %v6250_v9 }
 0x426   :  { %v12977_v8 = vpop.permute.xlu0 %12976 }
 0x427   :  { %v13002_v24 = vpop.permute.xlu1 %13001  ;;  %v12979_v42 = vunpack.i.h.bf16 %v12977_v8  ;;  %v12978_v30 = vunpack.i.l.bf16 %v12977_v8 }
 0x428   :  { %v13004_v62 = vunpack.i.h.bf16 %v13002_v24  ;;  %v13003_v17 = vunpack.i.l.bf16 %v13002_v24 }
 0x429   :  { %v5702_v22 = vsel %vm181_vm2, %v17174_v34, %v12979_v42  ;;  %v5701_v32 = vsel %vm181_vm2, %v17127_v18, %v12978_v30 }
 0x42a   :  { %v17347_v4 = vpop.f32.mrb[8].mxu1  ;;  %v12987_v2 = vpop.permute.xlu0 %12986  ;;  %v5685_v28 = vsel %vm5670_vm12, %v5668_v36, %v13003_v17  ;;  %v5686_v7 = vsel %vm5670_vm12, %v5669_v20, %v13004_v62  ;;  %v6288_v20 = vld [vmem:[#allocation6 + $0x2] sm:$0xf] }
 0x42b   :  { %v6097_v12 = vpop.f32.mrb[9].mxu1  ;;  %v12989_v21 = vunpack.i.h.bf16 %v12987_v2  ;;  %v12988_v35 = vunpack.i.l.bf16 %v12987_v2  ;;  %v6331_v44 = vld [vmem:[#allocation6 + $0x21] sm:$0xf]  ;;  %v5756_v6 = vpack.c.bf16 %v5686_v7, %v5685_v28  ;;  %v6456_v37 = vpop.permute.xlu1 %6455  ;;  %v6274_v28 = vld [vmem:[#allocation6 + $0x10] sm:$0xf] }
 0x42c   :  { %v17349_v15 = vpop.f32.mrb[10].mxu1  ;;  %v6299_v23 = vld [vmem:[#allocation6 + $0x20] sm:$0xf]  ;;  %6453 = vrot.lane.b32.xlu0 %v6331_v44, %s18408_s25  ;;  %v6321_v7 = vld [vmem:[#allocation6 + $0x10] sm:$0xf] }
 0x42d   :  { %6391 = vrot.lane.b32.xlu1 %v6299_v23, %s18408_s25  ;;  %v6100_v26 = vpop.f32.mrb[11].mxu1  ;;  %v5717_v10 = vsel %vm4227_vm9, %v5701_v32, %v12988_v35  ;;  %v5718_v46 = vsel %vm4227_vm9, %v5702_v22, %v12989_v21  ;;  %v6315_v29 = vld [vmem:[#allocation6 + $0x22] sm:$0xf]  ;;  %v6289_v22 = vld [vmem:[#allocation6 + $0xa] sm:$0xf] }
 0x42e   :  { %v12997_v25 = vpop.permute.xlu0 %12996 }
 0x42f   :  { %v12999_v51 = vunpack.i.h.bf16 %v12997_v25  ;;  %v12998_v47 = vunpack.i.l.bf16 %v12997_v25  ;;  %v17379_v50 = vpop.permute.xlu1 %6463  ;;  %v6275_v25 = vld [vmem:[#allocation6 + $0x18] sm:$0xf] }
 0x431   :  { %6423 = vrot.lane.b32.xlu1 %v6315_v29, %s18408_s25  ;;  %v5733_v59 = vsel %vm5670_vm12, %v5717_v10, %v12998_v47  ;;  %v5734_v34 = vsel %vm5670_vm12, %v5718_v46, %v12999_v51  ;;  %v6322_v51 = vld [vmem:[#allocation6 + $0x18] sm:$0xf]  ;;  %v6500_v47 = vsel %vm4227_vm9, %v6324_v40, %v6456_v37  ;;  %v6273_v46 = vld [vmem:[#allocation6 + $0x8] sm:$0xf] }
 0x432   :  { %v5757_v14 = vpack.c.bf16 %v5734_v34, %v5733_v59  ;;  %v6354_v0 = vpop.permute.xlu0 %6353  ;;  %v6306_v37 = vld [vmem:[#allocation6 + $0x19] sm:$0xf] }
 0x433   :  { %v6473_v10 = vsel %vm4227_vm9, %v6272_v58, %v6354_v0 }
 0x434   :  { %6022 = vmatprep.mubr.bf16.mxu0 %v5757_v14  ;;  %v6356_v19 = vpop.permute.xlu1 %6355 }
 0x435   :  { %6023 = vmatmul.mubr.bf16.gmra.mrb[92].mxu0 %v5756_v6  ;;  %v6474_v34 = vsel %vm4227_vm9, %v6273_v46, %v6356_v19 }
 0x436   :  { %v17374_v38 = vpop.permute.xlu0 %6361 }
 0x43a   :  { %v6386_v13 = vpop.permute.xlu0 %6385 }
 0x43b   :  { %v6481_v14 = vsel %vm4227_vm9, %v6288_v20, %v6386_v13 }
 0x43e   :  { %v6418_v5 = vpop.permute.xlu0 %6417 }
 0x442   :  { %v6358_v62 = vpop.permute.xlu0 %6357 }
 0x443   :  { %v6475_v6 = vsel %vm4227_vm9, %v6274_v28, %v6358_v62 }
 0x446   :  { %v6450_v35 = vpop.permute.xlu0 %6449 }
 0x468   :  { %v11040_v18 = vpop.f32.mrb[80].mxu0 }
 0x469   :  { %v11041_v63 = vpop.f32.mrb[81].mxu0 }
 0x46a   :  { %v11042_v48 = vadd.f32 %v11041_v63, %v11040_v18  ;;  %v11043_v53 = vpop.f32.mrb[82].mxu0  ;;  %v6497_v18 = vsel %vm4227_vm9, %v6321_v7, %v6450_v35  ;;  %v6290_v63 = vld [vmem:[#allocation6 + $0x12] sm:$0xf] }
 0x46b   :  { %v11044_v61 = vpop.f32.mrb[83].mxu0 }
 0x46c   :  { %v6001_v54 = vadd.f32 %v11042_v48, %v17153_v11  ;;  %v11045_v60 = vadd.f32 %v11044_v61, %v11043_v53  ;;  %v6323_v48 = vld [vmem:[#allocation6 + $0x20] sm:$0xf]  ;;  %v6291_v61 = vld [vmem:[#allocation6 + $0x1a] sm:$0xf] }
 0x46e   :  { %v6098_v56 = vadd.f32 %v6097_v12, %v6001_v54  ;;  %v6004_v39 = vadd.f32 %v11045_v60, %v17153_v11  ;;  %v6388_v12 = vpop.permute.xlu1 %6387 }
 0x46f   :  { %v6482_v29 = vsel %vm4227_vm9, %v6289_v22, %v6388_v12 }
 0x470   :  { %v6136_v57 = vmax.f32 %v6098_v56, 0.0  ;;  %v6101_v55 = vadd.f32 %v6100_v26, %v6004_v39 }
 0x472   :  { %6152 = vst.msk [vmem:[#allocation5 + $0x40] sm:$0xff] %vm4227_vm9, %v6136_v57  ;;  %v6137_v45 = vmax.f32 %v6101_v55, 0.0  ;;  %v6420_v21 = vpop.permute.xlu1 %6419  ;;  %v10662_v55 = vcombine.low %v6481_v14, %v6482_v29 }
 0x474   :  { %6153 = vst.msk [vmem:[#allocation5 + $0x48] sm:$0xff] %vm4227_vm9, %v6137_v45  ;;  %v6305_v45 = vld [vmem:[#allocation6 + $0x11] sm:$0xf] }
 0x479   :  { %v6176_v31 = vld [vmem:[#allocation5 + $0x40] ss:$2 sm:$0xf]  ;;  %v6208_v43 = vld [vmem:[#allocation5 + $0x41] ss:$2 sm:$0xf] }
 0x47a   :  { %v6231_v33 = vmax.f32 %v6176_v31, %v6208_v43 }
 0x47b   :  { %v6178_v3 = vld [vmem:[#allocation5 + $0x48] ss:$2 sm:$0xf]  ;;  %v6210_v27 = vld [vmem:[#allocation5 + $0x49] ss:$2 sm:$0xf]  ;;  %v6390_v44 = vpop.permute.xlu0 %6389 }
 0x47c   :  { %v6232_v16 = vmax.f32 %v6178_v3, %v6210_v27  ;;  %v6251_v9 = vsel %vm244_vm14, %v6231_v33, -inf  ;;  %v6360_v23 = vpop.permute.xlu1 %6359  ;;  %v6483_v60 = vsel %vm4227_vm9, %v6290_v63, %v6390_v44  ;;  %v10661_v33 = vcombine.low %v6473_v10, %v6474_v34  ;;  %v6304_v27 = vld [vmem:[#allocation6 + $0x9] sm:$0xf] }
 0x47d   :  { %v6476_v32 = vsel %vm4227_vm9, %v6275_v25, %v6360_v23  ;;  %v6490_v3 = vsel %vm4227_vm9, %v6305_v45, %v6420_v21  ;;  %v6489_v13 = vsel %vm4227_vm9, %v6304_v27, %v6418_v5 }
 0x47e   :  { %v6252_v52 = vsel %vm244_vm14, %v6232_v16, -inf  ;;  %v10665_v56 = vcombine.low %v6475_v6, %v6476_v32  ;;  %v6307_v16 = vld [vmem:[#allocation6 + $0x21] sm:$0xf]  ;;  %v10663_v12 = vcombine.low %v6489_v13, %v6490_v3 }
 0x47f   :  { %v6253_v8 = vmax.f32 %v6251_v9, %v6252_v52  ;;  %v6422_v26 = vpop.permute.xlu0 %6421 }
 0x480   :  { %v6452_v36 = vpop.permute.xlu1 %6451  ;;  %v6601_v19 = vpack.c.bf16 %v10665_v56, %v10661_v33 }
 0x481   :  { %6268 = vst.msk [vmem:[#allocation6 + $0x39] sm:$0xf] %vm244_vm14, %v6253_v8  ;;  %v6498_v59 = vsel %vm4227_vm9, %v6322_v51, %v6452_v36 }
 0x482   :  { %v10664_v0 = vcombine.low %v6497_v18, %v6498_v59 }
 0x487   :  { %v17381_v24 = vpop.f32.mrb[12].mxu1 }
 0x488   :  { %v6300_v41 = vld [vmem:[#allocation6 + $0x38] sm:$0xf]  ;;  %v17383_v2 = vpop.f32.mrb[13].mxu1 }
 0x489   :  { %v6285_v49 = vld [vmem:[#allocation6 + $0x39] sm:$0xf]  ;;  %6393 = vrot.lane.b32.xlu0 %v6300_v41, %s18408_s25  ;;  %v17387_v42 = vpop.f32.mrb[14].mxu1  ;;  %v6491_v41 = vsel %vm4227_vm9, %v6306_v37, %v6422_v26 }
 0x48a   :  { %6363 = vrot.lane.b32.xlu1 %v6285_v49, %s18408_s25  ;;  %v17389_v30 = vpop.f32.mrb[15].mxu1  ;;  %v6316_v17 = vld [vmem:[#allocation6 + $0x3a] sm:$0xf] }
 0x48d   :  { %6425 = vrot.lane.b32.xlu0 %v6316_v17, %s18408_s25 }
 0x49e   :  { %v6454_v53 = vpop.permute.xlu0 %6453 }
 0x49f   :  { %v6392_v54 = vpop.permute.xlu1 %6391  ;;  %v6499_v39 = vsel %vm4227_vm9, %v6323_v48, %v6454_v53 }
 0x4a0   :  { %v6484_v57 = vsel %vm4227_vm9, %v6291_v61, %v6392_v54  ;;  %v10668_v31 = vcombine.low %v6499_v39, %v6500_v47 }
 0x4a1   :  { %v10666_v43 = vcombine.low %v6483_v60, %v6484_v57 }
 0x4a2   :  { %v6604_v8 = vpack.c.bf16 %v10668_v31, %v10664_v0 }
 0x4a3   :  { %v6424_v9 = vpop.permute.xlu1 %6423  ;;  %v6602_v52 = vpack.c.bf16 %v10666_v43, %v10662_v55 }
 0x4a4   :  { %v6492_v49 = vsel %vm4227_vm9, %v6307_v16, %v6424_v9  ;;  %6993 = vmatprep.mubr.bf16.mxu0 %v6604_v8 }
 0x4a5   :  { %v10667_v62 = vcombine.low %v6491_v41, %v6492_v49  ;;  %6944 = vmatprep.mubr.bf16.mxu1 %v6602_v52 }
 0x4a6   :  { %6945 = vmatmul.mubr.bf16.vlgmr.msra.gmra.mrb[16].mxu1 %v6601_v19 }
 0x4a7   :  { %v6603_v17 = vpack.c.bf16 %v10667_v62, %v10663_v12 }
 0x4a8   :  { %v11046_v21 = vpop.f32.mrb[84].mxu0 }
 0x4a9   :  { %v11047_v35 = vpop.f32.mrb[85].mxu0  ;;  %6994 = vmatmul.mubr.bf16.vlgmr.msra.gmra.mrb[96].mxu0 %v6603_v17 }
 0x4aa   :  { %v11048_v44 = vadd.f32 %v11047_v35, %v11046_v21  ;;  %v11049_v23 = vpop.f32.mrb[86].mxu0 }
 0x4ab   :  { %v11050_v40 = vpop.f32.mrb[87].mxu0 }
 0x4ac   :  { %v6009_v58 = vadd.f32 %v11048_v44, %v17153_v11  ;;  %v11051_v5 = vadd.f32 %v11050_v40, %v11049_v23 }
 0x4ae   :  { %v6106_v36 = vadd.f32 %v17347_v4, %v6009_v58  ;;  %v6012_v26 = vadd.f32 %v11051_v5, %v17153_v11 }
 0x4b0   :  { %v6138_v20 = vmax.f32 %v6106_v36, 0.0  ;;  %v6109_v25 = vadd.f32 %v17349_v15, %v6012_v26 }
 0x4b2   :  { %6154 = vst.msk [vmem:[#allocation5 + $0x50] sm:$0xff] %vm4227_vm9, %v6138_v20  ;;  %v6139_v22 = vmax.f32 %v6109_v25, 0.0  ;;  %v13063_v25 = vld [vmem:[%s18357_s6 + $0x110] sm:$0xff]  }
 0x4b4   :  { %6155 = vst.msk [vmem:[#allocation5 + $0x58] sm:$0xff] %vm4227_vm9, %v6139_v22  ;;  %v13066_v22 = vld [vmem:[%s18357_s6 + $0x118] sm:$0xff]  }
 0x4b9   :  { %v6180_v32 = vld [vmem:[#allocation5 + $0x50] ss:$2 sm:$0xf]  ;;  %v6212_v51 = vld [vmem:[#allocation5 + $0x51] ss:$2 sm:$0xf] }
 0x4ba   :  { %v6233_v47 = vmax.f32 %v6180_v32, %v6212_v51 }
 0x4bb   :  { %v6182_v10 = vld [vmem:[#allocation5 + $0x58] ss:$2 sm:$0xf]  ;;  %v6214_v46 = vld [vmem:[#allocation5 + $0x59] ss:$2 sm:$0xf] }
 0x4bc   :  { %v6234_v29 = vmax.f32 %v6182_v10, %v6214_v46  ;;  %v6254_v28 = vsel %vm244_vm14, %v6233_v47, -inf }
 0x4be   :  { %v6255_v4 = vsel %vm244_vm14, %v6234_v29, -inf }
 0x4bf   :  { %v6256_v7 = vmax.f32 %v6254_v28, %v6255_v4  ;;  %v17461_v28 = vld [vmem:[%s18358_s7] ss:$0 sm:$0xff] }
 0x4c1   :  { %6269 = vst.msk [vmem:[#allocation6 + $0x41] sm:$0xf] %vm244_vm14, %v6256_v7 }
 0x4c8   :  { %v6286_v59 = vld [vmem:[#allocation6 + $0x41] sm:$0xf] }
 0x4c9   :  { %v6301_v15 = vld [vmem:[#allocation6 + $0x40] sm:$0xf]  ;;  %6365 = vrot.lane.b32.xlu0 %v6286_v59, %s18408_s25 }
 0x4ca   :  { %6395 = vrot.lane.b32.xlu1 %v6301_v15, %s18408_s25  ;;  %v6333_v34 = vld [vmem:[#allocation6 + $0x41] sm:$0xf] }
 0x4cb   :  { %v6317_v10 = vld [vmem:[#allocation6 + $0x42] sm:$0xf] }
 0x4cd   :  { %6457 = vrot.lane.b32.xlu0 %v6333_v34, %s18408_s25 }
 0x4e8   :  { %v11052_v14 = vpop.f32.mrb[88].mxu0 }
 0x4e9   :  { %v11053_v6 = vpop.f32.mrb[89].mxu0 }
 0x4ea   :  { %v11054_v18 = vadd.f32 %v11053_v6, %v11052_v14  ;;  %v11055_v63 = vpop.f32.mrb[90].mxu0 }
 0x4eb   :  { %v11056_v48 = vpop.f32.mrb[91].mxu0 }
 0x4ec   :  { %v6017_v53 = vadd.f32 %v11054_v18, %v17153_v11  ;;  %v11057_v61 = vadd.f32 %v11056_v48, %v11055_v63 }
 0x4ee   :  { %v6114_v54 = vadd.f32 %v17383_v2, %v6017_v53  ;;  %v6020_v60 = vadd.f32 %v11057_v61, %v17153_v11 }
 0x4f0   :  { %v6140_v56 = vmax.f32 %v6114_v54, 0.0  ;;  %v6117_v39 = vadd.f32 %v17389_v30, %v6020_v60  ;;  %v13061_v30 = vld [vmem:[%s18357_s6 + $0x100] sm:$0xff]  }
 0x4f1   :  { %11386 = vmatprep.subr.bf16.mxu1 %v13061_v30 }
 0x4f2   :  { %6156 = vst.msk [vmem:[#allocation5 + $0x60] sm:$0xff] %vm4227_vm9, %v6140_v56  ;;  %v6141_v57 = vmax.f32 %v6117_v39, 0.0  ;;  %11387 = vmatpush3.bf16.msra.mxu1 %v13061_v30  ;;  %v6292_v30 = vld [vmem:[#allocation6 + $0x32] sm:$0xf] }
 0x4f4   :  { %6157 = vst.msk [vmem:[#allocation5 + $0x68] sm:$0xff] %vm4227_vm9, %v6141_v57 }
 0x4f9   :  { %v6184_v55 = vld [vmem:[#allocation5 + $0x60] ss:$2 sm:$0xf]  ;;  %v6216_v45 = vld [vmem:[#allocation5 + $0x61] ss:$2 sm:$0xf] }
 0x4fa   :  { %v6235_v0 = vmax.f32 %v6184_v55, %v6216_v45 }
 0x4fb   :  { %v6186_v31 = vld [vmem:[#allocation5 + $0x68] ss:$2 sm:$0xf]  ;;  %v6218_v43 = vld [vmem:[#allocation5 + $0x69] ss:$2 sm:$0xf]  ;;  %v6394_v39 = vpop.permute.xlu0 %6393 }
 0x4fc   :  { %v6236_v33 = vmax.f32 %v6186_v31, %v6218_v43  ;;  %v6257_v3 = vsel %vm244_vm14, %v6235_v0, -inf  ;;  %v6364_v57 = vpop.permute.xlu1 %6363 }
 0x4fe   :  { %v6258_v2 = vsel %vm244_vm14, %v6236_v33, -inf  ;;  %v6328_v33 = vld [vmem:[#allocation6 + $0x58] sm:$0xf] }
 0x4ff   :  { %v6259_v27 = vmax.f32 %v6257_v3, %v6258_v2  ;;  %v6426_v55 = vpop.permute.xlu0 %6425  ;;  %v6276_v3 = vld [vmem:[#allocation6 + $0x30] sm:$0xf] }
 0x501   :  { %6270 = vst.msk [vmem:[#allocation6 + $0x49] sm:$0xf] %vm244_vm14, %v6259_v27 }
 0x508   :  { %v6302_v37 = vld [vmem:[#allocation6 + $0x48] sm:$0xf]  ;;  %v11058_v9 = vpop.f32.mrb[92].mxu0 }
 0x509   :  { %v6287_v16 = vld [vmem:[#allocation6 + $0x49] sm:$0xf]  ;;  %6397 = vrot.lane.b32.xlu0 %v6302_v37, %s18408_s25  ;;  %v11059_v52 = vpop.f32.mrb[93].mxu0 }
 0x50a   :  { %6367 = vrot.lane.b32.xlu1 %v6287_v16, %s18408_s25  ;;  %v11060_v8 = vadd.f32 %v11059_v52, %v11058_v9  ;;  %v11061_v13 = vpop.f32.mrb[94].mxu0  ;;  %v6334_v41 = vld [vmem:[#allocation6 + $0x49] sm:$0xf]  ;;  %v6293_v16 = vld [vmem:[#allocation6 + $0x3a] sm:$0xf] }
 0x50b   :  { %v11062_v19 = vpop.f32.mrb[95].mxu0  ;;  %v6318_v47 = vld [vmem:[#allocation6 + $0x4a] sm:$0xf] }
 0x50c   :  { %v6025_v49 = vadd.f32 %v11060_v8, %v17153_v11  ;;  %v11063_v12 = vadd.f32 %v11062_v19, %v11061_v13  ;;  %v6279_v37 = vld [vmem:[#allocation6 + $0x48] sm:$0xf]  ;;  %v6504_v8 = vsel %vm4227_vm9, %v6328_v33, %v17379_v50  ;;  %v6477_v13 = vsel %vm4227_vm9, %v6276_v3, %v17374_v38  ;;  %v6277_v19 = vld [vmem:[#allocation6 + $0x38] sm:$0xf]  ;;  %v13072_v33 = vld [vmem:[%s18359_s8 + $0x80] sm:$0xff]  }
 0x50d   :  { %v6326_v52 = vld [vmem:[#allocation6 + $0x48] sm:$0xf] }
 0x50e   :  { %6459 = vrot.lane.b32.xlu1 %v6334_v41, %s18408_s25  ;;  %v6122_v62 = vadd.f32 %v17381_v24, %v6025_v49  ;;  %v6028_v17 = vadd.f32 %v11063_v12, %v17153_v11  ;;  %v13062_v24 = vld [vmem:[%s18357_s6 + $0x108] sm:$0xff]   ;;  %v6278_v41 = vld [vmem:[#allocation6 + $0x40] sm:$0xf] }
 0x50f   :  { %11388 = vmatprep.subr.bf16.mxu1 %v13062_v24  ;;  %v6325_v12 = vld [vmem:[#allocation6 + $0x40] sm:$0xf]  ;;  %v13073_v3 = vld [vmem:[%s18359_s8 + $0x48] sm:$0xff]  }
 0x510   :  { %v6142_v21 = vmax.f32 %v6122_v62, 0.0  ;;  %v6125_v35 = vadd.f32 %v17387_v42, %v6028_v17  ;;  %11389 = vmatpush3.bf16.msra.mxu1 %v13062_v24  ;;  %v6485_v17 = vsel %vm4227_vm9, %v6292_v30, %v6394_v39  ;;  %v13076_v30 = vld [vmem:[%s18359_s8 + $0x88] sm:$0xff]  }
 0x511   :  { %11390 = vmatprep.subr.bf16.mxu1 %v13063_v25 }
 0x512   :  { %6158 = vst.msk [vmem:[#allocation5 + $0x70] sm:$0xff] %vm4227_vm9, %v6142_v21  ;;  %v6143_v44 = vmax.f32 %v6125_v35, 0.0  ;;  %v6478_v21 = vsel %vm4227_vm9, %v6277_v19, %v6364_v57  ;;  %v13067_v57 = vld [vmem:[#allocation6 + $0x42] ss:$8 sps:$4 sm:$0xff]   ;;  %v13082_v19 = vld [vmem:[%s18359_s8 + $0x18] sm:$0xff]  }
 0x514   :  { %6159 = vst.msk [vmem:[#allocation5 + $0x78] sm:$0xff] %vm4227_vm9, %v6143_v44  ;;  %11391 = vmatpush3.bf16.msra.mxu1 %v13063_v25 }
 0x515   :  { %11392 = vmatprep.subr.bf16.mxu1 %v13066_v22 }
 0x518   :  { %11393 = vmatpush3.bf16.msra.mxu1 %v13066_v22  ;;  %v13065_v22 = vld [vmem:[#allocation6 + $0x22] ss:$8 sps:$4 sm:$0xff]  }
 0x519   :  { %v6188_v23 = vld [vmem:[#allocation5 + $0x70] ss:$2 sm:$0xf]  ;;  %v6220_v40 = vld [vmem:[#allocation5 + $0x71] ss:$2 sm:$0xf] }
 0x51a   :  { %v6237_v58 = vmax.f32 %v6188_v23, %v6220_v40  ;;  %v6294_v23 = vld [vmem:[#allocation6 + $0x42] sm:$0xf] }
 0x51b   :  { %v6190_v5 = vld [vmem:[#allocation5 + $0x78] ss:$2 sm:$0xf]  ;;  %v6222_v36 = vld [vmem:[#allocation5 + $0x79] ss:$2 sm:$0xf] }
 0x51c   :  { %v6238_v26 = vmax.f32 %v6190_v5, %v6222_v36  ;;  %v6260_v11 = vsel %vm244_vm14, %v6237_v58, -inf  ;;  %v6295_v58 = vld [vmem:[#allocation6 + $0x4a] sm:$0xf] }
 0x51e   :  { %v6261_v20 = vsel %vm244_vm14, %v6238_v26, -inf }
 0x51f   :  { %v6262_v42 = vmax.f32 %v6260_v11, %v6261_v20 }
 0x521   :  { %6271 = vst.msk [vmem:[#allocation6 + $0x51] sm:$0xf] %vm244_vm14, %v6262_v42 }
 0x528   :  { %v6335_v32 = vld [vmem:[#allocation6 + $0x51] sm:$0xf] }
 0x529   :  { %v6303_v51 = vld [vmem:[#allocation6 + $0x50] sm:$0xf]  ;;  %6461 = vrot.lane.b32.xlu0 %v6335_v32, %s18408_s25  ;;  %v10669_v32 = vcombine.low %v6477_v13, %v6478_v21  ;;  %v13083_v13 = vld [vmem:[%s18359_s8 + $0xd8] sm:$0xff]   ;;  %v13088_v21 = vld [vmem:[%s18359_s8 + $0xa0] sm:$0xff]  }
 0x52a   :  { %6399 = vrot.lane.b32.xlu1 %v6303_v51, %s18408_s25  ;;  %v6319_v46 = vld [vmem:[#allocation6 + $0x52] sm:$0xf] }
 0x52b   :  { %v6327_v50 = vld [vmem:[#allocation6 + $0x50] sm:$0xf] }
 0x52d   :  { %6429 = vrot.lane.b32.xlu0 %v6318_v47, %s18408_s25 }
 0x52e   :  { %6427 = vrot.lane.b32.xlu1 %v6317_v10, %s18408_s25 }
 0x532   :  { %6431 = vrot.lane.b32.xlu1 %v6319_v46, %s18408_s25  ;;  %v13064_v46 = vld [vmem:[#allocation6 + $0x12] ss:$8 sps:$4 sm:$0xff]  }
 0x53b   :  { %v6366_v45 = vpop.permute.xlu0 %6365 }
 0x53c   :  { %v6396_v0 = vpop.permute.xlu1 %6395  ;;  %v6479_v35 = vsel %vm4227_vm9, %v6278_v41, %v6366_v45  ;;  %v13085_v41 = vld [vmem:[%s18359_s8 + $0x60] sm:$0xff]  }
 0x53d   :  { %v6486_v49 = vsel %vm4227_vm9, %v6293_v16, %v6396_v0  ;;  %v13078_v16 = vld [vmem:[%s18359_s8 + $0x10] sm:$0xff]  }
 0x53e   :  { %v10670_v11 = vcombine.low %v6485_v17, %v6486_v49  ;;  %v13084_v49 = vld [vmem:[%s18359_s8 + $0x98] sm:$0xff]   ;;  %v13089_v17 = vld [vmem:[%s18359_s8 + $0x68] sm:$0xff]  }
 0x53f   :  { %v6458_v43 = vpop.permute.xlu0 %6457 }
 0x540   :  { %v6501_v44 = vsel %vm4227_vm9, %v6325_v12, %v6458_v43  ;;  %v13071_v43 = vld [vmem:[%s18359_s8 + $0xc0] sm:$0xff]  }
 0x541   :  { %11158 = vmatprep.subr.bf16.mxu0 %v13071_v43  ;;  %v13087_v12 = vld [vmem:[%s18359_s8 + $0xe0] sm:$0xff]  }
 0x542   :  { %11159 = vmatpush3.bf16.msra.mxu0 %v13072_v33 }
 0x579   :  { %v11090_v29 = vpop.f32.mrb[16].mxu1 }
 0x57a   :  { %v11091_v4 = vpop.f32.mrb[17].mxu1 }
 0x57b   :  { %v11092_v7 = vadd.f32 %v11091_v4, %v11090_v29  ;;  %v11093_v59 = vpop.f32.mrb[18].mxu1  ;;  %v6398_v2 = vpop.permute.xlu0 %6397 }
 0x57c   :  { %v11094_v15 = vpop.f32.mrb[19].mxu1  ;;  %v11118_v34 = vpop.f32.mrb[96].mxu0  ;;  %v6487_v5 = vsel %vm4227_vm9, %v6294_v23, %v6398_v2  ;;  %v13074_v2 = vld [vmem:[%s18359_s8 + $0x8] sm:$0xff]   ;;  %v13093_v23 = vld [vmem:[%s18359_s8 + $0x70] sm:$0xff]  }
 0x57d   :  { %v6947_v14 = vadd.f32 %v11092_v7, %v17461_v28  ;;  %v11095_v6 = vadd.f32 %v11094_v15, %v11093_v59  ;;  %v11119_v18 = vpop.f32.mrb[97].mxu0  ;;  %v6368_v31 = vpop.permute.xlu1 %6367  ;;  %v6309_v7 = vld [vmem:[#allocation6 + $0x41] sm:$0xf]  ;;  %v6605_v59 = vpack.c.bf16 %v13065_v22, %v13064_v46 }
 0x57e   :  { %v11120_v63 = vadd.f32 %v11119_v18, %v11118_v34  ;;  %v11121_v48 = vpop.f32.mrb[98].mxu0  ;;  %v6480_v9 = vsel %vm4227_vm9, %v6279_v37, %v6368_v31  ;;  %v6308_v34 = vld [vmem:[#allocation6 + $0x39] sm:$0xf]  ;;  %v13069_v31 = vld [vmem:[%s18359_s8 + $0x40] sm:$0xff]   ;;  %v13077_v37 = vld [vmem:[%s18359_s8 + $0x50] sm:$0xff]  }
 0x57f   :  { %v6950_v53 = vadd.f32 %v11095_v6, %v17461_v28  ;;  %v11122_v61 = vpop.f32.mrb[99].mxu0  ;;  %v10673_v36 = vcombine.low %v6479_v35, %v6480_v9  ;;  %v6311_v6 = vld [vmem:[#allocation6 + $0x51] sm:$0xf]  ;;  %11136 = vmatprep.subr.bf16.mxu1 %v13069_v31  ;;  %v13091_v35 = vld [vmem:[%s18359_s8 + $0xe8] sm:$0xff]  }
 0x580   :  { %v11123_v54 = vadd.f32 %v11122_v61, %v11121_v48  ;;  %v17465_v60 = vadd.f32 %v11120_v63, %v6947_v14  ;;  %v6310_v14 = vld [vmem:[#allocation6 + $0x49] sm:$0xf]  ;;  %v6493_v63 = vsel %vm4227_vm9, %v6308_v34, %v6426_v55  ;;  %v13068_v61 = vld [vmem:[#allocation6 + $0x52] ss:$8 sps:$4 sm:$0xff]   ;;  %v13070_v55 = vld [vmem:[%s18359_s8] sm:$0xff]  }
 0x581   :  { %v6460_v27 = vpop.permute.xlu1 %6459  ;;  %v6606_v29 = vpack.c.bf16 %v10673_v36, %v10669_v32  ;;  %v6610_v0 = vpack.c.bf16 %v13068_v61, %v13067_v57  ;;  %v13079_v9 = vld [vmem:[%s18359_s8 + $0xd0] sm:$0xff]   ;;  %v13099_v36 = vld [vmem:[%s18359_s8 + $0xf8] sm:$0xff]  }
 0x582   :  { %v17467_v56 = vadd.f32 %v11123_v54, %v6950_v53  ;;  %v6502_v62 = vsel %vm4227_vm9, %v6326_v52, %v6460_v27  ;;  %v13075_v27 = vld [vmem:[%s18359_s8 + $0xc8] sm:$0xff]   ;;  %v13081_v52 = vld [vmem:[%s18359_s8 + $0x58] sm:$0xff]  }
 0x583   :  { %v10672_v20 = vcombine.low %v6501_v44, %v6502_v62  ;;  %11160 = vmatprep.subr.bf16.mxu0 %v13075_v27  ;;  %v13086_v62 = vld [vmem:[%s18359_s8 + $0x20] sm:$0xff]   ;;  %v13090_v44 = vld [vmem:[%s18359_s8 + $0x28] sm:$0xff]  }
 0x584   :  { %11161 = vmatpush3.bf16.msra.mxu0 %v13076_v30 }
 0x585   :  { %11162 = vmatprep.subr.bf16.mxu0 %v13079_v9 }
 0x59b   :  { %v6462_v40 = vpop.permute.xlu0 %6461 }
 0x59c   :  { %v6400_v38 = vpop.permute.xlu1 %6399  ;;  %v6503_v26 = vsel %vm4227_vm9, %v6327_v50, %v6462_v40  ;;  %v13092_v50 = vld [vmem:[%s18359_s8 + $0xa8] sm:$0xff]   ;;  %v13095_v40 = vld [vmem:[%s18359_s8 + $0xf0] sm:$0xff]  }
 0x59d   :  { %v6488_v24 = vsel %vm4227_vm9, %v6295_v58, %v6400_v38  ;;  %v10676_v42 = vcombine.low %v6503_v26, %v6504_v8  ;;  %v13080_v8 = vld [vmem:[%s18359_s8 + $0x90] sm:$0xff]   ;;  %v13097_v38 = vld [vmem:[%s18359_s8 + $0x78] sm:$0xff]  }
 0x59e   :  { %v10674_v25 = vcombine.low %v6487_v5, %v6488_v24  ;;  %11163 = vmatpush3.bf16.msra.mxu0 %v13080_v8  ;;  %v13094_v58 = vld [vmem:[%s18359_s8 + $0x30] sm:$0xff]   ;;  %v13098_v26 = vld [vmem:[%s18359_s8 + $0x38] sm:$0xff]   ;;  %v13101_v24 = vld [vmem:[%s18359_s8 + $0x140] sm:$0xff]   ;;  %v7218_v8 = vlaneseq }
 0x59f   :  { %v6609_v10 = vpack.c.bf16 %v10676_v42, %v10672_v20  ;;  %v6430_v4 = vpop.permute.xlu0 %6429  ;;  %11164 = vmatprep.subr.bf16.mxu0 %v13083_v13  ;;  %v13096_v5 = vld [vmem:[%s18359_s8 + $0xb0] sm:$0xff]   ;;  %v13103_v20 = vld [vmem:[%s18359_s8 + $0x1c0] sm:$0xff]  }
 0x5a0   :  { %v6428_v51 = vpop.permute.xlu1 %6427  ;;  %v6607_v47 = vpack.c.bf16 %v10674_v25, %v10670_v11  ;;  %v6495_v48 = vsel %vm4227_vm9, %v6310_v14, %v6430_v4  ;;  %v13100_v11 = vld [vmem:[%s18359_s8 + $0xb8] sm:$0xff]  }
 0x5a1   :  { %7001 = vmatprep.mubr.bf16.mxu0 %v6609_v10  ;;  %v6494_v15 = vsel %vm4227_vm9, %v6309_v7, %v6428_v51 }
 0x5a2   :  { %6952 = vmatprep.mubr.bf16.mxu1 %v6607_v47  ;;  %v10671_v54 = vcombine.low %v6493_v63, %v6494_v15  ;;  %11165 = vmatpush3.bf16.msra.mxu0 %v13084_v49  ;;  %v13363_v49 = vmov 1983009808  }
 0x5a3   :  { %6953 = vmatmul.mubr.bf16.gmra.mrb[20].mxu1 %v6606_v29  ;;  %11166 = vmatprep.subr.bf16.mxu0 %v13087_v12  ;;  %v7216_v12 = vunpack.c.l.s4 %v13363_v49 }
 0x5a4   :  { %v6432_v18 = vpop.permute.xlu1 %6431  ;;  %11394 = vmatprep.mubr.msk.bf16.mxu1 %vm4227_vm9, %v6605_v59 }
 0x5a5   :  { %v6496_v53 = vsel %vm4227_vm9, %v6311_v6, %v6432_v18 }
 0x5a6   :  { %v10675_v39 = vcombine.low %v6495_v48, %v6496_v53  ;;  %11167 = vmatpush3.bf16.msra.mxu0 %v13088_v21 }
 0x5a7   :  { %11168 = vmatprep.subr.bf16.mxu0 %v13091_v35 }
 0x5a8   :  { %v6608_v45 = vpack.c.bf16 %v10675_v39, %v10671_v54 }
 0x5aa   :  { %7002 = vmatmul.mubr.bf16.gmra.mrb[100].mxu0 %v6608_v45 }
 0x5ab   :  { %11395 = vmatmul.mubr.msk.bf16.vlgmr.msra.gmra.mrb[24].mxu1 %vm4227_vm9, %v6610_v0  ;;  %11169 = vmatpush3.bf16.msra.mxu0 %v13092_v50 }
 0x5ac   :  { %11137 = vmatpush3.bf16.msra.mxu1 %v13070_v55  ;;  %11170 = vmatprep.subr.bf16.mxu0 %v13095_v40 }
 0x5ad   :  { %11138 = vmatprep.subr.bf16.mxu1 %v13073_v3 }
 0x5af   :  { %11171 = vmatpush3.bf16.msra.mxu0 %v13096_v5 }
 0x5b0   :  { %11139 = vmatpush3.bf16.msra.mxu1 %v13074_v2  ;;  %11172 = vmatprep.subr.bf16.mxu0 %v13099_v36  ;;  %v7140_v36 = vld [vmem:[#allocation8] sm:$0x3] }
 0x5b1   :  { %11140 = vmatprep.subr.bf16.mxu1 %v13077_v37 }
 0x5b3   :  { %11173 = vmatpush3.bf16.msra.mxu0 %v13100_v11 }
 0x5b4   :  { %11141 = vmatpush3.bf16.msra.mxu1 %v13078_v16  ;;  %11202 = vmatprep.subr.bf16.mxu0 %v13103_v20 }
 0x5b5   :  { %11142 = vmatprep.subr.bf16.mxu1 %v13081_v52 }
 0x5b8   :  { %11143 = vmatpush3.bf16.msra.mxu1 %v13082_v19 }
 0x5b9   :  { %11144 = vmatprep.subr.bf16.mxu1 %v13085_v41 }
 0x5bc   :  { %11145 = vmatpush3.bf16.msra.mxu1 %v13086_v62 }
 0x5bd   :  { %11146 = vmatprep.subr.bf16.mxu1 %v13089_v17 }
 0x5c0   :  { %11147 = vmatpush3.bf16.msra.mxu1 %v13090_v44 }
 0x5c1   :  { %11148 = vmatprep.subr.bf16.mxu1 %v13093_v23 }
 0x5c4   :  { %11149 = vmatpush3.bf16.msra.mxu1 %v13094_v58 }
 0x5c5   :  { %11150 = vmatprep.subr.bf16.mxu1 %v13097_v38 }
 0x5c8   :  { %11151 = vmatpush3.bf16.msra.mxu1 %v13098_v26  ;;  %v17600_v26 = vshrl.u32 %v7218_v8, 7 }
 0x5c9   :  { %11180 = vmatprep.subr.bf16.mxu1 %v13101_v24 }
 0x676   :  { %v11096_v42 = vpop.f32.mrb[20].mxu1 }
 0x677   :  { %v11097_v25 = vpop.f32.mrb[21].mxu1 }
 0x678   :  { %v11098_v22 = vadd.f32 %v11097_v25, %v11096_v42  ;;  %v11099_v32 = vpop.f32.mrb[22].mxu1  ;;  %v7217_v25 = vunpack.c.0.s8 %v7216_v12 }
 0x679   :  { %v11100_v51 = vpop.f32.mrb[23].mxu1 }
 0x67a   :  { %v11101_v47 = vadd.f32 %v11100_v51, %v11099_v32  ;;  %v6955_v4 = vadd.f32 %v11098_v22, %v17461_v28  ;;  %v7144_v51 = vld [vmem:[#allocation8 + $0x1] sm:$0x3] }
 0x67c   :  { %v6958_v18 = vadd.f32 %v11101_v47, %v17461_v28 }
 0x67d   :  { %v11124_v10 = vpop.f32.mrb[100].mxu0 }
 0x67e   :  { %v11125_v46 = vpop.f32.mrb[101].mxu0  ;;  %v11396_v29 = vpop.f32.mrb[24].mxu1 }
 0x67f   :  { %v11126_v7 = vadd.f32 %v11125_v46, %v11124_v10  ;;  %v11127_v59 = vpop.f32.mrb[102].mxu0  ;;  %v7044_v15 = vpop.f32.mrb[25].mxu1 }
 0x680   :  { %v7045_v34 = vadd.f32 %v7044_v15, %v17465_v60  ;;  %v11128_v14 = vpop.f32.mrb[103].mxu0  ;;  %v11397_v6 = vpop.f32.mrb[26].mxu1 }
 0x681   :  { %v7004_v63 = vadd.f32 %v11126_v7, %v6955_v4  ;;  %v11129_v48 = vadd.f32 %v11128_v14, %v11127_v59  ;;  %v7047_v53 = vpop.f32.mrb[27].mxu1  ;;  %v7142_v4 = vld [vmem:[#allocation8 + $0x10] sm:$0x3]  ;;  %v17607_v14 = vsub.s32 %v7217_v25, %v17600_v26 }
 0x682   :  { %v7059_v61 = vmax.f32 %v7045_v34, 0.0  ;;  %v7048_v54 = vadd.f32 %v7047_v53, %v17467_v56  ;;  %v7146_v7 = vld [vmem:[#allocation8 + $0x11] sm:$0x3]  ;;  %v7213_v34 = vcombine.low %v7140_v36, %v7144_v51  ;;  %v7172_v53 = vld [vmem:[#allocation8 + $0x1d] sm:$0x3] }
 0x683   :  { %v7053_v39 = vadd.f32 %v11396_v29, %v7004_v63  ;;  %v7007_v57 = vadd.f32 %v11129_v48, %v6958_v18  ;;  %v7168_v63 = vld [vmem:[#allocation8 + $0x1c] sm:$0x3]  ;;  %v7170_v48 = vld [vmem:[#allocation8 + $0xd] sm:$0x3] }
 0x684   :  { %v7067_v45 = vcombine.high %v7059_v61, %v7059_v61  ;;  %7075 = vst [vmem:[#allocation7] sm:$0xf] %v7059_v61  ;;  %v7060_v0 = vmax.f32 %v7048_v54, 0.0  ;;  %v7295_v61 = vcombine.low %v7142_v4, %v7146_v7  ;;  %v7148_v54 = vld [vmem:[#allocation8 + $0x2] sm:$0x3] }
 0x685   :  { %v7061_v31 = vmax.f32 %v7053_v39, 0.0  ;;  %v7056_v55 = vadd.f32 %v11397_v6, %v7007_v57  ;;  %v7166_v6 = vld [vmem:[#allocation8 + $0xc] sm:$0x3] }
 0x686   :  { %7076 = vst [vmem:[#allocation7 + $0x4] sm:$0xf] %v7067_v45  ;;  %v7068_v43 = vcombine.high %v7060_v0, %v7060_v0  ;;  %7077 = vst [vmem:[#allocation7 + $0x8] sm:$0xf] %v7060_v0  ;;  %v7150_v45 = vld [vmem:[#allocation8 + $0x12] sm:$0x3]  ;;  %v7221_v0 = vrot.slane %v7213_v34, %v17607_v14 }
 0x687   :  { %v7069_v60 = vcombine.high %v7061_v31, %v7061_v31  ;;  %7079 = vst [vmem:[#allocation7 + $0x10] sm:$0xf] %v7061_v31  ;;  %v7062_v33 = vmax.f32 %v7056_v55, 0.0 }
 0x688   :  { %7078 = vst [vmem:[#allocation7 + $0xc] sm:$0xf] %v7068_v43 }
 0x689   :  { %7080 = vst [vmem:[#allocation7 + $0x14] sm:$0xf] %v7069_v60  ;;  %v7070_v28 = vcombine.high %v7062_v33, %v7062_v33  ;;  %7081 = vst [vmem:[#allocation7 + $0x18] sm:$0xf] %v7062_v33  ;;  %v7272_v33 = vcombine.low %v7166_v6, %v7170_v48 }
 0x68b   :  { %v7083_v3 = vld [vmem:[#allocation7] ss:$2 sm:$0x3]  ;;  %v7099_v2 = vld [vmem:[#allocation7 + $0x1] ss:$2 sm:$0x3] }
 0x68c   :  { %7082 = vst [vmem:[#allocation7 + $0x1c] sm:$0xf] %v7070_v28  ;;  %v7114_v30 = vmax.f32 %v7083_v3, %v7099_v2  ;;  %v7354_v28 = vcombine.low %v7168_v63, %v7172_v53 }
 0x68d   :  { %v7085_v56 = vld [vmem:[#allocation7 + $0x4] ss:$2 sm:$0x3]  ;;  %v7101_v27 = vld [vmem:[#allocation7 + $0x5] ss:$2 sm:$0x3] }
 0x68e   :  { %v7091_v37 = vld [vmem:[#allocation7 + $0x10] ss:$2 sm:$0x3]  ;;  %v7107_v16 = vld [vmem:[#allocation7 + $0x11] ss:$2 sm:$0x3]  ;;  %v7115_v9 = vmax.f32 %v7085_v56, %v7101_v27 }
 0x68f   :  { %v7118_v52 = vmax.f32 %v7091_v37, %v7107_v16  ;;  %v7087_v41 = vld [vmem:[#allocation7 + $0x8] ss:$2 sm:$0x3]  ;;  %v7123_v17 = vsel %vm7122_vm15, %v7114_v30, -inf  ;;  %v7303_v37 = vrot.slane %v7295_v61, %v17607_v14 }
 0x690   :  { %v7093_v13 = vld [vmem:[#allocation7 + $0x14] ss:$2 sm:$0x3]  ;;  %v7109_v19 = vld [vmem:[#allocation7 + $0x15] ss:$2 sm:$0x3] }
 0x691   :  { %v7119_v62 = vmax.f32 %v7093_v13, %v7109_v19  ;;  %v7124_v21 = vsel %vm7122_vm15, %v7115_v9, -inf  ;;  %v7095_v35 = vld [vmem:[#allocation7 + $0x18] ss:$2 sm:$0x3]  ;;  %v7129_v40 = vsel %vm7122_vm15, %v7118_v52, -inf }
 0x692   :  { %v7125_v44 = vmax.f32 %v7123_v17, %v7124_v21  ;;  %v7111_v50 = vld [vmem:[#allocation7 + $0x19] ss:$2 sm:$0x3]  ;;  %v7089_v20 = vld [vmem:[#allocation7 + $0xc] ss:$2 sm:$0x3] }
 0x693   :  { %v7097_v23 = vld [vmem:[#allocation7 + $0x1c] ss:$2 sm:$0x3]  ;;  %v7130_v58 = vsel %vm7122_vm15, %v7119_v62, -inf  ;;  %v7120_v5 = vmax.f32 %v7095_v35, %v7111_v50 }
 0x694   :  { %v7113_v38 = vld [vmem:[#allocation7 + $0x1d] ss:$2 sm:$0x3]  ;;  %v7131_v24 = vmax.f32 %v7129_v40, %v7130_v58  ;;  %7136 = vst [vmem:[#allocation8 + $0x5] sm:$0x3] %v7125_v44  ;;  %v7286_v44 = vrot.slane %v7272_v33, %v17607_v14  ;;  %v13102_v33 = vld [vmem:[%s18359_s8 + $0x100] sm:$0xff]  }
 0x695   :  { %v7121_v11 = vmax.f32 %v7097_v23, %v7113_v38  ;;  %v7103_v42 = vld [vmem:[#allocation7 + $0x9] ss:$2 sm:$0x3]  ;;  %v7105_v22 = vld [vmem:[#allocation7 + $0xd] ss:$2 sm:$0x3]  ;;  %v7368_v23 = vrot.slane %v7354_v28, %v17607_v14 }
 0x696   :  { %v7116_v32 = vmax.f32 %v7087_v41, %v7103_v42  ;;  %7138 = vst [vmem:[#allocation8 + $0x15] sm:$0x3] %v7131_v24  ;;  %v7132_v47 = vsel %vm7122_vm15, %v7120_v5, -inf  ;;  %v7117_v46 = vmax.f32 %v7089_v20, %v7105_v22 }
 0x697   :  { %v7133_v10 = vsel %vm7122_vm15, %v7121_v11, -inf }
 0x698   :  { %v7134_v29 = vmax.f32 %v7132_v47, %v7133_v10  ;;  %v7126_v59 = vsel %vm7122_vm15, %v7116_v32, -inf  ;;  %v7127_v15 = vsel %vm7122_vm15, %v7117_v46, -inf }
 0x699   :  { %v7128_v18 = vmax.f32 %v7126_v59, %v7127_v15 }
 0x69a   :  { %7139 = vst [vmem:[#allocation8 + $0x19] sm:$0x3] %v7134_v29 }
 0x69b   :  { %7137 = vst [vmem:[#allocation8 + $0x9] sm:$0x3] %v7128_v18  ;;  %v7141_v39 = vld [vmem:[#allocation8 + $0x4] sm:$0x3]  ;;  %v7160_v60 = vld [vmem:[#allocation8 + $0x6] sm:$0x3] }
 0x69c   :  { %v7145_v57 = vld [vmem:[#allocation8 + $0x5] sm:$0x3] }
 0x69d   :  { %v7254_v31 = vcombine.low %v7141_v39, %v7145_v57  ;;  %v7152_v55 = vld [vmem:[#allocation8 + $0x4] sm:$0x3]  ;;  %v7143_v3 = vld [vmem:[#allocation8 + $0x14] sm:$0x3]  ;;  %v7162_v13 = vld [vmem:[#allocation8 + $0x16] sm:$0x3] }
 0x69e   :  { %v7156_v43 = vld [vmem:[#allocation8 + $0x5] sm:$0x3]  ;;  %v7147_v2 = vld [vmem:[#allocation8 + $0x15] sm:$0x3]  ;;  %v7214_v56 = vcombine.low %v7148_v54, %v7152_v55 }
 0x69f   :  { %v7230_v27 = vcombine.low %v7156_v43, %v7160_v60  ;;  %v7262_v30 = vrot.slane %v7254_v31, %v17607_v14  ;;  %v7336_v16 = vcombine.low %v7143_v3, %v7147_v2  ;;  %v7154_v9 = vld [vmem:[#allocation8 + $0x14] sm:$0x3]  ;;  %v7151_v19 = vld [vmem:[#allocation8 + $0x16] sm:$0x3]  ;;  %v7149_v50 = vld [vmem:[#allocation8 + $0x6] sm:$0x3] }
 0x6a0   :  { %v7158_v52 = vld [vmem:[#allocation8 + $0x15] sm:$0x3]  ;;  %v7296_v41 = vcombine.low %v7150_v45, %v7154_v9  ;;  %v7228_v40 = vrot.slane %v7214_v56, %v17607_v14 }
 0x6a1   :  { %v7312_v49 = vcombine.low %v7158_v52, %v7162_v13  ;;  %v7344_v12 = vrot.slane %v7336_v16, %v17607_v14  ;;  %v10720_v62 = vcombine.low %v7221_v0, %v7262_v30  ;;  %v7155_v17 = vld [vmem:[#allocation8 + $0x18] sm:$0x3]  ;;  %v7163_v35 = vld [vmem:[#allocation8 + $0x1a] sm:$0x3]  ;;  %v7238_v38 = vrot.slane %v7230_v27, %v17607_v14  ;;  %v13105_v27 = vld [vmem:[%s18359_s8 + $0x148] sm:$0xff]  }
 0x6a2   :  { %v7159_v21 = vld [vmem:[#allocation8 + $0x19] sm:$0x3]  ;;  %v7337_v58 = vcombine.low %v7151_v19, %v7155_v17  ;;  %v7153_v20 = vld [vmem:[#allocation8 + $0x8] sm:$0x3]  ;;  %v7310_v42 = vrot.slane %v7296_v41, %v17607_v14  ;;  %v7161_v22 = vld [vmem:[#allocation8 + $0xa] sm:$0x3] }
 0x6a3   :  { %v7353_v5 = vcombine.low %v7159_v21, %v7163_v35  ;;  %v7167_v36 = vld [vmem:[#allocation8 + $0x18] sm:$0x3]  ;;  %v10722_v11 = vcombine.low %v7303_v37, %v7344_v12  ;;  %v7157_v25 = vld [vmem:[#allocation8 + $0x9] sm:$0x3]  ;;  %v7320_v32 = vrot.slane %v7312_v49, %v17607_v14  ;;  %v7255_v47 = vcombine.low %v7149_v50, %v7153_v20  ;;  %v13104_v12 = vld [vmem:[%s18359_s8 + $0x180] sm:$0xff]  }
 0x6a4   :  { %v7171_v24 = vld [vmem:[#allocation8 + $0x19] sm:$0x3]  ;;  %v7351_v10 = vrot.slane %v7337_v58, %v17607_v14  ;;  %v7271_v46 = vcombine.low %v7157_v25, %v7161_v22  ;;  %v7165_v4 = vld [vmem:[#allocation8 + $0x8] sm:$0x3]  ;;  %v7387_v59 = vrot.slane %v10720_v62, %v17607_v14  ;;  %v13109_v17 = vld [vmem:[%s18359_s8 + $0x150] sm:$0xff]  }
 0x6a5   :  { %v7313_v51 = vcombine.low %v7167_v36, %v7171_v24  ;;  %v7361_v29 = vrot.slane %v7353_v5, %v17607_v14  ;;  %v7169_v7 = vld [vmem:[#allocation8 + $0x9] sm:$0x3]  ;;  %v7401_v15 = vrot.slane %v10722_v11, %v17607_v14  ;;  %v7269_v18 = vrot.slane %v7255_v47, %v17607_v14  ;;  %v13110_v35 = vld [vmem:[%s18359_s8 + $0x110] sm:$0xff]   ;;  %v13115_v5 = vld [vmem:[%s18359_s8 + $0x1d8] sm:$0xff]  }
 0x6a6   :  { %v7231_v34 = vcombine.low %v7165_v4, %v7169_v7  ;;  %v10723_v63 = vcombine.low %v7310_v42, %v7351_v10  ;;  %v7279_v48 = vrot.slane %v7271_v46, %v17607_v14  ;;  %v13106_v13 = vld [vmem:[%s18359_s8 + $0x108] sm:$0xff]   ;;  %v13111_v50 = vld [vmem:[%s18359_s8 + $0x1d0] sm:$0xff]   ;;  %v13118_v36 = vld [vmem:[%s18359_s8 + $0x120] sm:$0xff]  }
 0x6a7   :  { %v7327_v6 = vrot.slane %v7313_v51, %v17607_v14  ;;  %v10726_v53 = vcombine.low %v7320_v32, %v7361_v29  ;;  %v7410_v61 = vcombine.high %v7387_v59, %v7401_v15  ;;  %v7409_v54 = vcombine.low %v7387_v59, %v7401_v15  ;;  %v13107_v62 = vld [vmem:[%s18359_s8 + $0x1c8] sm:$0xff]   ;;  %v13112_v58 = vld [vmem:[%s18359_s8 + $0x190] sm:$0xff]   ;;  %v13116_v24 = vld [vmem:[%s18359_s8 + $0x198] sm:$0xff]  }
 0x6a8   :  { %v7245_v39 = vrot.slane %v7231_v34, %v17607_v14  ;;  %v10721_v45 = vcombine.low %v7228_v40, %v7269_v18  ;;  %v7408_v0 = vrot.slane %v10723_v63, %v17607_v14  ;;  %v10724_v31 = vcombine.low %v7238_v38, %v7279_v48  ;;  %v13114_v40 = vld [vmem:[%s18359_s8 + $0x118] sm:$0xff]   ;;  %v13117_v38 = vld [vmem:[%s18359_s8 + $0x160] sm:$0xff]   ;;  %v13121_v11 = vld [vmem:[%s18359_s8 + $0x168] sm:$0xff]  }
 0x6a9   :  { %v10727_v57 = vcombine.low %v7327_v6, %v7368_v23  ;;  %v17629_v55 = vrot.slane %v10726_v53, %v17607_v14  ;;  %v7476_v43 = vpack.c.bf16 %v7410_v61, %v7410_v61  ;;  %v7475_v60 = vpack.c.bf16 %v7409_v54, %v7409_v54  ;;  %v13113_v23 = vld [vmem:[%s18359_s8 + $0x158] sm:$0xff]   ;;  %v13119_v20 = vld [vmem:[%s18359_s8 + $0x1e0] sm:$0xff]   ;;  %v13122_v42 = vld [vmem:[%s18359_s8 + $0x128] sm:$0xff]  }
 0x6aa   :  { %v10725_v28 = vcombine.low %v7245_v39, %v7286_v44  ;;  %v7394_v2 = vrot.slane %v10721_v45, %v17607_v14  ;;  %v17639_v56 = vrot.slane %v10724_v31, %v17607_v14  ;;  %v13108_v44 = vld [vmem:[%s18359_s8 + $0x188] sm:$0xff]   ;;  %v13120_v25 = vld [vmem:[%s18359_s8 + $0x1a0] sm:$0xff]   ;;  %v13125_v22 = vld [vmem:[%s18359_s8 + $0x170] sm:$0xff]  }
 0x6ab   :  { %v17635_v3 = vrot.slane %v10727_v57, %v17607_v14  ;;  %8099 = vmatprep.mubr.bf16.mxu1 %v7476_v43  ;;  %v13123_v32 = vld [vmem:[%s18359_s8 + $0x1e8] sm:$0xff]   ;;  %v13126_v51 = vld [vmem:[%s18359_s8 + $0x130] sm:$0xff]   ;;  %v13129_v10 = vld [vmem:[%s18359_s8 + $0x178] sm:$0xff]  }
 0x6ac   :  { %v17645_v30 = vrot.slane %v10725_v28, %v17607_v14  ;;  %8100 = vmatmul.mubr.bf16.vlgmr.msra.gmra.mrb[28].mxu1 %v7475_v60  ;;  %v7411_v37 = vcombine.low %v7394_v2, %v7408_v0  ;;  %v7412_v16 = vcombine.high %v7394_v2, %v7408_v0  ;;  %v7446_v9 = vcombine.high %v17639_v56, %v17629_v55  ;;  %v13124_v47 = vld [vmem:[%s18359_s8 + $0x1a8] sm:$0xff]   ;;  %v13127_v46 = vld [vmem:[%s18359_s8 + $0x1f0] sm:$0xff]   ;;  %v13130_v29 = vld [vmem:[%s18359_s8 + $0x138] sm:$0xff]  }
 0x6ad   :  { %11181 = vmatpush3.bf16.msra.mxu1 %v13102_v33  ;;  %v13128_v4 = vld [vmem:[%s18359_s8 + $0x1b0] sm:$0xff]   ;;  %v7445_v7 = vcombine.low %v17639_v56, %v17629_v55  ;;  %v13131_v59 = vld [vmem:[%s18359_s8 + $0x1f8] sm:$0xff]   ;;  %v13133_v15 = vld [vmem:[%s18359_s8 + $0x200] sm:$0xff]  }
 0x6ae   :  { %v7448_v52 = vcombine.high %v17645_v30, %v17635_v3  ;;  %v7477_v19 = vpack.c.bf16 %v7411_v37, %v7411_v37  ;;  %v7478_v41 = vpack.c.bf16 %v7412_v16, %v7412_v16  ;;  %v7480_v49 = vpack.c.bf16 %v7446_v9, %v7446_v9  ;;  %11182 = vmatprep.subr.bf16.mxu1 %v13105_v27  ;;  %v13132_v34 = vld [vmem:[%s18359_s8 + $0x1b8] sm:$0xff]   ;;  %v13134_v63 = vld [vmem:[%s18359_s8 + $0x208] sm:$0xff]   ;;  %v13135_v53 = vld [vmem:[%s18359_s8 + $0x210] sm:$0xff]  }
 0x6af   :  { %v7479_v6 = vpack.c.bf16 %v7445_v7, %v7445_v7  ;;  %v7447_v18 = vcombine.low %v17645_v30, %v17635_v3  ;;  %v13136_v61 = vld [vmem:[%s18359_s8 + $0x218] sm:$0xff]   ;;  %v13137_v54 = vld [vmem:[%s18359_s8 + $0x220] sm:$0xff]   ;;  %v10717_v45 = vld.sshfl [vmem:[#allocation8 + $0xe] sm:$0x3 pattern:$0x76325410] }
 0x6b0   :  { %8139 = vmatprep.mubr.bf16.mxu0 %v7478_v41  ;;  %8179 = vmatprep.mubr.bf16.mxu1 %v7480_v49  ;;  %v7482_v21 = vpack.c.bf16 %v7448_v52, %v7448_v52  ;;  %v10719_v39 = vld.sshfl [vmem:[#allocation8 + $0x1e] sm:$0x3 pattern:$0x76325410]  ;;  %v13138_v0 = vld [vmem:[%s18359_s8 + $0x228] sm:$0xff]   ;;  %v13139_v60 = vld [vmem:[%s18359_s8 + $0x230] sm:$0xff]  }
 0x6b1   :  { %8140 = vmatmul.mubr.bf16.vlgmr.msra.gmra.mrb[104].mxu0 %v7477_v19  ;;  %11183 = vmatpush3.bf16.msra.mxu1 %v13106_v13  ;;  %v7481_v48 = vpack.c.bf16 %v7447_v18, %v7447_v18  ;;  %v10718_v57 = vld.sshfl [vmem:[#allocation8 + $0x1a] sm:$0x3 pattern:$0x76325410]  ;;  %v8300_v27 = vld [vmem:[#allocation9 + $0x1] sm:$0x3] }
 0x6b2   :  { %11203 = vmatpush3.bf16.msra.mxu0 %v13104_v12  ;;  %8219 = vmatprep.mubr.bf16.mxu0 %v7482_v21  ;;  %v10716_v31 = vld.sshfl [vmem:[#allocation8 + $0xa] sm:$0x3 pattern:$0x76325410]  ;;  %v7450_v55 = vcombine.low %v10718_v57, %v10719_v39  ;;  %v13140_v3 = vld [vmem:[%s18359_s8 + $0x238] sm:$0xff]   ;;  %v13365_v9 = vmov 0  }
 0x6b3   :  { %11204 = vmatprep.subr.bf16.mxu0 %v13107_v62  ;;  %11184 = vmatprep.subr.bf16.mxu1 %v13109_v17  ;;  %v7449_v43 = vcombine.low %v10716_v31, %v10717_v45  ;;  %v8326_v30 = vld [vmem:[#allocation9 + $0xd] sm:$0x3]  ;;  %v8302_v37 = vld [vmem:[#allocation9 + $0x11] sm:$0x3]  ;;  %v8328_v16 = vld [vmem:[#allocation9 + $0x1d] sm:$0x3] }
 0x6b4   :  { %v7464_v33 = vrot.slane %v7450_v55, %v17607_v14  ;;  %8337 = vrot.lane.b32.xlu0 %v8300_v27, %s18408_s25  ;;  %8387 = vrot.lane.b32.xlu1 %v8326_v30, %s18408_s25  ;;  %v13141_v52 = vld [vmem:[%s18361_s10 + $0xc0] sm:$0xff]   ;;  %v13143_v19 = vld [vmem:[%s18361_s10 + $0xc8] sm:$0xff]  }
 0x6b5   :  { %11185 = vmatpush3.bf16.msra.mxu1 %v13110_v35  ;;  %v7457_v28 = vrot.slane %v7449_v43, %v17607_v14  ;;  %13005 = vset.pattern.permute.xlu0 %v13365_v9  ;;  %v13142_v13 = vld [vmem:[%s18361_s10 + $0x80] sm:$0xff]   ;;  %v13144_v41 = vld [vmem:[%s18361_s10 + $0x88] sm:$0xff]   ;;  %v13149_v45 = vld [vmem:[%s18361_s10 + $0xd8] sm:$0xff]  }
 0x6b6   :  { %11205 = vmatpush3.bf16.msra.mxu0 %v13108_v44  ;;  %11186 = vmatprep.subr.bf16.mxu1 %v13113_v23  ;;  %v10728_v62 = vld [vmem:[%s18360_s9] ss:$0 sm:$0xff]  ;;  %v13151_v31 = vld [vmem:[%s18361_s10 + $0x98] sm:$0xff]   ;;  %v13152_v55 = vld [vmem:[%s18361_s10 + $0x8] sm:$0xff]  }
 0x6b7   :  { %11206 = vmatprep.subr.bf16.mxu0 %v13111_v50  ;;  %v7465_v2 = vcombine.low %v7457_v28, %v7464_v33  ;;  %v13153_v33 = vld [vmem:[%s18361_s10 + $0xe0] sm:$0xff]  }
 0x6b8   :  { %8341 = vrot.lane.b32.xlu0 %v8302_v37, %s18408_s25  ;;  %8391 = vrot.lane.b32.xlu1 %v8328_v16, %s18408_s25  ;;  %v13156_v37 = vld [vmem:[%s18361_s10 + $0x10] sm:$0xff]   ;;  %v13157_v16 = vld [vmem:[%s18361_s10 + $0xe8] sm:$0xff]  }
 0x6b9   :  { %11187 = vmatpush3.bf16.msra.mxu1 %v13114_v40  ;;  %v7483_v56 = vpack.c.bf16 %v7465_v2, %v7465_v2  ;;  %v13154_v2 = vld [vmem:[%s18361_s10 + $0x50] sm:$0xff]  }
 0x6ba   :  { %11207 = vmatpush3.bf16.msra.mxu0 %v13112_v58  ;;  %11188 = vmatprep.subr.bf16.mxu1 %v13117_v38 }
 0x6bb   :  { %11208 = vmatprep.subr.bf16.mxu0 %v13115_v5 }
 0x6bd   :  { %11189 = vmatpush3.bf16.msra.mxu1 %v13118_v36 }
 0x6be   :  { %11209 = vmatpush3.bf16.msra.mxu0 %v13116_v24  ;;  %11190 = vmatprep.subr.bf16.mxu1 %v13121_v11 }
 0x6bf   :  { %11210 = vmatprep.subr.bf16.mxu0 %v13119_v20 }
 0x6c1   :  { %11191 = vmatpush3.bf16.msra.mxu1 %v13122_v42 }
 0x6c2   :  { %11211 = vmatpush3.bf16.msra.mxu0 %v13120_v25  ;;  %11192 = vmatprep.subr.bf16.mxu1 %v13125_v22 }
 0x6c3   :  { %11212 = vmatprep.subr.bf16.mxu0 %v13123_v32 }
 0x6c5   :  { %11193 = vmatpush3.bf16.msra.mxu1 %v13126_v51 }
 0x6c6   :  { %11213 = vmatpush3.bf16.msra.mxu0 %v13124_v47  ;;  %11194 = vmatprep.subr.bf16.mxu1 %v13129_v10 }
 0x6c7   :  { %11214 = vmatprep.subr.bf16.mxu0 %v13127_v46 }
 0x6c9   :  { %11195 = vmatpush3.bf16.msra.mxu1 %v13130_v29 }
 0x6ca   :  { %11215 = vmatpush3.bf16.msra.mxu0 %v13128_v4  ;;  %11398 = vmatprep.subr.bf16.mxu1 %v13353_v1 }
 0x6cb   :  { %11216 = vmatprep.subr.bf16.mxu0 %v13131_v59 }
 0x6cc   :  { %8180 = vmatmul.mubr.bf16.vlgmr.msra.gmra.mrb[32].mxu1 %v7479_v6  ;;  %v13147_v6 = vld [vmem:[%s18361_s10 + $0x90] sm:$0xff]  }
 0x6cd   :  { %11399 = vmatpush3.bf16.msra.mxu1 %v13133_v15  ;;  %11414 = vmatprep.mubr.msk.bf16.mxu1 %vm13364_vm1, %v13353_v1  ;;  %v13145_v15 = vld [vmem:[%s18361_s10 + $0xd0] sm:$0xff]  }
 0x6ce   :  { %11217 = vmatpush3.bf16.msra.mxu0 %v13132_v34  ;;  %11400 = vmatprep.subr.bf16.mxu1 %v13353_v1  ;;  %v13146_v34 = vld [vmem:[%s18361_s10 + $0x40] sm:$0xff]  }
 0x6cf   :  { %11233 = vmatprep.subr.bf16.mxu0 %v13146_v34 }
 0x6d1   :  { %8220 = vmatmul.mubr.bf16.vlgmr.msra.gmra.mrb[108].mxu0 %v7481_v48  ;;  %11401 = vmatpush3.bf16.msra.mxu1 %v13134_v63  ;;  %v13148_v48 = vld [vmem:[%s18361_s10] sm:$0xff]  }
 0x6d2   :  { %11402 = vmatprep.subr.bf16.mxu1 %v13353_v1  ;;  %11234 = vmatpush3.bf16.msra.mxu0 %v13148_v48 }
 0x6d5   :  { %11403 = vmatpush3.bf16.msra.mxu1 %v13135_v53 }
 0x6d6   :  { %11404 = vmatprep.subr.bf16.mxu1 %v13353_v1 }
 0x6d9   :  { %11405 = vmatpush3.bf16.msra.mxu1 %v13136_v61 }
 0x6da   :  { %11406 = vmatprep.subr.bf16.mxu1 %v13353_v1 }
 0x6dd   :  { %11407 = vmatpush3.bf16.msra.mxu1 %v13137_v54 }
 0x6de   :  { %11408 = vmatprep.subr.bf16.mxu1 %v13353_v1 }
 0x6e1   :  { %11409 = vmatpush3.bf16.msra.mxu1 %v13138_v0  ;;  %v13150_v0 = vld [vmem:[%s18361_s10 + $0x48] sm:$0xff]  }
 0x6e2   :  { %11410 = vmatprep.subr.bf16.mxu1 %v13353_v1  ;;  %11235 = vmatprep.subr.bf16.mxu0 %v13150_v0 }
 0x6e3   :  { %11236 = vmatpush3.bf16.msra.mxu0 %v13152_v55 }
 0x6e4   :  { %11237 = vmatprep.subr.bf16.mxu0 %v13154_v2 }
 0x6e5   :  { %11411 = vmatpush3.bf16.msra.mxu1 %v13139_v60 }
 0x6e6   :  { %11412 = vmatprep.subr.bf16.mxu1 %v13353_v1 }
 0x6e7   :  { %11238 = vmatpush3.bf16.msra.mxu0 %v13156_v37 }
 0x6e9   :  { %11413 = vmatpush3.bf16.msra.mxu1 %v13140_v3 }
 0x6ea   :  { %11255 = vmatprep.subr.bf16.mxu1 %v13141_v52  ;;  %v13158_v52 = vld [vmem:[%s18361_s10 + $0x58] sm:$0xff]  }
 0x6eb   :  { %11239 = vmatprep.subr.bf16.mxu0 %v13158_v52 }
 0x6ec   :  { %11415 = vmatmul.mubr.bf16.vlgmr.msra.gmra.mrb[36].mxu1 %v7483_v56  ;;  %v13155_v56 = vld [vmem:[%s18361_s10 + $0xa0] sm:$0xff]  }
 0x6ed   :  { %11256 = vmatpush3.bf16.msra.mxu1 %v13142_v13  ;;  %v13159_v13 = vld [vmem:[%s18361_s10 + $0xa8] sm:$0xff]  }
 0x6ee   :  { %11257 = vmatprep.subr.bf16.mxu1 %v13143_v19  ;;  %v13160_v19 = vld [vmem:[%s18361_s10 + $0x18] sm:$0xff]  }
 0x6ef   :  { %11240 = vmatpush3.bf16.msra.mxu0 %v13160_v19 }
 0x6f1   :  { %11258 = vmatpush3.bf16.msra.mxu1 %v13144_v41  ;;  %v13161_v41 = vld [vmem:[%s18361_s10 + $0xf0] sm:$0xff]  }
 0x6f2   :  { %11259 = vmatprep.subr.bf16.mxu1 %v13145_v15 }
 0x6f5   :  { %11260 = vmatpush3.bf16.msra.mxu1 %v13147_v6 }
 0x6f6   :  { %11261 = vmatprep.subr.bf16.mxu1 %v13149_v45 }
 0x6f9   :  { %11262 = vmatpush3.bf16.msra.mxu1 %v13151_v31 }
 0x6fa   :  { %11263 = vmatprep.subr.bf16.mxu1 %v13153_v33 }
 0x6fd   :  { %11264 = vmatpush3.bf16.msra.mxu1 %v13155_v56  ;;  %v8296_v56 = vld [vmem:[#allocation9] sm:$0x3] }
 0x6fe   :  { %11265 = vmatprep.subr.bf16.mxu1 %v13157_v16  ;;  %v8304_v16 = vld [vmem:[#allocation9 + $0x2] sm:$0x3] }
 0x701   :  { %11266 = vmatpush3.bf16.msra.mxu1 %v13159_v13 }
 0x702   :  { %11267 = vmatprep.subr.bf16.mxu1 %v13161_v41 }
 0x77f   :  { %v11152_v49 = vpop.f32.mrb[28].mxu1 }
 0x780   :  { %v11153_v12 = vpop.f32.mrb[29].mxu1 }
 0x781   :  { %v11154_v17 = vadd.f32 %v11153_v12, %v11152_v49  ;;  %v11155_v21 = vpop.f32.mrb[30].mxu1  ;;  %v13162_v49 = vld [vmem:[%s18361_s10 + $0x60] sm:$0xff]  }
 0x782   :  { %v11156_v35 = vpop.f32.mrb[31].mxu1  ;;  %v13164_v21 = vld [vmem:[%s18361_s10 + $0x20] sm:$0xff]   ;;  %11241 = vmatprep.subr.bf16.mxu0 %v13162_v49 }
 0x783   :  { %v8102_v44 = vadd.f32 %v11154_v17, %v10728_v62  ;;  %v13163_v17 = vld [vmem:[%s18361_s10 + $0xb0] sm:$0xff]   ;;  %v13165_v35 = vld [vmem:[%s18361_s10 + $0xf8] sm:$0xff]   ;;  %11242 = vmatpush3.bf16.msra.mxu0 %v13164_v21 }
 0x784   :  { %v11174_v23 = vpop.f32.mrb[104].mxu0  ;;  %11268 = vmatpush3.bf16.msra.mxu1 %v13163_v17 }
 0x785   :  { %v11175_v50 = vpop.f32.mrb[105].mxu0  ;;  %11269 = vmatprep.subr.bf16.mxu1 %v13165_v35 }
 0x786   :  { %v11176_v40 = vadd.f32 %v11175_v50, %v11174_v23  ;;  %v11177_v58 = vpop.f32.mrb[106].mxu0 }
 0x787   :  { %v11178_v38 = vpop.f32.mrb[107].mxu0  ;;  %v13168_v58 = vld [vmem:[%s18361_s10 + $0x28] sm:$0xff]  }
 0x788   :  { %v8142_v5 = vadd.f32 %v11176_v40, %v8102_v44  ;;  %v13166_v44 = vld [vmem:[%s18361_s10 + $0x68] sm:$0xff]   ;;  %v13167_v40 = vld [vmem:[%s18361_s10 + $0xb8] sm:$0xff]   ;;  %v13169_v38 = vld [vmem:[%s18361_s10 + $0x70] sm:$0xff]  }
 0x789   :  { %11243 = vmatprep.subr.bf16.mxu0 %v13166_v44  ;;  %11270 = vmatpush3.bf16.msra.mxu1 %v13167_v40 }
 0x78a   :  { %11244 = vmatpush3.bf16.msra.mxu0 %v13168_v58  ;;  %11418 = vmatprep.subr.bf16.mxu1 %v13353_v1 }
 0x78b   :  { %11245 = vmatprep.subr.bf16.mxu0 %v13169_v38  ;;  %v8306_v38 = vld [vmem:[#allocation9 + $0x12] sm:$0x3] }
 0x79f   :  { %v11196_v36 = vpop.f32.mrb[32].mxu1 }
 0x7a0   :  { %v11197_v24 = vpop.f32.mrb[33].mxu1 }
 0x7a1   :  { %v11198_v11 = vadd.f32 %v11197_v24, %v11196_v36  ;;  %v11199_v20 = vpop.f32.mrb[34].mxu1  ;;  %v9012_v24 = vld [vmem:[%s18417_s2] sm:$0x3] }
 0x7a2   :  { %v11200_v42 = vpop.f32.mrb[35].mxu1  ;;  %v13172_v20 = vld [vmem:[%s18361_s10 + $0x78] sm:$0xff]  }
 0x7a3   :  { %v8182_v25 = vadd.f32 %v11198_v11, %v8142_v5  ;;  %v13171_v11 = vld [vmem:[%s18361_s10 + $0x30] sm:$0xff]   ;;  %v13174_v42 = vld [vmem:[%s18361_s10 + $0x38] sm:$0xff]  }
 0x7a4   :  { %v11218_v22 = vpop.f32.mrb[108].mxu0  ;;  %11246 = vmatpush3.bf16.msra.mxu0 %v13171_v11 }
 0x7a5   :  { %v11219_v32 = vpop.f32.mrb[109].mxu0  ;;  %11247 = vmatprep.subr.bf16.mxu0 %v13172_v20 }
 0x7a6   :  { %v11220_v51 = vadd.f32 %v11219_v32, %v11218_v22  ;;  %v11221_v47 = vpop.f32.mrb[110].mxu0  ;;  %v8338_v22 = vpop.permute.xlu0 %8337 }
 0x7a7   :  { %v11222_v10 = vpop.f32.mrb[111].mxu0  ;;  %v8388_v32 = vpop.permute.xlu1 %8387  ;;  %v8397_v17 = vsel %vm4227_vm9, %v8296_v56, %v8338_v22 }
 0x7a8   :  { %v8222_v46 = vadd.f32 %v11220_v51, %v8182_v25  ;;  %11248 = vmatpush3.bf16.msra.mxu0 %v13174_v42  ;;  %v13366_v25 = vmov 0.0|0.0  }
 0x7a9   :  { %11451 = vmatprep.subr.bf16.mxu0 %v13366_v25 }
 0x7aa   :  { %v8342_v51 = vpop.permute.xlu0 %8341 }
 0x7ab   :  { %v8392_v47 = vpop.permute.xlu1 %8391 }
 0x7bf   :  { %v8261_v29 = vpop.f32.mrb[36].mxu1 }
 0x7c0   :  { %v8262_v4 = vadd.f32 %v8261_v29, %v8222_v46  ;;  %v11416_v7 = vpop.f32.mrb[37].mxu1 }
 0x7c1   :  { %v8264_v59 = vpop.f32.mrb[38].mxu1  ;;  %v8322_v7 = vld [vmem:[#allocation9 + $0xc] sm:$0x3] }
 0x7c2   :  { %v8267_v18 = vmax.f32 %v8262_v4, 0.0  ;;  %v11417_v63 = vpop.f32.mrb[39].mxu1  ;;  %v8410_v48 = vsel %vm4227_vm9, %v8322_v7, %v8388_v32 }
 0x7c4   :  { %v8269_v53 = vcombine.high %v8267_v18, %v8267_v18  ;;  %v8276_v61 = vrot.slane %v8267_v18, %v17607_v14 }
 0x7c6   :  { %v8283_v54 = vrot.slane %v8269_v53, %v17607_v14  ;;  %v8284_v39 = vcombine.high %v8276_v61, %v8276_v61  ;;  %8292 = vst.msk [vmem:[#allocation9 + $0x5] sm:$0x3] %vm8291_vm4, %v8276_v61 }
 0x7c8   :  { %v8285_v57 = vcombine.high %v8283_v54, %v8283_v54  ;;  %8293 = vst.msk [vmem:[#allocation9 + $0x9] sm:$0x3] %vm8291_vm4, %v8284_v39  ;;  %8294 = vst.msk [vmem:[#allocation9 + $0x15] sm:$0x3] %vm8291_vm4, %v8283_v54  ;;  %v8324_v54 = vld [vmem:[#allocation9 + $0x1c] sm:$0x3] }
 0x7c9   :  { %v8412_v33 = vsel %vm4227_vm9, %v8324_v54, %v8392_v47 }
 0x7ca   :  { %8295 = vst.msk [vmem:[#allocation9 + $0x19] sm:$0x3] %vm8291_vm4, %v8285_v57 }
 0x7cd   :  { %v8316_v43 = vld [vmem:[#allocation9 + $0x6] sm:$0x3]  ;;  %v8308_v23 = vld [vmem:[#allocation9 + $0x4] sm:$0x3] }
 0x7ce   :  { %v8301_v60 = vld [vmem:[#allocation9 + $0x5] sm:$0x3]  ;;  %8369 = vrot.lane.b32.xlu0 %v8316_v43, %s18408_s25 }
 0x7cf   :  { %8339 = vrot.lane.b32.xlu1 %v8301_v60, %s18408_s25  ;;  %v8317_v28 = vld [vmem:[#allocation9 + $0xa] sm:$0x3]  ;;  %v8318_v3 = vld [vmem:[#allocation9 + $0x16] sm:$0x3]  ;;  %v8309_v50 = vld [vmem:[#allocation9 + $0x8] sm:$0x3] }
 0x7d0   :  { %v8325_v27 = vld [vmem:[#allocation9 + $0x9] sm:$0x3]  ;;  %v8303_v30 = vld [vmem:[#allocation9 + $0x15] sm:$0x3]  ;;  %v8312_v34 = vld [vmem:[#allocation9 + $0x5] sm:$0x3] }
 0x7d1   :  { %v8327_v12 = vld [vmem:[#allocation9 + $0x19] sm:$0x3]  ;;  %v8310_v5 = vld [vmem:[#allocation9 + $0x14] sm:$0x3]  ;;  %v8313_v59 = vld [vmem:[#allocation9 + $0x9] sm:$0x3] }
 0x7d2   :  { %8373 = vrot.lane.b32.xlu0 %v8318_v3, %s18408_s25  ;;  %v8319_v62 = vld [vmem:[#allocation9 + $0x1a] sm:$0x3]  ;;  %v8311_v36 = vld [vmem:[#allocation9 + $0x18] sm:$0x3]  ;;  %v8321_v6 = vld [vmem:[#allocation9 + $0x8] sm:$0x3] }
 0x7d3   :  { %8371 = vrot.lane.b32.xlu1 %v8317_v28, %s18408_s25  ;;  %v8314_v45 = vld [vmem:[#allocation9 + $0x15] sm:$0x3]  ;;  %v8323_v55 = vld [vmem:[#allocation9 + $0x18] sm:$0x3]  ;;  %v8297_v52 = vld [vmem:[#allocation9 + $0x4] sm:$0x3] }
 0x7d4   :  { %v8315_v60 = vld [vmem:[#allocation9 + $0x19] sm:$0x3]  ;;  %v8307_v20 = vld [vmem:[#allocation9 + $0x16] sm:$0x3] }
 0x7d5   :  { %v10803_v54 = vld.sshfl [vmem:[#allocation9 + $0x1a] sm:$0x3 pattern:$0x76325410] }
 0x7d6   :  { %8385 = vrot.lane.b32.xlu0 %v8325_v27, %s18408_s25 }
 0x7d7   :  { %8343 = vrot.lane.b32.xlu1 %v8303_v30, %s18408_s25 }
 0x7da   :  { %8389 = vrot.lane.b32.xlu0 %v8327_v12, %s18408_s25  ;;  %v8305_v12 = vld [vmem:[#allocation9 + $0x6] sm:$0x3] }
 0x7db   :  { %8375 = vrot.lane.b32.xlu1 %v8319_v62, %s18408_s25 }
 0x7de   :  { %8353 = vrot.lane.b32.xlu0 %v8308_v23, %s18408_s25  ;;  %v8298_v23 = vld [vmem:[#allocation9 + $0x10] sm:$0x3] }
 0x7df   :  { %8355 = vrot.lane.b32.xlu1 %v8309_v50, %s18408_s25  ;;  %v8399_v47 = vsel %vm4227_vm9, %v8298_v23, %v8342_v51  ;;  %v13170_v51 = vld [vmem:[%s18361_s10 + $0x100] sm:$0xff]  }
 0x7e2   :  { %8357 = vrot.lane.b32.xlu0 %v8310_v5, %s18408_s25  ;;  %v8299_v5 = vld [vmem:[#allocation9 + $0x14] sm:$0x3] }
 0x7e3   :  { %8359 = vrot.lane.b32.xlu1 %v8311_v36, %s18408_s25  ;;  %s18418_s25 = sld [smem:[#allocation21_spill]] }
 0x7e6   :  { %9016 = vperm.xlu0 %13005, %v9012_v24  }
 0x840   :  { %v8370_v10 = vpop.permute.xlu0 %8369 }
 0x841   :  { %v8340_v46 = vpop.permute.xlu1 %8339  ;;  %v8405_v53 = vsel %vm4227_vm9, %v8312_v34, %v8370_v10 }
 0x842   :  { %v8398_v21 = vsel %vm4227_vm9, %v8297_v52, %v8340_v46  ;;  %v9024_v52 = vld [vmem:[%s18370_s19 + $0x18] sm:$0xff] }
 0x844   :  { %v8374_v4 = vpop.permute.xlu0 %8373 }
 0x845   :  { %v8372_v29 = vpop.permute.xlu1 %8371  ;;  %v8407_v28 = vsel %vm4227_vm9, %v8314_v45, %v8374_v4 }
 0x846   :  { %v8406_v15 = vsel %vm4227_vm9, %v8313_v59, %v8372_v29 }
 0x847   :  { %v8458_v39 = vcombine.low %v8406_v15, %v8410_v48 }
 0x848   :  { %v8386_v18 = vpop.permute.xlu0 %8385 }
 0x849   :  { %v8344_v63 = vpop.permute.xlu1 %8343  ;;  %v8409_v61 = vsel %vm4227_vm9, %v8321_v6, %v8386_v18  ;;  %v8472_v27 = vrot.slane %v8458_v39, %v17607_v14  ;;  %v10802_v39 = vld.sshfl [vmem:[#allocation9 + $0xe] sm:$0x3 pattern:$0x76325410] }
 0x84a   :  { %v8434_v57 = vcombine.low %v8405_v53, %v8409_v61  ;;  %v8400_v10 = vsel %vm4227_vm9, %v8299_v5, %v8344_v63  ;;  %v10804_v63 = vld.sshfl [vmem:[#allocation9 + $0x1e] sm:$0x3 pattern:$0x76325410]  ;;  %v13185_v5 = vld [vmem:[%s18363_s12 + $0x24] ss:$16 sps:$4 sm:$0xff]  }
 0x84c   :  { %v8448_v0 = vrot.slane %v8434_v57, %v17607_v14  ;;  %v8390_v31 = vpop.permute.xlu0 %8389  ;;  %v13173_v57 = vld [vmem:[%s18361_s10 + $0x108] sm:$0xff]  }
 0x84d   :  { %v8376_v43 = vpop.permute.xlu1 %8375  ;;  %v8411_v3 = vsel %vm4227_vm9, %v8323_v55, %v8390_v31  ;;  %v10801_v31 = vld.sshfl [vmem:[#allocation9 + $0xa] sm:$0x3 pattern:$0x76325410]  ;;  %v8566_v55 = vcombine.low %v10803_v54, %v10804_v63 }
 0x84e   :  { %v8408_v2 = vsel %vm4227_vm9, %v8315_v60, %v8376_v43  ;;  %v8482_v30 = vcombine.low %v8407_v28, %v8411_v3  ;;  %v10806_v13 = vcombine.low %v8448_v0, %v8472_v27  ;;  %v9021_v43 = vld [vmem:[%s18370_s19] sm:$0xff]  ;;  %v9022_v60 = vld [vmem:[%s18370_s19 + $0x8] sm:$0xff]  ;;  %v8565_v3 = vcombine.low %v10801_v31, %v10802_v39  ;;  %v13175_v27 = vld [vmem:[%s18361_s10 + $0x110] sm:$0xff]  }
 0x84f   :  { %v8506_v37 = vcombine.low %v8408_v2, %v8412_v33 }
 0x850   :  { %v8496_v19 = vrot.slane %v8482_v30, %v17607_v14  ;;  %v8354_v49 = vpop.permute.xlu0 %8353  ;;  %v8546_v22 = vrot.slane %v10806_v13, %v17607_v14  ;;  %v11452_v30 = vpack.c.bf16 %v9022_v60, %v9021_v43  ;;  %v8573_v13 = vrot.slane %v8565_v3, %v17607_v14  ;;  %v13195_v3 = vld [vmem:[%s18363_s12 + $0x44] ss:$16 sps:$4 sm:$0xff]  }
 0x851   :  { %v8520_v41 = vrot.slane %v8506_v37, %v17607_v14  ;;  %v8356_v62 = vpop.permute.xlu1 %8355  ;;  %v8401_v35 = vsel %vm4227_vm9, %v8304_v16, %v8354_v49  ;;  %v8580_v37 = vrot.slane %v8566_v55, %v17607_v14  ;;  %v9023_v16 = vld [vmem:[%s18370_s19 + $0x10] sm:$0xff] }
 0x852   :  { %v8402_v44 = vsel %vm4227_vm9, %v8305_v12, %v8356_v62  ;;  %v8433_v40 = vcombine.low %v8397_v17, %v8401_v35  ;;  %v9025_v12 = vld [vmem:[%s18370_s19 + $0x20] sm:$0xff]  ;;  %v9028_v35 = vld [vmem:[%s18370_s19 + $0x38] sm:$0xff] }
 0x853   :  { %v10808_v50 = vcombine.low %v8496_v19, %v8520_v41  ;;  %v8457_v58 = vcombine.low %v8398_v21, %v8402_v44  ;;  %v13176_v19 = vld [vmem:[%s18361_s10 + $0x118] sm:$0xff]   ;;  %v11455_v41 = vpack.c.bf16 %v9024_v52, %v9023_v16  ;;  %v8581_v49 = vcombine.low %v8573_v13, %v8580_v37  ;;  %v9027_v21 = vld [vmem:[%s18370_s19 + $0x30] sm:$0xff] }
 0x854   :  { %v8441_v36 = vrot.slane %v8433_v40, %v17607_v14  ;;  %v8358_v11 = vpop.permute.xlu0 %8357  ;;  %v9014_v44 = vand.u32 127, %v7218_v8  ;;  %v11461_v23 = vpack.c.bf16 %v9028_v35, %v9027_v21  ;;  %v9029_v40 = vld [vmem:[%s18370_s19 + $0x40] sm:$0xff]  ;;  %v13204_v16 = vld [vmem:[%s18363_s12 + $0x6c] ss:$16 sps:$4 sm:$0xff]   ;;  %v13202_v13 = vld [vmem:[%s18363_s12 + $0x68] ss:$16 sps:$4 sm:$0xff]  }
 0x855   :  { %v8465_v24 = vrot.slane %v8457_v58, %v17607_v14  ;;  %v8360_v42 = vpop.permute.xlu1 %8359  ;;  %v8560_v32 = vrot.slane %v10808_v50, %v17607_v14  ;;  %v8403_v46 = vsel %vm4227_vm9, %v8306_v38, %v8358_v11  ;;  %v8591_v17 = vpack.c.bf16 %v8581_v49, %v8581_v49  ;;  %v13177_v8 = vld [vmem:[%s18363_s12] ss:$16 sps:$4 sm:$0xff]   ;;  %v13180_v38 = vld [vmem:[%s18363_s12 + $0x8] ss:$16 sps:$4 sm:$0xff]   ;;  %v13201_v37 = vld [vmem:[%s18363_s12 + $0x64] ss:$16 sps:$4 sm:$0xff]  }
 0x856   :  { %v8404_v29 = vsel %vm4227_vm9, %v8307_v20, %v8360_v42  ;;  %v8481_v4 = vcombine.low %v8399_v47, %v8403_v46  ;;  %v13183_v11 = vld [vmem:[%s18363_s12 + $0x20] ss:$16 sps:$4 sm:$0xff]   ;;  %v13186_v20 = vld [vmem:[%s18363_s12 + $0x28] ss:$16 sps:$4 sm:$0xff]   ;;  %v13216_v21 = vld [vmem:[%s18363_s12 + $0xac] ss:$16 sps:$4 sm:$0xff]  }
 0x857   :  { %v8505_v7 = vcombine.low %v8400_v10, %v8404_v29  ;;  %v8564_v59 = vcombine.high %v8546_v22, %v8560_v32  ;;  %v8563_v15 = vcombine.low %v8546_v22, %v8560_v32  ;;  %v10805_v34 = vcombine.low %v8441_v36, %v8465_v24  ;;  %v13188_v36 = vld [vmem:[%s18363_s12 + $0x2c] ss:$16 sps:$4 sm:$0xff]   ;;  %v9104_v24 = vld [vmem:[%s18364_s13] sm:$0xff] }
 0x858   :  { %v8489_v6 = vrot.slane %v8481_v4, %v17607_v14  ;;  %v10860_v42 = vcombine.high %v9104_v24, %v9104_v24  ;;  %v9105_v22 = vld [vmem:[%s18364_s13 + $0x8] sm:$0xff]  ;;  %v13199_v52 = vld [vmem:[%s18363_s12 + $0x60] ss:$16 sps:$4 sm:$0xff]  }
 0x859   :  { %v8513_v18 = vrot.slane %v8505_v7, %v17607_v14  ;;  %v8590_v48 = vpack.c.bf16 %v8564_v59, %v8564_v59  ;;  %v8589_v53 = vpack.c.bf16 %v8563_v15, %v8563_v15  ;;  %v8539_v45 = vrot.slane %v10805_v34, %v17607_v14  ;;  %v10809_v59 = vld [vmem:[%s18362_s11] ss:$0 sm:$0xff] }
 0x85a   :  { %v10862_v32 = vcombine.high %v9105_v22, %v9105_v22  ;;  %v13211_v35 = vld [vmem:[%s18363_s12 + $0xa0] ss:$16 sps:$4 sm:$0xff]  }
 0x85b   :  { %v10807_v61 = vcombine.low %v8489_v6, %v8513_v18  ;;  %8962 = vmatprep.mubr.bf16.mxu1 %v8590_v48 }
 0x85c   :  { %8963 = vmatmul.mubr.bf16.vlgmr.msra.gmra.mrb[40].mxu1 %v8589_v53 }
 0x85d   :  { %11419 = vmatpush3.bf16.msra.mxu1 %v13170_v51  ;;  %v8553_v0 = vrot.slane %v10807_v61, %v17607_v14  ;;  %11426 = vmatprep.mubr.msk.bf16.mxu1 %vm13364_vm1, %v13353_v1  ;;  %v9026_v14 = vld [vmem:[%s18370_s19 + $0x28] sm:$0xff] }
 0x85e   :  { %11420 = vmatprep.subr.bf16.mxu1 %v13353_v1  ;;  %v11458_v62 = vpack.c.bf16 %v9026_v14, %v9025_v12  ;;  %v13205_v12 = vld [vmem:[%s18363_s12 + $0x80] ss:$16 sps:$4 sm:$0xff]   ;;  %v13208_v14 = vld [vmem:[%s18363_s12 + $0x88] ss:$16 sps:$4 sm:$0xff]  }
 0x85f   :  { %v8562_v33 = vcombine.high %v8539_v45, %v8553_v0  ;;  %v8561_v28 = vcombine.low %v8539_v45, %v8553_v0  ;;  %v10859_v45 = vcombine.low %v9104_v24, %v9104_v24  ;;  %v10861_v0 = vcombine.low %v9105_v22, %v9105_v22  ;;  %v13231_v24 = vld [vmem:[%s18366_s15 + $0x4] ss:$8 sps:$4 sm:$0xff]   ;;  %v13234_v22 = vld [vmem:[%s18366_s15 + $0x14] ss:$8 sps:$4 sm:$0xff]  }
 0x861   :  { %11421 = vmatpush3.bf16.msra.mxu1 %v13173_v57  ;;  %v8588_v2 = vpack.c.bf16 %v8562_v33, %v8562_v33  ;;  %v8587_v56 = vpack.c.bf16 %v8561_v28, %v8561_v28  ;;  %v9255_v33 = vsel %vm4464_vm3, %v10859_v45, 0  ;;  %v9261_v28 = vsel %vm4464_vm3, %v10861_v0, 0  ;;  %v13265_v45 = vld [vmem:[%s18366_s15 + $0xc0] ss:$8 sps:$4 sm:$0xff]   ;;  %v13267_v0 = vld [vmem:[%s18366_s15 + $0xc4] ss:$8 sps:$4 sm:$0xff]  }
 0x862   :  { %11422 = vmatprep.subr.bf16.mxu1 %v13353_v1 }
 0x863   :  { %8922 = vmatprep.mubr.bf16.mxu0 %v8588_v2  ;;  %v13198_v2 = vld [vmem:[%s18363_s12 + $0x4c] ss:$16 sps:$4 sm:$0xff]  }
 0x864   :  { %8923 = vmatmul.mubr.bf16.vlgmr.msra.gmra.mrb[112].mxu0 %v8587_v56 }
 0x865   :  { %11423 = vmatpush3.bf16.msra.mxu1 %v13175_v27  ;;  %11453 = vmatpush3.bf16.msra.mxu0 %v11452_v30  ;;  %v9017_v50 = vpop.permute.xlu0 %9016  ;;  %v13193_v27 = vld [vmem:[%s18363_s12 + $0x40] ss:$16 sps:$4 sm:$0xff]   ;;  %v13196_v30 = vld [vmem:[%s18363_s12 + $0x48] ss:$16 sps:$4 sm:$0xff]  }
 0x866   :  { %11424 = vmatprep.subr.bf16.mxu1 %v13353_v1  ;;  %11454 = vmatprep.subr.bf16.mxu0 %v13366_v25  ;;  %vm9018_vm5 = vcmp.eq.s32.totalorder %v9014_v44, %v9017_v50  ;;  %v13214_v44 = vld [vmem:[%s18363_s12 + $0xa8] ss:$16 sps:$4 sm:$0xff]   ;;  %v13222_v50 = vld [vmem:[%s18363_s12 + $0xcc] ss:$16 sps:$4 sm:$0xff]  }
 0x867   :  { %11448 = vmatprep.mubr.msk.f32.mxu0 %vm13364_vm1, %v13353_v1  ;;  %v10847_v58 = vsel %vm9018_vm5, 1.0, %v13353_v1 }
 0x869   :  { %11425 = vmatpush3.bf16.msra.mxu1 %v13176_v19  ;;  %11456 = vmatpush3.bf16.msra.mxu0 %v11455_v41  ;;  %v13207_v19 = vld [vmem:[%s18363_s12 + $0x84] ss:$16 sps:$4 sm:$0xff]   ;;  %v13210_v41 = vld [vmem:[%s18363_s12 + $0x8c] ss:$16 sps:$4 sm:$0xff]  }
 0x86a   :  { %11457 = vmatprep.subr.bf16.mxu0 %v13366_v25 }
 0x86c   :  { %11427 = vmatmul.mubr.msk.bf16.vlgmr.msra.gmra.mrb[44].mxu1 %vm4227_vm9, %v8591_v17  ;;  %v13213_v17 = vld [vmem:[%s18363_s12 + $0xa4] ss:$16 sps:$4 sm:$0xff]  }
 0x86d   :  { %11459 = vmatpush3.bf16.msra.mxu0 %v11458_v62  ;;  %9191 = vmatprep.mubr.bf16.mxu1 %v13365_v9 }
 0x86e   :  { %11460 = vmatprep.subr.bf16.mxu0 %v13366_v25  ;;  %v13179_v25 = vld [vmem:[%s18363_s12 + $0x4] ss:$16 sps:$4 sm:$0xff]  }
 0x86f   :  { %9159 = vmatprep.subr.bf16.mxu1 %v13179_v25 }
 0x870   :  { %9160 = vmatpush1.bf16.msra.mxu1 %v13177_v8  ;;  %v13220_v8 = vld [vmem:[%s18363_s12 + $0xc8] ss:$16 sps:$4 sm:$0xff]  }
 0x871   :  { %11462 = vmatpush3.bf16.msra.mxu0 %v11461_v23  ;;  %9161 = vmatprep.subr.bf16.mxu1 %v13185_v5  ;;  %v13219_v23 = vld [vmem:[%s18363_s12 + $0xc4] ss:$16 sps:$4 sm:$0xff]   ;;  %v13223_v5 = vld [vmem:[%s18363_s12 + $0xe0] ss:$16 sps:$4 sm:$0xff]  }
 0x872   :  { %11446 = vmatprep.subr.mxu0 %v13353_v1  ;;  %v13182_v1 = vld [vmem:[%s18363_s12 + $0xc] ss:$16 sps:$4 sm:$0xff]  }
 0x874   :  { %9162 = vmatpush1.bf16.msra.mxu1 %v13183_v11 }
 0x875   :  { %11447 = vmatpush3.msra.mxu0 %v9029_v40  ;;  %10863 = vmatprep.subr.msk.bf16.mxu1 %vm4464_vm3, %v10860_v42 }
 0x876   :  { %11449 = vmatmul.mubr.msk.f32.vlgmr.msra.gmra.mrb[116].mxu0 %vm4367_vm10, %v10847_v58  ;;  %9200 = vmatprep.subr.bf16.mxu0 %v13182_v1  ;;  %v13217_v58 = vld [vmem:[%s18363_s12 + $0xc0] ss:$16 sps:$4 sm:$0xff]   ;;  %v13228_v1 = vld [vmem:[%s18363_s12 + $0xec] ss:$16 sps:$4 sm:$0xff]  }
 0x877   :  { %9232 = vmatprep.mubr.bf16.mxu0 %v13365_v9  ;;  %9201 = vmatpush1.bf16.msra.mxu0 %v13180_v38  ;;  %v13225_v38 = vld [vmem:[%s18363_s12 + $0xe4] ss:$16 sps:$4 sm:$0xff]  }
 0x878   :  { %9202 = vmatprep.subr.bf16.mxu0 %v13188_v36  ;;  %v13226_v36 = vld [vmem:[%s18363_s12 + $0xe8] ss:$16 sps:$4 sm:$0xff]  }
 0x87b   :  { %9203 = vmatpush1.bf16.msra.mxu0 %v13186_v20  ;;  %v13229_v20 = vld [vmem:[%s18366_s15] ss:$8 sps:$4 sm:$0xff]  }
 0x87c   :  { %10865 = vmatprep.subr.msk.bf16.mxu0 %vm4464_vm3, %v10862_v32  ;;  %v13237_v32 = vld [vmem:[%s18366_s15 + $0x24] ss:$8 sps:$4 sm:$0xff]  }
 0x92f   :  { %v11271_v47 = vpop.f32.mrb[40].mxu1 }
 0x930   :  { %v11272_v10 = vpop.f32.mrb[41].mxu1 }
 0x931   :  { %v11273_v46 = vadd.f32 %v11272_v10, %v11271_v47  ;;  %v11274_v29 = vpop.f32.mrb[42].mxu1  ;;  %v13235_v47 = vld [vmem:[%s18366_s15 + $0x20] ss:$8 sps:$4 sm:$0xff]   ;;  %v13240_v10 = vld [vmem:[%s18366_s15 + $0x34] ss:$8 sps:$4 sm:$0xff]  }
 0x932   :  { %v11275_v4 = vpop.f32.mrb[43].mxu1  ;;  %v13243_v29 = vld [vmem:[%s18366_s15 + $0x44] ss:$8 sps:$4 sm:$0xff]  }
 0x933   :  { %v13241_v4 = vld [vmem:[%s18366_s15 + $0x40] ss:$8 sps:$4 sm:$0xff]  }
 0x937   :  { %v11249_v7 = vpop.f32.mrb[112].mxu0 }
 0x938   :  { %v11250_v15 = vpop.f32.mrb[113].mxu0 }
 0x939   :  { %v11251_v34 = vadd.f32 %v11250_v15, %v11249_v7  ;;  %v11252_v6 = vpop.f32.mrb[114].mxu0  ;;  %v13246_v7 = vld [vmem:[%s18366_s15 + $0x54] ss:$8 sps:$4 sm:$0xff]   ;;  %v13247_v15 = vld [vmem:[%s18366_s15 + $0x60] ss:$8 sps:$4 sm:$0xff]  }
 0x93a   :  { %v11253_v18 = vpop.f32.mrb[115].mxu0  ;;  %v13252_v6 = vld [vmem:[%s18366_s15 + $0x74] ss:$8 sps:$4 sm:$0xff]  }
 0x93b   :  { %v8925_v48 = vadd.f32 %v11251_v34, %v10809_v59  ;;  %v13244_v59 = vld [vmem:[%s18366_s15 + $0x50] ss:$8 sps:$4 sm:$0xff]   ;;  %v13249_v34 = vld [vmem:[%s18366_s15 + $0x64] ss:$8 sps:$4 sm:$0xff]  }
 0x93c   :  { %v13250_v18 = vld [vmem:[%s18366_s15 + $0x70] ss:$8 sps:$4 sm:$0xff]  }
 0x93d   :  { %v8965_v51 = vadd.f32 %v11273_v46, %v8925_v48  ;;  %v13238_v46 = vld [vmem:[%s18366_s15 + $0x30] ss:$8 sps:$4 sm:$0xff]   ;;  %v13253_v48 = vld [vmem:[%s18366_s15 + $0x80] ss:$8 sps:$4 sm:$0xff]  }
 0x93f   :  { %v9004_v53 = vpop.f32.mrb[44].mxu1 }
 0x940   :  { %v9005_v63 = vadd.f32 %v9004_v53, %v8965_v51  ;;  %v11428_v61 = vpop.f32.mrb[45].mxu1  ;;  %v13255_v51 = vld [vmem:[%s18366_s15 + $0x84] ss:$8 sps:$4 sm:$0xff]   ;;  %v13258_v53 = vld [vmem:[%s18366_s15 + $0x94] ss:$8 sps:$4 sm:$0xff]  }
 0x941   :  { %v9007_v54 = vpop.f32.mrb[46].mxu1  ;;  %v13259_v61 = vld [vmem:[%s18366_s15 + $0xa0] ss:$8 sps:$4 sm:$0xff]  }
 0x942   :  { %v9010_v39 = vmax.f32 %v9005_v63, 0.0  ;;  %v11429_v57 = vpop.f32.mrb[47].mxu1  ;;  %v13256_v63 = vld [vmem:[%s18366_s15 + $0x90] ss:$8 sps:$4 sm:$0xff]   ;;  %v13261_v54 = vld [vmem:[%s18366_s15 + $0xa4] ss:$8 sps:$4 sm:$0xff]  }
 0x943   :  { %v13262_v57 = vld [vmem:[%s18366_s15 + $0xb0] ss:$8 sps:$4 sm:$0xff]  }
 0x944   :  { %9011 = vst.msk [vmem:[#allocation10] sm:$0xff] %vm181_vm2, %v9010_v39  ;;  %v13264_v39 = vld [vmem:[%s18366_s15 + $0xb4] ss:$8 sps:$4 sm:$0xff]  }
 0x949   :  { %v9099_v31 = vpop.f32.mrb[116].mxu0 }
 0x94a   :  { %v11450_v55 = vpop.f32.mrb[117].mxu0  ;;  %v9103_v56 = vpack.c.bf16 %v9099_v31, %v9099_v31  ;;  %v13270_v31 = vld [vmem:[%s18366_s15 + $0xd4] ss:$8 sps:$4 sm:$0xff]  }
 0x94b   :  { %v9106_v43 = vld [vmem:[#allocation10] ss:$4 sm:$0x3]  ;;  %v9349_v49 = vld [vmem:[#allocation10 + $0x1] ss:$4 sm:$0x3] }
 0x94c   :  { %v9107_v60 = vpack.c.bf16 %v9106_v43, %v9106_v43  ;;  %v9350_v62 = vpack.c.bf16 %v9349_v49, %v9349_v49  ;;  %v9489_v40 = vld [vmem:[#allocation10 + $0x2] ss:$4 sm:$0x3]  ;;  %v9629_v11 = vld [vmem:[#allocation10 + $0x3] ss:$4 sm:$0x3] }
 0x94d   :  { %v9490_v25 = vpack.c.bf16 %v9489_v40, %v9489_v40  ;;  %v9630_v42 = vpack.c.bf16 %v9629_v11, %v9629_v11  ;;  %v13268_v55 = vld [vmem:[%s18366_s15 + $0xd0] ss:$8 sps:$4 sm:$0xff]   ;;  %v13271_v43 = vld [vmem:[%s18366_s15 + $0xe0] ss:$8 sps:$4 sm:$0xff]  }
 0x94e   :  { %10857 = vmatmul.mubr.msk.bf16.vlgmr.msra.gmra.mrb[48].mxu1 %vm181_vm2, %v9107_v60  ;;  %10858 = vmatmul.mubr.msk.bf16.vlgmr.msra.gmra.mrb[120].mxu0 %vm181_vm2, %v9107_v60  ;;  %v13273_v60 = vld [vmem:[%s18366_s15 + $0xe4] ss:$8 sps:$4 sm:$0xff]  }
 0x94f   :  { %9267 = vmatpush1.bf16.msra.mxu1 %v9255_v33  ;;  %9308 = vmatpush1.bf16.msra.mxu0 %v9261_v28  ;;  %v13276_v33 = vld [vmem:[%s18366_s15 + $0xf4] ss:$8 sps:$4 sm:$0xff]   ;;  %v13274_v28 = vld [vmem:[%s18366_s15 + $0xf0] ss:$8 sps:$4 sm:$0xff]  }
 0x950   :  { %9298 = vmatprep.mubr.bf16.mxu1 %v13365_v9  ;;  %9339 = vmatprep.mubr.bf16.mxu0 %v13365_v9 }
 0x951   :  { %9402 = vmatprep.subr.bf16.mxu1 %v13195_v3  ;;  %9443 = vmatprep.subr.bf16.mxu0 %v13198_v2  ;;  %v13279_v3 = vld [vmem:[%s18366_s15 + $0x104] ss:$8 sps:$4 sm:$0xff]  }
 0x956   :  { %10864 = vmatmul.mubr.msk.bf16.vlgmr.msra.gmra.mrb[52].mxu1 %vm71_vm0, %v9103_v56  ;;  %10866 = vmatmul.mubr.msk.bf16.vlgmr.msra.gmra.mrb[124].mxu0 %vm71_vm0, %v9103_v56 }
 0x957   :  { %9403 = vmatpush1.bf16.msra.mxu1 %v13193_v27  ;;  %9444 = vmatpush1.bf16.msra.mxu0 %v13196_v30 }
 0x958   :  { %9404 = vmatprep.subr.bf16.mxu1 %v13201_v37  ;;  %9445 = vmatprep.subr.bf16.mxu0 %v13204_v16 }
 0x959   :  { %9434 = vmatprep.mubr.bf16.mxu1 %v13365_v9  ;;  %9475 = vmatprep.mubr.bf16.mxu0 %v13365_v9 }
 0x95b   :  { %9405 = vmatpush1.bf16.msra.mxu1 %v13199_v52  ;;  %9446 = vmatpush1.bf16.msra.mxu0 %v13202_v13 }
 0x95c   :  { %9542 = vmatprep.subr.bf16.mxu1 %v13207_v19  ;;  %9583 = vmatprep.subr.bf16.mxu0 %v13210_v41 }
 0x95e   :  { %10875 = vmatmul.mubr.msk.bf16.vlgmr.msra.gmra.mrb[56].mxu1 %vm181_vm2, %v9350_v62  ;;  %10876 = vmatmul.mubr.msk.bf16.vlgmr.msra.gmra.mrb[128].mxu0 %vm181_vm2, %v9350_v62 }
 0x95f   :  { %9543 = vmatpush1.bf16.msra.mxu1 %v13205_v12  ;;  %9584 = vmatpush1.bf16.msra.mxu0 %v13208_v14 }
 0x960   :  { %9544 = vmatprep.subr.bf16.mxu1 %v13213_v17  ;;  %9585 = vmatprep.subr.bf16.mxu0 %v13216_v21 }
 0x961   :  { %9574 = vmatprep.mubr.bf16.mxu1 %v13365_v9  ;;  %9615 = vmatprep.mubr.bf16.mxu0 %v13365_v9 }
 0x963   :  { %9545 = vmatpush1.bf16.msra.mxu1 %v13211_v35  ;;  %9586 = vmatpush1.bf16.msra.mxu0 %v13214_v44 }
 0x964   :  { %9682 = vmatprep.subr.bf16.mxu1 %v13219_v23  ;;  %9723 = vmatprep.subr.bf16.mxu0 %v13222_v50 }
 0x966   :  { %10885 = vmatmul.mubr.msk.bf16.vlgmr.msra.gmra.mrb[60].mxu1 %vm181_vm2, %v9490_v25  ;;  %10886 = vmatmul.mubr.msk.bf16.vlgmr.msra.gmra.mrb[132].mxu0 %vm181_vm2, %v9490_v25 }
 0x967   :  { %9683 = vmatpush1.bf16.msra.mxu1 %v13217_v58  ;;  %9724 = vmatpush1.bf16.msra.mxu0 %v13220_v8 }
 0x968   :  { %9684 = vmatprep.subr.bf16.mxu1 %v13225_v38  ;;  %9725 = vmatprep.subr.bf16.mxu0 %v13228_v1 }
 0x969   :  { %9714 = vmatprep.mubr.bf16.mxu1 %v13365_v9  ;;  %9755 = vmatprep.mubr.bf16.mxu0 %v13365_v9  ;;  %v13232_v9 = vld [vmem:[%s18366_s15 + $0x10] ss:$8 sps:$4 sm:$0xff]  }
 0x96b   :  { %9685 = vmatpush1.bf16.msra.mxu1 %v13223_v5  ;;  %9726 = vmatpush1.bf16.msra.mxu0 %v13226_v36 }
 0x96c   :  { %10198 = vmatprep.subr.bf16.mxu1 %v13231_v24 }
 0x96e   :  { %10895 = vmatmul.mubr.msk.bf16.vlgmr.msra.gmra.mrb[64].mxu1 %vm181_vm2, %v9630_v42  ;;  %10896 = vmatmul.mubr.msk.bf16.vlgmr.msra.gmra.mrb[136].mxu0 %vm181_vm2, %v9630_v42 }
 0x96f   :  { %10199 = vmatpush1.bf16.msra.mxu1 %v13229_v20 }
 0x970   :  { %10200 = vmatprep.subr.bf16.mxu1 %v13234_v22 }
 0x973   :  { %10201 = vmatpush1.bf16.msra.mxu1 %v13232_v9 }
 0x974   :  { %10202 = vmatprep.subr.bf16.mxu1 %v13237_v32 }
 0x977   :  { %10203 = vmatpush1.bf16.msra.mxu1 %v13235_v47 }
 0x978   :  { %10204 = vmatprep.subr.bf16.mxu1 %v13240_v10 }
 0x97b   :  { %10205 = vmatpush1.bf16.msra.mxu1 %v13238_v46 }
 0x97c   :  { %10206 = vmatprep.subr.bf16.mxu1 %v13243_v29 }
 0x97f   :  { %10207 = vmatpush1.bf16.msra.mxu1 %v13241_v4 }
 0x980   :  { %10208 = vmatprep.subr.bf16.mxu1 %v13246_v7 }
 0x983   :  { %10209 = vmatpush1.bf16.msra.mxu1 %v13244_v59 }
 0x984   :  { %10210 = vmatprep.subr.bf16.mxu1 %v13249_v34 }
 0x987   :  { %10211 = vmatpush1.bf16.msra.mxu1 %v13247_v15 }
 0x988   :  { %10212 = vmatprep.subr.bf16.mxu1 %v13252_v6  ;;  %v18216_v6 = vsub.s32 0, %v17600_v26 }
 0x98b   :  { %10213 = vmatpush1.bf16.msra.mxu1 %v13250_v18  ;;  %v9780_v18 = vsub.s32 2, %v17600_v26 }
 0x98c   :  { %10214 = vmatprep.subr.bf16.mxu1 %v13255_v51  ;;  %v18223_v51 = vsub.s32 1, %v17600_v26 }
 0x98f   :  { %10215 = vmatpush1.bf16.msra.mxu1 %v13253_v48  ;;  %v9768_v48 = vld [vmem:[%s18365_s14] sm:$0xf] }
 0x990   :  { %10216 = vmatprep.subr.bf16.mxu1 %v13258_v53  ;;  %v9784_v53 = vsub.s32 3, %v17600_v26 }
 0x993   :  { %10217 = vmatpush1.bf16.msra.mxu1 %v13256_v63  ;;  %v9773_v63 = vrot.slane %v9768_v48, %v18216_v6 }
 0x994   :  { %10218 = vmatprep.subr.bf16.mxu1 %v13261_v54 }
 0x997   :  { %10219 = vmatpush1.bf16.msra.mxu1 %v13259_v61  ;;  %v9781_v61 = vrot.slane %v9768_v48, %v9780_v18  ;;  %v9866_v18 = vld [vmem:[%s18418_s25] sm:$0x3] }
 0x998   :  { %10220 = vmatprep.subr.bf16.mxu1 %v13264_v39 }
 0x99b   :  { %10221 = vmatpush1.bf16.msra.mxu1 %v13262_v57  ;;  %v9777_v57 = vrot.slane %v9768_v48, %v18223_v51 }
 0x99c   :  { %10222 = vmatprep.subr.bf16.mxu1 %v13267_v0 }
 0x99f   :  { %10223 = vmatpush1.bf16.msra.mxu1 %v13265_v45  ;;  %v9785_v45 = vrot.slane %v9768_v48, %v9784_v53  ;;  %v9871_v48 = vrot.slane %v9866_v18, %v18216_v6  ;;  %v10294_v53 = vld [vmem:[%s18419_s27] sm:$0x3] }
 0x9a0   :  { %10224 = vmatprep.subr.bf16.mxu1 %v13270_v31 }
 0x9a3   :  { %10225 = vmatpush1.bf16.msra.mxu1 %v13268_v55 }
 0x9a4   :  { %10226 = vmatprep.subr.bf16.mxu1 %v13273_v60 }
 0x9a7   :  { %10227 = vmatpush1.bf16.msra.mxu1 %v13271_v43 }
 0x9a8   :  { %10228 = vmatprep.subr.bf16.mxu1 %v13276_v33 }
 0x9ab   :  { %10229 = vmatpush1.bf16.msra.mxu1 %v13274_v28 }
 0x9ac   :  { %10239 = vmatprep.subr.bf16.mxu1 %v13279_v3 }
 0xa21   :  { %v9193_v2 = vpop.f32.mrb[48].mxu1  ;;  %v9234_v56 = vpop.f32.mrb[120].mxu0 }
 0xa22   :  { %v9195_v27 = vpop.f32.mrb[49].mxu1  ;;  %v9236_v30 = vpop.f32.mrb[121].mxu0 }
 0xa23   :  { %v9197_v37 = vpop.f32.mrb[50].mxu1  ;;  %v9238_v16 = vpop.f32.mrb[122].mxu0 }
 0xa24   :  { %v9198_v52 = vpop.f32.mrb[51].mxu1  ;;  %v9239_v13 = vpop.f32.mrb[123].mxu0 }
 0xa29   :  { %v9300_v19 = vpop.f32.mrb[52].mxu1  ;;  %v9341_v41 = vpop.f32.mrb[124].mxu0 }
 0xa2a   :  { %v9301_v49 = vadd.f32 %v9300_v19, %v9193_v2  ;;  %v9342_v12 = vadd.f32 %v9341_v41, %v9234_v56  ;;  %v9302_v14 = vpop.f32.mrb[53].mxu1  ;;  %v9343_v62 = vpop.f32.mrb[125].mxu0  ;;  %v13277_v41 = vld [vmem:[%s18366_s15 + $0x100] ss:$8 sps:$4 sm:$0xff]  }
 0xa2b   :  { %v9303_v17 = vadd.f32 %v9302_v14, %v9195_v27  ;;  %v9344_v21 = vadd.f32 %v9343_v62, %v9236_v30  ;;  %v9304_v35 = vpop.f32.mrb[54].mxu1  ;;  %v9345_v44 = vpop.f32.mrb[126].mxu0  ;;  %v13280_v62 = vld [vmem:[%s18366_s15 + $0x110] ss:$8 sps:$4 sm:$0xff]  }
 0xa2c   :  { %v9305_v23 = vpop.f32.mrb[55].mxu1  ;;  %v9346_v50 = vpop.f32.mrb[127].mxu0  ;;  %v13288_v35 = vld [vmem:[%s18366_s15 + $0x134] ss:$8 sps:$4 sm:$0xff]   ;;  %v13286_v44 = vld [vmem:[%s18366_s15 + $0x130] ss:$8 sps:$4 sm:$0xff]  }
 0xa2d   :  { %v13291_v23 = vld [vmem:[%s18366_s15 + $0x144] ss:$8 sps:$4 sm:$0xff]   ;;  %v13289_v50 = vld [vmem:[%s18366_s15 + $0x140] ss:$8 sps:$4 sm:$0xff]  }
 0xa31   :  { %v9436_v40 = vpop.f32.mrb[56].mxu1  ;;  %v9477_v58 = vpop.f32.mrb[128].mxu0 }
 0xa32   :  { %v9484_v8 = vadd.f32 %v9436_v40, %v9301_v49  ;;  %v9486_v25 = vadd.f32 %v9477_v58, %v9342_v12  ;;  %v9438_v38 = vpop.f32.mrb[57].mxu1  ;;  %v9479_v1 = vpop.f32.mrb[129].mxu0  ;;  %v13282_v12 = vld [vmem:[%s18366_s15 + $0x114] ss:$8 sps:$4 sm:$0xff]   ;;  %v13292_v58 = vld [vmem:[%s18366_s15 + $0x150] ss:$8 sps:$4 sm:$0xff]  }
 0xa33   :  { %v9485_v5 = vadd.f32 %v9438_v38, %v9303_v17  ;;  %v9487_v36 = vadd.f32 %v9479_v1, %v9344_v21  ;;  %v9440_v24 = vpop.f32.mrb[58].mxu1  ;;  %v9481_v11 = vpop.f32.mrb[130].mxu0  ;;  %v13285_v17 = vld [vmem:[%s18366_s15 + $0x124] ss:$8 sps:$4 sm:$0xff]   ;;  %v13283_v21 = vld [vmem:[%s18366_s15 + $0x120] ss:$8 sps:$4 sm:$0xff]  }
 0xa34   :  { %v9441_v20 = vpop.f32.mrb[59].mxu1  ;;  %v9482_v42 = vpop.f32.mrb[131].mxu0  ;;  %v13294_v40 = vld [vmem:[%s18366_s15 + $0x154] ss:$8 sps:$4 sm:$0xff]   ;;  %v13298_v1 = vld [vmem:[%s18366_s15 + $0x170] ss:$8 sps:$4 sm:$0xff]  }
 0xa35   :  { %v13300_v38 = vld [vmem:[%s18366_s15 + $0x174] ss:$8 sps:$4 sm:$0xff]   ;;  %v13304_v11 = vld [vmem:[%s18366_s15 + $0x190] ss:$8 sps:$4 sm:$0xff]   ;;  %v13309_v20 = vld [vmem:[%s18366_s15 + $0x1a4] ss:$8 sps:$4 sm:$0xff]  }
 0xa36   :  { %v13306_v24 = vld [vmem:[%s18366_s15 + $0x194] ss:$8 sps:$4 sm:$0xff]   ;;  %v13307_v42 = vld [vmem:[%s18366_s15 + $0x1a0] ss:$8 sps:$4 sm:$0xff]  }
 0xa39   :  { %v9576_v22 = vpop.f32.mrb[60].mxu1  ;;  %v9617_v9 = vpop.f32.mrb[132].mxu0 }
 0xa3a   :  { %v9624_v32 = vadd.f32 %v9576_v22, %v9484_v8  ;;  %v9626_v47 = vadd.f32 %v9617_v9, %v9486_v25  ;;  %v9578_v10 = vpop.f32.mrb[61].mxu1  ;;  %v9619_v46 = vpop.f32.mrb[133].mxu0  ;;  %v13297_v8 = vld [vmem:[%s18366_s15 + $0x164] ss:$8 sps:$4 sm:$0xff]   ;;  %v13295_v25 = vld [vmem:[%s18366_s15 + $0x160] ss:$8 sps:$4 sm:$0xff]  }
 0xa3b   :  { %v9625_v29 = vadd.f32 %v9578_v10, %v9485_v5  ;;  %v9627_v4 = vadd.f32 %v9619_v46, %v9487_v36  ;;  %v9580_v7 = vpop.f32.mrb[62].mxu1  ;;  %v9621_v59 = vpop.f32.mrb[134].mxu0  ;;  %v13303_v5 = vld [vmem:[%s18366_s15 + $0x184] ss:$8 sps:$4 sm:$0xff]   ;;  %v13301_v36 = vld [vmem:[%s18366_s15 + $0x180] ss:$8 sps:$4 sm:$0xff]  }
 0xa3c   :  { %v9581_v15 = vpop.f32.mrb[63].mxu1  ;;  %v9622_v34 = vpop.f32.mrb[135].mxu0  ;;  %v13312_v22 = vld [vmem:[%s18366_s15 + $0x1b4] ss:$8 sps:$4 sm:$0xff]   ;;  %v13310_v9 = vld [vmem:[%s18366_s15 + $0x1b0] ss:$8 sps:$4 sm:$0xff]  }
 0xa3d   :  { %v13318_v10 = vld [vmem:[%s18366_s15 + $0x1d4] ss:$8 sps:$4 sm:$0xff]   ;;  %v13316_v46 = vld [vmem:[%s18366_s15 + $0x1d0] ss:$8 sps:$4 sm:$0xff]  }
 0xa3e   :  { %v13324_v7 = vld [vmem:[%s18366_s15 + $0x1f4] ss:$8 sps:$4 sm:$0xff]   ;;  %v13322_v59 = vld [vmem:[%s18366_s15 + $0x1f0] ss:$8 sps:$4 sm:$0xff]  }
 0xa41   :  { %v9716_v54 = vpop.f32.mrb[64].mxu1  ;;  %v9757_v39 = vpop.f32.mrb[136].mxu0 }
 0xa42   :  { %v9764_v0 = vadd.f32 %v9716_v54, %v9624_v32  ;;  %v9766_v31 = vadd.f32 %v9757_v39, %v9626_v47  ;;  %v9718_v55 = vpop.f32.mrb[65].mxu1  ;;  %v9759_v43 = vpop.f32.mrb[137].mxu0  ;;  %v13315_v32 = vld [vmem:[%s18366_s15 + $0x1c4] ss:$8 sps:$4 sm:$0xff]   ;;  %v13313_v47 = vld [vmem:[%s18366_s15 + $0x1c0] ss:$8 sps:$4 sm:$0xff]   ;;  %v10299_v39 = vrot.slane %v10294_v53, %v18216_v6 }
 0xa43   :  { %v9765_v60 = vadd.f32 %v9718_v55, %v9625_v29  ;;  %v9767_v33 = vadd.f32 %v9759_v43, %v9627_v4  ;;  %v9720_v28 = vpop.f32.mrb[66].mxu1  ;;  %v9761_v3 = vpop.f32.mrb[138].mxu0  ;;  %v13321_v29 = vld [vmem:[%s18366_s15 + $0x1e4] ss:$8 sps:$4 sm:$0xff]   ;;  %v13319_v4 = vld [vmem:[%s18366_s15 + $0x1e0] ss:$8 sps:$4 sm:$0xff]  }
 0xa44   :  { %v9790_v2 = vadd.f32 %v9773_v63, %v9764_v0  ;;  %v18228_v56 = vadd.f32 %v9781_v61, %v9766_v31  ;;  %v9721_v26 = vpop.f32.mrb[67].mxu1  ;;  %v9762_v27 = vpop.f32.mrb[139].mxu0  ;;  %v9875_v63 = vrot.slane %v9866_v18, %v18223_v51  ;;  %v10303_v0 = vrot.slane %v10294_v53, %v18223_v51  ;;  %s13367_s15 = smov [#allocation12]  }
 0xa45   :  { %v9791_v30 = vadd.f32 %v9777_v57, %v9765_v60  ;;  %v9793_v37 = vadd.f32 %v9785_v45, %v9767_v33  ;;  %s10329_s24 = sshll.u32 %s13367_s15, 4  ;;  %s10330_s24 = int_to_ptr.vmem [resolvable:$true] %s10329_s24 }
 0xa46   :  { %v9794_v16 = vmax.f32 %v9790_v2, 0.0  ;;  %v9796_v15 = vmax.f32 %v18228_v56, 0.0  ;;  %s13329_s6 = scalar_lea.vmem %s10330_s24, 64  ;;  %p13334_p1 = scmp.lt.s32.totalorder %s10330_s24, %s10330_s24 }
 0xa47   :  { %v9795_v52 = vmax.f32 %v9791_v30, 0.0  ;;  %v9797_v13 = vmax.f32 %v9793_v37, 0.0  ;;  %p13330_p0 = scmp.ne.s32.totalorder %s10330_s24, %s13329_s6  ;;  %p13335_p2 = scmp.lt.s32.totalorder %s13329_s6, %s13329_s6 }
 0xa48   :  { %v9798_v49 = vpack.c.bf16 %v9794_v16, %v9794_v16  ;;  %v9800_v34 = vpack.c.bf16 %v9796_v15, %v9796_v15 }
 0xa49   :  { %v9799_v19 = vpack.c.bf16 %v9795_v52, %v9795_v52  ;;  %v9801_v14 = vpack.c.bf16 %v9797_v13, %v9797_v13  ;;  %p13336_p3 = por %p13335_p2, %p13334_p1 }
 0xa4b   :  { %10230 = vmatprep.mubr.bf16.mxu1 %v9799_v19  ;;  %p13337_p4 = pnand %p13336_p3, %p13330_p0 }
 0xa4c   :  { %10231 = vmatmul.mubr.bf16.vlgmr.msra.gmra.mrb[68].mxu1 %v9798_v49 }
 0xa4d   :  { %10240 = vmatpush1.bf16.msra.mxu1 %v13277_v41  ;;  %10271 = vmatprep.mubr.bf16.mxu1 %v9801_v14 }
 0xa4e   :  { %10241 = vmatprep.subr.bf16.mxu1 %v13282_v12 }
 0xa51   :  { %10242 = vmatpush1.bf16.msra.mxu1 %v13280_v62 }
 0xa52   :  { %10243 = vmatprep.subr.bf16.mxu1 %v13285_v17 }
 0xa55   :  { %10244 = vmatpush1.bf16.msra.mxu1 %v13283_v21 }
 0xa56   :  { %10245 = vmatprep.subr.bf16.mxu1 %v13288_v35 }
 0xa59   :  { %10246 = vmatpush1.bf16.msra.mxu1 %v13286_v44 }
 0xa5a   :  { %10247 = vmatprep.subr.bf16.mxu1 %v13291_v23 }
 0xa5d   :  { %10248 = vmatpush1.bf16.msra.mxu1 %v13289_v50 }
 0xa5e   :  { %10249 = vmatprep.subr.bf16.mxu1 %v13294_v40 }
 0xa61   :  { %10250 = vmatpush1.bf16.msra.mxu1 %v13292_v58 }
 0xa62   :  { %10251 = vmatprep.subr.bf16.mxu1 %v13297_v8 }
 0xa65   :  { %10252 = vmatpush1.bf16.msra.mxu1 %v13295_v25 }
 0xa66   :  { %10253 = vmatprep.subr.bf16.mxu1 %v13300_v38 }
 0xa69   :  { %10254 = vmatpush1.bf16.msra.mxu1 %v13298_v1 }
 0xa6a   :  { %10255 = vmatprep.subr.bf16.mxu1 %v13303_v5 }
 0xa6d   :  { %10256 = vmatpush1.bf16.msra.mxu1 %v13301_v36 }
 0xa6e   :  { %10257 = vmatprep.subr.bf16.mxu1 %v13306_v24 }
 0xa71   :  { %10258 = vmatpush1.bf16.msra.mxu1 %v13304_v11 }
 0xa72   :  { %10259 = vmatprep.subr.bf16.mxu1 %v13309_v20 }
 0xa75   :  { %10260 = vmatpush1.bf16.msra.mxu1 %v13307_v42 }
 0xa76   :  { %10261 = vmatprep.subr.bf16.mxu1 %v13312_v22 }
 0xa79   :  { %10262 = vmatpush1.bf16.msra.mxu1 %v13310_v9 }
 0xa7a   :  { %10263 = vmatprep.subr.bf16.mxu1 %v13315_v32 }
 0xa7d   :  { %10264 = vmatpush1.bf16.msra.mxu1 %v13313_v47 }
 0xa7e   :  { %10265 = vmatprep.subr.bf16.mxu1 %v13318_v10 }
 0xa81   :  { %10266 = vmatpush1.bf16.msra.mxu1 %v13316_v46 }
 0xa82   :  { %10267 = vmatprep.subr.bf16.mxu1 %v13321_v29 }
 0xa85   :  { %10268 = vmatpush1.bf16.msra.mxu1 %v13319_v4 }
 0xa86   :  { %10269 = vmatprep.subr.bf16.mxu1 %v13324_v7 }
 0xa89   :  { %10270 = vmatpush1.bf16.msra.mxu1 %v13322_v59 }
 0xa8c   :  { %10272 = vmatmul.mubr.bf16.vlgmr.msra.gmra.mrb[68].mxu1 %v9800_v34 }
 0xb5f   :  { %v10273_v61 = vpop.f32.mrb[68].mxu1 }
 0xb60   :  { %v11463_v54 = vadd.f32 %v10273_v61, %v9871_v48  ;;  %v10275_v57 = vpop.f32.mrb[69].mxu1 }
 0xb61   :  { %v11464_v45 = vadd.f32 %v10275_v57, %v9875_v63  ;;  %v10277_v31 = vpop.f32.mrb[70].mxu1 }
 0xb62   :  { %v10280_v55 = vmax.f32 %v11463_v54, 0.0  ;;  %v10278_v43 = vpop.f32.mrb[71].mxu1 }
 0xb63   :  { %v10281_v60 = vmax.f32 %v11464_v45, 0.0 }
 0xb64   :  { %v10306_v33 = vmul.f32 %v10299_v39, %v10280_v55 }
 0xb65   :  { %v10307_v28 = vmul.f32 %v10303_v0, %v10281_v60  ;;  %v10284_v3 = vcombine.low %v10280_v55, %v10281_v60 }
 0xb66   :  { %v10308_v2 = vsel %vm7122_vm15, %v10306_v33, 0.0 }
 0xb67   :  { %v10309_v56 = vsel %vm7122_vm15, %v10307_v28, 0.0  ;;  %10961 = vst.sshfl [vmem:[#allocation12] sm:$0x33 pattern:$0x76325410] %v10284_v3 }
 0xb68   :  { %v10310_v26 = vadd.f32 %v10309_v56, %v10308_v2 }
 0xb6a   :  { %10311 = vadd.xlane.f32.xlu1 %v10310_v26 }
 0xb6b   :  { %13340 = shalt.err (!%p13337_p4)
}
 0xb6c   :  { %s18420_s19 = sld [smem:[#allocation23_spill]] }
 0xb72   :  { %s13341_s4 = scalar_lea.hbm %s18420_s19, 64 }
 0xb73   :  { %p13342_p5 = scmp.ne.s32.totalorder %s18420_s19, %s13341_s4  ;;  %p13345_p6 = scmp.lt.u32.totalorder %s13341_s4, %s18420_s19 }
 0xb75   :  { %p13347_p7 = pnand %p13345_p6, %p13342_p5 }
 0xb77   :  { %13350 = shalt.err (!%p13347_p7)
}
 0xb78   :  { %10332 = dma.vmem_to_hbm [thread:$0]  %s10330_s24, 64, %s18420_s19, [#allocation13]   ;;  %v10962_v6 = vld [vmem:[#allocation11] ss:$0 sm:$0xff]  ;;  %vm10321_vm0 = vcmask 1024  }
 0xb79   :  { %s18421_s30 = sld [smem:[#allocation24_spill]] }
 0xbf7   :  { %v10312_v51 = vpop.xlane.xlu1 %10311 }
 0xbf8   :  { %v10320_v27 = vadd.f32 %v10962_v6, %v10312_v51 }
 0xbfa   :  { %10322 = vst.msk [vmem:[%s18421_s30] sm:$0x3] %vm10321_vm0, %v10320_v27 }
 0xbfb   :  { %13351 = dma.done.wait [#allocation13], 64  }
 0xbfc   :  { %13352 = vsyncadd [#allocation13], 4294967232 }
 0xbfd   :  { %10340 = vsyncpa [#allocation13], 1 }

</bundles_post_ra>
